<compile_context>
chip_gen: v6e
topology: v6e:2x2x1
jax: 0.10.0
libtpu: 0.0.40
codegen_flags: <defaults>
</compile_context>

<pallas_src>
import functools

import numpy as np
import jax
import jax.numpy as jnp
from jax.experimental import pallas as pl
from jax.experimental.pallas import tpu as pltpu

LN_EPS = 1e-5


# --------------------------------------------------------------------------- kernel
def gptj_block_kernel(x_ref, g_ref, b_ref,
                      wq_ref, wo_ref,
                      wfi_ref, bfi_ref,
                      wfo_ref, bfo_ref,
                      o_ref,
                      xln_ref, *acc_scratch,
                      nk_mlp, nk_attn):
    """One (tm, H) row tile of GPTJBlock; reduction chunked along grid axis 1.

    acc_scratch is empty when the output dtype is f32 (we accumulate straight
    into o_ref, saving tm*H*4 B of VMEM); otherwise it holds one f32 accumulator.
    """
    acc_ref = acc_scratch[0] if acc_scratch else o_ref
    k = pl.program_id(1)
    nk = max(nk_mlp, nk_attn)            # static; == pl.num_programs(1)

    # ---- k == 0: LayerNorm (f32), seed accumulator with residual + fc_out bias ----
    @pl.when(k == 0)
    def _():
        x = x_ref[...].astype(jnp.float32)
        mean = jnp.mean(x, axis=-1, keepdims=True)
        cx = x - mean
        var = jnp.mean(cx * cx, axis=-1, keepdims=True)
        xln = cx * jax.lax.rsqrt(var + LN_EPS)
        xln = xln * g_ref[...] + b_ref[...]
        # residual is the LN output (module reassigns x = ln(x) before the add);
        # fc_out bias is added exactly once here instead of in the epilogue.
        acc_ref[...] = xln + bfo_ref[...]
        xln_ref[...] = xln.astype(jnp.bfloat16)      # bf16 copy feeds the MXU

    xb = xln_ref[...]                                # bf16 [tm, H]

    def attn_part():
        # y_chunk = (xln @ wq[:, chunk]) @ wo[chunk, :]
        q = jnp.dot(xb, wq_ref[0], preferred_element_type=jnp.float32)
        return jnp.dot(q.astype(jnp.bfloat16), wo_ref[...],
                       preferred_element_type=jnp.float32)

    def mlp_part():
        # z_chunk = gelu_tanh(xln @ wfi[:, chunk] + bfi[chunk]) @ wfo[chunk, :]
        h = jnp.dot(xb, wfi_ref[0], preferred_element_type=jnp.float32) + bfi_ref[...]
        c0 = 0.7978845608028654  # sqrt(2/pi); gelu approximate='tanh' (tanh on EUP)
        h = 0.5 * h * (1.0 + jnp.tanh(c0 * (h + 0.044715 * h * h * h)))
        return jnp.dot(h.astype(jnp.bfloat16), wfo_ref[...],
                       preferred_element_type=jnp.float32)
    # TODO(synk): nn.Dropout() treated as identity (inference mode); no RNG dropout applied.

    if nk_mlp == nk_attn:
        # Common case: both reductions advance every step -> single RMW of the acc.
        acc_ref[...] += attn_part() + mlp_part()
    else:
        # Decoupled reductions (I not a clean multiple of H, or VMEM forced different
        # chunk widths): each part only runs while it still has chunks left.
        def _do_attn():
            acc_ref[...] += attn_part()

        def _do_mlp():
            acc_ref[...] += mlp_part()

        if nk_attn == nk:
            _do_attn()
        else:
            pl.when(k < nk_attn)(_do_attn)
        if nk_mlp == nk:
            _do_mlp()
        else:
            pl.when(k < nk_mlp)(_do_mlp)

    if acc_scratch:                      # non-f32 output: cast once at the end
        @pl.when(k == nk - 1)
        def _():
            o_ref[...] = acc_ref[...].astype(o_ref.dtype)


# --------------------------------------------------------------- tiling / weight prep
def _vmem_capacity_bytes():
    try:
        return int(pltpu.get_tpu_info().vmem_capacity_bytes)
    except Exception:
        return 64 << 20                  # conservative fallback (v7x-sized VMEM)


def _device_kind():
    try:
        return jax.devices()[0].device_kind.lower()
    except Exception:
        return ""


def _largest_divisor(total, limit, multiple_of):
    """Largest d <= limit with total % d == 0 and d % multiple_of == 0 (None if none)."""
    best = None
    for d in range(1, min(total, limit) + 1):
        if total % d == 0 and d % multiple_of == 0:
            best = d
    return best


def choose_tiling(M, H, I, *, out_dtype=jnp.float32, tm=None, ti=None, th=None):
    """Generation-aware, VMEM-budget-derived tile selection."""
    cap = _vmem_capacity_bytes()
    # ~102 MiB on 128-MiB parts (v5e/v6e), ~51 MiB on 64-MiB v7x.
    vmem_limit = min(int(cap * 0.80), cap - (8 << 20))
    budget = int(vmem_limit * 0.85)      # headroom for compiler temps
    kind = _device_kind()

    out_bytes = np.dtype(out_dtype).itemsize
    acc_bytes = 0 if out_dtype == jnp.float32 else 4   # f32 acc scratch only if needed
    # Per-row VMEM of M-tile-resident buffers:
    #   x (f32, 2 bufs) + out (2 bufs) + bf16 xln scratch [+ f32 acc]
    per_row = (2 * 4 + 2 * out_bytes + 2 + acc_bytes) * H

    if tm is None:
        if cap <= (64 << 20):
            tm_target = 512              # v7x-class: ridge ~310 FLOP/B, 64 MiB VMEM, 2 TCs
        elif "v5" in kind:
            tm_target = 256              # v5e: ridge ~240 FLOP/B
        else:
            tm_target = 1024             # v6e / unknown 128-MiB part: ridge ~655 FLOP/B
        tm_target = min(tm_target, max(16, int(budget * 0.6) // per_row), M)
        tm = (_largest_divisor(M, tm_target, 16)
              or _largest_divisor(M, tm_target, 8)
              or M)

    remaining = max(0, budget - per_row * tm)
    # VMEM bytes per unit of reduction-chunk width: double-buffered bf16 weight panels
    # (in + out projection) + f32/bf16 activation temps of that width.
    unit = 8 * H + 6 * tm

    if th is None:
        th_target = min(H, 512, max(128, (remaining // 4) // max(unit, 1)))
        th = _largest_divisor(H, th_target, 128) or H
    if ti is None:
        remaining2 = max(0, remaining - unit * th)
        ti_target = min(I, 2048, max(128, remaining2 // max(unit, 1)))
        ti = _largest_divisor(I, ti_target, 128) or I

    assert M % tm == 0 and H % th == 0 and I % ti == 0
    return dict(tm=int(tm), ti=int(ti), th=int(th), vmem_limit=int(vmem_limit))


def prepare_params(params, tiling):
    """One-time weight prep: transpose to [in, out], cast to bf16, and pre-tile the
    column-chunked weights so every k-block is one contiguous DMA."""
    H = params["q_proj_w"].shape[0]
    I = params["fc_in_w"].shape[0]
    ti, th = tiling["ti"], tiling["th"]
    nk_mlp, nk_attn = I // ti, H // th

    wq_t = jnp.asarray(params["q_proj_w"].T, jnp.bfloat16)        # [H, H]
    wfi_t = jnp.asarray(params["fc_in_w"].T, jnp.bfloat16)        # [H, I]
    return {
        # column-chunked weights, pre-tiled to [nk, H, chunk] (contiguous per block)
        "wq":  wq_t.reshape(H, nk_attn, th).transpose(1, 0, 2),   # [nk_attn, H, th]
        "wfi": wfi_t.reshape(H, nk_mlp, ti).transpose(1, 0, 2),   # [nk_mlp, H, ti]
        # row-chunked weights are already contiguous per block
        "wo":  jnp.asarray(params["out_proj_w"].T, jnp.bfloat16), # [H, H]
        "wfo": jnp.asarray(params["fc_out_w"].T, jnp.bfloat16),   # [I, H]
        "gamma": params["ln_g"].reshape(1, H).astype(jnp.float32),
        "beta":  params["ln_b"].reshape(1, H).astype(jnp.float32),
        "bfi":   params["fc_in_b"].reshape(1, I).astype(jnp.float32),
        "bfo":   params["fc_out_b"].reshape(1, H).astype(jnp.float32),
    }


# --------------------------------------------------------------------------- wrapper
def gptj_block(x, prep, tiling):
    """x: [B, S, H]. prep: prepare_params(params, tiling). tiling: choose_tiling(...)."""
    B, S, H = x.shape
    M = B * S
    x2 = x.reshape(M, H)

    tm, ti, th = tiling["tm"], tiling["ti"], tiling["th"]
    nk_attn = prep["wq"].shape[0]
    nk_mlp = prep["wfi"].shape[0]
    I = nk_mlp * ti
    nk = max(nk_mlp, nk_attn)
    assert M % tm == 0 and prep["wq"].shape[2] == th and prep["wfi"].shape[2] == ti

    acc_in_out = (x.dtype == jnp.float32)   # f32 output: accumulate straight into o_ref

    # Index maps: a finished reduction keeps its last block index (no re-DMA); its
    # compute is skipped in-kernel by pl.when.
    def _clamped(nk_part, ndim3):
        if nk_part == nk:
            return (lambda i, k: (k, 0, 0)) if ndim3 else (lambda i, k: (k, 0))
        if ndim3:
            return lambda i, k: (jnp.minimum(k, nk_part - 1), 0, 0)
        return lambda i, k: (jnp.minimum(k, nk_part - 1), 0)

    bfi_idx = ((lambda i, k: (0, k)) if nk_mlp == nk
               else (lambda i, k: (0, jnp.minimum(k, nk_mlp - 1))))

    n_i = M // tm
    w_bytes = 2 * (2 * H * H + 2 * H * I)            # bf16 weights, one full stream
    cost = pl.CostEstimate(
        flops=4 * M * H * (H + I),
        transcendentals=M * I,
        bytes_accessed=n_i * w_bytes + 2 * 4 * M * H,   # re-streamed weights + f32 in/out
    )

    scratch = [pltpu.VMEM((tm, H), jnp.bfloat16)]        # LN output (bf16 MXU operand)
    if not acc_in_out:
        scratch.append(pltpu.VMEM((tm, H), jnp.float32)) # f32 accumulator

    kernel = functools.partial(gptj_block_kernel, nk_mlp=nk_mlp, nk_attn=nk_attn)

    out2 = pl.pallas_call(
        kernel,
        out_shape=jax.ShapeDtypeStruct((M, H), x.dtype),
        grid_spec=pltpu.PrefetchScalarGridSpec(
            num_scalar_prefetch=0,
            grid=(n_i, nk),
            in_specs=[
                pl.BlockSpec((tm, H), lambda i, k: (i, 0)),          # x row tile
                pl.BlockSpec((1, H),  lambda i, k: (0, 0)),          # ln gamma
                pl.BlockSpec((1, H),  lambda i, k: (0, 0)),          # ln beta
                pl.BlockSpec((1, H, th), _clamped(nk_attn, True)),   # q_proj^T, pre-tiled
                pl.BlockSpec((th, H),    _clamped(nk_attn, False)),  # out_proj^T row chunk
                pl.BlockSpec((1, H, ti), _clamped(nk_mlp, True)),    # fc_in^T, pre-tiled
                pl.BlockSpec((1, ti),    bfi_idx),                   # fc_in bias chunk
                pl.BlockSpec((ti, H),    _clamped(nk_mlp, False)),   # fc_out^T row chunk
                pl.BlockSpec((1, H),  lambda i, k: (0, 0)),          # fc_out bias
            ],
            out_specs=pl.BlockSpec((tm, H), lambda i, k: (i, 0)),
            scratch_shapes=scratch,
        ),
        compiler_params=pltpu.CompilerParams(
            dimension_semantics=("parallel", "arbitrary"),
            vmem_limit_bytes=tiling["vmem_limit"],
        ),
        cost_estimate=cost,
    )(x2, prep["gamma"], prep["beta"], prep["wq"], prep["wo"],
      prep["wfi"], prep["bfi"], prep["wfo"], prep["bfo"])

    return out2.reshape(B, S, H)


# ------------------------------------------------------------------------- references
def reference_bf16(x, params):
    """Pure-JAX reference with the same numerics as the kernel (bf16 MXU, f32 acc)."""
    mean = jnp.mean(x, axis=-1, keepdims=True)
    var = jnp.mean((x - mean) ** 2, axis=-1, keepdims=True)
    xln = (x - mean) * jax.lax.rsqrt(var + LN_EPS) * params["ln_g"] + params["ln_b"]
    bdot = lambda a, b: jnp.dot(a.astype(jnp.bfloat16), b.astype(jnp.bfloat16),
                                preferred_element_type=jnp.float32)
    y = bdot(bdot(xln, params["q_proj_w"].T), params["out_proj_w"].T)
    h = bdot(xln, params["fc_in_w"].T) + params["fc_in_b"]
    h = jax.nn.gelu(h, approximate=True)
    z = bdot(h, params["fc_out_w"].T) + params["fc_out_b"]
    return y + z + xln


def reference_f32(x, params):
    """Full-precision reference (kernel should match to bf16-quantization level)."""
    mean = jnp.mean(x, axis=-1, keepdims=True)
    var = jnp.mean((x - mean) ** 2, axis=-1, keepdims=True)
    xln = (x - mean) / jnp.sqrt(var + LN_EPS) * params["ln_g"] + params["ln_b"]
    y = (xln @ params["q_proj_w"].T) @ params["out_proj_w"].T
    h = xln @ params["fc_in_w"].T + params["fc_in_b"]
    h = jax.nn.gelu(h, approximate=True)
    z = h @ params["fc_out_w"].T + params["fc_out_b"]
    return y + z + xln


if __name__ == "__main__":
    B, S = 2, 8
    H, I = 512, 2048          # scaled-down 4096 / 16384 (same 4x ratio)
    M = B * S

    key = jax.random.PRNGKey(0)
    ks = jax.random.split(key, 8)
    s_h = 1.0 / jnp.sqrt(H)
    s_i = 1.0 / jnp.sqrt(I)
    params = {
        "ln_g": 1.0 + 0.02 * jax.random.normal(ks[0], (H,), jnp.float32),
        "ln_b": 0.02 * jax.random.normal(ks[1], (H,), jnp.float32),
        "q_proj_w": jax.random.uniform(ks[2], (H, H), jnp.float32, -s_h, s_h),
        "out_proj_w": jax.random.uniform(ks[3], (H, H), jnp.float32, -s_h, s_h),
        "fc_in_w": jax.random.uniform(ks[4], (I, H), jnp.float32, -s_h, s_h),
        "fc_in_b": jax.random.uniform(ks[5], (I,), jnp.float32, -s_h, s_h),
        "fc_out_w": jax.random.uniform(ks[6], (H, I), jnp.float32, -s_i, s_i),
        "fc_out_b": jax.random.uniform(ks[7], (H,), jnp.float32, -s_i, s_i),
    }
    x = jax.random.normal(key, (B, S, H), jnp.float32)

    ref_b = reference_bf16(x, params)
    ref_f = reference_f32(x, params)

    # Config 1: auto (generation/VMEM-aware) tiling.
    tl_auto = choose_tiling(M, H, I, out_dtype=x.dtype)
    prep = prepare_params(params, tl_auto)
    out = jax.block_until_ready(gptj_block(x, prep, tl_auto))
    assert out.shape == (B, S, H)
    assert jnp.allclose(out, ref_b, atol=5e-3, rtol=5e-3), float(jnp.abs(out - ref_b).max())
    assert jnp.allclose(out, ref_f, atol=5e-2, rtol=5e-2), float(jnp.abs(out - ref_f).max())

    # Config 2: forced multi-chunk tiling (nk_mlp=4, nk_attn=2) to exercise the
    # decoupled-reduction path with clamped index maps + pl.when guards.
    tl_chunked = choose_tiling(M, H, I, out_dtype=x.dtype, ti=512, th=256)
    prep2 = prepare_params(params, tl_chunked)
    out2 = jax.block_until_ready(gptj_block(x, prep2, tl_chunked))
    assert jnp.allclose(out2, ref_b, atol=5e-3, rtol=5e-3), float(jnp.abs(out2 - ref_b).max())
    assert jnp.allclose(out2, ref_f, atol=5e-2, rtol=5e-2), float(jnp.abs(out2 - ref_f).max())

    print("KERNEL_OK")
</pallas_src>

<mosaic_0001>
module attributes {stable_mosaic.version = 11 : i64} {
  func.func @gptj_block_kernel(%arg0: i32, %arg1: i32, %arg2: memref<16x512xf32, #tpu.memory_space<vmem>>, %arg3: memref<1x512xf32, #tpu.memory_space<vmem>>, %arg4: memref<1x512xf32, #tpu.memory_space<vmem>>, %arg5: memref<1x512x512xbf16, #tpu.memory_space<vmem>>, %arg6: memref<512x512xbf16, #tpu.memory_space<vmem>>, %arg7: memref<1x512x2048xbf16, #tpu.memory_space<vmem>>, %arg8: memref<1x2048xf32, #tpu.memory_space<vmem>>, %arg9: memref<2048x512xbf16, #tpu.memory_space<vmem>>, %arg10: memref<1x512xf32, #tpu.memory_space<vmem>>, %arg11: memref<16x512xf32, #tpu.memory_space<vmem>>, %arg12: memref<16x512xbf16, #tpu.memory_space<vmem>>) attributes {dimension_semantics = [#tpu.dimension_semantics<parallel>, #tpu.dimension_semantics<arbitrary>], iteration_bounds = array<i64: 1, 1>, scalar_prefetch = 0 : i64, scratch_operands = 1 : i64, tpu.core_type = #tpu.core_type<tc>, window_params = [{transform_indices = @transform_0, window_bounds = array<i64: 16, 512>}, {pipeline_mode = #tpu.pipeline_mode<synchronous>, transform_indices = @transform_1, window_bounds = array<i64: 1, 512>}, {pipeline_mode = #tpu.pipeline_mode<synchronous>, transform_indices = @transform_2, window_bounds = array<i64: 1, 512>}, {transform_indices = @transform_3, window_bounds = array<i64: 1, 512, 512>}, {transform_indices = @transform_4, window_bounds = array<i64: 512, 512>}, {transform_indices = @transform_5, window_bounds = array<i64: 1, 512, 2048>}, {transform_indices = @transform_6, window_bounds = array<i64: 1, 2048>}, {transform_indices = @transform_7, window_bounds = array<i64: 2048, 512>}, {pipeline_mode = #tpu.pipeline_mode<synchronous>, transform_indices = @transform_8, window_bounds = array<i64: 1, 512>}, {transform_indices = @transform_9, window_bounds = array<i64: 16, 512>}]} {
    %c0_i32 = arith.constant 0 : i32
    %0 = arith.cmpi eq, %arg1, %c0_i32 : i32
    %1 = arith.extui %0 : i1 to i32
    %c0_i32_0 = arith.constant 0 : i32
    %2 = arith.cmpi ne, %1, %c0_i32_0 : i32
    scf.if %2 {
      %c0_25 = arith.constant 0 : index
      %c0_26 = arith.constant 0 : index
      %36 = vector.load %arg2[%c0_25, %c0_26] : memref<16x512xf32, #tpu.memory_space<vmem>>, vector<16x512xf32>
      %cst_27 = arith.constant dense<0.000000e+00> : vector<16xf32>
      %37 = vector.multi_reduction <add>, %36, %cst_27 [1] : vector<16x512xf32> to vector<16xf32>
      %38 = vector.shape_cast %37 : vector<16xf32> to vector<16x1xf32>
      %cst_28 = arith.constant 5.120000e+02 : f32
      %39 = vector.broadcast %cst_28 : f32 to vector<16x1xf32>
      %40 = arith.divf %38, %39 : vector<16x1xf32>
      %41 = vector.broadcast %40 : vector<16x1xf32> to vector<16x512xf32>
      %42 = arith.subf %36, %41 : vector<16x512xf32>
      %43 = arith.mulf %42, %42 : vector<16x512xf32>
      %cst_29 = arith.constant dense<0.000000e+00> : vector<16xf32>
      %44 = vector.multi_reduction <add>, %43, %cst_29 [1] : vector<16x512xf32> to vector<16xf32>
      %45 = vector.shape_cast %44 : vector<16xf32> to vector<16x1xf32>
      %cst_30 = arith.constant 5.120000e+02 : f32
      %46 = vector.broadcast %cst_30 : f32 to vector<16x1xf32>
      %47 = arith.divf %45, %46 : vector<16x1xf32>
      %cst_31 = arith.constant 9.99999974E-6 : f32
      %48 = vector.broadcast %cst_31 : f32 to vector<16x1xf32>
      %49 = arith.addf %47, %48 : vector<16x1xf32>
      %50 = math.rsqrt %49 : vector<16x1xf32>
      %51 = vector.broadcast %50 : vector<16x1xf32> to vector<16x512xf32>
      %52 = arith.mulf %42, %51 : vector<16x512xf32>
      %c0_32 = arith.constant 0 : index
      %c0_33 = arith.constant 0 : index
      %53 = vector.load %arg3[%c0_32, %c0_33] : memref<1x512xf32, #tpu.memory_space<vmem>>, vector<1x512xf32>
      %54 = vector.broadcast %53 : vector<1x512xf32> to vector<16x512xf32>
      %55 = arith.mulf %52, %54 : vector<16x512xf32>
      %c0_34 = arith.constant 0 : index
      %c0_35 = arith.constant 0 : index
      %56 = vector.load %arg4[%c0_34, %c0_35] : memref<1x512xf32, #tpu.memory_space<vmem>>, vector<1x512xf32>
      %57 = vector.broadcast %56 : vector<1x512xf32> to vector<16x512xf32>
      %58 = arith.addf %55, %57 : vector<16x512xf32>
      %c0_36 = arith.constant 0 : index
      %c0_37 = arith.constant 0 : index
      %59 = vector.load %arg10[%c0_36, %c0_37] : memref<1x512xf32, #tpu.memory_space<vmem>>, vector<1x512xf32>
      %60 = vector.broadcast %59 : vector<1x512xf32> to vector<16x512xf32>
      %61 = arith.addf %58, %60 : vector<16x512xf32>
      %c0_38 = arith.constant 0 : index
      %c0_39 = arith.constant 0 : index
      %62 = vector.load %arg11[%c0_38, %c0_39] : memref<16x512xf32, #tpu.memory_space<vmem>>, vector<16x512xf32>
      tpu.vector_store %arg11[%c0_38, %c0_39], %61 {strides = array<i32>} : memref<16x512xf32, #tpu.memory_space<vmem>>, vector<16x512xf32>,
      %63 = arith.truncf %58 : vector<16x512xf32> to vector<16x512xbf16>
      %c0_40 = arith.constant 0 : index
      %c0_41 = arith.constant 0 : index
      %64 = vector.load %arg12[%c0_40, %c0_41] : memref<16x512xbf16, #tpu.memory_space<vmem>>, vector<16x512xbf16>
      tpu.vector_store %arg12[%c0_40, %c0_41], %63 {strides = array<i32>} : memref<16x512xbf16, #tpu.memory_space<vmem>>, vector<16x512xbf16>,
    } else {
    }
    %c0 = arith.constant 0 : index
    %c0_1 = arith.constant 0 : index
    %3 = vector.load %arg12[%c0, %c0_1] : memref<16x512xbf16, #tpu.memory_space<vmem>>, vector<16x512xbf16>
    %c0_2 = arith.constant 0 : index
    %c0_3 = arith.constant 0 : index
    %4 = vector.load %arg11[%c0_2, %c0_3] : memref<16x512xf32, #tpu.memory_space<vmem>>, vector<16x512xf32>
    %c0_4 = arith.constant 0 : index
    %c0_5 = arith.constant 0 : index
    %c0_6 = arith.constant 0 : index
    %5 = vector.load %arg5[%c0_4, %c0_5, %c0_6] : memref<1x512x512xbf16, #tpu.memory_space<vmem>>, vector<1x512x512xbf16>
    %6 = vector.shape_cast %5 : vector<1x512x512xbf16> to vector<512x512xbf16>
    %cst = arith.constant dense<0.000000e+00> : vector<16x512xf32>
    %7 = tpu.matmul %3, %6, %cst {dimension_numbers = #tpu.dot_dimension_numbers<[1], [0], [0], [1], [0, 0, 1, 1], [], []>} : vector<16x512xbf16>, vector<512x512xbf16>, vector<16x512xf32> -> vector<16x512xf32>
    %8 = arith.truncf %7 : vector<16x512xf32> to vector<16x512xbf16>
    %c0_7 = arith.constant 0 : index
    %c0_8 = arith.constant 0 : index
    %9 = vector.load %arg6[%c0_7, %c0_8] : memref<512x512xbf16, #tpu.memory_space<vmem>>, vector<512x512xbf16>
    %cst_9 = arith.constant dense<0.000000e+00> : vector<16x512xf32>
    %10 = tpu.matmul %8, %9, %cst_9 {dimension_numbers = #tpu.dot_dimension_numbers<[1], [0], [0], [1], [0, 0, 1, 1], [], []>} : vector<16x512xbf16>, vector<512x512xbf16>, vector<16x512xf32> -> vector<16x512xf32>
    %c0_10 = arith.constant 0 : index
    %c0_11 = arith.constant 0 : index
    %c0_12 = arith.constant 0 : index
    %11 = vector.load %arg7[%c0_10, %c0_11, %c0_12] : memref<1x512x2048xbf16, #tpu.memory_space<vmem>>, vector<1x512x2048xbf16>
    %12 = vector.shape_cast %11 : vector<1x512x2048xbf16> to vector<512x2048xbf16>
    %cst_13 = arith.constant dense<0.000000e+00> : vector<16x2048xf32>
    %13 = tpu.matmul %3, %12, %cst_13 {dimension_numbers = #tpu.dot_dimension_numbers<[1], [0], [0], [1], [0, 0, 1, 1], [], []>} : vector<16x512xbf16>, vector<512x2048xbf16>, vector<16x2048xf32> -> vector<16x2048xf32>
    %c0_14 = arith.constant 0 : index
    %c0_15 = arith.constant 0 : index
    %14 = vector.load %arg8[%c0_14, %c0_15] : memref<1x2048xf32, #tpu.memory_space<vmem>>, vector<1x2048xf32>
    %15 = vector.broadcast %14 : vector<1x2048xf32> to vector<16x2048xf32>
    %16 = arith.addf %13, %15 : vector<16x2048xf32>
    %cst_16 = arith.constant 5.000000e-01 : f32
    %17 = vector.broadcast %cst_16 : f32 to vector<16x2048xf32>
    %18 = arith.mulf %17, %16 : vector<16x2048xf32>
    %cst_17 = arith.constant 4.471500e-02 : f32
    %19 = vector.broadcast %cst_17 : f32 to vector<16x2048xf32>
    %20 = arith.mulf %19, %16 : vector<16x2048xf32>
    %21 = arith.mulf %20, %16 : vector<16x2048xf32>
    %22 = arith.mulf %21, %16 : vector<16x2048xf32>
    %23 = arith.addf %16, %22 : vector<16x2048xf32>
    %cst_18 = arith.constant 0.797884583 : f32
    %24 = vector.broadcast %cst_18 : f32 to vector<16x2048xf32>
    %25 = arith.mulf %24, %23 : vector<16x2048xf32>
    %26 = math.tanh %25 : vector<16x2048xf32>
    %cst_19 = arith.constant 1.000000e+00 : f32
    %27 = vector.broadcast %cst_19 : f32 to vector<16x2048xf32>
    %28 = arith.addf %27, %26 : vector<16x2048xf32>
    %29 = arith.mulf %18, %28 : vector<16x2048xf32>
    %30 = arith.truncf %29 : vector<16x2048xf32> to vector<16x2048xbf16>
    %c0_20 = arith.constant 0 : index
    %c0_21 = arith.constant 0 : index
    %31 = vector.load %arg9[%c0_20, %c0_21] : memref<2048x512xbf16, #tpu.memory_space<vmem>>, vector<2048x512xbf16>
    %cst_22 = arith.constant dense<0.000000e+00> : vector<16x512xf32>
    %32 = tpu.matmul %30, %31, %cst_22 {dimension_numbers = #tpu.dot_dimension_numbers<[1], [0], [0], [1], [0, 0, 1, 1], [], []>} : vector<16x2048xbf16>, vector<2048x512xbf16>, vector<16x512xf32> -> vector<16x512xf32>
    %33 = arith.addf %10, %32 : vector<16x512xf32>
    %34 = arith.addf %4, %33 : vector<16x512xf32>
    %c0_23 = arith.constant 0 : index
    %c0_24 = arith.constant 0 : index
    %35 = vector.load %arg11[%c0_23, %c0_24] : memref<16x512xf32, #tpu.memory_space<vmem>>, vector<16x512xf32>
    tpu.vector_store %arg11[%c0_23, %c0_24], %34 {strides = array<i32>} : memref<16x512xf32, #tpu.memory_space<vmem>>, vector<16x512xf32>,
    return
  }
  func.func @transform_0(%arg0: i32, %arg1: i32) -> (i32, i32) {
    %c0_i32 = arith.constant 0 : i32
    %c0_i32_0 = arith.constant 0 : i32
    return %arg0, %c0_i32 : i32, i32
  }
  func.func @transform_1(%arg0: i32, %arg1: i32) -> (i32, i32) {
    %c0_i32 = arith.constant 0 : i32
    %c0_i32_0 = arith.constant 0 : i32
    %c0_i32_1 = arith.constant 0 : i32
    return %c0_i32, %c0_i32_0 : i32, i32
  }
  func.func @transform_2(%arg0: i32, %arg1: i32) -> (i32, i32) {
    %c0_i32 = arith.constant 0 : i32
    %c0_i32_0 = arith.constant 0 : i32
    %c0_i32_1 = arith.constant 0 : i32
    return %c0_i32, %c0_i32_0 : i32, i32
  }
  func.func @transform_3(%arg0: i32, %arg1: i32) -> (i32, i32, i32) {
    %c0_i32 = arith.constant 0 : i32
    %c0_i32_0 = arith.constant 0 : i32
    %c0_i32_1 = arith.constant 0 : i32
    return %arg1, %c0_i32, %c0_i32_0 : i32, i32, i32
  }
  func.func @transform_4(%arg0: i32, %arg1: i32) -> (i32, i32) {
    %c0_i32 = arith.constant 0 : i32
    %c0_i32_0 = arith.constant 0 : i32
    return %arg1, %c0_i32 : i32, i32
  }
  func.func @transform_5(%arg0: i32, %arg1: i32) -> (i32, i32, i32) {
    %c0_i32 = arith.constant 0 : i32
    %c0_i32_0 = arith.constant 0 : i32
    %c0_i32_1 = arith.constant 0 : i32
    return %arg1, %c0_i32, %c0_i32_0 : i32, i32, i32
  }
  func.func @transform_6(%arg0: i32, %arg1: i32) -> (i32, i32) {
    %c0_i32 = arith.constant 0 : i32
    %c0_i32_0 = arith.constant 0 : i32
    return %c0_i32, %arg1 : i32, i32
  }
  func.func @transform_7(%arg0: i32, %arg1: i32) -> (i32, i32) {
    %c0_i32 = arith.constant 0 : i32
    %c0_i32_0 = arith.constant 0 : i32
    return %arg1, %c0_i32 : i32, i32
  }
  func.func @transform_8(%arg0: i32, %arg1: i32) -> (i32, i32) {
    %c0_i32 = arith.constant 0 : i32
    %c0_i32_0 = arith.constant 0 : i32
    %c0_i32_1 = arith.constant 0 : i32
    return %c0_i32, %c0_i32_0 : i32, i32
  }
  func.func @transform_9(%arg0: i32, %arg1: i32) -> (i32, i32) {
    %c0_i32 = arith.constant 0 : i32
    %c0_i32_0 = arith.constant 0 : i32
    return %arg0, %c0_i32 : i32, i32
  }
}

</mosaic_0001>

<bundles_post_ra>
// kernel: tpu_custom_call.1
= control target key start
LH: loop header
LB: loop body
LE: loop exit
PB: predicated region body
PF: predicated region fallthrough
CT: control target
= control target key end

     0   :  { %14 = vsyncpa [#allocation4], 0  ;;  %s13766_s0 = inlined_call_operand.hbm [shape: f32[16,512], index: 0, kind: input, shape index: {}]   ;;  %s13767_s1 = inlined_call_operand.hbm [shape: f32[1,512], index: 1, kind: input, shape index: {}]   ;;  %s13768_s2 = inlined_call_operand.hbm [shape: f32[1,512], index: 2, kind: input, shape index: {}]   ;;  %s13769_s3 = inlined_call_operand.hbm [shape: bf16[1,512,512], index: 3, kind: input, shape index: {}]   ;;  %s13770_s4 = inlined_call_operand.hbm [shape: bf16[512,512], index: 4, kind: input, shape index: {}]   ;;  %s13771_s5 = inlined_call_operand.hbm [shape: bf16[1,512,2048], index: 5, kind: input, shape index: {}]   ;;  %s13772_s6 = inlined_call_operand.hbm [shape: f32[1,2048], index: 6, kind: input, shape index: {}]   ;;  %s13773_s7 = inlined_call_operand.hbm [shape: bf16[2048,512], index: 7, kind: input, shape index: {}]   ;;  %s13774_s8 = inlined_call_operand.hbm [shape: f32[1,512], index: 8, kind: input, shape index: {}]   ;;  %s13775_s9 = inlined_call_operand.hbm [shape: f32[16,512], index: 9, kind: output, shape index: {}]  }
   0x1   :  { %15 = vsyncpa [#allocation7], 0 }
   0x2   :  { %16 = vsyncpa [#allocation10], 0 }
   0x3   :  { %17 = vsyncpa [#allocation13], 0 }
   0x4   :  { %18 = vsyncpa [#allocation16], 0 }
   0x5   :  { %19 = vsyncpa [#allocation5], 0  ;;  %s12947_s30 = smov [#allocation6]   ;;  %s12948_s11 = smov [#allocation9]  }
   0x6   :  { %s38_s10 = sshll.u32 %s12947_s30, 4  ;;  %s57_s12 = sshll.u32 %s12948_s11, 4  ;;  %s39_s10 = int_to_ptr.vmem [resolvable:$true] %s38_s10  ;;  %s58_s12 = int_to_ptr.vmem [resolvable:$true] %s57_s12 }
   0x7   :  { %s12743_s13 = scalar_lea.vmem %s39_s10, 64  ;;  %p12748_p1 = scmp.lt.s32.totalorder %s39_s10, %s39_s10 }
   0x8   :  { %p12744_p0 = scmp.ne.s32.totalorder %s39_s10, %s12743_s13  ;;  %p12749_p2 = scmp.lt.s32.totalorder %s12743_s13, %s12743_s13 }
   0xa   :  { %p12750_p3 = por %p12749_p2, %p12748_p1 }
   0xc   :  { %p12751_p4 = pnand %p12750_p3, %p12744_p0 }
   0xe   :  { %12754 = shalt.err (!%p12751_p4)
}
   0xf   :  { %41 = dma.hbm_to_vmem [thread:$0]  %s13767_s1, 64, %s39_s10, [#allocation7]  }
  0x10   :  { %s12763_s16 = scalar_lea.vmem %s58_s12, 16384  ;;  %p12768_p6 = scmp.lt.s32.totalorder %s58_s12, %s58_s12 }
  0x11   :  { %p12764_p5 = scmp.ne.s32.totalorder %s58_s12, %s12763_s16  ;;  %p12769_p7 = scmp.lt.s32.totalorder %s12763_s16, %s12763_s16 }
  0x13   :  { %p12770_p8 = por %p12769_p7, %p12768_p6 }
  0x15   :  { %p12771_p9 = pnand %p12770_p8, %p12764_p5 }
  0x17   :  { %12774 = shalt.err (!%p12771_p9)
}
  0x18   :  { %s12949_s17 = smov 256   ;;  %s12950_s18 = smov 16  }
  0x19   :  { %63 = dma.hbm_to_vmem [thread:$0]  %s13769_s3, 16384, %s58_s12, [#allocation10], %s12949_s17, %s12949_s17, %s12950_s18  }
  0x1a   :  { %s12951_s21 = smov [#allocation12]  }
  0x1b   :  { %s81_s22 = sshll.u32 %s12951_s21, 4  ;;  %s82_s22 = int_to_ptr.vmem [resolvable:$true] %s81_s22 }
  0x1c   :  { %s12783_s1 = scalar_lea.vmem %s82_s22, 65536  ;;  %p12788_p11 = scmp.lt.s32.totalorder %s82_s22, %s82_s22 }
  0x1d   :  { %p12784_p10 = scmp.ne.s32.totalorder %s82_s22, %s12783_s1  ;;  %p12789_p12 = scmp.lt.s32.totalorder %s12783_s1, %s12783_s1 }
  0x1f   :  { %p12790_p13 = por %p12789_p12, %p12788_p11 }
  0x21   :  { %p12791_p0 = pnand %p12790_p13, %p12784_p10 }
  0x23   :  { %12794 = shalt.err (!%p12791_p0)
}
  0x24   :  { %s12952_s23 = smov 1024   ;;  %s12953_s24 = smov 64  }
  0x25   :  { %87 = dma.hbm_to_vmem [thread:$0]  %s13771_s5, 65536, %s82_s22, [#allocation13], %s12952_s23, %s12952_s23, %s12953_s24  }
  0x26   :  { %s12954_s27 = smov [#allocation15]   ;;  %s12955_s3 = smov [#allocation3]  }
  0x27   :  { %s103_s28 = sshll.u32 %s12954_s27, 4  ;;  %s25_s29 = sshll.u32 %s12955_s3, 4  ;;  %s104_s28 = int_to_ptr.vmem [resolvable:$true] %s103_s28  ;;  %s26_s29 = int_to_ptr.vmem [resolvable:$true] %s25_s29 }
  0x28   :  { %s12803_s30 = scalar_lea.vmem %s104_s28, 65536  ;;  %p12808_p2 = scmp.lt.s32.totalorder %s104_s28, %s104_s28 }
  0x29   :  { %p12804_p1 = scmp.ne.s32.totalorder %s104_s28, %s12803_s30  ;;  %p12809_p3 = scmp.lt.s32.totalorder %s12803_s30, %s12803_s30 }
  0x2b   :  { %p12810_p4 = por %p12809_p3, %p12808_p2 }
  0x2d   :  { %p12811_p5 = pnand %p12810_p4, %p12804_p1 }
  0x2f   :  { %12814 = shalt.err (!%p12811_p5)
}
  0x30   :  { %109 = dma.hbm_to_vmem [thread:$0]  %s13773_s7, 65536, %s104_s28, [#allocation16], %s12949_s17, %s12949_s17, %s12950_s18  }
  0x31   :  { %s12823_s5 = scalar_lea.vmem %s26_s29, 1024  ;;  %p12828_p7 = scmp.lt.s32.totalorder %s26_s29, %s26_s29 }
  0x32   :  { %p12824_p6 = scmp.ne.s32.totalorder %s26_s29, %s12823_s5  ;;  %p12829_p8 = scmp.lt.s32.totalorder %s12823_s5, %s12823_s5 }
  0x34   :  { %p12830_p9 = por %p12829_p8, %p12828_p7 }
  0x36   :  { %p12831_p10 = pnand %p12830_p9, %p12824_p6 }
  0x38   :  { %12834 = shalt.err (!%p12831_p10)
}
  0x39   :  { %s12956_s12 = smov 512   ;;  %s12957_s13 = smov 32  }
  0x3a   :  { %31 = dma.hbm_to_vmem [thread:$0]  %s13766_s0, 1024, %s26_s29, [#allocation4], %s12956_s12, %s12956_s12, %s12957_s13  }
  0x3b   :  { %s12958_s16 = smov [#allocation8]   ;;  %s12959_s7 = smov [#allocation11]  }
  0x3c   :  { %s48_s19 = sshll.u32 %s12958_s16, 4  ;;  %s69_s20 = sshll.u32 %s12959_s7, 4  ;;  %s49_s19 = int_to_ptr.vmem [resolvable:$true] %s48_s19  ;;  %s70_s20 = int_to_ptr.vmem [resolvable:$true] %s69_s20 }
  0x3d   :  { %s12843_s21 = scalar_lea.vmem %s49_s19, 64  ;;  %p12848_p12 = scmp.lt.s32.totalorder %s49_s19, %s49_s19 }
  0x3e   :  { %p12844_p11 = scmp.ne.s32.totalorder %s49_s19, %s12843_s21  ;;  %p12849_p13 = scmp.lt.s32.totalorder %s12843_s21, %s12843_s21 }
  0x40   :  { %p12850_p0 = por %p12849_p13, %p12848_p12 }
  0x42   :  { %p12851_p1 = pnand %p12850_p0, %p12844_p11 }
  0x44   :  { %12854 = shalt.err (!%p12851_p1)
}
  0x45   :  { %51 = dma.hbm_to_vmem [thread:$0]  %s13768_s2, 64, %s49_s19, [#allocation7]  }
  0x46   :  { %s12863_s23 = scalar_lea.vmem %s70_s20, 16384  ;;  %p12868_p3 = scmp.lt.s32.totalorder %s70_s20, %s70_s20 }
  0x47   :  { %p12864_p2 = scmp.ne.s32.totalorder %s70_s20, %s12863_s23  ;;  %p12869_p4 = scmp.lt.s32.totalorder %s12863_s23, %s12863_s23 }
  0x49   :  { %p12870_p5 = por %p12869_p4, %p12868_p3 }
  0x4b   :  { %p12871_p6 = pnand %p12870_p5, %p12864_p2 }
  0x4d   :  { %12874 = shalt.err (!%p12871_p6)
}
  0x4e   :  { %75 = dma.hbm_to_vmem [thread:$0]  %s13770_s4, 16384, %s70_s20, [#allocation10], %s12949_s17, %s12949_s17, %s12950_s18  }
  0x4f   :  { %s12960_s25 = smov [#allocation14]   ;;  %s12961_s27 = smov [#allocation17]  }
  0x50   :  { %s94_s26 = sshll.u32 %s12960_s25, 4  ;;  %s116_s2 = sshll.u32 %s12961_s27, 4  ;;  %s95_s26 = int_to_ptr.vmem [resolvable:$true] %s94_s26  ;;  %s117_s2 = int_to_ptr.vmem [resolvable:$true] %s116_s2 }
  0x51   :  { %s12883_s28 = scalar_lea.vmem %s95_s26, 256  ;;  %p12888_p8 = scmp.lt.s32.totalorder %s95_s26, %s95_s26 }
  0x52   :  { %p12884_p7 = scmp.ne.s32.totalorder %s95_s26, %s12883_s28  ;;  %p12889_p9 = scmp.lt.s32.totalorder %s12883_s28, %s12883_s28 }
  0x54   :  { %p12890_p10 = por %p12889_p9, %p12888_p8 }
  0x56   :  { %p12891_p11 = pnand %p12890_p10, %p12884_p7 }
  0x58   :  { %12894 = shalt.err (!%p12891_p11)
}
  0x59   :  { %97 = dma.hbm_to_vmem [thread:$0]  %s13772_s6, 256, %s95_s26, [#allocation13]  }
  0x5a   :  { %s12903_s30 = scalar_lea.vmem %s117_s2, 64  ;;  %p12908_p13 = scmp.lt.s32.totalorder %s117_s2, %s117_s2 }
  0x5b   :  { %p12904_p12 = scmp.ne.s32.totalorder %s117_s2, %s12903_s30  ;;  %p12909_p0 = scmp.lt.s32.totalorder %s12903_s30, %s12903_s30 }
  0x5d   :  { %p12910_p1 = por %p12909_p0, %p12908_p13 }
  0x5f   :  { %p12911_p2 = pnand %p12910_p1, %p12904_p12 }
  0x61   :  { %12914 = shalt.err (!%p12911_p2)
}
  0x62   :  { %119 = dma.hbm_to_vmem [thread:$0]  %s13774_s8, 64, %s117_s2, [#allocation16]  }
  0x63   :  { %12935 = dma.done.wait [#allocation4], 1024  }
  0x64   :  { %12936 = vsyncadd [#allocation4], 4294966272 }
  0x65   :  { %12937 = dma.done.wait [#allocation7], 128  }
  0x66   :  { %12938 = vsyncadd [#allocation7], 4294967168 }
  0x67   :  { %12939 = dma.done.wait [#allocation10], 32768  }
  0x68   :  { %12940 = vsyncadd [#allocation10], 4294934528 }
  0x69   :  { %12941 = dma.done.wait [#allocation13], 65792  }
  0x6a   :  { %12942 = vsyncadd [#allocation13], 4294901504 }
  0x6b   :  { %12943 = dma.done.wait [#allocation16], 65600  }
  0x6c   :  { %12944 = vsyncadd [#allocation16], 4294901696  ;;  %v13052_v0 = vld [vmem:[#allocation3] sm:$0xff]  ;;  %v13054_v1 = vld [vmem:[#allocation3 + $0x8] sm:$0xff]  ;;  %s12962_s6 = smov [#allocation18]  }
  0x6d   :  { %v13056_v2 = vld [vmem:[#allocation3 + $0x10] sm:$0xff]  ;;  %v13058_v3 = vld [vmem:[#allocation3 + $0x18] sm:$0xff]  ;;  %v159_v4 = vadd.f32 %v13054_v1, %v13052_v0  ;;  %v13062_v5 = vld [vmem:[#allocation3 + $0x20] sm:$0xff]  ;;  %s10183_s8 = sshll.u32 %s12962_s6, 4  ;;  %s10184_s8 = int_to_ptr.vmem [resolvable:$true] %s10183_s8 }
  0x6e   :  { %v13064_v6 = vld [vmem:[#allocation3 + $0x28] sm:$0xff]  ;;  %v13066_v7 = vld [vmem:[#allocation3 + $0x30] sm:$0xff]  ;;  %v158_v8 = vld [vmem:[#allocation3 + $0x38] sm:$0xff]  ;;  %s12915_s18 = scalar_lea.vmem %s10184_s8, 1024  ;;  %p12920_p4 = scmp.lt.s32.totalorder %s10184_s8, %s10184_s8 }
  0x6f   :  { %v164_v9 = vadd.f32 %v13064_v6, %v13062_v5  ;;  %v160_v10 = vadd.f32 %v159_v4, %v13056_v2  ;;  %v11511_v14 = vld [vmem:[#allocation9 + $0xe4] ss:$16 sps:$4 sm:$0xff]   ;;  %v11515_v16 = vld [vmem:[#allocation9 + $0xe0] ss:$16 sps:$4 sm:$0xff]   ;;  %p12916_p3 = scmp.ne.s32.totalorder %s10184_s8, %s12915_s18  ;;  %p12921_p5 = scmp.lt.s32.totalorder %s12915_s18, %s12915_s18 }
  0x70   :  { %v11513_v15 = vld [vmem:[#allocation9 + $0x2e4] ss:$16 sps:$4 sm:$0xff]   ;;  %v11516_v17 = vld [vmem:[#allocation9 + $0x2e0] ss:$16 sps:$4 sm:$0xff]   ;;  %1138 = vmatprep.subr.bf16.mxu0 %v11511_v14 }
  0x71   :  { %v165_v11 = vadd.f32 %v164_v9, %v13066_v7  ;;  %v161_v12 = vadd.f32 %v160_v10, %v13058_v3  ;;  %v11517_v18 = vld [vmem:[#allocation9 + $0xc4] ss:$16 sps:$4 sm:$0xff]   ;;  %1181 = vmatprep.subr.bf16.mxu1 %v11513_v15  ;;  %1139 = vmatpush1.bf16.msra.mxu0 %v11515_v16  ;;  %v11521_v20 = vld [vmem:[#allocation9 + $0xc0] ss:$16 sps:$4 sm:$0xff]   ;;  %p12922_p6 = por %p12921_p5, %p12920_p4 }
  0x72   :  { %v11519_v19 = vld [vmem:[#allocation9 + $0x2c4] ss:$16 sps:$4 sm:$0xff]   ;;  %1182 = vmatpush1.bf16.msra.mxu1 %v11516_v17  ;;  %v11522_v21 = vld [vmem:[#allocation9 + $0x2c0] ss:$16 sps:$4 sm:$0xff]   ;;  %1140 = vmatprep.subr.bf16.mxu0 %v11517_v18 }
  0x73   :  { %162 = vadd.xlane.f32.xlu0 %v161_v12  ;;  %v166_v13 = vadd.f32 %v165_v11, %v158_v8  ;;  %1183 = vmatprep.subr.bf16.mxu1 %v11519_v19  ;;  %v11523_v22 = vld [vmem:[#allocation9 + $0xa4] ss:$16 sps:$4 sm:$0xff]   ;;  %v11527_v24 = vld [vmem:[#allocation9 + $0xa0] ss:$16 sps:$4 sm:$0xff]   ;;  %p12923_p7 = pnand %p12922_p6, %p12916_p3 }
  0x74   :  { %v11525_v23 = vld [vmem:[#allocation9 + $0x2a4] ss:$16 sps:$4 sm:$0xff]   ;;  %v11528_v25 = vld [vmem:[#allocation9 + $0x2a0] ss:$16 sps:$4 sm:$0xff]  }
  0x75   :  { %1141 = vmatpush1.bf16.msra.mxu0 %v11521_v20  ;;  %v11529_v26 = vld [vmem:[#allocation9 + $0x84] ss:$16 sps:$4 sm:$0xff]   ;;  %v11533_v28 = vld [vmem:[#allocation9 + $0x80] ss:$16 sps:$4 sm:$0xff]  }
  0x76   :  { %1184 = vmatpush1.bf16.msra.mxu1 %v11522_v21  ;;  %1142 = vmatprep.subr.bf16.mxu0 %v11523_v22  ;;  %v11531_v27 = vld [vmem:[#allocation9 + $0x284] ss:$16 sps:$4 sm:$0xff]   ;;  %v11534_v29 = vld [vmem:[#allocation9 + $0x280] ss:$16 sps:$4 sm:$0xff]  }
  0x77   :  { %167 = vadd.xlane.f32.xlu0 %v166_v13  ;;  %1185 = vmatprep.subr.bf16.mxu1 %v11525_v23  ;;  %v11535_v30 = vld [vmem:[#allocation9 + $0x64] ss:$16 sps:$4 sm:$0xff]   ;;  %v11539_v32 = vld [vmem:[#allocation9 + $0x60] ss:$16 sps:$4 sm:$0xff]  }
  0x78   :  { %v11537_v31 = vld [vmem:[#allocation9 + $0x264] ss:$16 sps:$4 sm:$0xff]   ;;  %v11540_v33 = vld [vmem:[#allocation9 + $0x260] ss:$16 sps:$4 sm:$0xff]  }
  0x79   :  { %1143 = vmatpush1.bf16.msra.mxu0 %v11527_v24  ;;  %v11541_v34 = vld [vmem:[#allocation9 + $0x44] ss:$16 sps:$4 sm:$0xff]   ;;  %v11545_v36 = vld [vmem:[#allocation9 + $0x40] ss:$16 sps:$4 sm:$0xff]  }
  0x7a   :  { %1186 = vmatpush1.bf16.msra.mxu1 %v11528_v25  ;;  %1144 = vmatprep.subr.bf16.mxu0 %v11529_v26  ;;  %v11543_v35 = vld [vmem:[#allocation9 + $0x244] ss:$16 sps:$4 sm:$0xff]   ;;  %v11546_v37 = vld [vmem:[#allocation9 + $0x240] ss:$16 sps:$4 sm:$0xff]  }
  0x7b   :  { %1187 = vmatprep.subr.bf16.mxu1 %v11531_v27  ;;  %v11547_v38 = vld [vmem:[#allocation9 + $0x24] ss:$16 sps:$4 sm:$0xff]   ;;  %v11551_v40 = vld [vmem:[#allocation9 + $0x20] ss:$16 sps:$4 sm:$0xff]  }
  0x7c   :  { %v11549_v39 = vld [vmem:[#allocation9 + $0x224] ss:$16 sps:$4 sm:$0xff]   ;;  %v11552_v41 = vld [vmem:[#allocation9 + $0x220] ss:$16 sps:$4 sm:$0xff]  }
  0x7d   :  { %1145 = vmatpush1.bf16.msra.mxu0 %v11533_v28  ;;  %v11553_v42 = vld [vmem:[#allocation9 + $0x4] ss:$16 sps:$4 sm:$0xff]   ;;  %v11557_v44 = vld [vmem:[#allocation9] ss:$16 sps:$4 sm:$0xff]  }
  0x7e   :  { %1188 = vmatpush1.bf16.msra.mxu1 %v11534_v29  ;;  %1146 = vmatprep.subr.bf16.mxu0 %v11535_v30  ;;  %v11555_v43 = vld [vmem:[#allocation9 + $0x204] ss:$16 sps:$4 sm:$0xff]   ;;  %v11558_v45 = vld [vmem:[#allocation9 + $0x200] ss:$16 sps:$4 sm:$0xff]  }
  0x7f   :  { %1189 = vmatprep.subr.bf16.mxu1 %v11537_v31  ;;  %v11559_v46 = vld [vmem:[#allocation9 + $0x1e4] ss:$16 sps:$4 sm:$0xff]   ;;  %v11563_v48 = vld [vmem:[#allocation9 + $0x1e0] ss:$16 sps:$4 sm:$0xff]  }
  0x80   :  { %v11561_v47 = vld [vmem:[#allocation9 + $0x3e4] ss:$16 sps:$4 sm:$0xff]   ;;  %v11564_v49 = vld [vmem:[#allocation9 + $0x3e0] ss:$16 sps:$4 sm:$0xff]  }
  0x81   :  { %1147 = vmatpush1.bf16.msra.mxu0 %v11539_v32  ;;  %v11565_v13 = vld [vmem:[#allocation9 + $0x1c4] ss:$16 sps:$4 sm:$0xff]   ;;  %v11569_v15 = vld [vmem:[#allocation9 + $0x1c0] ss:$16 sps:$4 sm:$0xff]  }
  0x82   :  { %1190 = vmatpush1.bf16.msra.mxu1 %v11540_v33  ;;  %1148 = vmatprep.subr.bf16.mxu0 %v11541_v34  ;;  %v11567_v14 = vld [vmem:[#allocation9 + $0x3c4] ss:$16 sps:$4 sm:$0xff]   ;;  %v11570_v16 = vld [vmem:[#allocation9 + $0x3c0] ss:$16 sps:$4 sm:$0xff]  }
  0x83   :  { %1191 = vmatprep.subr.bf16.mxu1 %v11543_v35  ;;  %v11571_v17 = vld [vmem:[#allocation9 + $0x1a4] ss:$16 sps:$4 sm:$0xff]   ;;  %v11575_v19 = vld [vmem:[#allocation9 + $0x1a0] ss:$16 sps:$4 sm:$0xff]  }
  0x84   :  { %v11573_v18 = vld [vmem:[#allocation9 + $0x3a4] ss:$16 sps:$4 sm:$0xff]   ;;  %v11576_v20 = vld [vmem:[#allocation9 + $0x3a0] ss:$16 sps:$4 sm:$0xff]  }
  0x85   :  { %1149 = vmatpush1.bf16.msra.mxu0 %v11545_v36  ;;  %v11577_v21 = vld [vmem:[#allocation9 + $0x184] ss:$16 sps:$4 sm:$0xff]   ;;  %v11581_v23 = vld [vmem:[#allocation9 + $0x180] ss:$16 sps:$4 sm:$0xff]  }
  0x86   :  { %1192 = vmatpush1.bf16.msra.mxu1 %v11546_v37  ;;  %1150 = vmatprep.subr.bf16.mxu0 %v11547_v38  ;;  %v11579_v22 = vld [vmem:[#allocation9 + $0x384] ss:$16 sps:$4 sm:$0xff]   ;;  %v11582_v24 = vld [vmem:[#allocation9 + $0x380] ss:$16 sps:$4 sm:$0xff]  }
  0x87   :  { %1193 = vmatprep.subr.bf16.mxu1 %v11549_v39  ;;  %v11583_v25 = vld [vmem:[#allocation9 + $0x164] ss:$16 sps:$4 sm:$0xff]   ;;  %v11587_v27 = vld [vmem:[#allocation9 + $0x160] ss:$16 sps:$4 sm:$0xff]  }
  0x88   :  { %v11585_v26 = vld [vmem:[#allocation9 + $0x364] ss:$16 sps:$4 sm:$0xff]   ;;  %v11588_v28 = vld [vmem:[#allocation9 + $0x360] ss:$16 sps:$4 sm:$0xff]  }
  0x89   :  { %1151 = vmatpush1.bf16.msra.mxu0 %v11551_v40  ;;  %v11589_v29 = vld [vmem:[#allocation9 + $0x144] ss:$16 sps:$4 sm:$0xff]   ;;  %v11593_v31 = vld [vmem:[#allocation9 + $0x140] ss:$16 sps:$4 sm:$0xff]  }
  0x8a   :  { %1194 = vmatpush1.bf16.msra.mxu1 %v11552_v41  ;;  %1152 = vmatprep.subr.bf16.mxu0 %v11553_v42  ;;  %v11591_v30 = vld [vmem:[#allocation9 + $0x344] ss:$16 sps:$4 sm:$0xff]   ;;  %v11594_v32 = vld [vmem:[#allocation9 + $0x340] ss:$16 sps:$4 sm:$0xff]   ;;  %v11609_v41 = vld [vmem:[#allocation9 + $0xec] ss:$16 sps:$4 sm:$0xff]  }
  0x8b   :  { %1195 = vmatprep.subr.bf16.mxu1 %v11555_v43  ;;  %v11595_v33 = vld [vmem:[#allocation9 + $0x124] ss:$16 sps:$4 sm:$0xff]   ;;  %v11599_v35 = vld [vmem:[#allocation9 + $0x120] ss:$16 sps:$4 sm:$0xff]   ;;  %v11612_v42 = vld [vmem:[#allocation9 + $0x2ec] ss:$16 sps:$4 sm:$0xff]  }
  0x8c   :  { %v11597_v34 = vld [vmem:[#allocation9 + $0x324] ss:$16 sps:$4 sm:$0xff]   ;;  %v11600_v36 = vld [vmem:[#allocation9 + $0x320] ss:$16 sps:$4 sm:$0xff]  }
  0x8d   :  { %1153 = vmatpush1.bf16.msra.mxu0 %v11557_v44  ;;  %v11601_v37 = vld [vmem:[#allocation9 + $0x104] ss:$16 sps:$4 sm:$0xff]   ;;  %v11605_v39 = vld [vmem:[#allocation9 + $0x100] ss:$16 sps:$4 sm:$0xff]  }
  0x8e   :  { %1196 = vmatpush1.bf16.msra.mxu1 %v11558_v45  ;;  %1154 = vmatprep.subr.bf16.mxu0 %v11559_v46  ;;  %v11603_v38 = vld [vmem:[#allocation9 + $0x304] ss:$16 sps:$4 sm:$0xff]   ;;  %v11606_v40 = vld [vmem:[#allocation9 + $0x300] ss:$16 sps:$4 sm:$0xff]  }
  0x8f   :  { %1197 = vmatprep.subr.bf16.mxu1 %v11561_v47 }
  0x91   :  { %1155 = vmatpush2.bf16.msra.mxu0 %v11563_v48 }
  0x92   :  { %1198 = vmatpush2.bf16.msra.mxu1 %v11564_v49  ;;  %1156 = vmatprep.subr.bf16.mxu0 %v11565_v13  ;;  %v214_v49 = vlaneseq }
  0x93   :  { %1199 = vmatprep.subr.bf16.mxu1 %v11567_v14 }
  0x95   :  { %1157 = vmatpush2.bf16.msra.mxu0 %v11569_v15 }
  0x96   :  { %1200 = vmatpush2.bf16.msra.mxu1 %v11570_v16  ;;  %1158 = vmatprep.subr.bf16.mxu0 %v11571_v17 }
  0x97   :  { %1201 = vmatprep.subr.bf16.mxu1 %v11573_v18 }
  0x99   :  { %1159 = vmatpush2.bf16.msra.mxu0 %v11575_v19 }
  0x9a   :  { %1202 = vmatpush2.bf16.msra.mxu1 %v11576_v20  ;;  %1160 = vmatprep.subr.bf16.mxu0 %v11577_v21 }
  0x9b   :  { %1203 = vmatprep.subr.bf16.mxu1 %v11579_v22 }
  0x9d   :  { %1161 = vmatpush2.bf16.msra.mxu0 %v11581_v23 }
  0x9e   :  { %1204 = vmatpush2.bf16.msra.mxu1 %v11582_v24  ;;  %1162 = vmatprep.subr.bf16.mxu0 %v11583_v25 }
  0x9f   :  { %1205 = vmatprep.subr.bf16.mxu1 %v11585_v26  ;;  %v11607_v26 = vld [vmem:[#allocation9 + $0xe8] ss:$16 sps:$4 sm:$0xff]  }
  0xa1   :  { %1163 = vmatpush2.bf16.msra.mxu0 %v11587_v27  ;;  %v11610_v27 = vld [vmem:[#allocation9 + $0x2e8] ss:$16 sps:$4 sm:$0xff]  }
  0xa2   :  { %1206 = vmatpush2.bf16.msra.mxu1 %v11588_v28  ;;  %1164 = vmatprep.subr.bf16.mxu0 %v11589_v29 }
  0xa3   :  { %1207 = vmatprep.subr.bf16.mxu1 %v11591_v30 }
  0xa5   :  { %1165 = vmatpush2.bf16.msra.mxu0 %v11593_v31  ;;  %v272_v31 = vld [vmem:[#allocation17] sm:$0xf] }
  0xa6   :  { %1208 = vmatpush2.bf16.msra.mxu1 %v11594_v32  ;;  %1166 = vmatprep.subr.bf16.mxu0 %v11595_v33 }
  0xa7   :  { %1209 = vmatprep.subr.bf16.mxu1 %v11597_v34  ;;  %v11615_v34 = vld [vmem:[#allocation9 + $0xcc] ss:$16 sps:$4 sm:$0xff]  }
  0xa9   :  { %1167 = vmatpush2.bf16.msra.mxu0 %v11599_v35  ;;  %v11618_v35 = vld [vmem:[#allocation9 + $0x2cc] ss:$16 sps:$4 sm:$0xff]  }
  0xaa   :  { %1210 = vmatpush2.bf16.msra.mxu1 %v11600_v36  ;;  %1168 = vmatprep.subr.bf16.mxu0 %v11601_v37 }
  0xab   :  { %1211 = vmatprep.subr.bf16.mxu1 %v11603_v38  ;;  %v11613_v38 = vld [vmem:[#allocation9 + $0xc8] ss:$16 sps:$4 sm:$0xff]  }
  0xad   :  { %1169 = vmatpush2.bf16.msra.mxu0 %v11605_v39  ;;  %v11616_v39 = vld [vmem:[#allocation9 + $0x2c8] ss:$16 sps:$4 sm:$0xff]  }
  0xae   :  { %1212 = vmatpush2.bf16.msra.mxu1 %v11606_v40  ;;  %1224 = vmatprep.subr.bf16.mxu0 %v11609_v41  ;;  %v11621_v40 = vld [vmem:[#allocation9 + $0xac] ss:$16 sps:$4 sm:$0xff]  }
  0xaf   :  { %1267 = vmatprep.subr.bf16.mxu1 %v11612_v42  ;;  %v11624_v41 = vld [vmem:[#allocation9 + $0x2ac] ss:$16 sps:$4 sm:$0xff]  }
  0xfc   :  { %v163_v50 = vpop.xlane.xlu0 %162 }
  0xfd   :  { %v170_v51 = vmul.f32 0.001953125, %v163_v50  ;;  %v13112_v50 = vshrl.u32 %v214_v49, 7  ;;  %v11630_v49 = vld [vmem:[#allocation9 + $0x28c] ss:$16 sps:$4 sm:$0xff]  }
  0xff   :  { %v13074_v52 = vsub.f32 %v13052_v0, %v170_v51  ;;  %v13077_v53 = vsub.f32 %v13054_v1, %v170_v51  ;;  %v13080_v54 = vsub.f32 %v13056_v2, %v170_v51  ;;  %v13083_v56 = vsub.f32 %v13058_v3, %v170_v51  ;;  %v12731_v3 = vld [vmem:[#allocation3 + $0x38] sm:$0xff]  ;;  %v212_v51 = vld [vmem:[#allocation6] sm:$0xf] }
 0x100   :  { %v168_v55 = vpop.xlane.xlu0 %167 }
 0x101   :  { %v171_v57 = vmul.f32 0.001953125, %v168_v55  ;;  %v180_v58 = vmul.f32 %v13074_v52, %v13074_v52  ;;  %v181_v59 = vmul.f32 %v13077_v53, %v13077_v53  ;;  %v182_v60 = vmul.f32 %v13080_v54, %v13080_v54 }
 0x102   :  { %v183_v1 = vmul.f32 %v13083_v56, %v13083_v56  ;;  %v13115_v55 = vsub.s32 1, %v13112_v50 }
 0x103   :  { %v13092_v61 = vsub.f32 %v13062_v5, %v171_v57  ;;  %v13095_v62 = vsub.f32 %v13064_v6, %v171_v57  ;;  %v188_v63 = vadd.f32 %v181_v59, %v180_v58  ;;  %v13098_v0 = vsub.f32 %v13066_v7, %v171_v57 }
 0x104   :  { %v13102_v4 = vsub.f32 %v12731_v3, %v171_v57  ;;  %v13118_v57 = vsub.s32 3, %v13112_v50  ;;  %v13121_v58 = vsub.s32 0, %v13112_v50  ;;  %v13124_v59 = vsub.s32 2, %v13112_v50 }
 0x105   :  { %v189_v2 = vadd.f32 %v188_v63, %v182_v60  ;;  %v184_v8 = vmul.f32 %v13092_v61, %v13092_v61  ;;  %v185_v5 = vmul.f32 %v13095_v62, %v13095_v62  ;;  %v186_v6 = vmul.f32 %v13098_v0, %v13098_v0 }
 0x106   :  { %v187_v7 = vmul.f32 %v13102_v4, %v13102_v4  ;;  %v285_v36 = vrot.slane %v272_v31, %v13124_v59  ;;  %v289_v37 = vrot.slane %v272_v31, %v13118_v57  ;;  %v11681_v31 = vld [vmem:[#allocation9 + $0x16c] ss:$16 sps:$4 sm:$0xff]  }
 0x107   :  { %v190_v9 = vadd.f32 %v189_v2, %v183_v1  ;;  %v193_v10 = vadd.f32 %v185_v5, %v184_v8  ;;  %v221_v1 = vrot.slane %v212_v51, %v13115_v55  ;;  %v242_v2 = vld [vmem:[#allocation8] sm:$0xf]  ;;  %v229_v8 = vrot.slane %v212_v51, %v13118_v57 }
 0x108   :  { %v255_v13 = vrot.slane %v242_v2, %v13124_v59 }
 0x109   :  { %191 = vadd.xlane.f32.xlu1 %v190_v9  ;;  %v194_v11 = vadd.f32 %v193_v10, %v186_v6  ;;  %v217_v9 = vrot.slane %v212_v51, %v13121_v58  ;;  %v225_v10 = vrot.slane %v212_v51, %v13124_v59  ;;  %v11625_v51 = vld [vmem:[#allocation9 + $0x88] ss:$16 sps:$4 sm:$0xff]  }
 0x10b   :  { %v195_v12 = vadd.f32 %v194_v11, %v187_v7  ;;  %v251_v11 = vrot.slane %v242_v2, %v13115_v55 }
 0x10d   :  { %196 = vadd.xlane.f32.xlu1 %v195_v12  ;;  %v247_v12 = vrot.slane %v242_v2, %v13121_v58 }
 0x192   :  { %v192_v43 = vpop.xlane.xlu1 %191 }
 0x193   :  { %v198_v44 = vmul.f32 0.001953125, %v192_v43 }
 0x195   :  { %v200_v45 = vadd.f32 1e-05, %v198_v44 }
 0x196   :  { %v197_v46 = vpop.xlane.xlu1 %196 }
 0x197   :  { %12663 = vrsqrt.f32 %v200_v45  ;;  %v199_v47 = vmul.f32 0.001953125, %v197_v46  ;;  %v11619_v46 = vld [vmem:[#allocation9 + $0xa8] ss:$16 sps:$4 sm:$0xff]  }
 0x199   :  { %v201_v48 = vadd.f32 1e-05, %v199_v47  ;;  %v11622_v47 = vld [vmem:[#allocation9 + $0x2a8] ss:$16 sps:$4 sm:$0xff]  }
 0x19b   :  { %12665 = vrsqrt.f32 %v201_v48  ;;  %v11627_v48 = vld [vmem:[#allocation9 + $0x8c] ss:$16 sps:$4 sm:$0xff]  }
 0x1a4   :  { %v12664_v60 = vpop.eup %12663 }
 0x1a5   :  { %v205_v63 = vmul.f32 %v12664_v60, %v13077_v53  ;;  %v207_v3 = vmul.f32 %v12664_v60, %v13083_v56  ;;  %v204_v5 = vmul.f32 %v12664_v60, %v13074_v52  ;;  %v206_v6 = vmul.f32 %v12664_v60, %v13080_v54  ;;  %v11628_v60 = vld [vmem:[#allocation9 + $0x288] ss:$16 sps:$4 sm:$0xff]  }
 0x1a6   :  { %v259_v53 = vrot.slane %v242_v2, %v13118_v57  ;;  %v11631_v2 = vld [vmem:[#allocation9 + $0x68] ss:$16 sps:$4 sm:$0xff]  }
 0x1a7   :  { %v235_v14 = vmul.f32 %v221_v1, %v205_v63  ;;  %v237_v15 = vmul.f32 %v229_v8, %v207_v3  ;;  %v234_v54 = vmul.f32 %v217_v9, %v204_v5  ;;  %v236_v18 = vmul.f32 %v225_v10, %v206_v6  ;;  %v11633_v63 = vld [vmem:[#allocation9 + $0x6c] ss:$16 sps:$4 sm:$0xff]   ;;  %v11634_v3 = vld [vmem:[#allocation9 + $0x268] ss:$16 sps:$4 sm:$0xff]  }
 0x1a8   :  { %v12666_v7 = vpop.eup %12665  ;;  %v11642_v5 = vld [vmem:[#allocation9 + $0x24c] ss:$16 sps:$4 sm:$0xff]   ;;  %v11640_v6 = vld [vmem:[#allocation9 + $0x248] ss:$16 sps:$4 sm:$0xff]  }
 0x1a9   :  { %v209_v56 = vmul.f32 %v12666_v7, %v13095_v62  ;;  %v211_v52 = vmul.f32 %v12666_v7, %v13102_v4  ;;  %v208_v16 = vmul.f32 %v12666_v7, %v13092_v61  ;;  %v210_v17 = vmul.f32 %v12666_v7, %v13098_v0  ;;  %v11648_v7 = vld [vmem:[#allocation9 + $0x22c] ss:$16 sps:$4 sm:$0xff]  }
 0x1aa   :  { %v13142_v23 = vadd.f32 %v251_v11, %v235_v14  ;;  %v267_v25 = vadd.f32 %v259_v53, %v237_v15  ;;  %v13146_v4 = vadd.f32 %v247_v12, %v234_v54  ;;  %v266_v61 = vadd.f32 %v255_v13, %v236_v18  ;;  %v11652_v14 = vld [vmem:[#allocation9 + $0x208] ss:$16 sps:$4 sm:$0xff]   ;;  %v11660_v15 = vld [vmem:[#allocation9 + $0x3ec] ss:$16 sps:$4 sm:$0xff]  }
 0x1ab   :  { %v239_v19 = vmul.f32 %v221_v1, %v209_v56  ;;  %v241_v20 = vmul.f32 %v229_v8, %v211_v52  ;;  %v238_v21 = vmul.f32 %v217_v9, %v208_v16  ;;  %v240_v22 = vmul.f32 %v225_v10, %v210_v17  ;;  %v11636_v1 = vld [vmem:[#allocation9 + $0x26c] ss:$16 sps:$4 sm:$0xff]   ;;  %v11637_v9 = vld [vmem:[#allocation9 + $0x48] ss:$16 sps:$4 sm:$0xff]  }
 0x1ac   :  { %v13170_v42 = vadd.f32 %v285_v36, %v266_v61  ;;  %v13172_v43 = vadd.f32 %v289_v37, %v267_v25  ;;  %v11639_v8 = vld [vmem:[#allocation9 + $0x4c] ss:$16 sps:$4 sm:$0xff]   ;;  %v11649_v56 = vld [vmem:[#allocation9 + $0x8] ss:$16 sps:$4 sm:$0xff]  }
 0x1ad   :  { %v13144_v24 = vadd.f32 %v251_v11, %v239_v19  ;;  %v271_v62 = vadd.f32 %v259_v53, %v241_v20  ;;  %v13148_v28 = vadd.f32 %v247_v12, %v238_v21  ;;  %v270_v29 = vadd.f32 %v255_v13, %v240_v22  ;;  %v11645_v10 = vld [vmem:[#allocation9 + $0x2c] ss:$16 sps:$4 sm:$0xff]   ;;  %v11643_v11 = vld [vmem:[#allocation9 + $0x28] ss:$16 sps:$4 sm:$0xff]  }
 0x1ae   :  { %v11646_v53 = vld [vmem:[#allocation9 + $0x228] ss:$16 sps:$4 sm:$0xff]   ;;  %v11651_v12 = vld [vmem:[#allocation9 + $0xc] ss:$16 sps:$4 sm:$0xff]  }
 0x1af   :  { %v13152_v0 = vpack.c.bf16 %v13144_v24, %v13142_v23  ;;  %v13154_v30 = vpack.c.bf16 %v271_v62, %v267_v25  ;;  %v13158_v32 = vpack.c.bf16 %v13148_v28, %v13146_v4  ;;  %v13160_v33 = vpack.c.bf16 %v270_v29, %v266_v61  ;;  %v11654_v13 = vld [vmem:[#allocation9 + $0x20c] ss:$16 sps:$4 sm:$0xff]   ;;  %v11655_v16 = vld [vmem:[#allocation9 + $0x1e8] ss:$16 sps:$4 sm:$0xff]  }
 0x1b0   :  { %v13174_v44 = vadd.f32 %v285_v36, %v270_v29  ;;  %v13176_v45 = vadd.f32 %v289_v37, %v271_v62  ;;  %v11657_v52 = vld [vmem:[#allocation9 + $0x1ec] ss:$16 sps:$4 sm:$0xff]   ;;  %v11658_v54 = vld [vmem:[#allocation9 + $0x3e8] ss:$16 sps:$4 sm:$0xff]  }
 0x1b1   :  { %1170 = vmatprep.mubr.bf16.mxu0 %v13152_v0  ;;  %1213 = vmatprep.mubr.bf16.mxu1 %v13154_v30  ;;  %v11663_v17 = vld [vmem:[#allocation9 + $0x1cc] ss:$16 sps:$4 sm:$0xff]   ;;  %v11661_v19 = vld [vmem:[#allocation9 + $0x1c8] ss:$16 sps:$4 sm:$0xff]  }
 0x1b2   :  { %1171 = vmatmul.mubr.bf16.vlgmr.msra.gmra.mxu0 %v13158_v32  ;;  %1214 = vmatmul.mubr.bf16.vlgmr.msra.gmra.mxu1 %v13160_v33  ;;  %13778 = vst [vmem:[#allocation25_spill] sm:$0xff] %v13174_v44  ;;  %13779 = vst [vmem:[#allocation26_spill] sm:$0xff] %v13176_v45  ;;  %v11666_v18 = vld [vmem:[#allocation9 + $0x3cc] ss:$16 sps:$4 sm:$0xff]   ;;  %v11664_v20 = vld [vmem:[#allocation9 + $0x3c8] ss:$16 sps:$4 sm:$0xff]  }
 0x1b3   :  { %1225 = vmatpush1.bf16.msra.mxu0 %v11607_v26  ;;  %1268 = vmatpush1.bf16.msra.mxu1 %v11610_v27  ;;  %v11669_v21 = vld [vmem:[#allocation9 + $0x1ac] ss:$16 sps:$4 sm:$0xff]   ;;  %v11667_v25 = vld [vmem:[#allocation9 + $0x1a8] ss:$16 sps:$4 sm:$0xff]  }
 0x1b4   :  { %1256 = vmatprep.mubr.bf16.mxu0 %v13152_v0  ;;  %1299 = vmatprep.mubr.bf16.mxu1 %v13154_v30  ;;  %v11672_v22 = vld [vmem:[#allocation9 + $0x3ac] ss:$16 sps:$4 sm:$0xff]   ;;  %v11670_v62 = vld [vmem:[#allocation9 + $0x3a8] ss:$16 sps:$4 sm:$0xff]  }
 0x1b5   :  { %1226 = vmatprep.subr.bf16.mxu0 %v11615_v34  ;;  %1269 = vmatprep.subr.bf16.mxu1 %v11618_v35  ;;  %v11675_v26 = vld [vmem:[#allocation9 + $0x18c] ss:$16 sps:$4 sm:$0xff]   ;;  %v11673_v61 = vld [vmem:[#allocation9 + $0x188] ss:$16 sps:$4 sm:$0xff]  }
 0x1b6   :  { %v11678_v27 = vld [vmem:[#allocation9 + $0x38c] ss:$16 sps:$4 sm:$0xff]   ;;  %v11676_v29 = vld [vmem:[#allocation9 + $0x388] ss:$16 sps:$4 sm:$0xff]  }
 0x1b7   :  { %1227 = vmatpush1.bf16.msra.mxu0 %v11613_v38  ;;  %1270 = vmatpush1.bf16.msra.mxu1 %v11616_v39  ;;  %v11684_v34 = vld [vmem:[#allocation9 + $0x36c] ss:$16 sps:$4 sm:$0xff]   ;;  %v11679_v35 = vld [vmem:[#allocation9 + $0x168] ss:$16 sps:$4 sm:$0xff]  }
 0x1b8   :  { %1228 = vmatprep.subr.bf16.mxu0 %v11621_v40  ;;  %1271 = vmatprep.subr.bf16.mxu1 %v11624_v41  ;;  %v11682_v36 = vld [vmem:[#allocation9 + $0x368] ss:$16 sps:$4 sm:$0xff]   ;;  %v11687_v37 = vld [vmem:[#allocation9 + $0x14c] ss:$16 sps:$4 sm:$0xff]  }
 0x1b9   :  { %v11690_v38 = vld [vmem:[#allocation9 + $0x34c] ss:$16 sps:$4 sm:$0xff]   ;;  %v11685_v39 = vld [vmem:[#allocation9 + $0x148] ss:$16 sps:$4 sm:$0xff]  }
 0x1ba   :  { %v11688_v40 = vld [vmem:[#allocation9 + $0x348] ss:$16 sps:$4 sm:$0xff]   ;;  %v11693_v41 = vld [vmem:[#allocation9 + $0x12c] ss:$16 sps:$4 sm:$0xff]  }
 0x1bb   :  { %1229 = vmatpush1.bf16.msra.mxu0 %v11619_v46  ;;  %1272 = vmatpush1.bf16.msra.mxu1 %v11622_v47  ;;  %v11696_v46 = vld [vmem:[#allocation9 + $0x32c] ss:$16 sps:$4 sm:$0xff]   ;;  %v11691_v47 = vld [vmem:[#allocation9 + $0x128] ss:$16 sps:$4 sm:$0xff]  }
 0x1bc   :  { %1230 = vmatprep.subr.bf16.mxu0 %v11627_v48  ;;  %1273 = vmatprep.subr.bf16.mxu1 %v11630_v49  ;;  %v11694_v48 = vld [vmem:[#allocation9 + $0x328] ss:$16 sps:$4 sm:$0xff]   ;;  %v11699_v49 = vld [vmem:[#allocation9 + $0x10c] ss:$16 sps:$4 sm:$0xff]  }
 0x1bd   :  { %v1761_v45 = vld [vmem:[#allocation12 + $0x9f8] sm:$0xff] }
 0x1be   :  { %v1473_v44 = vld [vmem:[#allocation12 + $0xf8] sm:$0xff] }
 0x1bf   :  { %1231 = vmatpush1.bf16.msra.mxu0 %v11625_v51  ;;  %1274 = vmatpush1.bf16.msra.mxu1 %v11628_v60  ;;  %v11702_v51 = vld [vmem:[#allocation9 + $0x30c] ss:$16 sps:$4 sm:$0xff]   ;;  %v1554_v60 = vld [vmem:[#allocation12 + $0x380] sm:$0xff] }
 0x1c0   :  { %1232 = vmatprep.subr.bf16.mxu0 %v11633_v63  ;;  %1275 = vmatprep.subr.bf16.mxu1 %v11636_v1  ;;  %v1562_v63 = vld [vmem:[#allocation12 + $0x3c0] sm:$0xff] }
 0x1c1   :  { %v1810_v1 = vld [vmem:[#allocation12 + $0xb80] sm:$0xff] }
 0x1c3   :  { %1233 = vmatpush1.bf16.msra.mxu0 %v11631_v2  ;;  %1276 = vmatpush1.bf16.msra.mxu1 %v11634_v3  ;;  %v1818_v2 = vld [vmem:[#allocation12 + $0xbc0] sm:$0xff]  ;;  %v11697_v3 = vld [vmem:[#allocation9 + $0x108] ss:$16 sps:$4 sm:$0xff]  }
 0x1c4   :  { %1234 = vmatprep.subr.bf16.mxu0 %v11639_v8  ;;  %1277 = vmatprep.subr.bf16.mxu1 %v11642_v5  ;;  %v11700_v8 = vld [vmem:[#allocation9 + $0x308] ss:$16 sps:$4 sm:$0xff]   ;;  %v10448_v5 = vcombine.high %v1554_v60, %v1562_v63 }
 0x1c7   :  { %1235 = vmatpush1.bf16.msra.mxu0 %v11637_v9  ;;  %1278 = vmatpush1.bf16.msra.mxu1 %v11640_v6  ;;  %v10704_v9 = vcombine.high %v1810_v1, %v1818_v2  ;;  %v1538_v6 = vld [vmem:[#allocation12 + $0x300] sm:$0xff] }
 0x1c8   :  { %1236 = vmatprep.subr.bf16.mxu0 %v11645_v10  ;;  %1279 = vmatprep.subr.bf16.mxu1 %v11648_v7  ;;  %v1546_v10 = vld [vmem:[#allocation12 + $0x340] sm:$0xff] }
 0x1c9   :  { %v1794_v7 = vld [vmem:[#allocation12 + $0xb00] sm:$0xff] }
 0x1cb   :  { %1237 = vmatpush1.bf16.msra.mxu0 %v11643_v11  ;;  %1280 = vmatpush1.bf16.msra.mxu1 %v11646_v53  ;;  %v1802_v11 = vld [vmem:[#allocation12 + $0xb40] sm:$0xff]  ;;  %v10447_v53 = vcombine.low %v1554_v60, %v1562_v63 }
 0x1cc   :  { %1238 = vmatprep.subr.bf16.mxu0 %v11651_v12  ;;  %1281 = vmatprep.subr.bf16.mxu1 %v11654_v13  ;;  %v10703_v12 = vcombine.low %v1810_v1, %v1818_v2  ;;  %v10432_v13 = vcombine.high %v1538_v6, %v1546_v10  ;;  %v1458_v63 = vld [vmem:[#allocation12 + $0x80] sm:$0xff] }
 0x1cd   :  { %v1466_v1 = vld [vmem:[#allocation12 + $0xc0] sm:$0xff] }
 0x1ce   :  { %v1714_v2 = vld [vmem:[#allocation12 + $0x880] sm:$0xff] }
 0x1cf   :  { %1239 = vmatpush1.bf16.msra.mxu0 %v11649_v56  ;;  %1282 = vmatpush1.bf16.msra.mxu1 %v11652_v14  ;;  %v10688_v56 = vcombine.high %v1794_v7, %v1802_v11  ;;  %v1522_v14 = vld [vmem:[#allocation12 + $0x280] sm:$0xff] }
 0x1d0   :  { %1240 = vmatprep.subr.bf16.mxu0 %v11657_v52  ;;  %1283 = vmatprep.subr.bf16.mxu1 %v11660_v15  ;;  %v1530_v52 = vld [vmem:[#allocation12 + $0x2c0] sm:$0xff] }
 0x1d1   :  { %v1778_v15 = vld [vmem:[#allocation12 + $0xa80] sm:$0xff] }
 0x1d3   :  { %1241 = vmatpush2.bf16.msra.mxu0 %v11655_v16  ;;  %1284 = vmatpush2.bf16.msra.mxu1 %v11658_v54  ;;  %v1786_v16 = vld [vmem:[#allocation12 + $0xac0] sm:$0xff]  ;;  %v10431_v54 = vcombine.low %v1538_v6, %v1546_v10 }
 0x1d4   :  { %1242 = vmatprep.subr.bf16.mxu0 %v11663_v17  ;;  %1285 = vmatprep.subr.bf16.mxu1 %v11666_v18  ;;  %v10687_v17 = vcombine.low %v1794_v7, %v1802_v11  ;;  %v10416_v18 = vcombine.high %v1522_v14, %v1530_v52  ;;  %v1442_v10 = vld [vmem:[#allocation12] sm:$0xff] }
 0x1d5   :  { %v1450_v7 = vld [vmem:[#allocation12 + $0x40] sm:$0xff] }
 0x1d6   :  { %v1698_v11 = vld [vmem:[#allocation12 + $0x800] sm:$0xff] }
 0x1d7   :  { %1243 = vmatpush2.bf16.msra.mxu0 %v11661_v19  ;;  %1286 = vmatpush2.bf16.msra.mxu1 %v11664_v20  ;;  %v10672_v19 = vcombine.high %v1778_v15, %v1786_v16  ;;  %v1506_v20 = vld [vmem:[#allocation12 + $0x200] sm:$0xff] }
 0x1d8   :  { %1244 = vmatprep.subr.bf16.mxu0 %v11669_v21  ;;  %1287 = vmatprep.subr.bf16.mxu1 %v11672_v22  ;;  %v1514_v21 = vld [vmem:[#allocation12 + $0x240] sm:$0xff] }
 0x1d9   :  { %v1762_v22 = vld [vmem:[#allocation12 + $0xa00] sm:$0xff] }
 0x1db   :  { %1245 = vmatpush2.bf16.msra.mxu0 %v11667_v25  ;;  %1288 = vmatpush2.bf16.msra.mxu1 %v11670_v62  ;;  %v1770_v25 = vld [vmem:[#allocation12 + $0xa40] sm:$0xff]  ;;  %v10415_v62 = vcombine.low %v1522_v14, %v1530_v52 }
 0x1dc   :  { %1246 = vmatprep.subr.bf16.mxu0 %v11675_v26  ;;  %1289 = vmatprep.subr.bf16.mxu1 %v11678_v27  ;;  %v10671_v26 = vcombine.low %v1778_v15, %v1786_v16  ;;  %v10400_v27 = vcombine.high %v1506_v20, %v1514_v21  ;;  %v1682_v52 = vld [vmem:[#allocation12 + $0x780] sm:$0xff] }
 0x1dd   :  { %v1690_v15 = vld [vmem:[#allocation12 + $0x7c0] sm:$0xff] }
 0x1de   :  { %v1938_v16 = vld [vmem:[#allocation12 + $0xf80] sm:$0xff] }
 0x1df   :  { %1247 = vmatpush2.bf16.msra.mxu0 %v11673_v61  ;;  %1290 = vmatpush2.bf16.msra.mxu1 %v11676_v29  ;;  %v10656_v61 = vcombine.high %v1762_v22, %v1770_v25  ;;  %v1490_v29 = vld [vmem:[#allocation12 + $0x180] sm:$0xff] }
 0x1e0   :  { %1248 = vmatprep.subr.bf16.mxu0 %v11681_v31  ;;  %1291 = vmatprep.subr.bf16.mxu1 %v11684_v34  ;;  %v1498_v31 = vld [vmem:[#allocation12 + $0x1c0] sm:$0xff] }
 0x1e1   :  { %v1746_v34 = vld [vmem:[#allocation12 + $0x980] sm:$0xff] }
 0x1e3   :  { %1249 = vmatpush2.bf16.msra.mxu0 %v11679_v35  ;;  %1292 = vmatpush2.bf16.msra.mxu1 %v11682_v36  ;;  %v1754_v35 = vld [vmem:[#allocation12 + $0x9c0] sm:$0xff]  ;;  %v10399_v36 = vcombine.low %v1506_v20, %v1514_v21 }
 0x1e4   :  { %1250 = vmatprep.subr.bf16.mxu0 %v11687_v37  ;;  %1293 = vmatprep.subr.bf16.mxu1 %v11690_v38  ;;  %v10655_v37 = vcombine.low %v1762_v22, %v1770_v25  ;;  %v10384_v38 = vcombine.high %v1490_v29, %v1498_v31  ;;  %v1666_v21 = vld [vmem:[#allocation12 + $0x700] sm:$0xff] }
 0x1e5   :  { %v1674_v22 = vld [vmem:[#allocation12 + $0x740] sm:$0xff] }
 0x1e6   :  { %v1922_v25 = vld [vmem:[#allocation12 + $0xf00] sm:$0xff] }
 0x1e7   :  { %1251 = vmatpush2.bf16.msra.mxu0 %v11685_v39  ;;  %1294 = vmatpush2.bf16.msra.mxu1 %v11688_v40  ;;  %v10640_v39 = vcombine.high %v1746_v34, %v1754_v35  ;;  %v1474_v40 = vld [vmem:[#allocation12 + $0x100] sm:$0xff] }
 0x1e8   :  { %1252 = vmatprep.subr.bf16.mxu0 %v11693_v41  ;;  %1295 = vmatprep.subr.bf16.mxu1 %v11696_v46  ;;  %v1482_v41 = vld [vmem:[#allocation12 + $0x140] sm:$0xff] }
 0x1e9   :  { %v1730_v46 = vld [vmem:[#allocation12 + $0x900] sm:$0xff] }
 0x1eb   :  { %1253 = vmatpush2.bf16.msra.mxu0 %v11691_v47  ;;  %1296 = vmatpush2.bf16.msra.mxu1 %v11694_v48  ;;  %v1738_v47 = vld [vmem:[#allocation12 + $0x940] sm:$0xff]  ;;  %v10383_v48 = vcombine.low %v1490_v29, %v1498_v31 }
 0x1ec   :  { %1254 = vmatprep.subr.bf16.mxu0 %v11699_v49  ;;  %1297 = vmatprep.subr.bf16.mxu1 %v11702_v51  ;;  %v10639_v49 = vcombine.low %v1746_v34, %v1754_v35  ;;  %v10368_v51 = vcombine.high %v1474_v40, %v1482_v41  ;;  %v10624_v60 = vcombine.high %v1730_v46, %v1738_v47  ;;  %v1650_v31 = vld [vmem:[#allocation12 + $0x680] sm:$0xff] }
 0x1ed   :  { %v1658_v34 = vld [vmem:[#allocation12 + $0x6c0] sm:$0xff] }
 0x1ee   :  { %v1906_v35 = vld [vmem:[#allocation12 + $0xe80] sm:$0xff] }
 0x1ef   :  { %1255 = vmatpush2.bf16.msra.mxu0 %v11697_v3  ;;  %1298 = vmatpush2.bf16.msra.mxu1 %v11700_v8  ;;  %v1722_v3 = vld [vmem:[#allocation12 + $0x8c0] sm:$0xff]  ;;  %v10367_v8 = vcombine.low %v1474_v40, %v1482_v41 }
 0x1f0   :  { %4598 = vmatprep.subr.bf16.mxu0 %v10448_v5  ;;  %4641 = vmatprep.subr.bf16.mxu1 %v10704_v9  ;;  %v10623_v5 = vcombine.low %v1730_v46, %v1738_v47  ;;  %v10352_v9 = vcombine.high %v1458_v63, %v1466_v1  ;;  %v10608_v6 = vcombine.high %v1714_v2, %v1722_v3  ;;  %v1634_v41 = vld [vmem:[#allocation12 + $0x600] sm:$0xff] }
 0x1f1   :  { %v1642_v46 = vld [vmem:[#allocation12 + $0x640] sm:$0xff] }
 0x1f2   :  { %1257 = vmatmul.mubr.bf16.vlgmr.msra.gmra.mxu0 %v13158_v32  ;;  %1300 = vmatmul.mubr.bf16.vlgmr.msra.gmra.mxu1 %v13160_v33  ;;  %v1890_v47 = vld [vmem:[#allocation12 + $0xe00] sm:$0xff] }
 0x1f3   :  { %4599 = vmatpush1.bf16.msra.mxu0 %v10447_v53  ;;  %4630 = vmatprep.mubr.bf16.mxu0 %v13152_v0  ;;  %v1706_v53 = vld [vmem:[#allocation12 + $0x840] sm:$0xff] }
 0x1f4   :  { %4642 = vmatpush1.bf16.msra.mxu1 %v10703_v12  ;;  %4673 = vmatprep.mubr.bf16.mxu1 %v13154_v30  ;;  %v10351_v12 = vcombine.low %v1458_v63, %v1466_v1  ;;  %v10592_v14 = vcombine.high %v1698_v11, %v1706_v53  ;;  %v1618_v1 = vld [vmem:[#allocation12 + $0x580] sm:$0xff] }
 0x1f5   :  { %4600 = vmatprep.subr.bf16.mxu0 %v10432_v13  ;;  %4643 = vmatprep.subr.bf16.mxu1 %v10688_v56  ;;  %v10607_v13 = vcombine.low %v1714_v2, %v1722_v3  ;;  %v10336_v56 = vcombine.high %v1442_v10, %v1450_v7  ;;  %v1626_v2 = vld [vmem:[#allocation12 + $0x5c0] sm:$0xff] }
 0x1f6   :  { %v1874_v3 = vld [vmem:[#allocation12 + $0xd80] sm:$0xff] }
 0x1f7   :  { %4601 = vmatpush1.bf16.msra.mxu0 %v10431_v54  ;;  %v1946_v54 = vld [vmem:[#allocation12 + $0xfc0] sm:$0xff] }
 0x1f8   :  { %4644 = vmatpush1.bf16.msra.mxu1 %v10687_v17  ;;  %4602 = vmatprep.subr.bf16.mxu0 %v10416_v18  ;;  %v10335_v17 = vcombine.low %v1442_v10, %v1450_v7  ;;  %v10591_v18 = vcombine.low %v1698_v11, %v1706_v53  ;;  %v10832_v20 = vcombine.high %v1938_v16, %v1946_v54  ;;  %v1602_v7 = vld [vmem:[#allocation12 + $0x500] sm:$0xff] }
 0x1f9   :  { %4645 = vmatprep.subr.bf16.mxu1 %v10672_v19  ;;  %v10576_v19 = vcombine.high %v1682_v52, %v1690_v15  ;;  %v1610_v11 = vld [vmem:[#allocation12 + $0x540] sm:$0xff] }
 0x1fa   :  { %v1858_v53 = vld [vmem:[#allocation12 + $0xd00] sm:$0xff] }
 0x1fb   :  { %4603 = vmatpush1.bf16.msra.mxu0 %v10415_v62  ;;  %v1930_v62 = vld [vmem:[#allocation12 + $0xf40] sm:$0xff] }
 0x1fc   :  { %4646 = vmatpush1.bf16.msra.mxu1 %v10671_v26  ;;  %4604 = vmatprep.subr.bf16.mxu0 %v10400_v27  ;;  %v10575_v26 = vcombine.low %v1682_v52, %v1690_v15  ;;  %v10831_v27 = vcombine.low %v1938_v16, %v1946_v54  ;;  %v10816_v29 = vcombine.high %v1922_v25, %v1930_v62  ;;  %v1586_v15 = vld [vmem:[#allocation12 + $0x480] sm:$0xff] }
 0x1fd   :  { %4647 = vmatprep.subr.bf16.mxu1 %v10656_v61  ;;  %v10560_v61 = vcombine.high %v1666_v21, %v1674_v22  ;;  %v1594_v16 = vld [vmem:[#allocation12 + $0x4c0] sm:$0xff] }
 0x1fe   :  { %v1842_v54 = vld [vmem:[#allocation12 + $0xc80] sm:$0xff] }
 0x1ff   :  { %4605 = vmatpush1.bf16.msra.mxu0 %v10399_v36  ;;  %v1914_v36 = vld [vmem:[#allocation12 + $0xec0] sm:$0xff] }
 0x200   :  { %4648 = vmatpush1.bf16.msra.mxu1 %v10655_v37  ;;  %4606 = vmatprep.subr.bf16.mxu0 %v10384_v38  ;;  %v10559_v37 = vcombine.low %v1666_v21, %v1674_v22  ;;  %v10815_v38 = vcombine.low %v1922_v25, %v1930_v62  ;;  %v10800_v40 = vcombine.high %v1906_v35, %v1914_v36  ;;  %v1570_v22 = vld [vmem:[#allocation12 + $0x400] sm:$0xff] }
 0x201   :  { %4649 = vmatprep.subr.bf16.mxu1 %v10640_v39  ;;  %v10544_v39 = vcombine.high %v1650_v31, %v1658_v34  ;;  %v1578_v25 = vld [vmem:[#allocation12 + $0x440] sm:$0xff] }
 0x202   :  { %v1826_v62 = vld [vmem:[#allocation12 + $0xc00] sm:$0xff] }
 0x203   :  { %4607 = vmatpush1.bf16.msra.mxu0 %v10383_v48  ;;  %v1898_v48 = vld [vmem:[#allocation12 + $0xe40] sm:$0xff] }
 0x204   :  { %4650 = vmatpush1.bf16.msra.mxu1 %v10639_v49  ;;  %4608 = vmatprep.subr.bf16.mxu0 %v10368_v51  ;;  %v10543_v49 = vcombine.low %v1650_v31, %v1658_v34  ;;  %v10799_v51 = vcombine.low %v1906_v35, %v1914_v36  ;;  %v10784_v63 = vcombine.high %v1890_v47, %v1898_v48  ;;  %v1555_v34 = vld [vmem:[#allocation12 + $0x388] sm:$0xff] }
 0x205   :  { %4651 = vmatprep.subr.bf16.mxu1 %v10624_v60  ;;  %v10528_v60 = vcombine.high %v1634_v41, %v1642_v46  ;;  %v1563_v35 = vld [vmem:[#allocation12 + $0x3c8] sm:$0xff] }
 0x206   :  { %v1811_v36 = vld [vmem:[#allocation12 + $0xb88] sm:$0xff] }
 0x207   :  { %4609 = vmatpush1.bf16.msra.mxu0 %v10367_v8  ;;  %v1882_v8 = vld [vmem:[#allocation12 + $0xdc0] sm:$0xff] }
 0x208   :  { %4652 = vmatpush1.bf16.msra.mxu1 %v10623_v5  ;;  %4610 = vmatprep.subr.bf16.mxu0 %v10352_v9  ;;  %v10527_v5 = vcombine.low %v1634_v41, %v1642_v46  ;;  %v10783_v9 = vcombine.low %v1890_v47, %v1898_v48  ;;  %v10768_v10 = vcombine.high %v1874_v3, %v1882_v8  ;;  %v1539_v46 = vld [vmem:[#allocation12 + $0x308] sm:$0xff] }
 0x209   :  { %4653 = vmatprep.subr.bf16.mxu1 %v10608_v6  ;;  %v10512_v6 = vcombine.high %v1618_v1, %v1626_v2  ;;  %v1547_v47 = vld [vmem:[#allocation12 + $0x348] sm:$0xff]  ;;  %v10449_v48 = vcombine.low %v1555_v34, %v1563_v35 }
 0x20b   :  { %4611 = vmatpush1.bf16.msra.mxu0 %v10351_v12  ;;  %v1866_v12 = vld [vmem:[#allocation12 + $0xd40] sm:$0xff] }
 0x20c   :  { %4654 = vmatpush1.bf16.msra.mxu1 %v10607_v13  ;;  %4612 = vmatprep.subr.bf16.mxu0 %v10336_v56  ;;  %v10511_v13 = vcombine.low %v1618_v1, %v1626_v2  ;;  %v10767_v56 = vcombine.low %v1874_v3, %v1882_v8  ;;  %v10752_v52 = vcombine.high %v1858_v53, %v1866_v12  ;;  %v1523_v1 = vld [vmem:[#allocation12 + $0x288] sm:$0xff] }
 0x20d   :  { %4655 = vmatprep.subr.bf16.mxu1 %v10592_v14  ;;  %v10496_v14 = vcombine.high %v1602_v7, %v1610_v11  ;;  %v1531_v2 = vld [vmem:[#allocation12 + $0x2c8] sm:$0xff] }
 0x20e   :  { %v1779_v8 = vld [vmem:[#allocation12 + $0xa88] sm:$0xff] }
 0x20f   :  { %4613 = vmatpush1.bf16.msra.mxu0 %v10335_v17  ;;  %v1850_v17 = vld [vmem:[#allocation12 + $0xcc0] sm:$0xff] }
 0x210   :  { %4656 = vmatpush1.bf16.msra.mxu1 %v10591_v18  ;;  %4614 = vmatprep.subr.bf16.mxu0 %v10576_v19  ;;  %v10495_v18 = vcombine.low %v1602_v7, %v1610_v11  ;;  %v10751_v19 = vcombine.low %v1858_v53, %v1866_v12  ;;  %v10736_v21 = vcombine.high %v1842_v54, %v1850_v17  ;;  %v1507_v11 = vld [vmem:[#allocation12 + $0x208] sm:$0xff] }
 0x211   :  { %4657 = vmatprep.subr.bf16.mxu1 %v10832_v20  ;;  %v10480_v20 = vcombine.high %v1586_v15, %v1594_v16  ;;  %v1515_v53 = vld [vmem:[#allocation12 + $0x248] sm:$0xff] }
 0x212   :  { %v1763_v12 = vld [vmem:[#allocation12 + $0xa08] sm:$0xff] }
 0x213   :  { %4615 = vmatpush2.bf16.msra.mxu0 %v10575_v26  ;;  %v1834_v26 = vld [vmem:[#allocation12 + $0xc40] sm:$0xff] }
 0x214   :  { %4658 = vmatpush2.bf16.msra.mxu1 %v10831_v27  ;;  %4616 = vmatprep.subr.bf16.mxu0 %v10560_v61  ;;  %v10479_v27 = vcombine.low %v1586_v15, %v1594_v16  ;;  %v10735_v61 = vcombine.low %v1842_v54, %v1850_v17  ;;  %v10720_v31 = vcombine.high %v1826_v62, %v1834_v26  ;;  %v1491_v16 = vld [vmem:[#allocation12 + $0x188] sm:$0xff] }
 0x215   :  { %4659 = vmatprep.subr.bf16.mxu1 %v10816_v29  ;;  %v10464_v29 = vcombine.high %v1570_v22, %v1578_v25  ;;  %v1499_v54 = vld [vmem:[#allocation12 + $0x1c8] sm:$0xff] }
 0x216   :  { %v1747_v17 = vld [vmem:[#allocation12 + $0x988] sm:$0xff] }
 0x217   :  { %4617 = vmatpush2.bf16.msra.mxu0 %v10559_v37  ;;  %v1819_v37 = vld [vmem:[#allocation12 + $0xbc8] sm:$0xff] }
 0x218   :  { %4660 = vmatpush2.bf16.msra.mxu1 %v10815_v38  ;;  %4618 = vmatprep.subr.bf16.mxu0 %v10544_v39  ;;  %v10463_v38 = vcombine.low %v1570_v22, %v1578_v25  ;;  %v10719_v39 = vcombine.low %v1826_v62, %v1834_v26  ;;  %v10706_v41 = vcombine.high %v1811_v36, %v1819_v37  ;;  %v1475_v25 = vld [vmem:[#allocation12 + $0x108] sm:$0xff] }
 0x219   :  { %4661 = vmatprep.subr.bf16.mxu1 %v10800_v40  ;;  %v10450_v40 = vcombine.high %v1555_v34, %v1563_v35  ;;  %v1483_v62 = vld [vmem:[#allocation12 + $0x148] sm:$0xff] }
 0x21a   :  { %v1731_v26 = vld [vmem:[#allocation12 + $0x908] sm:$0xff] }
 0x21b   :  { %4619 = vmatpush2.bf16.msra.mxu0 %v10543_v49  ;;  %v1795_v49 = vld [vmem:[#allocation12 + $0xb08] sm:$0xff] }
 0x21c   :  { %4662 = vmatpush2.bf16.msra.mxu1 %v10799_v51  ;;  %4620 = vmatprep.subr.bf16.mxu0 %v10528_v60  ;;  %v1803_v51 = vld [vmem:[#allocation12 + $0xb48] sm:$0xff]  ;;  %v10705_v60 = vcombine.low %v1811_v36, %v1819_v37 }
 0x21d   :  { %4663 = vmatprep.subr.bf16.mxu1 %v10784_v63  ;;  %v10434_v63 = vcombine.high %v1539_v46, %v1547_v47  ;;  %v10690_v3 = vcombine.high %v1795_v49, %v1803_v51  ;;  %v1459_v35 = vld [vmem:[#allocation12 + $0x88] sm:$0xff] }
 0x21e   :  { %v1467_v36 = vld [vmem:[#allocation12 + $0xc8] sm:$0xff] }
 0x21f   :  { %4621 = vmatpush2.bf16.msra.mxu0 %v10527_v5  ;;  %v1787_v5 = vld [vmem:[#allocation12 + $0xac8] sm:$0xff] }
 0x220   :  { %4664 = vmatpush2.bf16.msra.mxu1 %v10783_v9  ;;  %4622 = vmatprep.subr.bf16.mxu0 %v10512_v6  ;;  %v10433_v9 = vcombine.low %v1539_v46, %v1547_v47  ;;  %v10689_v6 = vcombine.low %v1795_v49, %v1803_v51  ;;  %v10674_v7 = vcombine.high %v1779_v8, %v1787_v5  ;;  %v1715_v37 = vld [vmem:[#allocation12 + $0x888] sm:$0xff] }
 0x221   :  { %4665 = vmatprep.subr.bf16.mxu1 %v10768_v10  ;;  %v10418_v10 = vcombine.high %v1523_v1, %v1531_v2  ;;  %v1443_v47 = vld [vmem:[#allocation12 + $0x8] sm:$0xff] }
 0x222   :  { %v1699_v49 = vld [vmem:[#allocation12 + $0x808] sm:$0xff] }
 0x223   :  { %4623 = vmatpush2.bf16.msra.mxu0 %v10511_v13  ;;  %v1771_v13 = vld [vmem:[#allocation12 + $0xa48] sm:$0xff] }
 0x224   :  { %4666 = vmatpush2.bf16.msra.mxu1 %v10767_v56  ;;  %4624 = vmatprep.subr.bf16.mxu0 %v10496_v14  ;;  %v10417_v56 = vcombine.low %v1523_v1, %v1531_v2  ;;  %v10673_v14 = vcombine.low %v1779_v8, %v1787_v5  ;;  %v10658_v15 = vcombine.high %v1763_v12, %v1771_v13  ;;  %v1707_v51 = vld [vmem:[#allocation12 + $0x848] sm:$0xff] }
 0x225   :  { %4667 = vmatprep.subr.bf16.mxu1 %v10752_v52  ;;  %v10402_v52 = vcombine.high %v1507_v11, %v1515_v53  ;;  %v10594_v2 = vcombine.high %v1699_v49, %v1707_v51  ;;  %v1691_v8 = vld [vmem:[#allocation12 + $0x7c8] sm:$0xff] }
 0x226   :  { %v1939_v5 = vld [vmem:[#allocation12 + $0xf88] sm:$0xff] }
 0x227   :  { %4625 = vmatpush2.bf16.msra.mxu0 %v10495_v18  ;;  %v1755_v18 = vld [vmem:[#allocation12 + $0x9c8] sm:$0xff] }
 0x228   :  { %4668 = vmatpush2.bf16.msra.mxu1 %v10751_v19  ;;  %4626 = vmatprep.subr.bf16.mxu0 %v10480_v20  ;;  %v10401_v19 = vcombine.low %v1507_v11, %v1515_v53  ;;  %v10657_v20 = vcombine.low %v1763_v12, %v1771_v13  ;;  %v10642_v22 = vcombine.high %v1747_v17, %v1755_v18  ;;  %v1667_v53 = vld [vmem:[#allocation12 + $0x708] sm:$0xff] }
 0x229   :  { %4669 = vmatprep.subr.bf16.mxu1 %v10736_v21  ;;  %v10386_v21 = vcombine.high %v1491_v16, %v1499_v54  ;;  %v1675_v12 = vld [vmem:[#allocation12 + $0x748] sm:$0xff] }
 0x22a   :  { %v1923_v13 = vld [vmem:[#allocation12 + $0xf08] sm:$0xff] }
 0x22b   :  { %4627 = vmatpush2.bf16.msra.mxu0 %v10479_v27  ;;  %v1739_v27 = vld [vmem:[#allocation12 + $0x948] sm:$0xff] }
 0x22c   :  { %4670 = vmatpush2.bf16.msra.mxu1 %v10735_v61  ;;  %4628 = vmatprep.subr.bf16.mxu0 %v10464_v29  ;;  %v10385_v61 = vcombine.low %v1491_v16, %v1499_v54  ;;  %v10641_v29 = vcombine.low %v1747_v17, %v1755_v18  ;;  %v10626_v34 = vcombine.high %v1731_v26, %v1739_v27  ;;  %v1651_v54 = vld [vmem:[#allocation12 + $0x688] sm:$0xff] }
 0x22d   :  { %4671 = vmatprep.subr.bf16.mxu1 %v10720_v31  ;;  %v10370_v31 = vcombine.high %v1475_v25, %v1483_v62  ;;  %v1659_v17 = vld [vmem:[#allocation12 + $0x6c8] sm:$0xff] }
 0x22e   :  { %v1907_v18 = vld [vmem:[#allocation12 + $0xe88] sm:$0xff] }
 0x22f   :  { %4629 = vmatpush2.bf16.msra.mxu0 %v10463_v38  ;;  %v1723_v38 = vld [vmem:[#allocation12 + $0x8c8] sm:$0xff] }
 0x230   :  { %4672 = vmatpush2.bf16.msra.mxu1 %v10719_v39  ;;  %4684 = vmatprep.subr.bf16.mxu0 %v10450_v40  ;;  %v10369_v39 = vcombine.low %v1475_v25, %v1483_v62  ;;  %v10625_v40 = vcombine.low %v1731_v26, %v1739_v27  ;;  %v10610_v46 = vcombine.high %v1715_v37, %v1723_v38  ;;  %v1635_v62 = vld [vmem:[#allocation12 + $0x608] sm:$0xff] }
 0x231   :  { %4727 = vmatprep.subr.bf16.mxu1 %v10706_v41  ;;  %v10354_v41 = vcombine.high %v1459_v35, %v1467_v36  ;;  %v1643_v26 = vld [vmem:[#allocation12 + $0x648] sm:$0xff] }
 0x232   :  { %4631 = vmatmul.mubr.bf16.vlgmr.msra.gmra.mxu0 %v13158_v32  ;;  %v1891_v27 = vld [vmem:[#allocation12 + $0xe08] sm:$0xff] }
 0x233   :  { %4674 = vmatmul.mubr.bf16.vlgmr.msra.gmra.mxu1 %v13160_v33  ;;  %4685 = vmatpush1.bf16.msra.mxu0 %v10449_v48  ;;  %v1451_v48 = vld [vmem:[#allocation12 + $0x48] sm:$0xff] }
 0x234   :  { %4716 = vmatprep.mubr.bf16.mxu0 %v13152_v0  ;;  %4728 = vmatpush1.bf16.msra.mxu1 %v10705_v60  ;;  %v10353_v60 = vcombine.low %v1459_v35, %v1467_v36  ;;  %v10338_v1 = vcombine.high %v1443_v47, %v1451_v48  ;;  %v1619_v36 = vld [vmem:[#allocation12 + $0x588] sm:$0xff] }
 0x235   :  { %4759 = vmatprep.mubr.bf16.mxu1 %v13154_v30  ;;  %4686 = vmatprep.subr.bf16.mxu0 %v10434_v63  ;;  %v10609_v63 = vcombine.low %v1715_v37, %v1723_v38  ;;  %v1627_v37 = vld [vmem:[#allocation12 + $0x5c8] sm:$0xff] }
 0x236   :  { %4729 = vmatprep.subr.bf16.mxu1 %v10690_v3  ;;  %v1683_v3 = vld [vmem:[#allocation12 + $0x788] sm:$0xff] }
 0x237   :  { %4687 = vmatpush1.bf16.msra.mxu0 %v10433_v9  ;;  %v1947_v9 = vld [vmem:[#allocation12 + $0xfc8] sm:$0xff] }
 0x238   :  { %4730 = vmatpush1.bf16.msra.mxu1 %v10689_v6  ;;  %4688 = vmatprep.subr.bf16.mxu0 %v10418_v10  ;;  %v10337_v6 = vcombine.low %v1443_v47, %v1451_v48  ;;  %v10593_v10 = vcombine.low %v1699_v49, %v1707_v51  ;;  %v10834_v11 = vcombine.high %v1939_v5, %v1947_v9  ;;  %v1875_v38 = vld [vmem:[#allocation12 + $0xd88] sm:$0xff] }
 0x239   :  { %4731 = vmatprep.subr.bf16.mxu1 %v10674_v7  ;;  %v10578_v7 = vcombine.high %v1683_v3, %v1691_v8  ;;  %v1603_v48 = vld [vmem:[#allocation12 + $0x508] sm:$0xff] }
 0x23a   :  { %v1611_v49 = vld [vmem:[#allocation12 + $0x548] sm:$0xff] }
 0x23b   :  { %4689 = vmatpush1.bf16.msra.mxu0 %v10417_v56  ;;  %v1931_v56 = vld [vmem:[#allocation12 + $0xf48] sm:$0xff] }
 0x23c   :  { %4732 = vmatpush1.bf16.msra.mxu1 %v10673_v14  ;;  %4690 = vmatprep.subr.bf16.mxu0 %v10402_v52  ;;  %v10577_v14 = vcombine.low %v1683_v3, %v1691_v8  ;;  %v10833_v52 = vcombine.low %v1939_v5, %v1947_v9  ;;  %v10818_v16 = vcombine.high %v1923_v13, %v1931_v56  ;;  %v1859_v51 = vld [vmem:[#allocation12 + $0xd08] sm:$0xff] }
 0x23d   :  { %4733 = vmatprep.subr.bf16.mxu1 %v10658_v15  ;;  %v10562_v15 = vcombine.high %v1667_v53, %v1675_v12  ;;  %v1587_v8 = vld [vmem:[#allocation12 + $0x488] sm:$0xff] }
 0x23e   :  { %v1595_v5 = vld [vmem:[#allocation12 + $0x4c8] sm:$0xff] }
 0x23f   :  { %4691 = vmatpush1.bf16.msra.mxu0 %v10401_v19  ;;  %v1915_v19 = vld [vmem:[#allocation12 + $0xec8] sm:$0xff] }
 0x240   :  { %4734 = vmatpush1.bf16.msra.mxu1 %v10657_v20  ;;  %4692 = vmatprep.subr.bf16.mxu0 %v10386_v21  ;;  %v10561_v20 = vcombine.low %v1667_v53, %v1675_v12  ;;  %v10817_v21 = vcombine.low %v1923_v13, %v1931_v56  ;;  %v10802_v25 = vcombine.high %v1907_v18, %v1915_v19  ;;  %v1843_v9 = vld [vmem:[#allocation12 + $0xc88] sm:$0xff] }
 0x241   :  { %4735 = vmatprep.subr.bf16.mxu1 %v10642_v22  ;;  %v10546_v22 = vcombine.high %v1651_v54, %v1659_v17  ;;  %v1571_v12 = vld [vmem:[#allocation12 + $0x408] sm:$0xff] }
 0x242   :  { %v1579_v13 = vld [vmem:[#allocation12 + $0x448] sm:$0xff] }
 0x243   :  { %4693 = vmatpush1.bf16.msra.mxu0 %v10385_v61  ;;  %v1899_v61 = vld [vmem:[#allocation12 + $0xe48] sm:$0xff] }
 0x244   :  { %4736 = vmatpush1.bf16.msra.mxu1 %v10641_v29  ;;  %4694 = vmatprep.subr.bf16.mxu0 %v10370_v31  ;;  %v10545_v29 = vcombine.low %v1651_v54, %v1659_v17  ;;  %v10801_v31 = vcombine.low %v1907_v18, %v1915_v19  ;;  %v10786_v35 = vcombine.high %v1891_v27, %v1899_v61  ;;  %v1827_v56 = vld [vmem:[#allocation12 + $0xc08] sm:$0xff]  ;;  %v1556_v17 = vld [vmem:[#allocation12 + $0x390] sm:$0xff] }
 0x245   :  { %4737 = vmatprep.subr.bf16.mxu1 %v10626_v34  ;;  %v10530_v34 = vcombine.high %v1635_v62, %v1643_v26  ;;  %v1564_v18 = vld [vmem:[#allocation12 + $0x3d0] sm:$0xff] }
 0x246   :  { %v1812_v19 = vld [vmem:[#allocation12 + $0xb90] sm:$0xff] }
 0x247   :  { %4695 = vmatpush1.bf16.msra.mxu0 %v10369_v39  ;;  %v1883_v39 = vld [vmem:[#allocation12 + $0xdc8] sm:$0xff] }
 0x248   :  { %4738 = vmatpush1.bf16.msra.mxu1 %v10625_v40  ;;  %4696 = vmatprep.subr.bf16.mxu0 %v10354_v41  ;;  %v10529_v40 = vcombine.low %v1635_v62, %v1643_v26  ;;  %v10785_v41 = vcombine.low %v1891_v27, %v1899_v61  ;;  %v10770_v47 = vcombine.high %v1875_v38, %v1883_v39  ;;  %v1540_v26 = vld [vmem:[#allocation12 + $0x310] sm:$0xff] }
 0x249   :  { %4739 = vmatprep.subr.bf16.mxu1 %v10610_v46  ;;  %v10514_v46 = vcombine.high %v1619_v36, %v1627_v37  ;;  %v1548_v27 = vld [vmem:[#allocation12 + $0x350] sm:$0xff]  ;;  %v10451_v61 = vcombine.low %v1556_v17, %v1564_v18 }
 0x24b   :  { %4697 = vmatpush1.bf16.msra.mxu0 %v10353_v60  ;;  %v1867_v60 = vld [vmem:[#allocation12 + $0xd48] sm:$0xff] }
 0x24c   :  { %4740 = vmatpush1.bf16.msra.mxu1 %v10609_v63  ;;  %4698 = vmatprep.subr.bf16.mxu0 %v10338_v1  ;;  %v10513_v63 = vcombine.low %v1619_v36, %v1627_v37  ;;  %v10769_v1 = vcombine.low %v1875_v38, %v1883_v39  ;;  %v10754_v3 = vcombine.high %v1859_v51, %v1867_v60  ;;  %v1524_v36 = vld [vmem:[#allocation12 + $0x290] sm:$0xff] }
 0x24d   :  { %4741 = vmatprep.subr.bf16.mxu1 %v10594_v2  ;;  %v10498_v2 = vcombine.high %v1603_v48, %v1611_v49  ;;  %v1532_v37 = vld [vmem:[#allocation12 + $0x2d0] sm:$0xff] }
 0x24f   :  { %4699 = vmatpush1.bf16.msra.mxu0 %v10337_v6  ;;  %v1851_v6 = vld [vmem:[#allocation12 + $0xcc8] sm:$0xff] }
 0x250   :  { %4742 = vmatpush1.bf16.msra.mxu1 %v10593_v10  ;;  %4700 = vmatprep.subr.bf16.mxu0 %v10578_v7  ;;  %v10497_v10 = vcombine.low %v1603_v48, %v1611_v49  ;;  %v10753_v7 = vcombine.low %v1859_v51, %v1867_v60  ;;  %v10738_v53 = vcombine.high %v1843_v9, %v1851_v6 }
 0x251   :  { %4743 = vmatprep.subr.bf16.mxu1 %v10834_v11  ;;  %v10482_v11 = vcombine.high %v1587_v8, %v1595_v5  ;;  %v10435_v48 = vcombine.low %v1540_v26, %v1548_v27 }
 0x253   :  { %4701 = vmatpush2.bf16.msra.mxu0 %v10577_v14  ;;  %v1835_v14 = vld [vmem:[#allocation12 + $0xc48] sm:$0xff] }
 0x254   :  { %4744 = vmatpush2.bf16.msra.mxu1 %v10833_v52  ;;  %4702 = vmatprep.subr.bf16.mxu0 %v10562_v15  ;;  %v10481_v52 = vcombine.low %v1587_v8, %v1595_v5  ;;  %v10737_v15 = vcombine.low %v1843_v9, %v1851_v6  ;;  %v10722_v54 = vcombine.high %v1827_v56, %v1835_v14  ;;  %v1516_v8 = vld [vmem:[#allocation12 + $0x250] sm:$0xff] }
 0x255   :  { %4745 = vmatprep.subr.bf16.mxu1 %v10818_v16  ;;  %v10466_v16 = vcombine.high %v1571_v12, %v1579_v13  ;;  %v1764_v6 = vld [vmem:[#allocation12 + $0xa10] sm:$0xff] }
 0x257   :  { %4703 = vmatpush2.bf16.msra.mxu0 %v10561_v20  ;;  %v1820_v20 = vld [vmem:[#allocation12 + $0xbd0] sm:$0xff] }
 0x258   :  { %4746 = vmatpush2.bf16.msra.mxu1 %v10817_v21  ;;  %4704 = vmatprep.subr.bf16.mxu0 %v10546_v22  ;;  %v10465_v21 = vcombine.low %v1571_v12, %v1579_v13  ;;  %v10721_v22 = vcombine.low %v1827_v56, %v1835_v14  ;;  %v10708_v62 = vcombine.high %v1812_v19, %v1820_v20 }
 0x259   :  { %4747 = vmatprep.subr.bf16.mxu1 %v10802_v25  ;;  %v10452_v25 = vcombine.high %v1556_v17, %v1564_v18  ;;  %v1748_v17 = vld [vmem:[#allocation12 + $0x990] sm:$0xff] }
 0x25a   :  { %v1756_v18 = vld [vmem:[#allocation12 + $0x9d0] sm:$0xff] }
 0x25b   :  { %4705 = vmatpush2.bf16.msra.mxu0 %v10545_v29  ;;  %v1796_v29 = vld [vmem:[#allocation12 + $0xb10] sm:$0xff] }
 0x25c   :  { %4748 = vmatpush2.bf16.msra.mxu1 %v10801_v31  ;;  %4706 = vmatprep.subr.bf16.mxu0 %v10530_v34  ;;  %v1804_v31 = vld [vmem:[#allocation12 + $0xb50] sm:$0xff]  ;;  %v10707_v34 = vcombine.low %v1812_v19, %v1820_v20 }
 0x25d   :  { %4749 = vmatprep.subr.bf16.mxu1 %v10786_v35  ;;  %v10436_v35 = vcombine.high %v1540_v26, %v1548_v27  ;;  %v10691_v60 = vcombine.low %v1796_v29, %v1804_v31  ;;  %v1484_v26 = vld [vmem:[#allocation12 + $0x150] sm:$0xff] }
 0x25e   :  { %v1732_v27 = vld [vmem:[#allocation12 + $0x910] sm:$0xff] }
 0x25f   :  { %4707 = vmatpush2.bf16.msra.mxu0 %v10529_v40  ;;  %v10692_v40 = vcombine.high %v1796_v29, %v1804_v31  ;;  %v10643_v31 = vcombine.low %v1748_v17, %v1756_v18 }
 0x260   :  { %4750 = vmatpush2.bf16.msra.mxu1 %v10785_v41  ;;  %4708 = vmatprep.subr.bf16.mxu0 %v10514_v46  ;;  %v1780_v41 = vld [vmem:[#allocation12 + $0xa90] sm:$0xff] }
 0x261   :  { %4751 = vmatprep.subr.bf16.mxu1 %v10770_v47  ;;  %v1788_v46 = vld [vmem:[#allocation12 + $0xad0] sm:$0xff] }
 0x262   :  { %v10675_v13 = vcombine.low %v1780_v41, %v1788_v46 }
 0x263   :  { %4709 = vmatpush2.bf16.msra.mxu0 %v10513_v63  ;;  %v10420_v63 = vcombine.high %v1524_v36, %v1532_v37 }
 0x264   :  { %4752 = vmatpush2.bf16.msra.mxu1 %v10769_v1  ;;  %4710 = vmatprep.subr.bf16.mxu0 %v10498_v2  ;;  %v10676_v2 = vcombine.high %v1780_v41, %v1788_v46 }
 0x265   :  { %4753 = vmatprep.subr.bf16.mxu1 %v10754_v3  ;;  %v1508_v3 = vld [vmem:[#allocation12 + $0x210] sm:$0xff] }
 0x266   :  { %v10404_v56 = vcombine.high %v1508_v3, %v1516_v8  ;;  %v10403_v20 = vcombine.low %v1508_v3, %v1516_v8  ;;  %v1684_v8 = vld [vmem:[#allocation12 + $0x790] sm:$0xff] }
 0x267   :  { %4711 = vmatpush2.bf16.msra.mxu0 %v10497_v10  ;;  %v1772_v10 = vld [vmem:[#allocation12 + $0xa50] sm:$0xff] }
 0x268   :  { %4754 = vmatpush2.bf16.msra.mxu1 %v10753_v7  ;;  %4712 = vmatprep.subr.bf16.mxu0 %v10482_v11  ;;  %v10419_v11 = vcombine.low %v1524_v36, %v1532_v37  ;;  %v1460_v36 = vld [vmem:[#allocation12 + $0x90] sm:$0xff] }
 0x269   :  { %4755 = vmatprep.subr.bf16.mxu1 %v10738_v53  ;;  %v1468_v37 = vld [vmem:[#allocation12 + $0xd0] sm:$0xff] }
 0x26a   :  { %v10356_v46 = vcombine.high %v1460_v36, %v1468_v37 }
 0x26b   :  { %4713 = vmatpush2.bf16.msra.mxu0 %v10481_v52 }
 0x26c   :  { %4756 = vmatpush2.bf16.msra.mxu1 %v10737_v15  ;;  %4714 = vmatprep.subr.bf16.mxu0 %v10466_v16  ;;  %v10660_v15 = vcombine.high %v1764_v6, %v1772_v10  ;;  %v1492_v16 = vld [vmem:[#allocation12 + $0x190] sm:$0xff] }
 0x26d   :  { %4757 = vmatprep.subr.bf16.mxu1 %v10722_v54  ;;  %v1500_v54 = vld [vmem:[#allocation12 + $0x1d0] sm:$0xff] }
 0x26e   :  { %v10387_v29 = vcombine.low %v1492_v16, %v1500_v54 }
 0x26f   :  { %4715 = vmatpush2.bf16.msra.mxu0 %v10465_v21  ;;  %v10659_v21 = vcombine.low %v1764_v6, %v1772_v10  ;;  %v1948_v6 = vld [vmem:[#allocation12 + $0xfd0] sm:$0xff] }
 0x270   :  { %4758 = vmatpush2.bf16.msra.mxu1 %v10721_v22  ;;  %4770 = vmatprep.subr.bf16.mxu0 %v10452_v25  ;;  %v10388_v22 = vcombine.high %v1492_v16, %v1500_v54  ;;  %v10644_v25 = vcombine.high %v1748_v17, %v1756_v18  ;;  %v1652_v18 = vld [vmem:[#allocation12 + $0x690] sm:$0xff] }
 0x271   :  { %4813 = vmatprep.subr.bf16.mxu1 %v10708_v62  ;;  %v1476_v62 = vld [vmem:[#allocation12 + $0x110] sm:$0xff] }
 0x272   :  { %4717 = vmatmul.mubr.bf16.vlgmr.msra.gmra.mxu0 %v13158_v32  ;;  %v1172_v38 = vpop.f32.mrf.mxu0  ;;  %v1215_v39 = vpop.f32.mrf.mxu1 }
 0x273   :  { %4760 = vmatmul.mubr.bf16.vlgmr.msra.gmra.mxu1 %v13160_v33  ;;  %v1216_v47 = vadd.f32 %v1215_v39, %v1172_v38  ;;  %4771 = vmatpush1.bf16.msra.mxu0 %v10451_v61  ;;  %v1740_v61 = vld [vmem:[#allocation12 + $0x950] sm:$0xff] }
 0x274   :  { %4802 = vmatprep.mubr.bf16.mxu0 %v13152_v0  ;;  %4814 = vmatpush1.bf16.msra.mxu1 %v10707_v34  ;;  %v1174_v49 = vpop.f32.mrf.mxu0  ;;  %v1217_v51 = vpop.f32.mrf.mxu1  ;;  %v10372_v34 = vcombine.high %v1476_v62, %v1484_v26  ;;  %v1716_v38 = vld [vmem:[#allocation12 + $0x890] sm:$0xff]  ;;  %v10627_v41 = vcombine.low %v1732_v27, %v1740_v61 }
 0x275   :  { %4845 = vmatprep.mubr.bf16.mxu1 %v13154_v30  ;;  %v1218_v1 = vadd.f32 %v1217_v51, %v1174_v49  ;;  %4772 = vmatprep.subr.bf16.mxu0 %v10436_v35  ;;  %v10628_v35 = vcombine.high %v1732_v27, %v1740_v61  ;;  %v1724_v39 = vld [vmem:[#allocation12 + $0x8d0] sm:$0xff] }
 0x276   :  { %4815 = vmatprep.subr.bf16.mxu1 %v10692_v40  ;;  %v1176_v5 = vpop.f32.mrf.mxu0  ;;  %v1219_v9 = vpop.f32.mrf.mxu1  ;;  %v10371_v40 = vcombine.low %v1476_v62, %v1484_v26  ;;  %v1452_v49 = vld [vmem:[#allocation12 + $0x50] sm:$0xff] }
 0x277   :  { %v1220_v7 = vadd.f32 %v1219_v9, %v1176_v5  ;;  %4773 = vmatpush1.bf16.msra.mxu0 %v10435_v48  ;;  %v1444_v48 = vld [vmem:[#allocation12 + $0x10] sm:$0xff] }
 0x278   :  { %4816 = vmatpush1.bf16.msra.mxu1 %v10691_v60  ;;  %v1178_v53 = vpop.f32.mrf.mxu0  ;;  %v1221_v12 = vpop.f32.mrf.mxu1  ;;  %4774 = vmatprep.subr.bf16.mxu0 %v10420_v63  ;;  %v1700_v51 = vld [vmem:[#allocation12 + $0x810] sm:$0xff]  ;;  %v10355_v63 = vcombine.low %v1460_v36, %v1468_v37  ;;  %v10339_v10 = vcombine.low %v1444_v48, %v1452_v49 }
 0x279   :  { %v13190_v14 = vpack.c.bf16 %v1220_v7, %v1216_v47  ;;  %v1222_v52 = vadd.f32 %v1221_v12, %v1178_v53  ;;  %4817 = vmatprep.subr.bf16.mxu1 %v10676_v2  ;;  %v10612_v47 = vcombine.high %v1716_v38, %v1724_v39  ;;  %v1708_v60 = vld [vmem:[#allocation12 + $0x850] sm:$0xff]  ;;  %v10340_v2 = vcombine.high %v1444_v48, %v1452_v49 }
 0x27a   :  { %v10596_v3 = vcombine.high %v1700_v51, %v1708_v60  ;;  %v1692_v5 = vld [vmem:[#allocation12 + $0x7d0] sm:$0xff]  ;;  %v10595_v7 = vcombine.low %v1700_v51, %v1708_v60 }
 0x27b   :  { %v13192_v19 = vpack.c.bf16 %v1222_v52, %v1218_v1  ;;  %4775 = vmatpush1.bf16.msra.mxu0 %v10419_v11  ;;  %v10611_v1 = vcombine.low %v1716_v38, %v1724_v39  ;;  %v1940_v9 = vld [vmem:[#allocation12 + $0xf90] sm:$0xff]  ;;  %v10580_v11 = vcombine.high %v1684_v8, %v1692_v5 }
 0x27c   :  { %4818 = vmatpush1.bf16.msra.mxu1 %v10675_v13  ;;  %4776 = vmatprep.subr.bf16.mxu0 %v10404_v56  ;;  %v10836_v53 = vcombine.high %v1940_v9, %v1948_v6  ;;  %v1668_v12 = vld [vmem:[#allocation12 + $0x710] sm:$0xff]  ;;  %v10835_v16 = vcombine.low %v1940_v9, %v1948_v6 }
 0x27d   :  { %4819 = vmatprep.subr.bf16.mxu1 %v10660_v15  ;;  %v1676_v13 = vld [vmem:[#allocation12 + $0x750] sm:$0xff]  ;;  %v10579_v15 = vcombine.low %v1684_v8, %v1692_v5 }
 0x27e   :  { %v1924_v56 = vld [vmem:[#allocation12 + $0xf10] sm:$0xff]  ;;  %v10564_v54 = vcombine.high %v1668_v12, %v1676_v13 }
 0x27f   :  { %4777 = vmatpush1.bf16.msra.mxu0 %v10403_v20  ;;  %v1932_v52 = vld [vmem:[#allocation12 + $0xf50] sm:$0xff] }
 0x280   :  { %4820 = vmatpush1.bf16.msra.mxu1 %v10659_v21  ;;  %4778 = vmatprep.subr.bf16.mxu0 %v10388_v22  ;;  %v10820_v17 = vcombine.high %v1924_v56, %v1932_v52  ;;  %v1660_v20 = vld [vmem:[#allocation12 + $0x6d0] sm:$0xff]  ;;  %v10819_v62 = vcombine.low %v1924_v56, %v1932_v52 }
 0x281   :  { %4821 = vmatprep.subr.bf16.mxu1 %v10644_v25  ;;  %v1908_v21 = vld [vmem:[#allocation12 + $0xe90] sm:$0xff]  ;;  %v10563_v25 = vcombine.low %v1668_v12, %v1676_v13  ;;  %v10548_v26 = vcombine.high %v1652_v18, %v1660_v20 }
 0x282   :  { %v1916_v22 = vld [vmem:[#allocation12 + $0xed0] sm:$0xff] }
 0x283   :  { %4779 = vmatpush1.bf16.msra.mxu0 %v10387_v29  ;;  %v10804_v27 = vcombine.high %v1908_v21, %v1916_v22  ;;  %v1636_v61 = vld [vmem:[#allocation12 + $0x610] sm:$0xff]  ;;  %v10803_v36 = vcombine.low %v1908_v21, %v1916_v22  ;;  %v1557_v22 = vld [vmem:[#allocation12 + $0x398] sm:$0xff] }
 0x284   :  { %4822 = vmatpush1.bf16.msra.mxu1 %v10643_v31  ;;  %4780 = vmatprep.subr.bf16.mxu0 %v10372_v34  ;;  %v1644_v29 = vld [vmem:[#allocation12 + $0x650] sm:$0xff] }
 0x285   :  { %4823 = vmatprep.subr.bf16.mxu1 %v10628_v35  ;;  %v1892_v31 = vld [vmem:[#allocation12 + $0xe10] sm:$0xff]  ;;  %v10547_v35 = vcombine.low %v1652_v18, %v1660_v20  ;;  %v10532_v37 = vcombine.high %v1636_v61, %v1644_v29 }
 0x286   :  { %v1900_v34 = vld [vmem:[#allocation12 + $0xe50] sm:$0xff] }
 0x287   :  { %4781 = vmatpush1.bf16.msra.mxu0 %v10371_v40  ;;  %v10788_v38 = vcombine.high %v1892_v31, %v1900_v34  ;;  %v1620_v39 = vld [vmem:[#allocation12 + $0x590] sm:$0xff]  ;;  %v10787_v48 = vcombine.low %v1892_v31, %v1900_v34  ;;  %v1541_v34 = vld [vmem:[#allocation12 + $0x318] sm:$0xff] }
 0x288   :  { %4824 = vmatpush1.bf16.msra.mxu1 %v10627_v41  ;;  %4782 = vmatprep.subr.bf16.mxu0 %v10356_v46  ;;  %v1628_v40 = vld [vmem:[#allocation12 + $0x5d0] sm:$0xff] }
 0x289   :  { %4825 = vmatprep.subr.bf16.mxu1 %v10612_v47  ;;  %v1876_v41 = vld [vmem:[#allocation12 + $0xd90] sm:$0xff]  ;;  %v10531_v47 = vcombine.low %v1636_v61, %v1644_v29  ;;  %v10516_v49 = vcombine.high %v1620_v39, %v1628_v40 }
 0x28a   :  { %v1884_v46 = vld [vmem:[#allocation12 + $0xdd0] sm:$0xff] }
 0x28b   :  { %4783 = vmatpush1.bf16.msra.mxu0 %v10355_v63  ;;  %v10772_v51 = vcombine.high %v1876_v41, %v1884_v46  ;;  %v1604_v60 = vld [vmem:[#allocation12 + $0x510] sm:$0xff]  ;;  %v10771_v8 = vcombine.low %v1876_v41, %v1884_v46  ;;  %v1525_v41 = vld [vmem:[#allocation12 + $0x298] sm:$0xff] }
 0x28c   :  { %4826 = vmatpush1.bf16.msra.mxu1 %v10611_v1  ;;  %4784 = vmatprep.subr.bf16.mxu0 %v10340_v2  ;;  %v1612_v63 = vld [vmem:[#allocation12 + $0x550] sm:$0xff]  ;;  %v1533_v46 = vld [vmem:[#allocation12 + $0x2d8] sm:$0xff] }
 0x28d   :  { %4827 = vmatprep.subr.bf16.mxu1 %v10596_v3  ;;  %v1860_v1 = vld [vmem:[#allocation12 + $0xd10] sm:$0xff]  ;;  %v10515_v3 = vcombine.low %v1620_v39, %v1628_v40  ;;  %v10500_v5 = vcombine.high %v1604_v60, %v1612_v63 }
 0x28e   :  { %v1868_v2 = vld [vmem:[#allocation12 + $0xd50] sm:$0xff] }
 0x28f   :  { %4785 = vmatpush1.bf16.msra.mxu0 %v10339_v10  ;;  %v10756_v9 = vcombine.high %v1860_v1, %v1868_v2  ;;  %v1588_v6 = vld [vmem:[#allocation12 + $0x490] sm:$0xff]  ;;  %v10755_v12 = vcombine.low %v1860_v1, %v1868_v2 }
 0x290   :  { %4828 = vmatpush1.bf16.msra.mxu1 %v10595_v7  ;;  %4786 = vmatprep.subr.bf16.mxu0 %v10580_v11  ;;  %v1596_v10 = vld [vmem:[#allocation12 + $0x4d0] sm:$0xff] }
 0x291   :  { %4829 = vmatprep.subr.bf16.mxu1 %v10836_v53  ;;  %v1844_v7 = vld [vmem:[#allocation12 + $0xc90] sm:$0xff]  ;;  %v10499_v53 = vcombine.low %v1604_v60, %v1612_v63  ;;  %v10484_v13 = vcombine.high %v1588_v6, %v1596_v10  ;;  %v1789_v60 = vld [vmem:[#allocation12 + $0xad8] sm:$0xff] }
 0x292   :  { %v1852_v11 = vld [vmem:[#allocation12 + $0xcd0] sm:$0xff] }
 0x293   :  { %4787 = vmatpush2.bf16.msra.mxu0 %v10579_v15  ;;  %v10740_v56 = vcombine.high %v1844_v7, %v1852_v11  ;;  %v1572_v52 = vld [vmem:[#allocation12 + $0x410] sm:$0xff]  ;;  %v10739_v18 = vcombine.low %v1844_v7, %v1852_v11  ;;  %v1517_v7 = vld [vmem:[#allocation12 + $0x258] sm:$0xff] }
 0x294   :  { %4830 = vmatpush2.bf16.msra.mxu1 %v10835_v16  ;;  %4788 = vmatprep.subr.bf16.mxu0 %v10564_v54  ;;  %v1580_v15 = vld [vmem:[#allocation12 + $0x450] sm:$0xff] }
 0x295   :  { %4831 = vmatprep.subr.bf16.mxu1 %v10820_v17  ;;  %v1828_v16 = vld [vmem:[#allocation12 + $0xc10] sm:$0xff]  ;;  %v10483_v17 = vcombine.low %v1588_v6, %v1596_v10  ;;  %v10468_v20 = vcombine.high %v1572_v52, %v1580_v15  ;;  %v1509_v10 = vld [vmem:[#allocation12 + $0x218] sm:$0xff] }
 0x296   :  { %v1836_v54 = vld [vmem:[#allocation12 + $0xc50] sm:$0xff] }
 0x297   :  { %4789 = vmatpush2.bf16.msra.mxu0 %v10563_v25  ;;  %v10724_v21 = vcombine.high %v1828_v16, %v1836_v54  ;;  %v1565_v25 = vld [vmem:[#allocation12 + $0x3d8] sm:$0xff]  ;;  %v10723_v61 = vcombine.low %v1828_v16, %v1836_v54 }
 0x298   :  { %4832 = vmatpush2.bf16.msra.mxu1 %v10819_v62  ;;  %4790 = vmatprep.subr.bf16.mxu0 %v10548_v26  ;;  %v1813_v62 = vld [vmem:[#allocation12 + $0xb98] sm:$0xff]  ;;  %v10454_v29 = vcombine.high %v1557_v22, %v1565_v25 }
 0x299   :  { %4833 = vmatprep.subr.bf16.mxu1 %v10804_v27  ;;  %v1821_v26 = vld [vmem:[#allocation12 + $0xbd8] sm:$0xff]  ;;  %v10467_v27 = vcombine.low %v1572_v52, %v1580_v15  ;;  %v10421_v52 = vcombine.low %v1525_v41, %v1533_v46 }
 0x29a   :  { %v10710_v31 = vcombine.high %v1813_v62, %v1821_v26  ;;  %v10709_v39 = vcombine.low %v1813_v62, %v1821_v26  ;;  %v1749_v62 = vld [vmem:[#allocation12 + $0x998] sm:$0xff] }
 0x29b   :  { %4791 = vmatpush2.bf16.msra.mxu0 %v10547_v35  ;;  %v1549_v35 = vld [vmem:[#allocation12 + $0x358] sm:$0xff] }
 0x29c   :  { %4834 = vmatpush2.bf16.msra.mxu1 %v10803_v36  ;;  %4792 = vmatprep.subr.bf16.mxu0 %v10532_v37  ;;  %v10453_v36 = vcombine.low %v1557_v22, %v1565_v25  ;;  %v1797_v37 = vld [vmem:[#allocation12 + $0xb18] sm:$0xff]  ;;  %v10438_v40 = vcombine.high %v1541_v34, %v1549_v35  ;;  %v10437_v1 = vcombine.low %v1541_v34, %v1549_v35 }
 0x29d   :  { %4835 = vmatprep.subr.bf16.mxu1 %v10788_v38  ;;  %v1805_v38 = vld [vmem:[#allocation12 + $0xb58] sm:$0xff] }
 0x29e   :  { %v1493_v22 = vld [vmem:[#allocation12 + $0x198] sm:$0xff] }
 0x29f   :  { %4793 = vmatpush2.bf16.msra.mxu0 %v10531_v47  ;;  %v1501_v25 = vld [vmem:[#allocation12 + $0x1d8] sm:$0xff] }
 0x2a0   :  { %4836 = vmatpush2.bf16.msra.mxu1 %v10787_v48  ;;  %4794 = vmatprep.subr.bf16.mxu0 %v10516_v49  ;;  %v10694_v49 = vcombine.high %v1797_v37, %v1805_v38  ;;  %v1757_v26 = vld [vmem:[#allocation12 + $0x9d8] sm:$0xff] }
 0x2a1   :  { %4837 = vmatprep.subr.bf16.mxu1 %v10772_v51  ;;  %v1781_v51 = vld [vmem:[#allocation12 + $0xa98] sm:$0xff]  ;;  %v10646_v34 = vcombine.high %v1749_v62, %v1757_v26 }
 0x2a2   :  { %v10678_v6 = vcombine.high %v1781_v51, %v1789_v60  ;;  %v10677_v54 = vcombine.low %v1781_v51, %v1789_v60  ;;  %v1477_v35 = vld [vmem:[#allocation12 + $0x118] sm:$0xff] }
 0x2a3   :  { %4795 = vmatpush2.bf16.msra.mxu0 %v10515_v3  ;;  %v1725_v51 = vld [vmem:[#allocation12 + $0x8d8] sm:$0xff] }
 0x2a4   :  { %4838 = vmatpush2.bf16.msra.mxu1 %v10771_v8  ;;  %4796 = vmatprep.subr.bf16.mxu0 %v10500_v5  ;;  %v10693_v8 = vcombine.low %v1797_v37, %v1805_v38  ;;  %v10422_v5 = vcombine.high %v1525_v41, %v1533_v46  ;;  %v1733_v37 = vld [vmem:[#allocation12 + $0x918] sm:$0xff] }
 0x2a5   :  { %4839 = vmatprep.subr.bf16.mxu1 %v10756_v9  ;;  %v1741_v38 = vld [vmem:[#allocation12 + $0x958] sm:$0xff] }
 0x2a6   :  { %v10630_v46 = vcombine.high %v1733_v37, %v1741_v38 }
 0x2a7   :  { %4797 = vmatpush2.bf16.msra.mxu0 %v10499_v53 }
 0x2a8   :  { %4840 = vmatpush2.bf16.msra.mxu1 %v10755_v12  ;;  %4798 = vmatprep.subr.bf16.mxu0 %v10484_v13  ;;  %v1765_v12 = vld [vmem:[#allocation12 + $0xa18] sm:$0xff] }
 0x2a9   :  { %4841 = vmatprep.subr.bf16.mxu1 %v10740_v56  ;;  %v1773_v13 = vld [vmem:[#allocation12 + $0xa58] sm:$0xff] }
 0x2ab   :  { %4799 = vmatpush2.bf16.msra.mxu0 %v10483_v17  ;;  %v10406_v17 = vcombine.high %v1509_v10, %v1517_v7 }
 0x2ac   :  { %4842 = vmatpush2.bf16.msra.mxu1 %v10739_v18  ;;  %4800 = vmatprep.subr.bf16.mxu0 %v10468_v20 }
 0x2ad   :  { %4843 = vmatprep.subr.bf16.mxu1 %v10724_v21  ;;  %v10662_v21 = vcombine.high %v1765_v12, %v1773_v13 }
 0x2af   :  { %4801 = vmatpush2.bf16.msra.mxu0 %v10467_v27 }
 0x2b0   :  { %4844 = vmatpush2.bf16.msra.mxu1 %v10723_v61  ;;  %4856 = vmatprep.subr.bf16.mxu0 %v10454_v29  ;;  %v10405_v61 = vcombine.low %v1509_v10, %v1517_v7  ;;  %v10661_v29 = vcombine.low %v1765_v12, %v1773_v13  ;;  %v1693_v12 = vld [vmem:[#allocation12 + $0x7d8] sm:$0xff] }
 0x2b1   :  { %4899 = vmatprep.subr.bf16.mxu1 %v10710_v31  ;;  %v10390_v31 = vcombine.high %v1493_v22, %v1501_v25  ;;  %v1941_v13 = vld [vmem:[#allocation12 + $0xf98] sm:$0xff] }
 0x2b2   :  { %v1258_v47 = vpop.f32.mrf.mxu0  ;;  %v1301_v48 = vpop.f32.mrf.mxu1  ;;  %4803 = vmatmul.mubr.bf16.vlgmr.msra.gmra.mxu0 %v13158_v32 }
 0x2b3   :  { %v1302_v63 = vadd.f32 %v1301_v48, %v1258_v47  ;;  %4846 = vmatmul.mubr.bf16.vlgmr.msra.gmra.mxu1 %v13160_v33  ;;  %4857 = vmatpush1.bf16.msra.mxu0 %v10453_v36  ;;  %v1485_v36 = vld [vmem:[#allocation12 + $0x158] sm:$0xff] }
 0x2b4   :  { %4888 = vmatprep.mubr.bf16.mxu0 %v13152_v0  ;;  %4900 = vmatpush1.bf16.msra.mxu1 %v10709_v39  ;;  %v1260_v2 = vpop.f32.mrf.mxu0  ;;  %v1303_v3 = vpop.f32.mrf.mxu1  ;;  %v10389_v39 = vcombine.low %v1493_v22, %v1501_v25  ;;  %v10374_v41 = vcombine.high %v1477_v35, %v1485_v36  ;;  %v1461_v47 = vld [vmem:[#allocation12 + $0x98] sm:$0xff]  ;;  %v10373_v60 = vcombine.low %v1477_v35, %v1485_v36 }
 0x2b5   :  { %4931 = vmatprep.mubr.bf16.mxu1 %v13154_v30  ;;  %v1304_v9 = vadd.f32 %v1303_v3, %v1260_v2  ;;  %4858 = vmatprep.subr.bf16.mxu0 %v10438_v40  ;;  %v10645_v40 = vcombine.low %v1749_v62, %v1757_v26  ;;  %v1469_v48 = vld [vmem:[#allocation12 + $0xd8] sm:$0xff] }
 0x2b6   :  { %v1262_v11 = vpop.f32.mrf.mxu0  ;;  %v1305_v53 = vpop.f32.mrf.mxu1  ;;  %4901 = vmatprep.subr.bf16.mxu1 %v10694_v49  ;;  %v1717_v49 = vld [vmem:[#allocation12 + $0x898] sm:$0xff] }
 0x2b7   :  { %v1306_v56 = vadd.f32 %v1305_v53, %v1262_v11  ;;  %4859 = vmatpush1.bf16.msra.mxu0 %v10437_v1  ;;  %v10358_v1 = vcombine.high %v1461_v47, %v1469_v48  ;;  %v10614_v2 = vcombine.high %v1717_v49, %v1725_v51  ;;  %v1445_v3 = vld [vmem:[#allocation12 + $0x18] sm:$0xff]  ;;  %v10613_v10 = vcombine.low %v1717_v49, %v1725_v51 }
 0x2b8   :  { %4902 = vmatpush1.bf16.msra.mxu1 %v10693_v8  ;;  %v1264_v15 = vpop.f32.mrf.mxu0  ;;  %v1307_v16 = vpop.f32.mrf.mxu1  ;;  %4860 = vmatprep.subr.bf16.mxu0 %v10422_v5  ;;  %v1453_v8 = vld [vmem:[#allocation12 + $0x58] sm:$0xff] }
 0x2b9   :  { %v13198_v18 = vpack.c.bf16 %v1306_v56, %v1302_v63  ;;  %v1308_v20 = vadd.f32 %v1307_v16, %v1264_v15  ;;  %4903 = vmatprep.subr.bf16.mxu1 %v10678_v6  ;;  %v10629_v63 = vcombine.low %v1733_v37, %v1741_v38  ;;  %v1701_v5 = vld [vmem:[#allocation12 + $0x818] sm:$0xff]  ;;  %v10357_v6 = vcombine.low %v1461_v47, %v1469_v48 }
 0x2ba   :  { %v10342_v7 = vcombine.high %v1445_v3, %v1453_v8  ;;  %v1685_v53 = vld [vmem:[#allocation12 + $0x798] sm:$0xff] }
 0x2bb   :  { %v13200_v27 = vpack.c.bf16 %v1308_v20, %v1304_v9  ;;  %4861 = vmatpush1.bf16.msra.mxu0 %v10421_v52  ;;  %v1709_v9 = vld [vmem:[#allocation12 + $0x858] sm:$0xff]  ;;  %v10341_v52 = vcombine.low %v1445_v3, %v1453_v8  ;;  %v10582_v16 = vcombine.high %v1685_v53, %v1693_v12  ;;  %v10581_v25 = vcombine.low %v1685_v53, %v1693_v12 }
 0x2bc   :  { %4904 = vmatpush1.bf16.msra.mxu1 %v10677_v54  ;;  %4862 = vmatprep.subr.bf16.mxu0 %v10406_v17  ;;  %v10598_v11 = vcombine.high %v1701_v5, %v1709_v9  ;;  %v1949_v56 = vld [vmem:[#allocation12 + $0xfd8] sm:$0xff]  ;;  %v10597_v15 = vcombine.low %v1701_v5, %v1709_v9 }
 0x2bd   :  { %4905 = vmatprep.subr.bf16.mxu1 %v10662_v21  ;;  %v10838_v54 = vcombine.high %v1941_v13, %v1949_v56  ;;  %v1669_v17 = vld [vmem:[#allocation12 + $0x718] sm:$0xff]  ;;  %v10837_v62 = vcombine.low %v1941_v13, %v1949_v56 }
 0x2be   :  { %v1677_v20 = vld [vmem:[#allocation12 + $0x758] sm:$0xff] }
 0x2bf   :  { %4863 = vmatpush1.bf16.msra.mxu0 %v10405_v61  ;;  %v1925_v21 = vld [vmem:[#allocation12 + $0xf18] sm:$0xff]  ;;  %v10566_v26 = vcombine.high %v1669_v17, %v1677_v20  ;;  %v10565_v36 = vcombine.low %v1669_v17, %v1677_v20 }
 0x2c0   :  { %4906 = vmatpush1.bf16.msra.mxu1 %v10661_v29  ;;  %4864 = vmatprep.subr.bf16.mxu0 %v10390_v31  ;;  %v1933_v22 = vld [vmem:[#allocation12 + $0xf58] sm:$0xff] }
 0x2c1   :  { %4907 = vmatprep.subr.bf16.mxu1 %v10646_v34  ;;  %v10822_v61 = vcombine.high %v1925_v21, %v1933_v22  ;;  %v1653_v29 = vld [vmem:[#allocation12 + $0x698] sm:$0xff]  ;;  %v10821_v37 = vcombine.low %v1925_v21, %v1933_v22 }
 0x2c2   :  { %v1661_v31 = vld [vmem:[#allocation12 + $0x6d8] sm:$0xff] }
 0x2c3   :  { %4865 = vmatpush1.bf16.msra.mxu0 %v10389_v39  ;;  %v1909_v34 = vld [vmem:[#allocation12 + $0xe98] sm:$0xff]  ;;  %v10550_v38 = vcombine.high %v1653_v29, %v1661_v31  ;;  %v10549_v48 = vcombine.low %v1653_v29, %v1661_v31 }
 0x2c4   :  { %4908 = vmatpush1.bf16.msra.mxu1 %v10645_v40  ;;  %4866 = vmatprep.subr.bf16.mxu0 %v10374_v41  ;;  %v1917_v35 = vld [vmem:[#allocation12 + $0xed8] sm:$0xff] }
 0x2c5   :  { %4909 = vmatprep.subr.bf16.mxu1 %v10630_v46  ;;  %v10806_v39 = vcombine.high %v1909_v34, %v1917_v35  ;;  %v1637_v40 = vld [vmem:[#allocation12 + $0x618] sm:$0xff]  ;;  %v10805_v49 = vcombine.low %v1909_v34, %v1917_v35 }
 0x2c6   :  { %v1645_v41 = vld [vmem:[#allocation12 + $0x658] sm:$0xff] }
 0x2c7   :  { %4867 = vmatpush1.bf16.msra.mxu0 %v10373_v60  ;;  %v1893_v46 = vld [vmem:[#allocation12 + $0xe18] sm:$0xff]  ;;  %v10534_v51 = vcombine.high %v1637_v40, %v1645_v41  ;;  %v10533_v8 = vcombine.low %v1637_v40, %v1645_v41  ;;  %v1822_v40 = vld [vmem:[#allocation12 + $0xbe0] sm:$0xff] }
 0x2c8   :  { %4910 = vmatpush1.bf16.msra.mxu1 %v10629_v63  ;;  %4868 = vmatprep.subr.bf16.mxu0 %v10358_v1  ;;  %v1901_v47 = vld [vmem:[#allocation12 + $0xe58] sm:$0xff] }
 0x2c9   :  { %4911 = vmatprep.subr.bf16.mxu1 %v10614_v2  ;;  %v10790_v60 = vcombine.high %v1893_v46, %v1901_v47  ;;  %v1621_v63 = vld [vmem:[#allocation12 + $0x598] sm:$0xff]  ;;  %v10789_v5 = vcombine.low %v1893_v46, %v1901_v47  ;;  %v13202_v47 = vld [vmem:[#allocation14] sm:$0xff] }
 0x2ca   :  { %v1629_v1 = vld [vmem:[#allocation12 + $0x5d8] sm:$0xff] }
 0x2cb   :  { %4869 = vmatpush1.bf16.msra.mxu0 %v10357_v6  ;;  %v1877_v2 = vld [vmem:[#allocation12 + $0xd98] sm:$0xff]  ;;  %v10518_v9 = vcombine.high %v1621_v63, %v1629_v1  ;;  %v10517_v12 = vcombine.low %v1621_v63, %v1629_v1  ;;  %v1961_v63 = vrot.slane %v13202_v47, %v13121_v58 }
 0x2cc   :  { %4912 = vmatpush1.bf16.msra.mxu1 %v10613_v10  ;;  %4870 = vmatprep.subr.bf16.mxu0 %v10342_v7  ;;  %v1885_v3 = vld [vmem:[#allocation12 + $0xdd8] sm:$0xff] }
 0x2cd   :  { %4913 = vmatprep.subr.bf16.mxu1 %v10598_v11  ;;  %v10774_v6 = vcombine.high %v1877_v2, %v1885_v3  ;;  %v1605_v10 = vld [vmem:[#allocation12 + $0x518] sm:$0xff]  ;;  %v10773_v13 = vcombine.low %v1877_v2, %v1885_v3  ;;  %v1798_v2 = vld [vmem:[#allocation12 + $0xb20] sm:$0xff] }
 0x2ce   :  { %v1613_v7 = vld [vmem:[#allocation12 + $0x558] sm:$0xff]  ;;  %v1806_v3 = vld [vmem:[#allocation12 + $0xb60] sm:$0xff] }
 0x2cf   :  { %4871 = vmatpush1.bf16.msra.mxu0 %v10341_v52  ;;  %v1861_v11 = vld [vmem:[#allocation12 + $0xd18] sm:$0xff]  ;;  %v10502_v56 = vcombine.high %v1605_v10, %v1613_v7  ;;  %v10501_v20 = vcombine.low %v1605_v10, %v1613_v7  ;;  %v10696_v7 = vcombine.high %v1798_v2, %v1806_v3 }
 0x2d0   :  { %4914 = vmatpush1.bf16.msra.mxu1 %v10597_v15  ;;  %4872 = vmatprep.subr.bf16.mxu0 %v10582_v16  ;;  %v1869_v53 = vld [vmem:[#allocation12 + $0xd58] sm:$0xff] }
 0x2d1   :  { %4915 = vmatprep.subr.bf16.mxu1 %v10838_v54  ;;  %v10758_v52 = vcombine.high %v1861_v11, %v1869_v53  ;;  %v1589_v15 = vld [vmem:[#allocation12 + $0x498] sm:$0xff]  ;;  %v10757_v21 = vcombine.low %v1861_v11, %v1869_v53  ;;  %v1782_v11 = vld [vmem:[#allocation12 + $0xaa0] sm:$0xff] }
 0x2d2   :  { %v1597_v16 = vld [vmem:[#allocation12 + $0x4d8] sm:$0xff]  ;;  %v1790_v53 = vld [vmem:[#allocation12 + $0xae0] sm:$0xff] }
 0x2d3   :  { %4873 = vmatpush2.bf16.msra.mxu0 %v10581_v25  ;;  %v1845_v54 = vld [vmem:[#allocation12 + $0xc98] sm:$0xff]  ;;  %v10486_v22 = vcombine.high %v1589_v15, %v1597_v16  ;;  %v10485_v31 = vcombine.low %v1589_v15, %v1597_v16  ;;  %v10695_v15 = vcombine.low %v1798_v2, %v1806_v3 }
 0x2d4   :  { %4916 = vmatpush2.bf16.msra.mxu1 %v10837_v62  ;;  %4874 = vmatprep.subr.bf16.mxu0 %v10566_v26  ;;  %v1853_v17 = vld [vmem:[#allocation12 + $0xcd8] sm:$0xff] }
 0x2d5   :  { %4917 = vmatprep.subr.bf16.mxu1 %v10822_v61  ;;  %v10742_v25 = vcombine.high %v1845_v54, %v1853_v17  ;;  %v1573_v62 = vld [vmem:[#allocation12 + $0x418] sm:$0xff]  ;;  %v10741_v34 = vcombine.low %v1845_v54, %v1853_v17 }
 0x2d6   :  { %v1581_v26 = vld [vmem:[#allocation12 + $0x458] sm:$0xff] }
 0x2d7   :  { %4875 = vmatpush2.bf16.msra.mxu0 %v10565_v36  ;;  %v1829_v61 = vld [vmem:[#allocation12 + $0xc18] sm:$0xff]  ;;  %v10470_v35 = vcombine.high %v1573_v62, %v1581_v26  ;;  %v10469_v41 = vcombine.low %v1573_v62, %v1581_v26  ;;  %v1766_v62 = vld [vmem:[#allocation12 + $0xa20] sm:$0xff] }
 0x2d8   :  { %4918 = vmatpush2.bf16.msra.mxu1 %v10821_v37  ;;  %4876 = vmatprep.subr.bf16.mxu0 %v10550_v38  ;;  %v1837_v29 = vld [vmem:[#allocation12 + $0xc58] sm:$0xff]  ;;  %v1558_v37 = vld [vmem:[#allocation12 + $0x3a0] sm:$0xff] }
 0x2d9   :  { %4919 = vmatprep.subr.bf16.mxu1 %v10806_v39  ;;  %v10726_v36 = vcombine.high %v1829_v61, %v1837_v29  ;;  %v1566_v38 = vld [vmem:[#allocation12 + $0x3e0] sm:$0xff]  ;;  %v10725_v46 = vcombine.low %v1829_v61, %v1837_v29 }
 0x2da   :  { %v1814_v39 = vld [vmem:[#allocation12 + $0xba0] sm:$0xff]  ;;  %v10455_v1 = vcombine.low %v1558_v37, %v1566_v38 }
 0x2db   :  { %4877 = vmatpush2.bf16.msra.mxu0 %v10549_v48  ;;  %v10456_v48 = vcombine.high %v1558_v37, %v1566_v38  ;;  %v1774_v26 = vld [vmem:[#allocation12 + $0xa60] sm:$0xff] }
 0x2dc   :  { %4920 = vmatpush2.bf16.msra.mxu1 %v10805_v49  ;;  %4878 = vmatprep.subr.bf16.mxu0 %v10534_v51  ;;  %v10712_v49 = vcombine.high %v1814_v39, %v1822_v40  ;;  %v1542_v51 = vld [vmem:[#allocation12 + $0x320] sm:$0xff] }
 0x2dd   :  { %4921 = vmatprep.subr.bf16.mxu1 %v10790_v60  ;;  %v1550_v60 = vld [vmem:[#allocation12 + $0x360] sm:$0xff] }
 0x2df   :  { %4879 = vmatpush2.bf16.msra.mxu0 %v10533_v8  ;;  %v10711_v8 = vcombine.low %v1814_v39, %v1822_v40  ;;  %v10664_v39 = vcombine.high %v1766_v62, %v1774_v26  ;;  %v1494_v40 = vld [vmem:[#allocation12 + $0x1a0] sm:$0xff] }
 0x2e0   :  { %4922 = vmatpush2.bf16.msra.mxu1 %v10789_v5  ;;  %4880 = vmatprep.subr.bf16.mxu0 %v10518_v9  ;;  %v10440_v5 = vcombine.high %v1542_v51, %v1550_v60  ;;  %v1526_v9 = vld [vmem:[#allocation12 + $0x2a0] sm:$0xff] }
 0x2e1   :  { %4923 = vmatprep.subr.bf16.mxu1 %v10774_v6  ;;  %v1534_v6 = vld [vmem:[#allocation12 + $0x2e0] sm:$0xff] }
 0x2e2   :  { %v10424_v16 = vcombine.high %v1526_v9, %v1534_v6 }
 0x2e3   :  { %4881 = vmatpush2.bf16.msra.mxu0 %v10517_v12 }
 0x2e4   :  { %4924 = vmatpush2.bf16.msra.mxu1 %v10773_v13  ;;  %4882 = vmatprep.subr.bf16.mxu0 %v10502_v56  ;;  %v10439_v56 = vcombine.low %v1542_v51, %v1550_v60 }
 0x2e5   :  { %4925 = vmatprep.subr.bf16.mxu1 %v10758_v52 }
 0x2e7   :  { %4883 = vmatpush2.bf16.msra.mxu0 %v10501_v20  ;;  %v10680_v20 = vcombine.high %v1782_v11, %v1790_v53 }
 0x2e8   :  { %4926 = vmatpush2.bf16.msra.mxu1 %v10757_v21  ;;  %4884 = vmatprep.subr.bf16.mxu0 %v10486_v22  ;;  %v1510_v21 = vld [vmem:[#allocation12 + $0x220] sm:$0xff] }
 0x2e9   :  { %4927 = vmatprep.subr.bf16.mxu1 %v10742_v25  ;;  %v1518_v22 = vld [vmem:[#allocation12 + $0x260] sm:$0xff] }
 0x2ea   :  { %v10407_v60 = vcombine.low %v1510_v21, %v1518_v22 }
 0x2eb   :  { %4885 = vmatpush2.bf16.msra.mxu0 %v10485_v31  ;;  %v10423_v31 = vcombine.low %v1526_v9, %v1534_v6  ;;  %v1486_v9 = vld [vmem:[#allocation12 + $0x160] sm:$0xff] }
 0x2ec   :  { %4928 = vmatpush2.bf16.msra.mxu1 %v10741_v34  ;;  %4886 = vmatprep.subr.bf16.mxu0 %v10470_v35  ;;  %v10679_v35 = vcombine.low %v1782_v11, %v1790_v53  ;;  %v1734_v6 = vld [vmem:[#allocation12 + $0x920] sm:$0xff] }
 0x2ed   :  { %4929 = vmatprep.subr.bf16.mxu1 %v10726_v36  ;;  %v10408_v36 = vcombine.high %v1510_v21, %v1518_v22  ;;  %v1718_v21 = vld [vmem:[#allocation12 + $0x8a0] sm:$0xff] }
 0x2ee   :  { %v1726_v22 = vld [vmem:[#allocation12 + $0x8e0] sm:$0xff] }
 0x2ef   :  { %4887 = vmatpush2.bf16.msra.mxu0 %v10469_v41  ;;  %v1502_v41 = vld [vmem:[#allocation12 + $0x1e0] sm:$0xff] }
 0x2f0   :  { %4930 = vmatpush2.bf16.msra.mxu1 %v10725_v46  ;;  %4942 = vmatprep.subr.bf16.mxu0 %v10456_v48  ;;  %v1750_v46 = vld [vmem:[#allocation12 + $0x9a0] sm:$0xff]  ;;  %v10391_v53 = vcombine.low %v1494_v40, %v1502_v41 }
 0x2f1   :  { %4985 = vmatprep.subr.bf16.mxu1 %v10712_v49  ;;  %v1758_v48 = vld [vmem:[#allocation12 + $0x9e0] sm:$0xff] }
 0x2f2   :  { %v4632_v10 = vpop.f32.mrf.mxu0  ;;  %4889 = vmatmul.mubr.bf16.vlgmr.msra.gmra.mxu0 %v13158_v32 }
 0x2f3   :  { %v4633_v12 = vadd.f32 %v4632_v10, %v1961_v63  ;;  %v4675_v13 = vpop.f32.mrf.mxu1  ;;  %4932 = vmatmul.mubr.bf16.vlgmr.msra.gmra.mxu1 %v13160_v33  ;;  %4943 = vmatpush1.bf16.msra.mxu0 %v10455_v1  ;;  %v10392_v1 = vcombine.high %v1494_v40, %v1502_v41  ;;  %v1742_v10 = vld [vmem:[#allocation12 + $0x960] sm:$0xff] }
 0x2f4   :  { %4974 = vmatprep.mubr.bf16.mxu0 %v13152_v0  ;;  %4986 = vmatpush1.bf16.msra.mxu1 %v10711_v8  ;;  %v13209_v52 = vpop.f32.mrf.mxu0  ;;  %v10648_v8 = vcombine.high %v1750_v46, %v1758_v48 }
 0x2f5   :  { %v13211_v54 = vadd.f32 %v4675_v13, %v4633_v12  ;;  %5017 = vmatprep.mubr.bf16.mxu1 %v13154_v30  ;;  %v13214_v17 = vpop.f32.mrf.mxu1  ;;  %4944 = vmatprep.subr.bf16.mxu0 %v10440_v5  ;;  %v1478_v5 = vld [vmem:[#allocation12 + $0x120] sm:$0xff]  ;;  %v10647_v12 = vcombine.low %v1750_v46, %v1758_v48 }
 0x2f6   :  { %v4636_v25 = vpop.f32.mrf.mxu0  ;;  %4987 = vmatprep.subr.bf16.mxu1 %v10696_v7  ;;  %v10376_v13 = vcombine.high %v1478_v5, %v1486_v9  ;;  %v1686_v46 = vld [vmem:[#allocation12 + $0x7a0] sm:$0xff] }
 0x2f7   :  { %v5318_v61 = vmul.f32 0.044715, %v13211_v54  ;;  %v4637_v29 = vadd.f32 %v4636_v25, %v1961_v63  ;;  %4945 = vmatpush1.bf16.msra.mxu0 %v10439_v56  ;;  %v4679_v34 = vpop.f32.mrf.mxu1  ;;  %v10663_v63 = vcombine.low %v1766_v62, %v1774_v26  ;;  %v10375_v62 = vcombine.low %v1478_v5, %v1486_v9  ;;  %v1694_v48 = vld [vmem:[#allocation12 + $0x7e0] sm:$0xff] }
 0x2f8   :  { %4988 = vmatpush1.bf16.msra.mxu1 %v10695_v15  ;;  %4946 = vmatprep.subr.bf16.mxu0 %v10424_v16  ;;  %v10632_v15 = vcombine.high %v1734_v6, %v1742_v10  ;;  %v1462_v16 = vld [vmem:[#allocation12 + $0xa0] sm:$0xff]  ;;  %v10631_v26 = vcombine.low %v1734_v6, %v1742_v10  ;;  %v10583_v10 = vcombine.low %v1686_v46, %v1694_v48 }
 0x2f9   :  { %v5350_v37 = vmul.f32 %v5318_v61, %v13211_v54  ;;  %v13218_v38 = vadd.f32 %v4679_v34, %v4637_v29  ;;  %4989 = vmatprep.subr.bf16.mxu1 %v10680_v20  ;;  %v1470_v20 = vld [vmem:[#allocation12 + $0xe0] sm:$0xff]  ;;  %v10616_v29 = vcombine.high %v1718_v21, %v1726_v22 }
 0x2fa   :  { %v10360_v61 = vcombine.high %v1462_v16, %v1470_v20  ;;  %v1454_v34 = vld [vmem:[#allocation12 + $0x60] sm:$0xff] }
 0x2fb   :  { %v5382_v49 = vmul.f32 %v5350_v37, %v13211_v54  ;;  %v5334_v51 = vmul.f32 0.044715, %v13218_v38  ;;  %4947 = vmatpush1.bf16.msra.mxu0 %v10423_v31  ;;  %v1446_v31 = vld [vmem:[#allocation12 + $0x20] sm:$0xff]  ;;  %v10359_v37 = vcombine.low %v1462_v16, %v1470_v20 }
 0x2fc   :  { %4990 = vmatpush1.bf16.msra.mxu1 %v10679_v35  ;;  %4948 = vmatprep.subr.bf16.mxu0 %v10408_v36  ;;  %v1702_v35 = vld [vmem:[#allocation12 + $0x820] sm:$0xff]  ;;  %v10344_v40 = vcombine.high %v1446_v31, %v1454_v34 }
 0x2fd   :  { %v5414_v2 = vadd.f32 %v5382_v49, %v13211_v54  ;;  %v5366_v3 = vmul.f32 %v5334_v51, %v13218_v38  ;;  %4991 = vmatprep.subr.bf16.mxu1 %v10664_v39  ;;  %v1710_v36 = vld [vmem:[#allocation12 + $0x860] sm:$0xff]  ;;  %v10615_v39 = vcombine.low %v1718_v21, %v1726_v22  ;;  %v5286_v22 = vmul.f32 0.5, %v13211_v54 }
 0x2fe   :  { %v10600_v41 = vcombine.high %v1702_v35, %v1710_v36  ;;  %v1942_v49 = vld [vmem:[#allocation12 + $0xfa0] sm:$0xff] }
 0x2ff   :  { %v5446_v7 = vmul.f32 0.7978846, %v5414_v2  ;;  %v5398_v11 = vmul.f32 %v5366_v3, %v13218_v38  ;;  %4949 = vmatpush1.bf16.msra.mxu0 %v10407_v60  ;;  %v1950_v51 = vld [vmem:[#allocation12 + $0xfe0] sm:$0xff]  ;;  %v10343_v60 = vcombine.low %v1446_v31, %v1454_v34 }
 0x300   :  { %4992 = vmatpush1.bf16.msra.mxu1 %v10663_v63  ;;  %4950 = vmatprep.subr.bf16.mxu0 %v10392_v1  ;;  %v10599_v63 = vcombine.low %v1702_v35, %v1710_v36  ;;  %v10584_v1 = vcombine.high %v1686_v46, %v1694_v48  ;;  %v10840_v2 = vcombine.high %v1942_v49, %v1950_v51  ;;  %v1670_v3 = vld [vmem:[#allocation12 + $0x720] sm:$0xff] }
 0x301   :  { %12667 = vtanh.f32 %v5446_v7  ;;  %v5430_v56 = vadd.f32 %v5398_v11, %v13218_v38  ;;  %4993 = vmatprep.subr.bf16.mxu1 %v10648_v8  ;;  %v1678_v8 = vld [vmem:[#allocation12 + $0x760] sm:$0xff]  ;;  %v10839_v7 = vcombine.low %v1942_v49, %v1950_v51 }
 0x302   :  { %v1926_v9 = vld [vmem:[#allocation12 + $0xf20] sm:$0xff]  ;;  %v10568_v11 = vcombine.high %v1670_v3, %v1678_v8  ;;  %v10567_v21 = vcombine.low %v1670_v3, %v1678_v8 }
 0x303   :  { %v5462_v25 = vmul.f32 0.7978846, %v5430_v56  ;;  %4951 = vmatpush1.bf16.msra.mxu0 %v10391_v53  ;;  %v1934_v6 = vld [vmem:[#allocation12 + $0xf60] sm:$0xff] }
 0x304   :  { %4994 = vmatpush1.bf16.msra.mxu1 %v10647_v12  ;;  %4952 = vmatprep.subr.bf16.mxu0 %v10376_v13  ;;  %v10824_v53 = vcombine.high %v1926_v9, %v1934_v6  ;;  %v1654_v12 = vld [vmem:[#allocation12 + $0x6a0] sm:$0xff] }
 0x305   :  { %12669 = vtanh.f32 %v5462_v25  ;;  %4995 = vmatprep.subr.bf16.mxu1 %v10632_v15  ;;  %v1662_v13 = vld [vmem:[#allocation12 + $0x6e0] sm:$0xff]  ;;  %v5302_v25 = vmul.f32 0.5, %v13218_v38 }
 0x306   :  { %v1910_v16 = vld [vmem:[#allocation12 + $0xea0] sm:$0xff] }
 0x307   :  { %4953 = vmatpush1.bf16.msra.mxu0 %v10375_v62  ;;  %v1918_v20 = vld [vmem:[#allocation12 + $0xee0] sm:$0xff] }
 0x308   :  { %4996 = vmatpush1.bf16.msra.mxu1 %v10631_v26  ;;  %4954 = vmatprep.subr.bf16.mxu0 %v10360_v61  ;;  %v10823_v26 = vcombine.low %v1926_v9, %v1934_v6  ;;  %v10552_v61 = vcombine.high %v1654_v12, %v1662_v13  ;;  %v1638_v31 = vld [vmem:[#allocation12 + $0x620] sm:$0xff]  ;;  %v10807_v54 = vcombine.low %v1910_v16, %v1918_v20 }
 0x309   :  { %4997 = vmatprep.subr.bf16.mxu1 %v10616_v29  ;;  %v10808_v29 = vcombine.high %v1910_v16, %v1918_v20  ;;  %v1646_v34 = vld [vmem:[#allocation12 + $0x660] sm:$0xff] }
 0x30a   :  { %v10536_v38 = vcombine.high %v1638_v31, %v1646_v34  ;;  %v1622_v48 = vld [vmem:[#allocation12 + $0x5a0] sm:$0xff] }
 0x30b   :  { %4955 = vmatpush1.bf16.msra.mxu0 %v10359_v37  ;;  %v1894_v37 = vld [vmem:[#allocation12 + $0xe20] sm:$0xff] }
 0x30c   :  { %4998 = vmatpush1.bf16.msra.mxu1 %v10615_v39  ;;  %4956 = vmatprep.subr.bf16.mxu0 %v10344_v40  ;;  %v1902_v39 = vld [vmem:[#allocation12 + $0xe60] sm:$0xff]  ;;  %v10551_v40 = vcombine.low %v1654_v12, %v1662_v13 }
 0x30d   :  { %4999 = vmatprep.subr.bf16.mxu1 %v10600_v41  ;;  %v10792_v46 = vcombine.high %v1894_v37, %v1902_v39  ;;  %v1630_v49 = vld [vmem:[#allocation12 + $0x5e0] sm:$0xff] }
 0x30e   :  { %v12668_v5 = vpop.eup %12667  ;;  %v1878_v51 = vld [vmem:[#allocation12 + $0xda0] sm:$0xff] }
 0x30f   :  { %4957 = vmatpush1.bf16.msra.mxu0 %v10343_v60  ;;  %v5510_v56 = vadd.f32 1.0, %v12668_v5  ;;  %v1886_v60 = vld [vmem:[#allocation12 + $0xde0] sm:$0xff] }
 0x310   :  { %5000 = vmatpush1.bf16.msra.mxu1 %v10599_v63  ;;  %4958 = vmatprep.subr.bf16.mxu0 %v10584_v1  ;;  %v10535_v63 = vcombine.low %v1638_v31, %v1646_v34  ;;  %v10791_v1 = vcombine.low %v1894_v37, %v1902_v39  ;;  %v10776_v3 = vcombine.high %v1878_v51, %v1886_v60  ;;  %v1606_v8 = vld [vmem:[#allocation12 + $0x520] sm:$0xff]  ;;  %v1567_v37 = vld [vmem:[#allocation12 + $0x3e8] sm:$0xff] }
 0x311   :  { %5001 = vmatprep.subr.bf16.mxu1 %v10840_v2  ;;  %v5542_v35 = vmul.f32 %v5510_v56, %v5286_v22  ;;  %v10520_v2 = vcombine.high %v1622_v48, %v1630_v49  ;;  %v1614_v5 = vld [vmem:[#allocation12 + $0x560] sm:$0xff]  ;;  %v1815_v39 = vld [vmem:[#allocation12 + $0xba8] sm:$0xff] }
 0x312   :  { %v12670_v15 = vpop.eup %12669  ;;  %v1862_v9 = vld [vmem:[#allocation12 + $0xd20] sm:$0xff]  ;;  %v10503_v16 = vcombine.low %v1606_v8, %v1614_v5 }
 0x313   :  { %4959 = vmatpush2.bf16.msra.mxu0 %v10583_v10  ;;  %v5526_v62 = vadd.f32 1.0, %v12670_v15  ;;  %v1870_v6 = vld [vmem:[#allocation12 + $0xd60] sm:$0xff]  ;;  %v10519_v10 = vcombine.low %v1622_v48, %v1630_v49  ;;  %v1543_v49 = vld [vmem:[#allocation12 + $0x328] sm:$0xff] }
 0x314   :  { %5002 = vmatpush2.bf16.msra.mxu1 %v10839_v7  ;;  %4960 = vmatprep.subr.bf16.mxu0 %v10568_v11  ;;  %v10775_v7 = vcombine.low %v1878_v51, %v1886_v60  ;;  %v10504_v11 = vcombine.high %v1606_v8, %v1614_v5  ;;  %v1590_v12 = vld [vmem:[#allocation12 + $0x4a0] sm:$0xff]  ;;  %v10759_v20 = vcombine.low %v1862_v9, %v1870_v6  ;;  %v1551_v51 = vld [vmem:[#allocation12 + $0x368] sm:$0xff]  ;;  %v13234_v5 = vpop.f32.mrf.mxu1 }
 0x315   :  { %5003 = vmatprep.subr.bf16.mxu1 %v10824_v53  ;;  %v5558_v36 = vmul.f32 %v5526_v62, %v5302_v25  ;;  %v10760_v53 = vcombine.high %v1862_v9, %v1870_v6  ;;  %v1598_v13 = vld [vmem:[#allocation12 + $0x4e0] sm:$0xff]  ;;  %v1969_v60 = vrot.slane %v13202_v47, %v13124_v59  ;;  %v10442_v9 = vcombine.high %v1543_v49, %v1551_v51  ;;  %v1527_v6 = vld [vmem:[#allocation12 + $0x2a8] sm:$0xff] }
 0x316   :  { %v1846_v56 = vld [vmem:[#allocation12 + $0xca0] sm:$0xff] }
 0x317   :  { %4961 = vmatpush2.bf16.msra.mxu0 %v10567_v21  ;;  %v13228_v41 = vpack.c.bf16 %v5558_v36, %v5542_v35  ;;  %v1854_v15 = vld [vmem:[#allocation12 + $0xce0] sm:$0xff]  ;;  %v10488_v21 = vcombine.high %v1590_v12, %v1598_v13  ;;  %v1559_v36 = vld [vmem:[#allocation12 + $0x3a8] sm:$0xff] }
 0x318   :  { %5004 = vmatpush2.bf16.msra.mxu1 %v10823_v26  ;;  %4962 = vmatprep.subr.bf16.mxu0 %v10552_v61  ;;  %v10744_v22 = vcombine.high %v1846_v56, %v1854_v15  ;;  %v1574_v25 = vld [vmem:[#allocation12 + $0x420] sm:$0xff]  ;;  %v10743_v31 = vcombine.low %v1846_v56, %v1854_v15  ;;  %v10441_v15 = vcombine.low %v1543_v49, %v1551_v51  ;;  %v1495_v49 = vld [vmem:[#allocation12 + $0x1a8] sm:$0xff] }
 0x319   :  { %5005 = vmatprep.subr.bf16.mxu1 %v10808_v29  ;;  %v1582_v62 = vld [vmem:[#allocation12 + $0x460] sm:$0xff]  ;;  %v10487_v29 = vcombine.low %v1590_v12, %v1598_v13  ;;  %v1791_v12 = vld [vmem:[#allocation12 + $0xae8] sm:$0xff] }
 0x31a   :  { %v1830_v26 = vld [vmem:[#allocation12 + $0xc20] sm:$0xff]  ;;  %v10472_v34 = vcombine.high %v1574_v25, %v1582_v62  ;;  %v1503_v51 = vld [vmem:[#allocation12 + $0x1e8] sm:$0xff] }
 0x31b   :  { %4963 = vmatpush2.bf16.msra.mxu0 %v10551_v40  ;;  %v1838_v61 = vld [vmem:[#allocation12 + $0xc60] sm:$0xff]  ;;  %v1823_v40 = vld [vmem:[#allocation12 + $0xbe8] sm:$0xff] }
 0x31c   :  { %5006 = vmatpush2.bf16.msra.mxu1 %v10807_v54  ;;  %4964 = vmatprep.subr.bf16.mxu0 %v10536_v38  ;;  %v10728_v35 = vcombine.high %v1830_v26, %v1838_v61  ;;  %v10471_v54 = vcombine.low %v1574_v25, %v1582_v62  ;;  %v10727_v38 = vcombine.low %v1830_v26, %v1838_v61  ;;  %v1511_v26 = vld [vmem:[#allocation12 + $0x228] sm:$0xff] }
 0x31d   :  { %5007 = vmatprep.subr.bf16.mxu1 %v10792_v46  ;;  %v10458_v46 = vcombine.high %v1559_v36, %v1567_v37  ;;  %v10714_v48 = vcombine.high %v1815_v39, %v1823_v40  ;;  %v10713_v8 = vcombine.low %v1815_v39, %v1823_v40  ;;  %v1519_v61 = vld [vmem:[#allocation12 + $0x268] sm:$0xff] }
 0x31f   :  { %4965 = vmatpush2.bf16.msra.mxu0 %v10535_v63  ;;  %v10457_v63 = vcombine.low %v1559_v36, %v1567_v37 }
 0x320   :  { %5008 = vmatpush2.bf16.msra.mxu1 %v10791_v1  ;;  %4966 = vmatprep.subr.bf16.mxu0 %v10520_v2  ;;  %v1799_v1 = vld [vmem:[#allocation12 + $0xb28] sm:$0xff] }
 0x321   :  { %5009 = vmatprep.subr.bf16.mxu1 %v10776_v3  ;;  %v1807_v2 = vld [vmem:[#allocation12 + $0xb68] sm:$0xff]  ;;  %v13232_v3 = vpop.f32.mrf.mxu0 }
 0x323   :  { %4967 = vmatpush2.bf16.msra.mxu0 %v10519_v10  ;;  %v1535_v10 = vld [vmem:[#allocation12 + $0x2e8] sm:$0xff] }
 0x324   :  { %5010 = vmatpush2.bf16.msra.mxu1 %v10775_v7  ;;  %4968 = vmatprep.subr.bf16.mxu0 %v10504_v11  ;;  %v10698_v11 = vcombine.high %v1799_v1, %v1807_v2  ;;  %v10425_v37 = vcombine.low %v1527_v6, %v1535_v10 }
 0x325   :  { %5011 = vmatprep.subr.bf16.mxu1 %v10760_v53  ;;  %v1783_v53 = vld [vmem:[#allocation12 + $0xaa8] sm:$0xff] }
 0x326   :  { %v10682_v62 = vcombine.high %v1783_v53, %v1791_v12  ;;  %v10681_v40 = vcombine.low %v1783_v53, %v1791_v12  ;;  %v1479_v53 = vld [vmem:[#allocation12 + $0x128] sm:$0xff] }
 0x327   :  { %4969 = vmatpush2.bf16.msra.mxu0 %v10503_v16  ;;  %v1487_v12 = vld [vmem:[#allocation12 + $0x168] sm:$0xff] }
 0x328   :  { %5012 = vmatpush2.bf16.msra.mxu1 %v10759_v20  ;;  %4970 = vmatprep.subr.bf16.mxu0 %v10488_v21  ;;  %v10697_v20 = vcombine.low %v1799_v1, %v1807_v2  ;;  %v10426_v21 = vcombine.high %v1527_v6, %v1535_v10  ;;  %v1759_v1 = vld [vmem:[#allocation12 + $0x9e8] sm:$0xff]  ;;  %v10394_v6 = vcombine.high %v1495_v49, %v1503_v51 }
 0x329   :  { %5013 = vmatprep.subr.bf16.mxu1 %v10744_v22 }
 0x32b   :  { %4971 = vmatpush2.bf16.msra.mxu0 %v10487_v29 }
 0x32c   :  { %5014 = vmatpush2.bf16.msra.mxu1 %v10743_v31  ;;  %4972 = vmatprep.subr.bf16.mxu0 %v10472_v34  ;;  %v1767_v31 = vld [vmem:[#allocation12 + $0xa28] sm:$0xff] }
 0x32d   :  { %5015 = vmatprep.subr.bf16.mxu1 %v10728_v35  ;;  %v1775_v34 = vld [vmem:[#allocation12 + $0xa68] sm:$0xff] }
 0x32f   :  { %4973 = vmatpush2.bf16.msra.mxu0 %v10471_v54  ;;  %v10410_v54 = vcombine.high %v1511_v26, %v1519_v61 }
 0x330   :  { %5016 = vmatpush2.bf16.msra.mxu1 %v10727_v38  ;;  %5028 = vmatprep.subr.bf16.mxu0 %v10458_v46 }
 0x331   :  { %5071 = vmatprep.subr.bf16.mxu1 %v10714_v48  ;;  %v10666_v48 = vcombine.high %v1767_v31, %v1775_v34 }
 0x332   :  { %v4718_v7 = vpop.f32.mrf.mxu0  ;;  %4975 = vmatmul.mubr.bf16.vlgmr.msra.gmra.mxu0 %v13158_v32 }
 0x333   :  { %v4719_v13 = vadd.f32 %v4718_v7, %v1969_v60  ;;  %v4761_v56 = vpop.f32.mrf.mxu1  ;;  %5018 = vmatmul.mubr.bf16.vlgmr.msra.gmra.mxu1 %v13160_v33  ;;  %5029 = vmatpush1.bf16.msra.mxu0 %v10457_v63  ;;  %v1751_v63 = vld [vmem:[#allocation12 + $0x9a8] sm:$0xff] }
 0x334   :  { %5060 = vmatprep.mubr.bf16.mxu0 %v13152_v0  ;;  %5072 = vmatpush1.bf16.msra.mxu1 %v10713_v8  ;;  %v13239_v16 = vpop.f32.mrf.mxu0  ;;  %v10409_v8 = vcombine.low %v1511_v26, %v1519_v61  ;;  %v10378_v26 = vcombine.high %v1479_v53, %v1487_v12 }
 0x335   :  { %v13241_v22 = vadd.f32 %v4761_v56, %v4719_v13  ;;  %5103 = vmatprep.mubr.bf16.mxu1 %v13154_v30  ;;  %v13244_v25 = vpop.f32.mrf.mxu1  ;;  %5030 = vmatprep.subr.bf16.mxu0 %v10442_v9  ;;  %v10665_v9 = vcombine.low %v1767_v31, %v1775_v34  ;;  %v1735_v13 = vld [vmem:[#allocation12 + $0x928] sm:$0xff] }
 0x336   :  { %v4722_v29 = vpop.f32.mrf.mxu0  ;;  %5073 = vmatprep.subr.bf16.mxu1 %v10698_v11  ;;  %v10650_v11 = vcombine.high %v1751_v63, %v1759_v1  ;;  %v1743_v56 = vld [vmem:[#allocation12 + $0x968] sm:$0xff] }
 0x337   :  { %v5320_v35 = vmul.f32 0.044715, %v13241_v22  ;;  %v4723_v36 = vadd.f32 %v4722_v29, %v1969_v60  ;;  %5031 = vmatpush1.bf16.msra.mxu0 %v10441_v15  ;;  %v4765_v39 = vpop.f32.mrf.mxu1  ;;  %v10634_v29 = vcombine.high %v1735_v13, %v1743_v56  ;;  %v1463_v31 = vld [vmem:[#allocation12 + $0xa8] sm:$0xff] }
 0x338   :  { %5074 = vmatpush1.bf16.msra.mxu1 %v10697_v20  ;;  %5032 = vmatprep.subr.bf16.mxu0 %v10426_v21  ;;  %v10393_v21 = vcombine.low %v1495_v49, %v1503_v51  ;;  %v1471_v34 = vld [vmem:[#allocation12 + $0xe8] sm:$0xff] }
 0x339   :  { %v5352_v38 = vmul.f32 %v5320_v35, %v13241_v22  ;;  %v13248_v46 = vadd.f32 %v4765_v39, %v4723_v36  ;;  %5075 = vmatprep.subr.bf16.mxu1 %v10682_v62  ;;  %v10649_v62 = vcombine.low %v1751_v63, %v1759_v1  ;;  %v1719_v35 = vld [vmem:[#allocation12 + $0x8a8] sm:$0xff]  ;;  %v10377_v39 = vcombine.low %v1479_v53, %v1487_v12 }
 0x33a   :  { %v1727_v36 = vld [vmem:[#allocation12 + $0x8e8] sm:$0xff]  ;;  %v10361_v1 = vcombine.low %v1463_v31, %v1471_v34 }
 0x33b   :  { %v5384_v2 = vmul.f32 %v5352_v38, %v13241_v22  ;;  %v5336_v60 = vmul.f32 0.044715, %v13248_v46  ;;  %5033 = vmatpush1.bf16.msra.mxu0 %v10425_v37  ;;  %v10618_v38 = vcombine.high %v1719_v35, %v1727_v36  ;;  %v1455_v49 = vld [vmem:[#allocation12 + $0x68] sm:$0xff] }
 0x33c   :  { %5076 = vmatpush1.bf16.msra.mxu1 %v10681_v40  ;;  %5034 = vmatprep.subr.bf16.mxu0 %v10410_v54  ;;  %v10633_v40 = vcombine.low %v1735_v13, %v1743_v56  ;;  %v10362_v54 = vcombine.high %v1463_v31, %v1471_v34  ;;  %v1703_v51 = vld [vmem:[#allocation12 + $0x828] sm:$0xff] }
 0x33d   :  { %v5416_v10 = vadd.f32 %v5384_v2, %v13241_v22  ;;  %v5368_v7 = vmul.f32 %v5336_v60, %v13248_v46  ;;  %5077 = vmatprep.subr.bf16.mxu1 %v10666_v48  ;;  %v1447_v48 = vld [vmem:[#allocation12 + $0x28] sm:$0xff]  ;;  %v10617_v2 = vcombine.low %v1719_v35, %v1727_v36 }
 0x33e   :  { %v1711_v63 = vld [vmem:[#allocation12 + $0x868] sm:$0xff]  ;;  %v10346_v60 = vcombine.high %v1447_v48, %v1455_v49 }
 0x33f   :  { %v5448_v15 = vmul.f32 0.7978846, %v5416_v10  ;;  %v5400_v20 = vmul.f32 %v5368_v7, %v13248_v46  ;;  %5035 = vmatpush1.bf16.msra.mxu0 %v10409_v8  ;;  %v10602_v8 = vcombine.high %v1703_v51, %v1711_v63  ;;  %v1943_v10 = vld [vmem:[#allocation12 + $0xfa8] sm:$0xff]  ;;  %v10601_v53 = vcombine.low %v1703_v51, %v1711_v63 }
 0x340   :  { %5078 = vmatpush1.bf16.msra.mxu1 %v10665_v9  ;;  %5036 = vmatprep.subr.bf16.mxu0 %v10394_v6  ;;  %v1687_v9 = vld [vmem:[#allocation12 + $0x7a8] sm:$0xff] }
 0x341   :  { %12671 = vtanh.f32 %v5448_v15  ;;  %v5432_v61 = vadd.f32 %v5400_v20, %v13248_v46  ;;  %5079 = vmatprep.subr.bf16.mxu1 %v10650_v11  ;;  %v1695_v6 = vld [vmem:[#allocation12 + $0x7e8] sm:$0xff]  ;;  %v10345_v11 = vcombine.low %v1447_v48, %v1455_v49  ;;  %v5304_v48 = vmul.f32 0.5, %v13248_v46 }
 0x342   :  { %v1951_v7 = vld [vmem:[#allocation12 + $0xfe8] sm:$0xff]  ;;  %v10586_v12 = vcombine.high %v1687_v9, %v1695_v6 }
 0x343   :  { %v5464_v37 = vmul.f32 0.7978846, %v5432_v61  ;;  %5037 = vmatpush1.bf16.msra.mxu0 %v10393_v21  ;;  %v10842_v13 = vcombine.high %v1943_v10, %v1951_v7  ;;  %v1671_v56 = vld [vmem:[#allocation12 + $0x728] sm:$0xff]  ;;  %v10841_v61 = vcombine.low %v1943_v10, %v1951_v7 }
 0x344   :  { %5080 = vmatpush1.bf16.msra.mxu1 %v10649_v62  ;;  %5038 = vmatprep.subr.bf16.mxu0 %v10378_v26  ;;  %v1679_v15 = vld [vmem:[#allocation12 + $0x768] sm:$0xff]  ;;  %v10585_v26 = vcombine.low %v1687_v9, %v1695_v6 }
 0x345   :  { %12673 = vtanh.f32 %v5464_v37  ;;  %5081 = vmatprep.subr.bf16.mxu1 %v10634_v29  ;;  %v1927_v21 = vld [vmem:[#allocation12 + $0xf28] sm:$0xff]  ;;  %v10570_v29 = vcombine.high %v1671_v56, %v1679_v15 }
 0x346   :  { %v1935_v62 = vld [vmem:[#allocation12 + $0xf68] sm:$0xff] }
 0x347   :  { %5039 = vmatpush1.bf16.msra.mxu0 %v10377_v39  ;;  %v10826_v31 = vcombine.high %v1927_v21, %v1935_v62  ;;  %v1655_v34 = vld [vmem:[#allocation12 + $0x6a8] sm:$0xff]  ;;  %v10825_v51 = vcombine.low %v1927_v21, %v1935_v62 }
 0x348   :  { %5082 = vmatpush1.bf16.msra.mxu1 %v10633_v40  ;;  %5040 = vmatprep.subr.bf16.mxu0 %v10362_v54  ;;  %v1663_v35 = vld [vmem:[#allocation12 + $0x6e8] sm:$0xff]  ;;  %v10569_v54 = vcombine.low %v1671_v56, %v1679_v15 }
 0x349   :  { %5083 = vmatprep.subr.bf16.mxu1 %v10618_v38  ;;  %v1911_v39 = vld [vmem:[#allocation12 + $0xea8] sm:$0xff]  ;;  %v5288_v38 = vmul.f32 0.5, %v13241_v22  ;;  %v10554_v63 = vcombine.high %v1655_v34, %v1663_v35  ;;  %v10553_v7 = vcombine.low %v1655_v34, %v1663_v35 }
 0x34a   :  { %v1919_v40 = vld [vmem:[#allocation12 + $0xee8] sm:$0xff] }
 0x34b   :  { %5041 = vmatpush1.bf16.msra.mxu0 %v10361_v1  ;;  %v10810_v1 = vcombine.high %v1911_v39, %v1919_v40  ;;  %v1895_v6 = vld [vmem:[#allocation12 + $0xe28] sm:$0xff]  ;;  %v10809_v22 = vcombine.low %v1911_v39, %v1919_v40 }
 0x34c   :  { %5084 = vmatpush1.bf16.msra.mxu1 %v10617_v2  ;;  %5042 = vmatprep.subr.bf16.mxu0 %v10346_v60  ;;  %v1639_v2 = vld [vmem:[#allocation12 + $0x628] sm:$0xff] }
 0x34d   :  { %5085 = vmatprep.subr.bf16.mxu1 %v10602_v8  ;;  %v1647_v60 = vld [vmem:[#allocation12 + $0x668] sm:$0xff] }
 0x34e   :  { %v12672_v20 = vpop.eup %12671  ;;  %v1903_v10 = vld [vmem:[#allocation12 + $0xe68] sm:$0xff]  ;;  %v10538_v46 = vcombine.high %v1639_v2, %v1647_v60 }
 0x34f   :  { %5043 = vmatpush1.bf16.msra.mxu0 %v10345_v11  ;;  %v5512_v36 = vadd.f32 1.0, %v12672_v20  ;;  %v1879_v56 = vld [vmem:[#allocation12 + $0xda8] sm:$0xff]  ;;  %v10537_v20 = vcombine.low %v1639_v2, %v1647_v60  ;;  %v10793_v21 = vcombine.low %v1895_v6, %v1903_v10 }
 0x350   :  { %5086 = vmatpush1.bf16.msra.mxu1 %v10601_v53  ;;  %5044 = vmatprep.subr.bf16.mxu0 %v10586_v12  ;;  %v10794_v53 = vcombine.high %v1895_v6, %v1903_v10  ;;  %v1623_v12 = vld [vmem:[#allocation12 + $0x5a8] sm:$0xff] }
 0x351   :  { %5087 = vmatprep.subr.bf16.mxu1 %v10842_v13  ;;  %v5544_v8 = vmul.f32 %v5512_v36, %v5288_v38  ;;  %v1631_v13 = vld [vmem:[#allocation12 + $0x5e8] sm:$0xff] }
 0x352   :  { %v12674_v37 = vpop.eup %12673  ;;  %v1887_v15 = vld [vmem:[#allocation12 + $0xde8] sm:$0xff]  ;;  %v10522_v62 = vcombine.high %v1623_v12, %v1631_v13  ;;  %v10521_v35 = vcombine.low %v1623_v12, %v1631_v13  ;;  %v1816_v12 = vld [vmem:[#allocation12 + $0xbb0] sm:$0xff] }
 0x353   :  { %5045 = vmatpush2.bf16.msra.mxu0 %v10585_v26  ;;  %v5528_v49 = vadd.f32 1.0, %v12674_v37  ;;  %v10778_v26 = vcombine.high %v1879_v56, %v1887_v15  ;;  %v1871_v34 = vld [vmem:[#allocation12 + $0xd68] sm:$0xff]  ;;  %v10777_v36 = vcombine.low %v1879_v56, %v1887_v15  ;;  %v1824_v13 = vld [vmem:[#allocation12 + $0xbf0] sm:$0xff]  ;;  %v13777_v15 = vsub.s32 4, %v13112_v50 }
 0x354   :  { %5088 = vmatpush2.bf16.msra.mxu1 %v10841_v61  ;;  %5046 = vmatprep.subr.bf16.mxu0 %v10570_v29  ;;  %v1607_v61 = vld [vmem:[#allocation12 + $0x528] sm:$0xff] }
 0x355   :  { %5089 = vmatprep.subr.bf16.mxu1 %v10826_v31  ;;  %v5560_v9 = vmul.f32 %v5528_v49, %v5304_v48  ;;  %v1615_v29 = vld [vmem:[#allocation12 + $0x568] sm:$0xff] }
 0x356   :  { %v1863_v31 = vld [vmem:[#allocation12 + $0xd28] sm:$0xff]  ;;  %v10506_v37 = vcombine.high %v1607_v61, %v1615_v29  ;;  %v10505_v49 = vcombine.low %v1607_v61, %v1615_v29  ;;  %v1552_v61 = vld [vmem:[#allocation12 + $0x370] sm:$0xff]  ;;  %v1977_v29 = vrot.slane %v13202_v47, %v13777_v15  ;;  %v1753_v15 = vld [vmem:[#allocation12 + $0x9b8] sm:$0xff] }
 0x357   :  { %5047 = vmatpush2.bf16.msra.mxu0 %v10569_v54  ;;  %v13258_v11 = vpack.c.bf16 %v5560_v9, %v5544_v8  ;;  %v10762_v39 = vcombine.high %v1863_v31, %v1871_v34  ;;  %v1591_v40 = vld [vmem:[#allocation12 + $0x4a8] sm:$0xff]  ;;  %v1792_v47 = vld [vmem:[#allocation12 + $0xaf0] sm:$0xff] }
 0x358   :  { %5090 = vmatpush2.bf16.msra.mxu1 %v10825_v51  ;;  %5048 = vmatprep.subr.bf16.mxu0 %v10554_v63  ;;  %v1599_v54 = vld [vmem:[#allocation12 + $0x4e8] sm:$0xff]  ;;  %v10761_v51 = vcombine.low %v1863_v31, %v1871_v34  ;;  %v1800_v34 = vld [vmem:[#allocation12 + $0xb30] sm:$0xff] }
 0x359   :  { %5091 = vmatprep.subr.bf16.mxu1 %v10810_v1  ;;  %v1847_v38 = vld [vmem:[#allocation12 + $0xca8] sm:$0xff]  ;;  %v10490_v63 = vcombine.high %v1591_v40, %v1599_v54  ;;  %v10489_v6 = vcombine.low %v1591_v40, %v1599_v54  ;;  %v1528_v54 = vld [vmem:[#allocation12 + $0x2b0] sm:$0xff] }
 0x35a   :  { %v1855_v48 = vld [vmem:[#allocation12 + $0xce8] sm:$0xff] }
 0x35b   :  { %5049 = vmatpush2.bf16.msra.mxu0 %v10553_v7  ;;  %v10746_v1 = vcombine.high %v1847_v38, %v1855_v48  ;;  %v1575_v2 = vld [vmem:[#allocation12 + $0x428] sm:$0xff]  ;;  %v10745_v10 = vcombine.low %v1847_v38, %v1855_v48  ;;  %v1536_v38 = vld [vmem:[#allocation12 + $0x2f0] sm:$0xff] }
 0x35c   :  { %5092 = vmatpush2.bf16.msra.mxu1 %v10809_v22  ;;  %5050 = vmatprep.subr.bf16.mxu0 %v10538_v46  ;;  %v1583_v60 = vld [vmem:[#allocation12 + $0x468] sm:$0xff]  ;;  %v1560_v46 = vld [vmem:[#allocation12 + $0x3b0] sm:$0xff] }
 0x35d   :  { %5093 = vmatprep.subr.bf16.mxu1 %v10794_v53  ;;  %v1831_v8 = vld [vmem:[#allocation12 + $0xc28] sm:$0xff]  ;;  %v10474_v7 = vcombine.high %v1575_v2, %v1583_v60  ;;  %v1568_v53 = vld [vmem:[#allocation12 + $0x3f0] sm:$0xff]  ;;  %v10473_v56 = vcombine.low %v1575_v2, %v1583_v60 }
 0x35e   :  { %v1839_v9 = vld [vmem:[#allocation12 + $0xc68] sm:$0xff]  ;;  %v10459_v31 = vcombine.low %v1560_v46, %v1568_v53 }
 0x35f   :  { %5051 = vmatpush2.bf16.msra.mxu0 %v10537_v20  ;;  %v10730_v22 = vcombine.high %v1831_v8, %v1839_v9  ;;  %v10729_v20 = vcombine.low %v1831_v8, %v1839_v9  ;;  %v10428_v9 = vcombine.high %v1528_v54, %v1536_v38 }
 0x360   :  { %5094 = vmatpush2.bf16.msra.mxu1 %v10793_v21  ;;  %5052 = vmatprep.subr.bf16.mxu0 %v10522_v62  ;;  %v10460_v21 = vcombine.high %v1560_v46, %v1568_v53  ;;  %v10716_v62 = vcombine.high %v1816_v12, %v1824_v13  ;;  %v1520_v46 = vld [vmem:[#allocation12 + $0x270] sm:$0xff] }
 0x361   :  { %5095 = vmatprep.subr.bf16.mxu1 %v10778_v26  ;;  %v1544_v26 = vld [vmem:[#allocation12 + $0x330] sm:$0xff] }
 0x362   :  { %v10444_v40 = vcombine.high %v1544_v26, %v1552_v61  ;;  %v10443_v2 = vcombine.low %v1544_v26, %v1552_v61 }
 0x363   :  { %5053 = vmatpush2.bf16.msra.mxu0 %v10521_v35  ;;  %v1808_v35 = vld [vmem:[#allocation12 + $0xb70] sm:$0xff] }
 0x364   :  { %5096 = vmatpush2.bf16.msra.mxu1 %v10777_v36  ;;  %5054 = vmatprep.subr.bf16.mxu0 %v10506_v37  ;;  %v13264_v36 = vpop.f32.mrf.mxu0  ;;  %v10715_v37 = vcombine.low %v1816_v12, %v1824_v13  ;;  %v10699_v8 = vcombine.low %v1800_v34, %v1808_v35  ;;  %v1768_v12 = vld [vmem:[#allocation12 + $0xa30] sm:$0xff] }
 0x365   :  { %5097 = vmatprep.subr.bf16.mxu1 %v10762_v39  ;;  %v13266_v39 = vpop.f32.mrf.mxu1  ;;  %v1776_v13 = vld [vmem:[#allocation12 + $0xa70] sm:$0xff] }
 0x367   :  { %5055 = vmatpush2.bf16.msra.mxu0 %v10505_v49  ;;  %v10700_v49 = vcombine.high %v1800_v34, %v1808_v35  ;;  %v10668_v35 = vcombine.high %v1768_v12, %v1776_v13 }
 0x368   :  { %5098 = vmatpush2.bf16.msra.mxu1 %v10761_v51  ;;  %5056 = vmatprep.subr.bf16.mxu0 %v10490_v63  ;;  %v1784_v51 = vld [vmem:[#allocation12 + $0xab0] sm:$0xff] }
 0x369   :  { %5099 = vmatprep.subr.bf16.mxu1 %v10746_v1  ;;  %v10683_v26 = vcombine.low %v1784_v51, %v1792_v47 }
 0x36b   :  { %5057 = vmatpush2.bf16.msra.mxu0 %v10489_v6 }
 0x36c   :  { %5100 = vmatpush2.bf16.msra.mxu1 %v10745_v10  ;;  %5058 = vmatprep.subr.bf16.mxu0 %v10474_v7  ;;  %v10684_v7 = vcombine.high %v1784_v51, %v1792_v47 }
 0x36d   :  { %5101 = vmatprep.subr.bf16.mxu1 %v10730_v22  ;;  %v1512_v22 = vld [vmem:[#allocation12 + $0x230] sm:$0xff] }
 0x36e   :  { %v10412_v61 = vcombine.high %v1512_v22, %v1520_v46 }
 0x36f   :  { %5059 = vmatpush2.bf16.msra.mxu0 %v10473_v56 }
 0x370   :  { %5102 = vmatpush2.bf16.msra.mxu1 %v10729_v20  ;;  %5114 = vmatprep.subr.bf16.mxu0 %v10460_v21  ;;  %v10427_v21 = vcombine.low %v1528_v54, %v1536_v38  ;;  %v10411_v54 = vcombine.low %v1512_v22, %v1520_v46  ;;  %v10667_v38 = vcombine.low %v1768_v12, %v1776_v13 }
 0x371   :  { %5157 = vmatprep.subr.bf16.mxu1 %v10716_v62 }
 0x372   :  { %v4804_v48 = vpop.f32.mrf.mxu0  ;;  %5061 = vmatmul.mubr.bf16.vlgmr.msra.gmra.mxu0 %v13158_v32 }
 0x373   :  { %v4805_v63 = vadd.f32 %v4804_v48, %v1977_v29  ;;  %v4847_v1 = vpop.f32.mrf.mxu1  ;;  %5104 = vmatmul.mubr.bf16.vlgmr.msra.gmra.mxu1 %v13160_v33  ;;  %5115 = vmatpush1.bf16.msra.mxu0 %v10459_v31  ;;  %v1752_v48 = vld [vmem:[#allocation12 + $0x9b0] sm:$0xff] }
 0x374   :  { %5146 = vmatprep.mubr.bf16.mxu0 %v13152_v0  ;;  %5158 = vmatpush1.bf16.msra.mxu1 %v10715_v37  ;;  %v13271_v60 = vpop.f32.mrf.mxu0  ;;  %v1496_v37 = vld [vmem:[#allocation12 + $0x1b0] sm:$0xff] }
 0x375   :  { %v13273_v6 = vadd.f32 %v4847_v1, %v4805_v63  ;;  %5189 = vmatprep.mubr.bf16.mxu1 %v13154_v30  ;;  %v13276_v10 = vpop.f32.mrf.mxu1  ;;  %5116 = vmatprep.subr.bf16.mxu0 %v10444_v40  ;;  %v1504_v40 = vld [vmem:[#allocation12 + $0x1f0] sm:$0xff] }
 0x376   :  { %v4808_v53 = vpop.f32.mrf.mxu0  ;;  %5159 = vmatprep.subr.bf16.mxu1 %v10700_v49  ;;  %v1760_v49 = vld [vmem:[#allocation12 + $0x9f0] sm:$0xff]  ;;  %v10396_v51 = vcombine.high %v1496_v37, %v1504_v40 }
 0x377   :  { %v5322_v56 = vmul.f32 0.044715, %v13273_v6  ;;  %v4809_v20 = vadd.f32 %v4808_v53, %v1977_v29  ;;  %5117 = vmatpush1.bf16.msra.mxu0 %v10443_v2  ;;  %v4851_v62 = vpop.f32.mrf.mxu1  ;;  %v10652_v2 = vcombine.high %v1752_v48, %v1760_v49  ;;  %v1744_v53 = vld [vmem:[#allocation12 + $0x970] sm:$0xff]  ;;  %v10651_v22 = vcombine.low %v1752_v48, %v1760_v49 }
 0x378   :  { %5160 = vmatpush1.bf16.msra.mxu1 %v10699_v8  ;;  %5118 = vmatprep.subr.bf16.mxu0 %v10428_v9  ;;  %v1480_v8 = vld [vmem:[#allocation12 + $0x130] sm:$0xff] }
 0x379   :  { %v5354_v31 = vmul.f32 %v5322_v56, %v13273_v6  ;;  %v13280_v34 = vadd.f32 %v4851_v62, %v4809_v20  ;;  %5161 = vmatprep.subr.bf16.mxu1 %v10684_v7  ;;  %v1488_v9 = vld [vmem:[#allocation12 + $0x170] sm:$0xff] }
 0x37a   :  { %v1736_v7 = vld [vmem:[#allocation12 + $0x930] sm:$0xff]  ;;  %v10380_v46 = vcombine.high %v1480_v8, %v1488_v9 }
 0x37b   :  { %v5386_v63 = vmul.f32 %v5354_v31, %v13273_v6  ;;  %v5338_v29 = vmul.f32 0.044715, %v13280_v34  ;;  %5119 = vmatpush1.bf16.msra.mxu0 %v10427_v21  ;;  %v10395_v21 = vcombine.low %v1496_v37, %v1504_v40  ;;  %v10636_v13 = vcombine.high %v1736_v7, %v1744_v53  ;;  %v1464_v62 = vld [vmem:[#allocation12 + $0xb0] sm:$0xff] }
 0x37c   :  { %5162 = vmatpush1.bf16.msra.mxu1 %v10683_v26  ;;  %5120 = vmatprep.subr.bf16.mxu0 %v10412_v61  ;;  %v1472_v26 = vld [vmem:[#allocation12 + $0xf0] sm:$0xff] }
 0x37d   :  { %v5418_v47 = vadd.f32 %v5386_v63, %v13273_v6  ;;  %v5370_v1 = vmul.f32 %v5338_v29, %v13280_v34  ;;  %5163 = vmatprep.subr.bf16.mxu1 %v10668_v35  ;;  %v1720_v61 = vld [vmem:[#allocation12 + $0x8b0] sm:$0xff]  ;;  %v10379_v63 = vcombine.low %v1480_v8, %v1488_v9  ;;  %v10635_v29 = vcombine.low %v1736_v7, %v1744_v53 }
 0x37e   :  { %v1728_v31 = vld [vmem:[#allocation12 + $0x8f0] sm:$0xff]  ;;  %v10364_v37 = vcombine.high %v1464_v62, %v1472_v26 }
 0x37f   :  { %v5450_v56 = vmul.f32 0.7978846, %v5418_v47  ;;  %v5402_v20 = vmul.f32 %v5370_v1, %v13280_v34  ;;  %5121 = vmatpush1.bf16.msra.mxu0 %v10411_v54  ;;  %v10620_v40 = vcombine.high %v1720_v61, %v1728_v31  ;;  %v1448_v48 = vld [vmem:[#allocation12 + $0x30] sm:$0xff]  ;;  %v10619_v47 = vcombine.low %v1720_v61, %v1728_v31 }
 0x380   :  { %5164 = vmatpush1.bf16.msra.mxu1 %v10667_v38  ;;  %5122 = vmatprep.subr.bf16.mxu0 %v10396_v51  ;;  %v1456_v49 = vld [vmem:[#allocation12 + $0x70] sm:$0xff]  ;;  %v10363_v51 = vcombine.low %v1464_v62, %v1472_v26 }
 0x381   :  { %12675 = vtanh.f32 %v5450_v56  ;;  %v5434_v12 = vadd.f32 %v5402_v20, %v13280_v34  ;;  %5165 = vmatprep.subr.bf16.mxu1 %v10652_v2  ;;  %v1704_v54 = vld [vmem:[#allocation12 + $0x830] sm:$0xff]  ;;  %v10348_v1 = vcombine.high %v1448_v48, %v1456_v49  ;;  %v10347_v53 = vcombine.low %v1448_v48, %v1456_v49 }
 0x382   :  { %v1712_v38 = vld [vmem:[#allocation12 + $0x870] sm:$0xff] }
 0x383   :  { %v5466_v35 = vmul.f32 0.7978846, %v5434_v12  ;;  %5123 = vmatpush1.bf16.msra.mxu0 %v10395_v21  ;;  %v10604_v2 = vcombine.high %v1704_v54, %v1712_v38  ;;  %v1688_v8 = vld [vmem:[#allocation12 + $0x7b0] sm:$0xff]  ;;  %v10603_v20 = vcombine.low %v1704_v54, %v1712_v38 }
 0x384   :  { %5166 = vmatpush1.bf16.msra.mxu1 %v10651_v22  ;;  %5124 = vmatprep.subr.bf16.mxu0 %v10380_v46  ;;  %v1696_v9 = vld [vmem:[#allocation12 + $0x7f0] sm:$0xff] }
 0x385   :  { %12677 = vtanh.f32 %v5466_v35  ;;  %5167 = vmatprep.subr.bf16.mxu1 %v10636_v13  ;;  %v1944_v56 = vld [vmem:[#allocation12 + $0xfb0] sm:$0xff]  ;;  %v10588_v21 = vcombine.high %v1688_v8, %v1696_v9  ;;  %v10587_v61 = vcombine.low %v1688_v8, %v1696_v9 }
 0x386   :  { %v1952_v7 = vld [vmem:[#allocation12 + $0xff0] sm:$0xff] }
 0x387   :  { %5125 = vmatpush1.bf16.msra.mxu0 %v10379_v63  ;;  %v10844_v22 = vcombine.high %v1944_v56, %v1952_v7  ;;  %v1672_v46 = vld [vmem:[#allocation12 + $0x730] sm:$0xff]  ;;  %v10843_v31 = vcombine.low %v1944_v56, %v1952_v7 }
 0x388   :  { %5168 = vmatpush1.bf16.msra.mxu1 %v10635_v29  ;;  %5126 = vmatprep.subr.bf16.mxu0 %v10364_v37  ;;  %v1680_v12 = vld [vmem:[#allocation12 + $0x770] sm:$0xff] }
 0x389   :  { %5169 = vmatprep.subr.bf16.mxu1 %v10620_v40  ;;  %v1928_v62 = vld [vmem:[#allocation12 + $0xf30] sm:$0xff]  ;;  %v10572_v35 = vcombine.high %v1672_v46, %v1680_v12  ;;  %v10571_v38 = vcombine.low %v1672_v46, %v1680_v12 }
 0x38a   :  { %v1936_v26 = vld [vmem:[#allocation12 + $0xf70] sm:$0xff] }
 0x38b   :  { %5127 = vmatpush1.bf16.msra.mxu0 %v10363_v51  ;;  %v10828_v63 = vcombine.high %v1928_v62, %v1936_v26  ;;  %v1656_v29 = vld [vmem:[#allocation12 + $0x6b0] sm:$0xff]  ;;  %v5290_v51 = vmul.f32 0.5, %v13273_v6 }
 0x38c   :  { %5170 = vmatpush1.bf16.msra.mxu1 %v10619_v47  ;;  %5128 = vmatprep.subr.bf16.mxu0 %v10348_v1  ;;  %v1664_v37 = vld [vmem:[#allocation12 + $0x6f0] sm:$0xff]  ;;  %v5306_v47 = vmul.f32 0.5, %v13280_v34 }
 0x38d   :  { %5171 = vmatprep.subr.bf16.mxu1 %v10604_v2  ;;  %v1912_v49 = vld [vmem:[#allocation12 + $0xeb0] sm:$0xff]  ;;  %v10827_v2 = vcombine.low %v1928_v62, %v1936_v26  ;;  %v10556_v8 = vcombine.high %v1656_v29, %v1664_v37 }
 0x38e   :  { %v12676_v13 = vpop.eup %12675  ;;  %v1920_v54 = vld [vmem:[#allocation12 + $0xef0] sm:$0xff] }
 0x38f   :  { %5129 = vmatpush1.bf16.msra.mxu0 %v10347_v53  ;;  %v5514_v40 = vadd.f32 1.0, %v12676_v13  ;;  %v10812_v9 = vcombine.high %v1912_v49, %v1920_v54  ;;  %v1640_v56 = vld [vmem:[#allocation12 + $0x630] sm:$0xff]  ;;  %v10555_v13 = vcombine.low %v1656_v29, %v1664_v37  ;;  %v10811_v6 = vcombine.low %v1912_v49, %v1920_v54 }
 0x390   :  { %5172 = vmatpush1.bf16.msra.mxu1 %v10603_v20  ;;  %5130 = vmatprep.subr.bf16.mxu0 %v10588_v21  ;;  %v1648_v7 = vld [vmem:[#allocation12 + $0x670] sm:$0xff] }
 0x391   :  { %5173 = vmatprep.subr.bf16.mxu1 %v10844_v22  ;;  %v5546_v53 = vmul.f32 %v5514_v40, %v5290_v51  ;;  %v1896_v21 = vld [vmem:[#allocation12 + $0xe30] sm:$0xff]  ;;  %v10540_v34 = vcombine.high %v1640_v56, %v1648_v7 }
 0x392   :  { %v12678_v48 = vpop.eup %12677  ;;  %v1904_v22 = vld [vmem:[#allocation12 + $0xe70] sm:$0xff] }
 0x393   :  { %5131 = vmatpush2.bf16.msra.mxu0 %v10587_v61  ;;  %v5530_v1 = vadd.f32 1.0, %v12678_v48  ;;  %v10796_v12 = vcombine.high %v1896_v21, %v1904_v22  ;;  %v1624_v62 = vld [vmem:[#allocation12 + $0x5b0] sm:$0xff] }
 0x394   :  { %5174 = vmatpush2.bf16.msra.mxu1 %v10843_v31  ;;  %5132 = vmatprep.subr.bf16.mxu0 %v10572_v35  ;;  %v1632_v26 = vld [vmem:[#allocation12 + $0x5f0] sm:$0xff]  ;;  %v10539_v35 = vcombine.low %v1640_v56, %v1648_v7 }
 0x395   :  { %5175 = vmatprep.subr.bf16.mxu1 %v10828_v63  ;;  %v5562_v20 = vmul.f32 %v5530_v1, %v5306_v47  ;;  %v1880_v61 = vld [vmem:[#allocation12 + $0xdb0] sm:$0xff]  ;;  %v10795_v63 = vcombine.low %v1896_v21, %v1904_v22  ;;  %v10524_v40 = vcombine.high %v1624_v62, %v1632_v26  ;;  %v10523_v49 = vcombine.low %v1624_v62, %v1632_v26 }
 0x396   :  { %v1888_v31 = vld [vmem:[#allocation12 + $0xdf0] sm:$0xff] }
 0x397   :  { %5133 = vmatpush2.bf16.msra.mxu0 %v10571_v38  ;;  %v13290_v46 = vpack.c.bf16 %v5562_v20, %v5546_v53  ;;  %v10780_v29 = vcombine.high %v1880_v61, %v1888_v31  ;;  %v1608_v37 = vld [vmem:[#allocation12 + $0x530] sm:$0xff]  ;;  %v10779_v54 = vcombine.low %v1880_v61, %v1888_v31  ;;  %v1561_v31 = vld [vmem:[#allocation12 + $0x3b8] sm:$0xff] }
 0x398   :  { %5176 = vmatpush2.bf16.msra.mxu1 %v10827_v2  ;;  %5134 = vmatprep.subr.bf16.mxu0 %v10556_v8  ;;  %v1616_v48 = vld [vmem:[#allocation12 + $0x570] sm:$0xff] }
 0x399   :  { %5177 = vmatprep.subr.bf16.mxu1 %v10812_v9  ;;  %v1864_v38 = vld [vmem:[#allocation12 + $0xd30] sm:$0xff]  ;;  %v10508_v47 = vcombine.high %v1608_v37, %v1616_v48  ;;  %v10507_v7 = vcombine.low %v1608_v37, %v1616_v48  ;;  %v13776_v37 = vsub.s32 6, %v13112_v50 }
 0x39a   :  { %v1872_v51 = vld [vmem:[#allocation12 + $0xd70] sm:$0xff] }
 0x39b   :  { %5135 = vmatpush2.bf16.msra.mxu0 %v10555_v13  ;;  %v10764_v1 = vcombine.high %v1864_v38, %v1872_v51  ;;  %v1592_v2 = vld [vmem:[#allocation12 + $0x4b0] sm:$0xff]  ;;  %v10763_v53 = vcombine.low %v1864_v38, %v1872_v51 }
 0x39c   :  { %5178 = vmatpush2.bf16.msra.mxu1 %v10811_v6  ;;  %5136 = vmatprep.subr.bf16.mxu0 %v10540_v34  ;;  %v1600_v8 = vld [vmem:[#allocation12 + $0x4f0] sm:$0xff] }
 0x39d   :  { %5179 = vmatprep.subr.bf16.mxu1 %v10796_v12  ;;  %v1848_v9 = vld [vmem:[#allocation12 + $0xcb0] sm:$0xff]  ;;  %v10492_v20 = vcombine.high %v1592_v2, %v1600_v8  ;;  %v10491_v12 = vcombine.low %v1592_v2, %v1600_v8  ;;  %v1801_v8 = vld [vmem:[#allocation12 + $0xb38] sm:$0xff] }
 0x39e   :  { %v1856_v56 = vld [vmem:[#allocation12 + $0xcf0] sm:$0xff] }
 0x39f   :  { %5137 = vmatpush2.bf16.msra.mxu0 %v10539_v35  ;;  %v10748_v21 = vcombine.high %v1848_v9, %v1856_v56  ;;  %v1576_v22 = vld [vmem:[#allocation12 + $0x430] sm:$0xff]  ;;  %v10747_v62 = vcombine.low %v1848_v9, %v1856_v56  ;;  %v1569_v35 = vld [vmem:[#allocation12 + $0x3f8] sm:$0xff]  ;;  %v13298_v56 = vpop.f32.mrf.mxu0 }
 0x3a0   :  { %5180 = vmatpush2.bf16.msra.mxu1 %v10795_v63  ;;  %5138 = vmatprep.subr.bf16.mxu0 %v10524_v40  ;;  %v1584_v13 = vld [vmem:[#allocation12 + $0x470] sm:$0xff]  ;;  %v1817_v63 = vld [vmem:[#allocation12 + $0xbb8] sm:$0xff]  ;;  %v10462_v38 = vcombine.high %v1561_v31, %v1569_v35  ;;  %v10461_v2 = vcombine.low %v1561_v31, %v1569_v35 }
 0x3a1   :  { %5181 = vmatprep.subr.bf16.mxu1 %v10780_v29  ;;  %v1832_v6 = vld [vmem:[#allocation12 + $0xc30] sm:$0xff]  ;;  %v10476_v26 = vcombine.high %v1576_v22, %v1584_v13  ;;  %v1825_v40 = vld [vmem:[#allocation12 + $0xbf8] sm:$0xff]  ;;  %v10475_v29 = vcombine.low %v1576_v22, %v1584_v13 }
 0x3a2   :  { %v1840_v34 = vld [vmem:[#allocation12 + $0xc70] sm:$0xff]  ;;  %v10718_v51 = vcombine.high %v1817_v63, %v1825_v40  ;;  %v1809_v9 = vld [vmem:[#allocation12 + $0xb78] sm:$0xff] }
 0x3a3   :  { %5139 = vmatpush2.bf16.msra.mxu0 %v10523_v49  ;;  %v10732_v61 = vcombine.high %v1832_v6, %v1840_v34  ;;  %v10731_v48 = vcombine.low %v1832_v6, %v1840_v34  ;;  %v1545_v49 = vld [vmem:[#allocation12 + $0x338] sm:$0xff]  ;;  %v10702_v6 = vcombine.high %v1801_v8, %v1809_v9  ;;  %v10701_v35 = vcombine.low %v1801_v8, %v1809_v9 }
 0x3a4   :  { %5182 = vmatpush2.bf16.msra.mxu1 %v10779_v54  ;;  %5140 = vmatprep.subr.bf16.mxu0 %v10508_v47  ;;  %v1553_v54 = vld [vmem:[#allocation12 + $0x378] sm:$0xff]  ;;  %v13293_v47 = vld [vmem:[#allocation14] sm:$0xff] }
 0x3a5   :  { %5183 = vmatprep.subr.bf16.mxu1 %v10764_v1  ;;  %v1985_v1 = vrot.slane %v13293_v47, %v13776_v37  ;;  %v1537_v22 = vld [vmem:[#allocation12 + $0x2f8] sm:$0xff] }
 0x3a6   :  { %v1785_v34 = vld [vmem:[#allocation12 + $0xab8] sm:$0xff] }
 0x3a7   :  { %5141 = vmatpush2.bf16.msra.mxu0 %v10507_v7  ;;  %v10717_v7 = vcombine.low %v1817_v63, %v1825_v40  ;;  %v1497_v37 = vld [vmem:[#allocation12 + $0x1b8] sm:$0xff] }
 0x3a8   :  { %5184 = vmatpush2.bf16.msra.mxu1 %v10763_v53  ;;  %5142 = vmatprep.subr.bf16.mxu0 %v10492_v20  ;;  %v13300_v53 = vpop.f32.mrf.mxu1  ;;  %v10446_v20 = vcombine.high %v1545_v49, %v1553_v54 }
 0x3a9   :  { %5185 = vmatprep.subr.bf16.mxu1 %v10748_v21  ;;  %v1529_v21 = vld [vmem:[#allocation12 + $0x2b8] sm:$0xff] }
 0x3aa   :  { %v10430_v63 = vcombine.high %v1529_v21, %v1537_v22  ;;  %v10429_v8 = vcombine.low %v1529_v21, %v1537_v22 }
 0x3ab   :  { %5143 = vmatpush2.bf16.msra.mxu0 %v10491_v12  ;;  %v1793_v12 = vld [vmem:[#allocation12 + $0xaf8] sm:$0xff] }
 0x3ac   :  { %5186 = vmatpush2.bf16.msra.mxu1 %v10747_v62  ;;  %5144 = vmatprep.subr.bf16.mxu0 %v10476_v26 }
 0x3ad   :  { %5187 = vmatprep.subr.bf16.mxu1 %v10732_v61  ;;  %v10445_v61 = vcombine.low %v1545_v49, %v1553_v54  ;;  %v1769_v49 = vld [vmem:[#allocation12 + $0xa38] sm:$0xff] }
 0x3ae   :  { %v1777_v54 = vld [vmem:[#allocation12 + $0xa78] sm:$0xff] }
 0x3af   :  { %5145 = vmatpush2.bf16.msra.mxu0 %v10475_v29 }
 0x3b0   :  { %5188 = vmatpush2.bf16.msra.mxu1 %v10731_v48  ;;  %5200 = vmatprep.subr.bf16.mxu0 %v10462_v38  ;;  %v10686_v48 = vcombine.high %v1785_v34, %v1793_v12  ;;  %v1513_v38 = vld [vmem:[#allocation12 + $0x238] sm:$0xff] }
 0x3b1   :  { %5243 = vmatprep.subr.bf16.mxu1 %v10718_v51  ;;  %v1521_v51 = vld [vmem:[#allocation12 + $0x278] sm:$0xff] }
 0x3b2   :  { %v4890_v13 = vpop.f32.mrf.mxu0  ;;  %5147 = vmatmul.mubr.bf16.vlgmr.msra.gmra.mxu0 %v13158_v32 }
 0x3b3   :  { %v4891_v62 = vadd.f32 %v4890_v13, %v1985_v1  ;;  %v4933_v26 = vpop.f32.mrf.mxu1  ;;  %5190 = vmatmul.mubr.bf16.vlgmr.msra.gmra.mxu1 %v13160_v33  ;;  %5201 = vmatpush1.bf16.msra.mxu0 %v10461_v2 }
 0x3b4   :  { %5232 = vmatprep.mubr.bf16.mxu0 %v13152_v0  ;;  %5244 = vmatpush1.bf16.msra.mxu1 %v10717_v7  ;;  %v13305_v31 = vpop.f32.mrf.mxu0  ;;  %v10685_v7 = vcombine.low %v1785_v34, %v1793_v12  ;;  %v10413_v34 = vcombine.low %v1513_v38, %v1521_v51  ;;  %v1973_v12 = vrot.slane %v13293_v47, %v13118_v57 }
 0x3b5   :  { %v13307_v40 = vadd.f32 %v4933_v26, %v4891_v62  ;;  %5275 = vmatprep.mubr.bf16.mxu1 %v13154_v30  ;;  %v13310_v29 = vpop.f32.mrf.mxu1  ;;  %5202 = vmatprep.subr.bf16.mxu0 %v10446_v20  ;;  %v10414_v30 = vcombine.high %v1513_v38, %v1521_v51  ;;  %v10670_v26 = vcombine.high %v1769_v49, %v1777_v54  ;;  %v1737_v38 = vld [vmem:[#allocation12 + $0x938] sm:$0xff] }
 0x3b6   :  { %v4894_v13 = vpop.f32.mrf.mxu0  ;;  %5245 = vmatprep.subr.bf16.mxu1 %v10702_v6  ;;  %v1505_v6 = vld [vmem:[#allocation12 + $0x1f8] sm:$0xff] }
 0x3b7   :  { %v5324_v0 = vmul.f32 0.044715, %v13307_v40  ;;  %v4895_v2 = vadd.f32 %v4894_v13, %v1985_v1  ;;  %5203 = vmatpush1.bf16.msra.mxu0 %v10445_v61  ;;  %v4937_v9 = vpop.f32.mrf.mxu1  ;;  %v1965_v1 = vrot.slane %v13293_v47, %v13115_v55  ;;  %v10669_v61 = vcombine.low %v1769_v49, %v1777_v54  ;;  %v1745_v51 = vld [vmem:[#allocation12 + $0x978] sm:$0xff] }
 0x3b8   :  { %5246 = vmatpush1.bf16.msra.mxu1 %v10701_v35  ;;  %5204 = vmatprep.subr.bf16.mxu0 %v10430_v63  ;;  %v10398_v35 = vcombine.high %v1497_v37, %v1505_v6  ;;  %v10654_v13 = vcombine.high %v1753_v15, %v1761_v45  ;;  %v10397_v49 = vcombine.low %v1497_v37, %v1505_v6  ;;  %v1729_v6 = vld [vmem:[#allocation12 + $0x8f8] sm:$0xff] }
 0x3b9   :  { %v5356_v62 = vmul.f32 %v5324_v0, %v13307_v40  ;;  %v13314_v20 = vadd.f32 %v4937_v9, %v4895_v2  ;;  %5247 = vmatprep.subr.bf16.mxu1 %v10686_v48  ;;  %v1481_v0 = vld [vmem:[#allocation12 + $0x138] sm:$0xff]  ;;  %v4639_v9 = vadd.f32 %v13232_v3, %v1965_v1  ;;  %v4635_v54 = vadd.f32 %v13209_v52, %v1965_v1 }
 0x3ba   :  { %v1489_v2 = vld [vmem:[#allocation12 + $0x178] sm:$0xff] }
 0x3bb   :  { %v5388_v21 = vmul.f32 %v5356_v62, %v13307_v40  ;;  %v5340_v22 = vmul.f32 0.044715, %v13314_v20  ;;  %5205 = vmatpush1.bf16.msra.mxu0 %v10429_v8  ;;  %v4725_v8 = vadd.f32 %v13264_v36, %v1973_v12  ;;  %v10638_v36 = vcombine.high %v1737_v38, %v1745_v51  ;;  %v1721_v52 = vld [vmem:[#allocation12 + $0x8b8] sm:$0xff] }
 0x3bc   :  { %5248 = vmatpush1.bf16.msra.mxu1 %v10685_v7  ;;  %5206 = vmatprep.subr.bf16.mxu0 %v10414_v30  ;;  %v10653_v30 = vcombine.low %v1753_v15, %v1761_v45  ;;  %v10381_v45 = vcombine.low %v1481_v0, %v1489_v2  ;;  %v10637_v15 = vcombine.low %v1737_v38, %v1745_v51  ;;  %v1689_v51 = vld [vmem:[#allocation12 + $0x7b8] sm:$0xff] }
 0x3bd   :  { %v5420_v63 = vadd.f32 %v5388_v21, %v13307_v40  ;;  %v5372_v48 = vmul.f32 %v5340_v22, %v13314_v20  ;;  %5249 = vmatprep.subr.bf16.mxu1 %v10670_v26  ;;  %v10382_v26 = vcombine.high %v1481_v0, %v1489_v2  ;;  %v4721_v21 = vadd.f32 %v13239_v16, %v1973_v12  ;;  %v1465_v22 = vld [vmem:[#allocation12 + $0xb8] sm:$0xff] }
 0x3be   :  { %v13334_v37 = vadd.f32 %v13266_v39, %v4725_v8  ;;  %v13337_v16 = vadd.f32 %v13214_v17, %v4635_v54  ;;  %v1449_v39 = vld [vmem:[#allocation12 + $0x38] sm:$0xff]  ;;  %v10365_v17 = vcombine.low %v1465_v22, %v1473_v44 }
 0x3bf   :  { %v5452_v62 = vmul.f32 0.7978846, %v5420_v63  ;;  %v5404_v7 = vmul.f32 %v5372_v48, %v13314_v20  ;;  %5207 = vmatpush1.bf16.msra.mxu0 %v10413_v34  ;;  %v13331_v63 = vadd.f32 %v13234_v5, %v4639_v9  ;;  %v10366_v34 = vcombine.high %v1465_v22, %v1473_v44  ;;  %v1713_v0 = vld [vmem:[#allocation12 + $0x878] sm:$0xff] }
 0x3c0   :  { %5250 = vmatpush1.bf16.msra.mxu1 %v10669_v61  ;;  %5208 = vmatprep.subr.bf16.mxu0 %v10398_v35  ;;  %v13340_v12 = vadd.f32 %v13244_v25, %v4721_v21  ;;  %v10622_v5 = vcombine.high %v1721_v52, %v1729_v6  ;;  %v1457_v61 = vld [vmem:[#allocation12 + $0x78] sm:$0xff]  ;;  %v5337_v48 = vmul.f32 0.044715, %v13334_v37  ;;  %v5319_v2 = vmul.f32 0.044715, %v13337_v16 }
 0x3c1   :  { %12679 = vtanh.f32 %v5452_v62  ;;  %v5436_v3 = vadd.f32 %v5404_v7, %v13314_v20  ;;  %5251 = vmatprep.subr.bf16.mxu1 %v10654_v13  ;;  %v5335_v35 = vmul.f32 0.044715, %v13331_v63  ;;  %v1705_v13 = vld [vmem:[#allocation12 + $0x838] sm:$0xff]  ;;  %v10621_v9 = vcombine.low %v1721_v52, %v1729_v6 }
 0x3c2   :  { %v10350_v25 = vcombine.high %v1449_v39, %v1457_v61  ;;  %v5321_v8 = vmul.f32 0.044715, %v13340_v12  ;;  %v10606_v38 = vcombine.high %v1705_v13, %v1713_v0  ;;  %v1697_v62 = vld [vmem:[#allocation12 + $0x7f8] sm:$0xff]  ;;  %v10349_v44 = vcombine.low %v1449_v39, %v1457_v61 }
 0x3c3   :  { %v5468_v1 = vmul.f32 0.7978846, %v5436_v3  ;;  %5209 = vmatpush1.bf16.msra.mxu0 %v10397_v49  ;;  %v5367_v7 = vmul.f32 %v5335_v35, %v13331_v63  ;;  %v5369_v49 = vmul.f32 %v5337_v48, %v13334_v37  ;;  %v1945_v54 = vld [vmem:[#allocation12 + $0xfb8] sm:$0xff]  ;;  %v10605_v21 = vcombine.low %v1705_v13, %v1713_v0 }
 0x3c4   :  { %5252 = vmatpush1.bf16.msra.mxu1 %v10653_v30  ;;  %5210 = vmatprep.subr.bf16.mxu0 %v10382_v26  ;;  %v1953_v30 = vld [vmem:[#allocation12 + $0xff8] sm:$0xff]  ;;  %v5351_v26 = vmul.f32 %v5319_v2, %v13337_v16  ;;  %v10590_v3 = vcombine.high %v1689_v51, %v1697_v62  ;;  %v10589_v39 = vcombine.low %v1689_v51, %v1697_v62 }
 0x3c5   :  { %12681 = vtanh.f32 %v5468_v1  ;;  %5253 = vmatprep.subr.bf16.mxu1 %v10638_v36  ;;  %v5353_v36 = vmul.f32 %v5321_v8, %v13340_v12  ;;  %v10846_v22 = vcombine.high %v1945_v54, %v1953_v30  ;;  %v1673_v52 = vld [vmem:[#allocation12 + $0x738] sm:$0xff]  ;;  %v10845_v35 = vcombine.low %v1945_v54, %v1953_v30 }
 0x3c6   :  { %v1681_v6 = vld [vmem:[#allocation12 + $0x778] sm:$0xff]  ;;  %v5383_v61 = vmul.f32 %v5351_v26, %v13337_v16  ;;  %v5308_v54 = vmul.f32 0.5, %v13314_v20 }
 0x3c7   :  { %5211 = vmatpush1.bf16.msra.mxu0 %v10381_v45  ;;  %v5399_v45 = vmul.f32 %v5367_v7, %v13331_v63  ;;  %v10574_v48 = vcombine.high %v1673_v52, %v1681_v6  ;;  %v5385_v13 = vmul.f32 %v5353_v36, %v13340_v12  ;;  %v1665_v2 = vld [vmem:[#allocation12 + $0x6f8] sm:$0xff]  ;;  %v10573_v62 = vcombine.low %v1673_v52, %v1681_v6 }
 0x3c8   :  { %5254 = vmatpush1.bf16.msra.mxu1 %v10637_v15  ;;  %5212 = vmatprep.subr.bf16.mxu0 %v10366_v34  ;;  %v5401_v15 = vmul.f32 %v5369_v49, %v13334_v37  ;;  %v1929_v34 = vld [vmem:[#allocation12 + $0xf38] sm:$0xff]  ;;  %v5292_v49 = vmul.f32 0.5, %v13307_v40 }
 0x3c9   :  { %5255 = vmatprep.subr.bf16.mxu1 %v10622_v5  ;;  %v1937_v5 = vld [vmem:[#allocation12 + $0xf78] sm:$0xff]  ;;  %v5431_v7 = vadd.f32 %v5399_v45, %v13331_v63 }
 0x3ca   :  { %v10830_v0 = vcombine.high %v1929_v34, %v1937_v5  ;;  %v1913_v8 = vld [vmem:[#allocation12 + $0xeb8] sm:$0xff]  ;;  %v5433_v51 = vadd.f32 %v5401_v15, %v13334_v37 }
 0x3cb   :  { %5213 = vmatpush1.bf16.msra.mxu0 %v10365_v17  ;;  %v1657_v17 = vld [vmem:[#allocation12 + $0x6b8] sm:$0xff]  ;;  %v5463_v40 = vmul.f32 0.7978846, %v5431_v7 }
 0x3cc   :  { %5256 = vmatpush1.bf16.msra.mxu1 %v10621_v9  ;;  %5214 = vmatprep.subr.bf16.mxu0 %v10350_v25  ;;  %v10558_v26 = vcombine.high %v1657_v17, %v1665_v2  ;;  %v1641_v36 = vld [vmem:[#allocation12 + $0x638] sm:$0xff]  ;;  %v10557_v20 = vcombine.low %v1657_v17, %v1665_v2 }
 0x3cd   :  { %5257 = vmatprep.subr.bf16.mxu1 %v10606_v38  ;;  %v1921_v38 = vld [vmem:[#allocation12 + $0xef8] sm:$0xff]  ;;  %12683 = vtanh.f32 %v5463_v40 }
 0x3ce   :  { %v12680_v1 = vpop.eup %12679  ;;  %v1897_v52 = vld [vmem:[#allocation12 + $0xe38] sm:$0xff] }
 0x3cf   :  { %5215 = vmatpush1.bf16.msra.mxu0 %v10349_v44  ;;  %v5516_v9 = vadd.f32 1.0, %v12680_v1  ;;  %v10829_v44 = vcombine.low %v1929_v34, %v1937_v5  ;;  %v5417_v1 = vadd.f32 %v5385_v13, %v13340_v12  ;;  %v1905_v6 = vld [vmem:[#allocation12 + $0xe78] sm:$0xff]  ;;  %v10813_v34 = vcombine.low %v1913_v8, %v1921_v38 }
 0x3d0   :  { %5258 = vmatpush1.bf16.msra.mxu1 %v10605_v21  ;;  %5216 = vmatprep.subr.bf16.mxu0 %v10590_v3  ;;  %v5415_v21 = vadd.f32 %v5383_v61, %v13337_v16  ;;  %v10814_v3 = vcombine.high %v1913_v8, %v1921_v38  ;;  %v10797_v17 = vcombine.low %v1897_v52, %v1905_v6  ;;  %v1609_v38 = vld [vmem:[#allocation12 + $0x538] sm:$0xff] }
 0x3d1   :  { %5259 = vmatprep.subr.bf16.mxu1 %v10846_v22  ;;  %v1649_v22 = vld [vmem:[#allocation12 + $0x678] sm:$0xff]  ;;  %v5548_v45 = vmul.f32 %v5516_v9, %v5292_v49  ;;  %v5449_v13 = vmul.f32 0.7978846, %v5417_v1 }
 0x3d2   :  { %v12682_v25 = vpop.eup %12681  ;;  %v10542_v5 = vcombine.high %v1641_v36, %v1649_v22  ;;  %v5447_v61 = vmul.f32 0.7978846, %v5415_v21  ;;  %v1881_v9 = vld [vmem:[#allocation12 + $0xdb8] sm:$0xff]  ;;  %v10541_v7 = vcombine.low %v1641_v36, %v1649_v22 }
 0x3d3   :  { %5217 = vmatpush2.bf16.msra.mxu0 %v10589_v39  ;;  %v5532_v30 = vadd.f32 1.0, %v12682_v25  ;;  %v5465_v39 = vmul.f32 0.7978846, %v5433_v51  ;;  %v1633_v25 = vld [vmem:[#allocation12 + $0x5f8] sm:$0xff] }
 0x3d4   :  { %5260 = vmatpush2.bf16.msra.mxu1 %v10845_v35  ;;  %5218 = vmatprep.subr.bf16.mxu0 %v10574_v48  ;;  %v10798_v48 = vcombine.high %v1897_v52, %v1905_v6  ;;  %v1889_v49 = vld [vmem:[#allocation12 + $0xdf8] sm:$0xff] }
 0x3d5   :  { %5261 = vmatprep.subr.bf16.mxu1 %v10830_v0  ;;  %v5564_v15 = vmul.f32 %v5532_v30, %v5308_v54  ;;  %v1625_v0 = vld [vmem:[#allocation12 + $0x5b8] sm:$0xff]  ;;  %12685 = vtanh.f32 %v5465_v39  ;;  %v10782_v8 = vcombine.high %v1881_v9, %v1889_v49 }
 0x3d6   :  { %v10526_v2 = vcombine.high %v1625_v0, %v1633_v25  ;;  %12687 = vtanh.f32 %v5447_v61  ;;  %v1617_v51 = vld [vmem:[#allocation12 + $0x578] sm:$0xff]  ;;  %v10525_v30 = vcombine.low %v1625_v0, %v1633_v25 }
 0x3d7   :  { %5219 = vmatpush2.bf16.msra.mxu0 %v10573_v62  ;;  %v13360_v35 = vpack.c.bf16 %v5564_v15, %v5548_v45  ;;  %12689 = vtanh.f32 %v5449_v13  ;;  %v1865_v62 = vld [vmem:[#allocation12 + $0xd38] sm:$0xff]  ;;  %v10509_v45 = vcombine.low %v1609_v38, %v1617_v51 }
 0x3d8   :  { %5262 = vmatpush2.bf16.msra.mxu1 %v10829_v44  ;;  %5220 = vmatprep.subr.bf16.mxu0 %v10558_v26  ;;  %v1873_v54 = vld [vmem:[#allocation12 + $0xd78] sm:$0xff]  ;;  %v10781_v44 = vcombine.low %v1881_v9, %v1889_v49  ;;  %v10510_v26 = vcombine.high %v1609_v38, %v1617_v51  ;;  %v13362_v38 = vld [vmem:[#allocation14 + $0x8] sm:$0xff]  ;;  %v11705_v51 = vld [vmem:[#allocation15 + $0xe4] ss:$16 sps:$4 sm:$0xff]  }
 0x3d9   :  { %5263 = vmatprep.subr.bf16.mxu1 %v10814_v3  ;;  %v10766_v21 = vcombine.high %v1865_v62, %v1873_v54  ;;  %v1593_v3 = vld [vmem:[#allocation12 + $0x4b8] sm:$0xff]  ;;  %v10765_v15 = vcombine.low %v1865_v62, %v1873_v54  ;;  %v5303_v62 = vmul.f32 0.5, %v13331_v63  ;;  %v11706_v63 = vld [vmem:[#allocation15 + $0x2e0] ss:$16 sps:$4 sm:$0xff]  }
 0x3da   :  { %v1601_v36 = vld [vmem:[#allocation12 + $0x4f8] sm:$0xff] }
 0x3db   :  { %5221 = vmatpush2.bf16.msra.mxu0 %v10557_v20  ;;  %v1849_v22 = vld [vmem:[#allocation12 + $0xcb8] sm:$0xff]  ;;  %v10494_v52 = vcombine.high %v1593_v3, %v1601_v36  ;;  %v10493_v61 = vcombine.low %v1593_v3, %v1601_v36  ;;  %v1993_v36 = vrot.slane %v13362_v38, %v13121_v58 }
 0x3dc   :  { %5264 = vmatpush2.bf16.msra.mxu1 %v10813_v34  ;;  %5222 = vmatprep.subr.bf16.mxu0 %v10542_v5  ;;  %v1857_v1 = vld [vmem:[#allocation12 + $0xcf8] sm:$0xff]  ;;  %v12684_v5 = vpop.eup %12683 }
 0x3dd   :  { %5265 = vmatprep.subr.bf16.mxu1 %v10798_v48  ;;  %v10750_v6 = vcombine.high %v1849_v22, %v1857_v1  ;;  %v1577_v40 = vld [vmem:[#allocation12 + $0x438] sm:$0xff]  ;;  %v10749_v0 = vcombine.low %v1849_v22, %v1857_v1  ;;  %v11703_v22 = vld [vmem:[#allocation15 + $0xe0] ss:$16 sps:$4 sm:$0xff]   ;;  %v5289_v1 = vmul.f32 0.5, %v13340_v12 }
 0x3de   :  { %v1585_v20 = vld [vmem:[#allocation12 + $0x478] sm:$0xff] }
 0x3df   :  { %5223 = vmatpush2.bf16.msra.mxu0 %v10541_v7  ;;  %v1833_v39 = vld [vmem:[#allocation12 + $0xc38] sm:$0xff]  ;;  %v10478_v25 = vcombine.high %v1577_v40, %v1585_v20  ;;  %v5527_v7 = vadd.f32 1.0, %v12684_v5 }
 0x3e0   :  { %5266 = vmatpush2.bf16.msra.mxu1 %v10797_v17  ;;  %5224 = vmatprep.subr.bf16.mxu0 %v10526_v2  ;;  %v1841_v34 = vld [vmem:[#allocation12 + $0xc78] sm:$0xff]  ;;  %v10477_v17 = vcombine.low %v1577_v40, %v1585_v20  ;;  %v11711_v40 = vld [vmem:[#allocation15 + $0xc4] ss:$16 sps:$4 sm:$0xff]  }
 0x3e1   :  { %5267 = vmatprep.subr.bf16.mxu1 %v10782_v8  ;;  %v10734_v9 = vcombine.high %v1833_v39, %v1841_v34  ;;  %v10733_v8 = vcombine.low %v1833_v39, %v1841_v34  ;;  %v5559_v3 = vmul.f32 %v5527_v7, %v5303_v62  ;;  %v11714_v39 = vld [vmem:[#allocation15 + $0x2c4] ss:$16 sps:$4 sm:$0xff]  }
 0x3e2   :  { %v12686_v48 = vpop.eup %12685  ;;  %v11723_v62 = vld [vmem:[#allocation15 + $0x84] ss:$16 sps:$4 sm:$0xff]  }
 0x3e3   :  { %5225 = vmatpush2.bf16.msra.mxu0 %v10525_v30  ;;  %v12688_v13 = vpop.eup %12687  ;;  %v5529_v2 = vadd.f32 1.0, %v12686_v48  ;;  %v11708_v30 = vld [vmem:[#allocation15 + $0x2e4] ss:$16 sps:$4 sm:$0xff]  }
 0x3e4   :  { %5268 = vmatpush2.bf16.msra.mxu1 %v10781_v44  ;;  %5226 = vmatprep.subr.bf16.mxu0 %v10510_v26  ;;  %v12690_v49 = vpop.eup %12689  ;;  %v5511_v54 = vadd.f32 1.0, %v12688_v13  ;;  %v5305_v44 = vmul.f32 0.5, %v13334_v37 }
 0x3e5   :  { %5269 = vmatprep.subr.bf16.mxu1 %v10766_v21  ;;  %v5513_v26 = vadd.f32 1.0, %v12690_v49  ;;  %v5287_v21 = vmul.f32 0.5, %v13337_v16 }
 0x3e7   :  { %5227 = vmatpush2.bf16.msra.mxu0 %v10509_v45  ;;  %v5561_v45 = vmul.f32 %v5529_v2, %v5305_v44  ;;  %v5545_v37 = vmul.f32 %v5513_v26, %v5289_v1  ;;  %v1980_v2 = vsub.s32 5, %v13112_v50  ;;  %v11726_v26 = vld [vmem:[#allocation15 + $0x284] ss:$16 sps:$4 sm:$0xff]   ;;  %v11724_v1 = vld [vmem:[#allocation15 + $0x280] ss:$16 sps:$4 sm:$0xff]  }
 0x3e8   :  { %5270 = vmatpush2.bf16.msra.mxu1 %v10765_v15  ;;  %5228 = vmatprep.subr.bf16.mxu0 %v10494_v52  ;;  %v4896_v15 = vpop.f32.mrf.mxu0  ;;  %v5543_v52 = vmul.f32 %v5511_v54, %v5287_v21  ;;  %v1988_v54 = vsub.s32 7, %v13112_v50 }
 0x3e9   :  { %5271 = vmatprep.subr.bf16.mxu1 %v10750_v6  ;;  %v13370_v6 = vpop.f32.mrf.mxu1  ;;  %v13376_v12 = vpack.c.bf16 %v5561_v45, %v5545_v37  ;;  %v11729_v45 = vld [vmem:[#allocation15 + $0x64] ss:$16 sps:$4 sm:$0xff]  }
 0x3ea   :  { %v13373_v20 = vpack.c.bf16 %v5559_v3, %v5543_v52 }
 0x3eb   :  { %5229 = vmatpush2.bf16.msra.mxu0 %v10493_v61  ;;  %v11709_v61 = vld [vmem:[#allocation15 + $0xc0] ss:$16 sps:$4 sm:$0xff]  }
 0x3ec   :  { %5272 = vmatpush2.bf16.msra.mxu1 %v10749_v0  ;;  %5230 = vmatprep.subr.bf16.mxu0 %v10478_v25  ;;  %v11712_v0 = vld [vmem:[#allocation15 + $0x2c0] ss:$16 sps:$4 sm:$0xff]   ;;  %v11717_v25 = vld [vmem:[#allocation15 + $0xa4] ss:$16 sps:$4 sm:$0xff]  }
 0x3ed   :  { %5273 = vmatprep.subr.bf16.mxu1 %v10734_v9  ;;  %v11720_v9 = vld [vmem:[#allocation15 + $0x2a4] ss:$16 sps:$4 sm:$0xff]  }
 0x3ef   :  { %5231 = vmatpush2.bf16.msra.mxu0 %v10477_v17  ;;  %v11715_v17 = vld [vmem:[#allocation15 + $0xa0] ss:$16 sps:$4 sm:$0xff]  }
 0x3f0   :  { %5274 = vmatpush2.bf16.msra.mxu1 %v10733_v8  ;;  %8662 = vmatprep.subr.bf16.mxu0 %v11705_v51  ;;  %v11718_v51 = vld [vmem:[#allocation15 + $0x2a0] ss:$16 sps:$4 sm:$0xff]  }
 0x3f1   :  { %8705 = vmatprep.subr.bf16.mxu1 %v11708_v30 }
 0x3f2   :  { %v4976_v16 = vpop.f32.mrf.mxu0  ;;  %5233 = vmatmul.mubr.bf16.vlgmr.msra.gmra.mxu0 %v13158_v32 }
 0x3f3   :  { %v4977_v34 = vadd.f32 %v4976_v16, %v1993_v36  ;;  %v5019_v5 = vpop.f32.mrf.mxu1  ;;  %5276 = vmatmul.mubr.bf16.vlgmr.msra.gmra.mxu1 %v13160_v33  ;;  %8663 = vmatpush1.bf16.msra.mxu0 %v11703_v22  ;;  %v1981_v22 = vrot.slane %v13293_v47, %v1980_v2 }
 0x3f4   :  { %8694 = vmatprep.mubr.bf16.mxu0 %v13373_v20  ;;  %8706 = vmatpush1.bf16.msra.mxu1 %v11706_v63  ;;  %v13379_v48 = vpop.f32.mrf.mxu0  ;;  %v1989_v63 = vrot.slane %v13293_v47, %v1988_v54  ;;  %v11735_v47 = vld [vmem:[#allocation15 + $0x44] ss:$16 sps:$4 sm:$0xff]  }
 0x3f5   :  { %v13381_v13 = vadd.f32 %v5019_v5, %v4977_v34  ;;  %8737 = vmatprep.mubr.bf16.mxu1 %v13376_v12  ;;  %v13384_v32 = vpop.f32.mrf.mxu1  ;;  %8664 = vmatprep.subr.bf16.mxu0 %v11711_v40  ;;  %v11732_v40 = vld [vmem:[#allocation15 + $0x264] ss:$16 sps:$4 sm:$0xff]   ;;  %v4811_v16 = vadd.f32 %v13298_v56, %v1981_v22 }
 0x3f6   :  { %v4980_v33 = vpop.f32.mrf.mxu0  ;;  %8707 = vmatprep.subr.bf16.mxu1 %v11714_v39  ;;  %v4897_v39 = vadd.f32 %v4896_v15, %v1989_v63 }
 0x3f7   :  { %v5326_v49 = vmul.f32 0.044715, %v13381_v13  ;;  %v4981_v7 = vadd.f32 %v4980_v33, %v1993_v36  ;;  %8665 = vmatpush1.bf16.msra.mxu0 %v11709_v61  ;;  %v5023_v8 = vpop.f32.mrf.mxu1  ;;  %v11721_v36 = vld [vmem:[#allocation15 + $0x80] ss:$16 sps:$4 sm:$0xff]   ;;  %v13408_v56 = vadd.f32 %v13300_v53, %v4811_v16  ;;  %v11744_v53 = vld [vmem:[#allocation15 + $0x224] ss:$16 sps:$4 sm:$0xff]  }
 0x3f8   :  { %8708 = vmatpush1.bf16.msra.mxu1 %v11712_v0  ;;  %8666 = vmatprep.subr.bf16.mxu0 %v11717_v25  ;;  %v11727_v61 = vld [vmem:[#allocation15 + $0x60] ss:$16 sps:$4 sm:$0xff]   ;;  %v4807_v0 = vadd.f32 %v13271_v60, %v1981_v22  ;;  %v13411_v15 = vadd.f32 %v13370_v6, %v4897_v39 }
 0x3f9   :  { %v5358_v30 = vmul.f32 %v5326_v49, %v13381_v13  ;;  %v13390_v44 = vadd.f32 %v5023_v8, %v4981_v7  ;;  %8709 = vmatprep.subr.bf16.mxu1 %v11720_v9  ;;  %v11730_v25 = vld [vmem:[#allocation15 + $0x260] ss:$16 sps:$4 sm:$0xff]   ;;  %v4893_v9 = vadd.f32 %v13305_v31, %v1989_v63  ;;  %v11738_v49 = vld [vmem:[#allocation15 + $0x244] ss:$16 sps:$4 sm:$0xff]  }
 0x3fa   :  { %v11733_v60 = vld [vmem:[#allocation15 + $0x40] ss:$16 sps:$4 sm:$0xff]   ;;  %v11741_v8 = vld [vmem:[#allocation15 + $0x24] ss:$16 sps:$4 sm:$0xff]   ;;  %v5341_v6 = vmul.f32 0.044715, %v13411_v15 }
 0x3fb   :  { %v5390_v21 = vmul.f32 %v5358_v30, %v13381_v13  ;;  %v5342_v3 = vmul.f32 0.044715, %v13390_v44  ;;  %8667 = vmatpush1.bf16.msra.mxu0 %v11715_v17  ;;  %v13414_v17 = vadd.f32 %v13276_v10, %v4807_v0  ;;  %v11736_v31 = vld [vmem:[#allocation15 + $0x240] ss:$16 sps:$4 sm:$0xff]  }
 0x3fc   :  { %8710 = vmatpush1.bf16.msra.mxu1 %v11718_v51  ;;  %8668 = vmatprep.subr.bf16.mxu0 %v11723_v62  ;;  %v13417_v51 = vadd.f32 %v13310_v29, %v4893_v9  ;;  %v5339_v62 = vmul.f32 0.044715, %v13408_v56  ;;  %v11739_v30 = vld [vmem:[#allocation15 + $0x20] ss:$16 sps:$4 sm:$0xff]   ;;  %v11750_v29 = vld [vmem:[#allocation15 + $0x204] ss:$16 sps:$4 sm:$0xff]   ;;  %v5373_v22 = vmul.f32 %v5341_v6, %v13411_v15 }
 0x3fd   :  { %v5422_v52 = vadd.f32 %v5390_v21, %v13381_v13  ;;  %v5374_v37 = vmul.f32 %v5342_v3, %v13390_v44  ;;  %8711 = vmatprep.subr.bf16.mxu1 %v11726_v26  ;;  %v5323_v26 = vmul.f32 0.044715, %v13414_v17  ;;  %v11742_v10 = vld [vmem:[#allocation15 + $0x220] ss:$16 sps:$4 sm:$0xff]   ;;  %v11747_v21 = vld [vmem:[#allocation15 + $0x4] ss:$16 sps:$4 sm:$0xff]  }
 0x3fe   :  { %v5325_v3 = vmul.f32 0.044715, %v13417_v51  ;;  %v11748_v63 = vld [vmem:[#allocation15 + $0x200] ss:$16 sps:$4 sm:$0xff]   ;;  %v11762_v9 = vld [vmem:[#allocation15 + $0x3c4] ss:$16 sps:$4 sm:$0xff]  }
 0x3ff   :  { %v5454_v34 = vmul.f32 0.7978846, %v5422_v52  ;;  %v5406_v5 = vmul.f32 %v5374_v37, %v13390_v44  ;;  %8669 = vmatpush1.bf16.msra.mxu0 %v11721_v36  ;;  %v5371_v36 = vmul.f32 %v5339_v62, %v13408_v56  ;;  %v11753_v52 = vld [vmem:[#allocation15 + $0x1e4] ss:$16 sps:$4 sm:$0xff]   ;;  %v11754_v0 = vld [vmem:[#allocation15 + $0x3e0] ss:$16 sps:$4 sm:$0xff]  }
 0x400   :  { %8712 = vmatpush1.bf16.msra.mxu1 %v11724_v1  ;;  %8670 = vmatprep.subr.bf16.mxu0 %v11729_v45  ;;  %v11745_v1 = vld [vmem:[#allocation15] ss:$16 sps:$4 sm:$0xff]   ;;  %v5355_v45 = vmul.f32 %v5323_v26, %v13414_v17  ;;  %v5357_v37 = vmul.f32 %v5325_v3, %v13417_v51 }
 0x401   :  { %12691 = vtanh.f32 %v5454_v34  ;;  %v5438_v33 = vadd.f32 %v5406_v5, %v13390_v44  ;;  %8713 = vmatprep.subr.bf16.mxu1 %v11732_v40  ;;  %v11756_v40 = vld [vmem:[#allocation15 + $0x3e4] ss:$16 sps:$4 sm:$0xff]   ;;  %v5403_v39 = vmul.f32 %v5371_v36, %v13408_v56  ;;  %v5405_v34 = vmul.f32 %v5373_v22, %v13411_v15  ;;  %v11751_v5 = vld [vmem:[#allocation15 + $0x1e0] ss:$16 sps:$4 sm:$0xff]  }
 0x402   :  { %v11760_v6 = vld [vmem:[#allocation15 + $0x3c0] ss:$16 sps:$4 sm:$0xff]  }
 0x403   :  { %v5470_v7 = vmul.f32 0.7978846, %v5438_v33  ;;  %8671 = vmatpush1.bf16.msra.mxu0 %v11727_v61  ;;  %v5387_v61 = vmul.f32 %v5355_v45, %v13414_v17  ;;  %v11763_v22 = vld [vmem:[#allocation15 + $0x1a0] ss:$16 sps:$4 sm:$0xff]   ;;  %v11771_v45 = vld [vmem:[#allocation15 + $0x184] ss:$16 sps:$4 sm:$0xff]  }
 0x404   :  { %8714 = vmatpush1.bf16.msra.mxu1 %v11730_v25  ;;  %8672 = vmatprep.subr.bf16.mxu0 %v11735_v47  ;;  %v11759_v25 = vld [vmem:[#allocation15 + $0x1c4] ss:$16 sps:$4 sm:$0xff]   ;;  %v5389_v47 = vmul.f32 %v5357_v37, %v13417_v51 }
 0x405   :  { %12693 = vtanh.f32 %v5470_v7  ;;  %8715 = vmatprep.subr.bf16.mxu1 %v11738_v49  ;;  %v5435_v7 = vadd.f32 %v5403_v39, %v13408_v56  ;;  %v5419_v26 = vadd.f32 %v5387_v61, %v13414_v17  ;;  %v11777_v39 = vld [vmem:[#allocation15 + $0x164] ss:$16 sps:$4 sm:$0xff]   ;;  %v11778_v61 = vld [vmem:[#allocation15 + $0x360] ss:$16 sps:$4 sm:$0xff]  }
 0x407   :  { %8673 = vmatpush1.bf16.msra.mxu0 %v11733_v60  ;;  %v11757_v60 = vld [vmem:[#allocation15 + $0x1c0] ss:$16 sps:$4 sm:$0xff]   ;;  %v5467_v36 = vmul.f32 0.7978846, %v5435_v7 }
 0x408   :  { %8716 = vmatpush1.bf16.msra.mxu1 %v11736_v31  ;;  %8674 = vmatprep.subr.bf16.mxu0 %v11741_v8  ;;  %v5437_v31 = vadd.f32 %v5405_v34, %v13411_v15  ;;  %v5294_v8 = vmul.f32 0.5, %v13381_v13  ;;  %v11780_v34 = vld [vmem:[#allocation15 + $0x364] ss:$16 sps:$4 sm:$0xff]  }
 0x409   :  { %8717 = vmatprep.subr.bf16.mxu1 %v11744_v53  ;;  %v5310_v53 = vmul.f32 0.5, %v13390_v44  ;;  %v11766_v44 = vld [vmem:[#allocation15 + $0x3a0] ss:$16 sps:$4 sm:$0xff]   ;;  %12695 = vtanh.f32 %v5467_v36  ;;  %v5307_v36 = vmul.f32 0.5, %v13408_v56 }
 0x40a   :  { %v11802_v56 = vld [vmem:[#allocation15 + $0x6e0] ss:$16 sps:$4 sm:$0xff]  }
 0x40b   :  { %8675 = vmatpush1.bf16.msra.mxu0 %v11739_v30  ;;  %v11765_v30 = vld [vmem:[#allocation15 + $0x1a4] ss:$16 sps:$4 sm:$0xff]  }
 0x40c   :  { %8718 = vmatpush1.bf16.msra.mxu1 %v11742_v10  ;;  %8676 = vmatprep.subr.bf16.mxu0 %v11747_v21  ;;  %v11768_v10 = vld [vmem:[#allocation15 + $0x3a4] ss:$16 sps:$4 sm:$0xff]   ;;  %v5421_v21 = vadd.f32 %v5389_v47, %v13417_v51  ;;  %v11781_v47 = vld [vmem:[#allocation15 + $0x140] ss:$16 sps:$4 sm:$0xff]  }
 0x40d   :  { %8719 = vmatprep.subr.bf16.mxu1 %v11750_v29 }
 0x40e   :  { %v12692_v16 = vpop.eup %12691  ;;  %v5453_v37 = vmul.f32 0.7978846, %v5421_v21 }
 0x40f   :  { %8677 = vmatpush1.bf16.msra.mxu0 %v11745_v1  ;;  %v5518_v33 = vadd.f32 1.0, %v12692_v16  ;;  %v5469_v1 = vmul.f32 0.7978846, %v5437_v31  ;;  %v11772_v16 = vld [vmem:[#allocation15 + $0x380] ss:$16 sps:$4 sm:$0xff]  }
 0x410   :  { %8720 = vmatpush1.bf16.msra.mxu1 %v11748_v63  ;;  %8678 = vmatprep.subr.bf16.mxu0 %v11753_v52  ;;  %v5451_v63 = vmul.f32 0.7978846, %v5419_v26  ;;  %v11774_v52 = vld [vmem:[#allocation15 + $0x384] ss:$16 sps:$4 sm:$0xff]  }
 0x411   :  { %8721 = vmatprep.subr.bf16.mxu1 %v11756_v40  ;;  %v5550_v3 = vmul.f32 %v5518_v33, %v5294_v8  ;;  %v11769_v40 = vld [vmem:[#allocation15 + $0x180] ss:$16 sps:$4 sm:$0xff]   ;;  %12697 = vtanh.f32 %v5469_v1  ;;  %v11789_v33 = vld [vmem:[#allocation15 + $0x124] ss:$16 sps:$4 sm:$0xff]  }
 0x412   :  { %v12694_v49 = vpop.eup %12693  ;;  %12699 = vtanh.f32 %v5451_v63  ;;  %v11790_v8 = vld [vmem:[#allocation15 + $0x320] ss:$16 sps:$4 sm:$0xff]   ;;  %v11804_v1 = vld [vmem:[#allocation15 + $0x6e4] ss:$16 sps:$4 sm:$0xff]   ;;  %v5291_v63 = vmul.f32 0.5, %v13414_v17 }
 0x413   :  { %8679 = vmatpush2.bf16.msra.mxu0 %v11751_v5  ;;  %v5534_v62 = vadd.f32 1.0, %v12694_v49  ;;  %12701 = vtanh.f32 %v5453_v37  ;;  %v11775_v5 = vld [vmem:[#allocation15 + $0x160] ss:$16 sps:$4 sm:$0xff]   ;;  %v11792_v49 = vld [vmem:[#allocation15 + $0x324] ss:$16 sps:$4 sm:$0xff]   ;;  %v2001_v37 = vrot.slane %v13362_v38, %v13124_v59 }
 0x414   :  { %8722 = vmatpush2.bf16.msra.mxu1 %v11754_v0  ;;  %8680 = vmatprep.subr.bf16.mxu0 %v11759_v25  ;;  %v11783_v0 = vld [vmem:[#allocation15 + $0x144] ss:$16 sps:$4 sm:$0xff]  }
 0x415   :  { %8723 = vmatprep.subr.bf16.mxu1 %v11762_v9  ;;  %v5566_v29 = vmul.f32 %v5534_v62, %v5310_v53  ;;  %v11786_v25 = vld [vmem:[#allocation15 + $0x344] ss:$16 sps:$4 sm:$0xff]   ;;  %v11784_v9 = vld [vmem:[#allocation15 + $0x340] ss:$16 sps:$4 sm:$0xff]  }
 0x416   :  { %v12696_v7 = vpop.eup %12695  ;;  %v11795_v53 = vld [vmem:[#allocation15 + $0x104] ss:$16 sps:$4 sm:$0xff]  }
 0x417   :  { %8681 = vmatpush2.bf16.msra.mxu0 %v11757_v60  ;;  %v13437_v13 = vpack.c.bf16 %v5566_v29, %v5550_v3  ;;  %v11787_v60 = vld [vmem:[#allocation15 + $0x120] ss:$16 sps:$4 sm:$0xff]   ;;  %v5531_v26 = vadd.f32 1.0, %v12696_v7  ;;  %v11801_v29 = vld [vmem:[#allocation15 + $0x4e4] ss:$16 sps:$4 sm:$0xff]  }
 0x418   :  { %8724 = vmatpush2.bf16.msra.mxu1 %v11760_v6  ;;  %8682 = vmatprep.subr.bf16.mxu0 %v11765_v30  ;;  %v11798_v6 = vld [vmem:[#allocation15 + $0x304] ss:$16 sps:$4 sm:$0xff]   ;;  %v11796_v3 = vld [vmem:[#allocation15 + $0x300] ss:$16 sps:$4 sm:$0xff]  }
 0x419   :  { %8725 = vmatprep.subr.bf16.mxu1 %v11768_v10  ;;  %v11793_v10 = vld [vmem:[#allocation15 + $0x100] ss:$16 sps:$4 sm:$0xff]   ;;  %v11810_v59 = vld [vmem:[#allocation15 + $0x6c4] ss:$16 sps:$4 sm:$0xff]  }
 0x41a   :  { %v11808_v7 = vld [vmem:[#allocation15 + $0x6c0] ss:$16 sps:$4 sm:$0xff]  }
 0x41b   :  { %8683 = vmatpush2.bf16.msra.mxu0 %v11763_v22 }
 0x41c   :  { %8726 = vmatpush2.bf16.msra.mxu1 %v11766_v44  ;;  %8684 = vmatprep.subr.bf16.mxu0 %v11771_v45  ;;  %v5309_v44 = vmul.f32 0.5, %v13411_v15 }
 0x41d   :  { %8727 = vmatprep.subr.bf16.mxu1 %v11774_v52  ;;  %v5563_v52 = vmul.f32 %v5531_v26, %v5307_v36  ;;  %v11811_v26 = vld [vmem:[#allocation15 + $0x4a0] ss:$16 sps:$4 sm:$0xff]  }
 0x41e   :  { %v12698_v31 = vpop.eup %12697 }
 0x41f   :  { %8685 = vmatpush2.bf16.msra.mxu0 %v11769_v40  ;;  %v12700_v62 = vpop.eup %12699  ;;  %v5533_v21 = vadd.f32 1.0, %v12698_v31  ;;  %v11799_v40 = vld [vmem:[#allocation15 + $0x4e0] ss:$16 sps:$4 sm:$0xff]  }
 0x420   :  { %8728 = vmatpush2.bf16.msra.mxu1 %v11772_v16  ;;  %8686 = vmatprep.subr.bf16.mxu0 %v11777_v39  ;;  %v12702_v30 = vpop.eup %12701  ;;  %v5515_v22 = vadd.f32 1.0, %v12700_v62  ;;  %v5293_v16 = vmul.f32 0.5, %v13417_v51 }
 0x421   :  { %8729 = vmatprep.subr.bf16.mxu1 %v11780_v34  ;;  %v5517_v45 = vadd.f32 1.0, %v12702_v30  ;;  %v5565_v39 = vmul.f32 %v5533_v21, %v5309_v44  ;;  %v4982_v34 = vpop.f32.mrf.mxu0  ;;  %v11814_v21 = vld [vmem:[#allocation15 + $0x6a0] ss:$16 sps:$4 sm:$0xff]  }
 0x423   :  { %8687 = vmatpush2.bf16.msra.mxu0 %v11775_v5  ;;  %v5547_v5 = vmul.f32 %v5515_v22, %v5291_v63  ;;  %v5549_v15 = vmul.f32 %v5517_v45, %v5293_v16  ;;  %v11822_v22 = vld [vmem:[#allocation15 + $0x684] ss:$16 sps:$4 sm:$0xff]   ;;  %v11817_v45 = vld [vmem:[#allocation15 + $0x480] ss:$16 sps:$4 sm:$0xff]   ;;  %v1997_v63 = vrot.slane %v13362_v38, %v13115_v55 }
 0x424   :  { %8730 = vmatpush2.bf16.msra.mxu1 %v11778_v61  ;;  %8688 = vmatprep.subr.bf16.mxu0 %v11783_v0  ;;  %v13445_v61 = vpop.f32.mrf.mxu1  ;;  %v11807_v0 = vld [vmem:[#allocation15 + $0x4c4] ss:$16 sps:$4 sm:$0xff]  }
 0x425   :  { %8731 = vmatprep.subr.bf16.mxu1 %v11786_v25  ;;  %v13448_v25 = vpack.c.bf16 %v5563_v52, %v5547_v5  ;;  %v13451_v51 = vpack.c.bf16 %v5565_v39, %v5549_v15  ;;  %v2005_v39 = vrot.slane %v13362_v38, %v13118_v57  ;;  %v11828_v5 = vld [vmem:[#allocation15 + $0x664] ss:$16 sps:$4 sm:$0xff]   ;;  %v4983_v15 = vadd.f32 %v4982_v34, %v1997_v63 }
 0x427   :  { %8689 = vmatpush2.bf16.msra.mxu0 %v11781_v47  ;;  %v13473_v34 = vadd.f32 %v13445_v61, %v4983_v15 }
 0x428   :  { %8732 = vmatpush2.bf16.msra.mxu1 %v11784_v9  ;;  %8690 = vmatprep.subr.bf16.mxu0 %v11789_v33  ;;  %v11805_v33 = vld [vmem:[#allocation15 + $0x4c0] ss:$16 sps:$4 sm:$0xff]  }
 0x429   :  { %8733 = vmatprep.subr.bf16.mxu1 %v11792_v49  ;;  %v5343_v61 = vmul.f32 0.044715, %v13473_v34 }
 0x42b   :  { %8691 = vmatpush2.bf16.msra.mxu0 %v11787_v60  ;;  %v11813_v60 = vld [vmem:[#allocation15 + $0x4a4] ss:$16 sps:$4 sm:$0xff]  }
 0x42c   :  { %8734 = vmatpush2.bf16.msra.mxu1 %v11790_v8  ;;  %8692 = vmatprep.subr.bf16.mxu0 %v11795_v53  ;;  %v11816_v53 = vld [vmem:[#allocation15 + $0x6a4] ss:$16 sps:$4 sm:$0xff]  }
 0x42d   :  { %8735 = vmatprep.subr.bf16.mxu1 %v11798_v6 }
 0x42f   :  { %8693 = vmatpush2.bf16.msra.mxu0 %v11793_v10 }
 0x430   :  { %8736 = vmatpush2.bf16.msra.mxu1 %v11796_v3  ;;  %8748 = vmatprep.subr.bf16.mxu0 %v11801_v29  ;;  %v11819_v3 = vld [vmem:[#allocation15 + $0x484] ss:$16 sps:$4 sm:$0xff]  }
 0x431   :  { %8791 = vmatprep.subr.bf16.mxu1 %v11804_v1 }
 0x432   :  { %v5062_v17 = vpop.f32.mrf.mxu0  ;;  %8695 = vmatmul.mubr.bf16.vlgmr.msra.gmra.mxu0 %v13228_v41 }
 0x433   :  { %v5063_v47 = vadd.f32 %v5062_v17, %v2001_v37  ;;  %v5105_v9 = vpop.f32.mrf.mxu1  ;;  %8738 = vmatmul.mubr.bf16.vlgmr.msra.gmra.mxu1 %v13258_v11  ;;  %8749 = vmatpush1.bf16.msra.mxu0 %v11799_v40  ;;  %v11825_v40 = vld [vmem:[#allocation15 + $0x464] ss:$16 sps:$4 sm:$0xff]  }
 0x434   :  { %8780 = vmatprep.mubr.bf16.mxu0 %v13448_v25  ;;  %8792 = vmatpush1.bf16.msra.mxu1 %v11802_v56  ;;  %v5064_v49 = vpop.f32.mrf.mxu0 }
 0x435   :  { %v13454_v31 = vadd.f32 %v5105_v9, %v5063_v47  ;;  %8823 = vmatprep.mubr.bf16.mxu1 %v13451_v51  ;;  %v5107_v8 = vpop.f32.mrf.mxu1  ;;  %8750 = vmatprep.subr.bf16.mxu0 %v11807_v0  ;;  %v11823_v47 = vld [vmem:[#allocation15 + $0x460] ss:$16 sps:$4 sm:$0xff]   ;;  %v4979_v9 = vadd.f32 %v13379_v48, %v1997_v63  ;;  %v5375_v63 = vmul.f32 %v5343_v61, %v13473_v34 }
 0x436   :  { %v5066_v62 = vpop.f32.mrf.mxu0  ;;  %8793 = vmatprep.subr.bf16.mxu1 %v11810_v59  ;;  %v11856_v61 = vld [vmem:[#allocation15 + $0x7c0] ss:$16 sps:$4 sm:$0xff]  }
 0x437   :  { %v5328_v6 = vmul.f32 0.044715, %v13454_v31  ;;  %v5067_v30 = vadd.f32 %v5066_v62, %v2001_v37  ;;  %8751 = vmatpush1.bf16.msra.mxu0 %v11805_v33  ;;  %v5109_v10 = vpop.f32.mrf.mxu1  ;;  %v11820_v37 = vld [vmem:[#allocation15 + $0x680] ss:$16 sps:$4 sm:$0xff]   ;;  %v13478_v48 = vadd.f32 %v13384_v32, %v4979_v9 }
 0x438   :  { %8794 = vmatpush1.bf16.msra.mxu1 %v11808_v7  ;;  %8752 = vmatprep.subr.bf16.mxu0 %v11813_v60  ;;  %v5068_v52 = vpop.f32.mrf.mxu0  ;;  %v11826_v33 = vld [vmem:[#allocation15 + $0x660] ss:$16 sps:$4 sm:$0xff]   ;;  %v11831_v7 = vld [vmem:[#allocation15 + $0x444] ss:$16 sps:$4 sm:$0xff]   ;;  %v5065_v60 = vadd.f32 %v5064_v49, %v2005_v39 }
 0x439   :  { %v5360_v29 = vmul.f32 %v5328_v6, %v13454_v31  ;;  %v13459_v36 = vadd.f32 %v5109_v10, %v5067_v30  ;;  %8795 = vmatprep.subr.bf16.mxu1 %v11816_v53  ;;  %v5069_v59 = vadd.f32 %v5068_v52, %v2005_v39  ;;  %v11834_v53 = vld [vmem:[#allocation15 + $0x644] ss:$16 sps:$4 sm:$0xff]   ;;  %v5111_v62 = vpop.f32.mrf.mxu1  ;;  %v11832_v10 = vld [vmem:[#allocation15 + $0x640] ss:$16 sps:$4 sm:$0xff]  }
 0x43a   :  { %v11837_v49 = vld [vmem:[#allocation15 + $0x424] ss:$16 sps:$4 sm:$0xff]   ;;  %v11838_v32 = vld [vmem:[#allocation15 + $0x620] ss:$16 sps:$4 sm:$0xff]  }
 0x43b   :  { %v5392_v1 = vmul.f32 %v5360_v29, %v13454_v31  ;;  %v5344_v44 = vmul.f32 0.044715, %v13459_v36  ;;  %8753 = vmatpush1.bf16.msra.mxu0 %v11811_v26  ;;  %v13475_v30 = vadd.f32 %v5111_v62, %v5069_v59  ;;  %v11829_v26 = vld [vmem:[#allocation15 + $0x440] ss:$16 sps:$4 sm:$0xff]   ;;  %v11849_v39 = vld [vmem:[#allocation15 + $0x5e4] ss:$16 sps:$4 sm:$0xff]  }
 0x43c   :  { %8796 = vmatpush1.bf16.msra.mxu1 %v11814_v21  ;;  %8754 = vmatprep.subr.bf16.mxu0 %v11819_v3  ;;  %v13480_v21 = vadd.f32 %v5107_v8, %v5065_v60  ;;  %v11840_v3 = vld [vmem:[#allocation15 + $0x624] ss:$16 sps:$4 sm:$0xff]   ;;  %v11847_v59 = vld [vmem:[#allocation15 + $0x5e0] ss:$16 sps:$4 sm:$0xff]  }
 0x43d   :  { %v5424_v16 = vadd.f32 %v5392_v1, %v13454_v31  ;;  %v5376_v56 = vmul.f32 %v5344_v44, %v13459_v36  ;;  %8797 = vmatprep.subr.bf16.mxu1 %v11822_v22  ;;  %v5345_v29 = vmul.f32 0.044715, %v13475_v30  ;;  %v11835_v22 = vld [vmem:[#allocation15 + $0x420] ss:$16 sps:$4 sm:$0xff]   ;;  %v5327_v1 = vmul.f32 0.044715, %v13478_v48 }
 0x43e   :  { %v11843_v44 = vld [vmem:[#allocation15 + $0x404] ss:$16 sps:$4 sm:$0xff]   ;;  %v11850_v9 = vld [vmem:[#allocation15 + $0x7e0] ss:$16 sps:$4 sm:$0xff]  }
 0x43f   :  { %v5456_v0 = vmul.f32 0.7978846, %v5424_v16  ;;  %v5408_v17 = vmul.f32 %v5376_v56, %v13459_v36  ;;  %8755 = vmatpush1.bf16.msra.mxu0 %v11817_v45  ;;  %v5329_v45 = vmul.f32 0.044715, %v13480_v21  ;;  %v11846_v8 = vld [vmem:[#allocation15 + $0x604] ss:$16 sps:$4 sm:$0xff]   ;;  %v5377_v52 = vmul.f32 %v5345_v29, %v13475_v30 }
 0x440   :  { %8798 = vmatpush1.bf16.msra.mxu1 %v11820_v37  ;;  %8756 = vmatprep.subr.bf16.mxu0 %v11825_v40  ;;  %v11841_v37 = vld [vmem:[#allocation15 + $0x400] ss:$16 sps:$4 sm:$0xff]   ;;  %v5359_v40 = vmul.f32 %v5327_v1, %v13478_v48  ;;  %v11858_v60 = vld [vmem:[#allocation15 + $0x7c4] ss:$16 sps:$4 sm:$0xff]  }
 0x441   :  { %12703 = vtanh.f32 %v5456_v0  ;;  %v5440_v57 = vadd.f32 %v5408_v17, %v13459_v36  ;;  %8799 = vmatprep.subr.bf16.mxu1 %v11828_v5  ;;  %v11844_v16 = vld [vmem:[#allocation15 + $0x600] ss:$16 sps:$4 sm:$0xff]   ;;  %v5361_v56 = vmul.f32 %v5329_v45, %v13480_v21  ;;  %v11852_v5 = vld [vmem:[#allocation15 + $0x7e4] ss:$16 sps:$4 sm:$0xff]   ;;  %v5407_v0 = vmul.f32 %v5375_v63, %v13473_v34 }
 0x442   :  { %v5409_v17 = vmul.f32 %v5377_v52, %v13475_v30  ;;  %v11861_v29 = vld [vmem:[#allocation15 + $0x5a4] ss:$16 sps:$4 sm:$0xff]   ;;  %v11859_v63 = vld [vmem:[#allocation15 + $0x5a0] ss:$16 sps:$4 sm:$0xff]  }
 0x443   :  { %v5472_v6 = vmul.f32 0.7978846, %v5440_v57  ;;  %8757 = vmatpush1.bf16.msra.mxu0 %v11823_v47  ;;  %v5391_v47 = vmul.f32 %v5359_v40, %v13478_v48  ;;  %v5439_v62 = vadd.f32 %v5407_v0, %v13473_v34  ;;  %v11864_v1 = vld [vmem:[#allocation15 + $0x7a4] ss:$16 sps:$4 sm:$0xff]  }
 0x444   :  { %8800 = vmatpush1.bf16.msra.mxu1 %v11826_v33  ;;  %8758 = vmatprep.subr.bf16.mxu0 %v11831_v7  ;;  %v11855_v33 = vld [vmem:[#allocation15 + $0x5c4] ss:$16 sps:$4 sm:$0xff]   ;;  %v5393_v7 = vmul.f32 %v5361_v56, %v13480_v21  ;;  %v11865_v56 = vld [vmem:[#allocation15 + $0x580] ss:$16 sps:$4 sm:$0xff]  }
 0x445   :  { %12705 = vtanh.f32 %v5472_v6  ;;  %8801 = vmatprep.subr.bf16.mxu1 %v11834_v53  ;;  %v11853_v6 = vld [vmem:[#allocation15 + $0x5c0] ss:$16 sps:$4 sm:$0xff]   ;;  %v11876_v0 = vld [vmem:[#allocation15 + $0x764] ss:$16 sps:$4 sm:$0xff]  }
 0x447   :  { %8759 = vmatpush1.bf16.msra.mxu0 %v11829_v26  ;;  %v5441_v26 = vadd.f32 %v5409_v17, %v13475_v30  ;;  %v11871_v17 = vld [vmem:[#allocation15 + $0x560] ss:$16 sps:$4 sm:$0xff]  }
 0x448   :  { %8802 = vmatpush1.bf16.msra.mxu1 %v11832_v10  ;;  %8760 = vmatprep.subr.bf16.mxu0 %v11837_v49  ;;  %v5296_v10 = vmul.f32 0.5, %v13454_v31  ;;  %v5312_v49 = vmul.f32 0.5, %v13459_v36  ;;  %v11862_v36 = vld [vmem:[#allocation15 + $0x7a0] ss:$16 sps:$4 sm:$0xff]  }
 0x449   :  { %8803 = vmatprep.subr.bf16.mxu1 %v11840_v3  ;;  %v5473_v52 = vmul.f32 0.7978846, %v5441_v26  ;;  %v11886_v26 = vld [vmem:[#allocation15 + $0x720] ss:$16 sps:$4 sm:$0xff]  }
 0x44b   :  { %8761 = vmatpush1.bf16.msra.mxu0 %v11835_v22  ;;  %v5423_v22 = vadd.f32 %v5391_v47, %v13478_v48  ;;  %v11879_v47 = vld [vmem:[#allocation15 + $0x544] ss:$16 sps:$4 sm:$0xff]  }
 0x44c   :  { %8804 = vmatpush1.bf16.msra.mxu1 %v11838_v32  ;;  %8762 = vmatprep.subr.bf16.mxu0 %v11843_v44  ;;  %v5425_v32 = vadd.f32 %v5393_v7, %v13480_v21  ;;  %v11880_v7 = vld [vmem:[#allocation15 + $0x740] ss:$16 sps:$4 sm:$0xff]  }
 0x44d   :  { %8805 = vmatprep.subr.bf16.mxu1 %v11846_v8  ;;  %v5471_v8 = vmul.f32 0.7978846, %v5439_v62  ;;  %v5455_v40 = vmul.f32 0.7978846, %v5423_v22  ;;  %v11883_v62 = vld [vmem:[#allocation15 + $0x520] ss:$16 sps:$4 sm:$0xff]  }
 0x44e   :  { %v12704_v15 = vpop.eup %12703  ;;  %v11889_v22 = vld [vmem:[#allocation15 + $0x500] ss:$16 sps:$4 sm:$0xff]  }
 0x44f   :  { %8763 = vmatpush1.bf16.msra.mxu0 %v11841_v37  ;;  %v5520_v57 = vadd.f32 1.0, %v12704_v15  ;;  %v11867_v37 = vld [vmem:[#allocation15 + $0x584] ss:$16 sps:$4 sm:$0xff]   ;;  %12707 = vtanh.f32 %v5471_v8 }
 0x450   :  { %8806 = vmatpush1.bf16.msra.mxu1 %v11844_v16  ;;  %8764 = vmatprep.subr.bf16.mxu0 %v11849_v39  ;;  %v11870_v16 = vld [vmem:[#allocation15 + $0x784] ss:$16 sps:$4 sm:$0xff]   ;;  %v5457_v39 = vmul.f32 0.7978846, %v5425_v32  ;;  %12709 = vtanh.f32 %v5473_v52  ;;  %v11892_v32 = vld [vmem:[#allocation15 + $0x700] ss:$16 sps:$4 sm:$0xff]  }
 0x451   :  { %8807 = vmatprep.subr.bf16.mxu1 %v11852_v5  ;;  %v5552_v44 = vmul.f32 %v5520_v57, %v5296_v10  ;;  %v11868_v5 = vld [vmem:[#allocation15 + $0x780] ss:$16 sps:$4 sm:$0xff]   ;;  %v11873_v15 = vld [vmem:[#allocation15 + $0x564] ss:$16 sps:$4 sm:$0xff]   ;;  %12711 = vtanh.f32 %v5455_v40  ;;  %v5313_v52 = vmul.f32 0.5, %v13475_v30 }
 0x452   :  { %v12706_v53 = vpop.eup %12705  ;;  %12713 = vtanh.f32 %v5457_v39  ;;  %v11888_v57 = vld [vmem:[#allocation15 + $0x724] ss:$16 sps:$4 sm:$0xff]  }
 0x453   :  { %8765 = vmatpush2.bf16.msra.mxu0 %v11847_v59  ;;  %v5536_v3 = vadd.f32 1.0, %v12706_v53  ;;  %v11874_v59 = vld [vmem:[#allocation15 + $0x760] ss:$16 sps:$4 sm:$0xff]   ;;  %v11891_v10 = vld [vmem:[#allocation15 + $0x504] ss:$16 sps:$4 sm:$0xff]  }
 0x454   :  { %8808 = vmatpush2.bf16.msra.mxu1 %v11850_v9  ;;  %8766 = vmatprep.subr.bf16.mxu0 %v11855_v33  ;;  %v11882_v9 = vld [vmem:[#allocation15 + $0x744] ss:$16 sps:$4 sm:$0xff]   ;;  %v11877_v33 = vld [vmem:[#allocation15 + $0x540] ss:$16 sps:$4 sm:$0xff]  }
 0x455   :  { %8809 = vmatprep.subr.bf16.mxu1 %v11858_v60  ;;  %v5568_v45 = vmul.f32 %v5536_v3, %v5312_v49  ;;  %v11885_v60 = vld [vmem:[#allocation15 + $0x524] ss:$16 sps:$4 sm:$0xff]  }
 0x456   :  { %v11894_v3 = vld [vmem:[#allocation15 + $0x704] ss:$16 sps:$4 sm:$0xff]  }
 0x457   :  { %8767 = vmatpush2.bf16.msra.mxu0 %v11853_v6  ;;  %v13500_v31 = vpack.c.bf16 %v5568_v45, %v5552_v44  ;;  %v11897_v44 = vld [vmem:[#allocation15 + $0x8e4] ss:$16 sps:$4 sm:$0xff]   ;;  %v5311_v45 = vmul.f32 0.5, %v13473_v34  ;;  %v11898_v34 = vld [vmem:[#allocation15 + $0xae0] ss:$16 sps:$4 sm:$0xff]  }
 0x458   :  { %8810 = vmatpush2.bf16.msra.mxu1 %v11856_v61  ;;  %8768 = vmatprep.subr.bf16.mxu0 %v11861_v29  ;;  %v11903_v30 = vld [vmem:[#allocation15 + $0x8c4] ss:$16 sps:$4 sm:$0xff]  }
 0x459   :  { %8811 = vmatprep.subr.bf16.mxu1 %v11864_v1 }
 0x45b   :  { %8769 = vmatpush2.bf16.msra.mxu0 %v11859_v63  ;;  %v11900_v63 = vld [vmem:[#allocation15 + $0xae4] ss:$16 sps:$4 sm:$0xff]  }
 0x45c   :  { %8812 = vmatpush2.bf16.msra.mxu1 %v11862_v36  ;;  %8770 = vmatprep.subr.bf16.mxu0 %v11867_v37  ;;  %v12708_v53 = vpop.eup %12707  ;;  %v5295_v37 = vmul.f32 0.5, %v13478_v48 }
 0x45d   :  { %8813 = vmatprep.subr.bf16.mxu1 %v11870_v16  ;;  %v12710_v6 = vpop.eup %12709  ;;  %v5535_v29 = vadd.f32 1.0, %v12708_v53  ;;  %v13780_v16 = vsub.s32 4, %v13112_v50  ;;  %v11909_v53 = vld [vmem:[#allocation15 + $0x8a4] ss:$16 sps:$4 sm:$0xff]  }
 0x45e   :  { %v12712_v49 = vpop.eup %12711  ;;  %v5537_v1 = vadd.f32 1.0, %v12710_v6 }
 0x45f   :  { %8771 = vmatpush2.bf16.msra.mxu0 %v11865_v56  ;;  %v12714_v61 = vpop.eup %12713  ;;  %v5519_v8 = vadd.f32 1.0, %v12712_v49  ;;  %v5567_v40 = vmul.f32 %v5535_v29, %v5311_v45  ;;  %v2009_v39 = vrot.slane %v13362_v38, %v13780_v16  ;;  %v11895_v56 = vld [vmem:[#allocation15 + $0x8e0] ss:$16 sps:$4 sm:$0xff]   ;;  %v11918_v45 = vld [vmem:[#allocation15 + $0xa84] ss:$16 sps:$4 sm:$0xff]  }
 0x460   :  { %8814 = vmatpush2.bf16.msra.mxu1 %v11868_v5  ;;  %8772 = vmatprep.subr.bf16.mxu0 %v11873_v15  ;;  %v5521_v36 = vadd.f32 1.0, %v12714_v61  ;;  %v5297_v5 = vmul.f32 0.5, %v13480_v21  ;;  %v5569_v15 = vmul.f32 %v5537_v1, %v5313_v52  ;;  %v11907_v61 = vld [vmem:[#allocation15 + $0x8a0] ss:$16 sps:$4 sm:$0xff]   ;;  %v11915_v1 = vld [vmem:[#allocation15 + $0x884] ss:$16 sps:$4 sm:$0xff]  }
 0x461   :  { %8815 = vmatprep.subr.bf16.mxu1 %v11876_v0  ;;  %v5551_v0 = vmul.f32 %v5519_v8, %v5295_v37  ;;  %v2013_v37 = vrot.slane %v13362_v38, %v1980_v2  ;;  %v11921_v16 = vld [vmem:[#allocation15 + $0x864] ss:$16 sps:$4 sm:$0xff]   ;;  %v11922_v38 = vld [vmem:[#allocation15 + $0xa60] ss:$16 sps:$4 sm:$0xff]  }
 0x462   :  { %v11927_v2 = vld [vmem:[#allocation15 + $0x844] ss:$16 sps:$4 sm:$0xff]  }
 0x463   :  { %8773 = vmatpush2.bf16.msra.mxu0 %v11871_v17  ;;  %v5553_v17 = vmul.f32 %v5521_v36, %v5297_v5  ;;  %v13510_v48 = vpack.c.bf16 %v5567_v40, %v5551_v0  ;;  %v11913_v36 = vld [vmem:[#allocation15 + $0x880] ss:$16 sps:$4 sm:$0xff]   ;;  %v11924_v5 = vld [vmem:[#allocation15 + $0xa64] ss:$16 sps:$4 sm:$0xff]  }
 0x464   :  { %8816 = vmatpush2.bf16.msra.mxu1 %v11874_v59  ;;  %8774 = vmatprep.subr.bf16.mxu0 %v11879_v47  ;;  %v11906_v47 = vld [vmem:[#allocation15 + $0xac4] ss:$16 sps:$4 sm:$0xff]   ;;  %v11916_v40 = vld [vmem:[#allocation15 + $0xa80] ss:$16 sps:$4 sm:$0xff]  }
 0x465   :  { %8817 = vmatprep.subr.bf16.mxu1 %v11882_v9  ;;  %v13513_v21 = vpack.c.bf16 %v5569_v15, %v5553_v17  ;;  %v11919_v17 = vld [vmem:[#allocation15 + $0x860] ss:$16 sps:$4 sm:$0xff]  }
 0x467   :  { %8775 = vmatpush2.bf16.msra.mxu0 %v11877_v33 }
 0x468   :  { %8818 = vmatpush2.bf16.msra.mxu1 %v11880_v7  ;;  %8776 = vmatprep.subr.bf16.mxu0 %v11885_v60  ;;  %v11901_v7 = vld [vmem:[#allocation15 + $0x8c0] ss:$16 sps:$4 sm:$0xff]  }
 0x469   :  { %8819 = vmatprep.subr.bf16.mxu1 %v11888_v57  ;;  %v11904_v57 = vld [vmem:[#allocation15 + $0xac0] ss:$16 sps:$4 sm:$0xff]  }
 0x46b   :  { %8777 = vmatpush2.bf16.msra.mxu0 %v11883_v62 }
 0x46c   :  { %8820 = vmatpush2.bf16.msra.mxu1 %v11886_v26  ;;  %8778 = vmatprep.subr.bf16.mxu0 %v11891_v10  ;;  %v11912_v26 = vld [vmem:[#allocation15 + $0xaa4] ss:$16 sps:$4 sm:$0xff]  }
 0x46d   :  { %8821 = vmatprep.subr.bf16.mxu1 %v11894_v3 }
 0x46f   :  { %8779 = vmatpush2.bf16.msra.mxu0 %v11889_v22  ;;  %v11910_v22 = vld [vmem:[#allocation15 + $0xaa0] ss:$16 sps:$4 sm:$0xff]  }
 0x470   :  { %8822 = vmatpush2.bf16.msra.mxu1 %v11892_v32  ;;  %8834 = vmatprep.subr.bf16.mxu0 %v11897_v44 }
 0x471   :  { %8877 = vmatprep.subr.bf16.mxu1 %v11900_v63 }
 0x472   :  { %v5148_v59 = vpop.f32.mrf.mxu0  ;;  %8781 = vmatmul.mubr.bf16.vlgmr.msra.gmra.mxu0 %v13290_v46 }
 0x473   :  { %v5149_v9 = vadd.f32 %v5148_v59, %v2009_v39  ;;  %v5191_v33 = vpop.f32.mrf.mxu1  ;;  %8824 = vmatmul.mubr.bf16.vlgmr.msra.gmra.mxu1 %v13360_v35  ;;  %8835 = vmatpush1.bf16.msra.mxu0 %v11895_v56 }
 0x474   :  { %8866 = vmatprep.mubr.bf16.mxu0 %v13510_v48  ;;  %8878 = vmatpush1.bf16.msra.mxu1 %v11898_v34  ;;  %v5150_v60 = vpop.f32.mrf.mxu0 }
 0x475   :  { %v13516_v62 = vadd.f32 %v5191_v33, %v5149_v9  ;;  %8909 = vmatprep.mubr.bf16.mxu1 %v13513_v21  ;;  %v5193_v6 = vpop.f32.mrf.mxu1  ;;  %8836 = vmatprep.subr.bf16.mxu0 %v11903_v30  ;;  %v5151_v30 = vadd.f32 %v5150_v60, %v2013_v37  ;;  %v11930_v9 = vld [vmem:[#allocation15 + $0xa44] ss:$16 sps:$4 sm:$0xff]   ;;  %v11928_v60 = vld [vmem:[#allocation15 + $0xa40] ss:$16 sps:$4 sm:$0xff]  }
 0x476   :  { %v5152_v10 = vpop.f32.mrf.mxu0  ;;  %8879 = vmatprep.subr.bf16.mxu1 %v11906_v47 }
 0x477   :  { %v5330_v49 = vmul.f32 0.044715, %v13516_v62  ;;  %v5153_v3 = vadd.f32 %v5152_v10, %v2009_v39  ;;  %8837 = vmatpush1.bf16.msra.mxu0 %v11901_v7  ;;  %v5195_v29 = vpop.f32.mrf.mxu1  ;;  %v11936_v10 = vld [vmem:[#allocation15 + $0xa24] ss:$16 sps:$4 sm:$0xff]  }
 0x478   :  { %8880 = vmatpush1.bf16.msra.mxu1 %v11904_v57  ;;  %8838 = vmatprep.subr.bf16.mxu0 %v11909_v53  ;;  %v5154_v52 = vpop.f32.mrf.mxu0  ;;  %v11925_v57 = vld [vmem:[#allocation15 + $0x840] ss:$16 sps:$4 sm:$0xff]   ;;  %v13534_v53 = vadd.f32 %v5193_v6, %v5151_v30  ;;  %v11942_v6 = vld [vmem:[#allocation15 + $0xa04] ss:$16 sps:$4 sm:$0xff]   ;;  %v5298_v30 = vmul.f32 0.5, %v13516_v62 }
 0x479   :  { %v5362_v32 = vmul.f32 %v5330_v49, %v13516_v62  ;;  %v13521_v44 = vadd.f32 %v5195_v29, %v5153_v3  ;;  %8881 = vmatprep.subr.bf16.mxu1 %v11912_v26  ;;  %v5155_v15 = vadd.f32 %v5154_v52, %v2013_v37  ;;  %v5197_v47 = vpop.f32.mrf.mxu1  ;;  %v11933_v26 = vld [vmem:[#allocation15 + $0x824] ss:$16 sps:$4 sm:$0xff]   ;;  %v11931_v3 = vld [vmem:[#allocation15 + $0x820] ss:$16 sps:$4 sm:$0xff]  }
 0x47a   :  { %v11934_v29 = vld [vmem:[#allocation15 + $0xa20] ss:$16 sps:$4 sm:$0xff]   ;;  %v11948_v52 = vld [vmem:[#allocation15 + $0xbe4] ss:$16 sps:$4 sm:$0xff]  }
 0x47b   :  { %v5394_v8 = vmul.f32 %v5362_v32, %v13516_v62  ;;  %v5346_v63 = vmul.f32 0.044715, %v13521_v44  ;;  %8839 = vmatpush1.bf16.msra.mxu0 %v11907_v61  ;;  %v13532_v33 = vadd.f32 %v5197_v47, %v5155_v15  ;;  %v5331_v61 = vmul.f32 0.044715, %v13534_v53  ;;  %v11937_v32 = vld [vmem:[#allocation15 + $0x800] ss:$16 sps:$4 sm:$0xff]  }
 0x47c   :  { %8882 = vmatpush1.bf16.msra.mxu1 %v11910_v22  ;;  %8840 = vmatprep.subr.bf16.mxu0 %v11915_v1  ;;  %v11939_v22 = vld [vmem:[#allocation15 + $0x804] ss:$16 sps:$4 sm:$0xff]  }
 0x47d   :  { %v5426_v39 = vadd.f32 %v5394_v8, %v13516_v62  ;;  %v5378_v56 = vmul.f32 %v5346_v63, %v13521_v44  ;;  %8883 = vmatprep.subr.bf16.mxu1 %v11918_v45  ;;  %v5347_v49 = vmul.f32 0.044715, %v13532_v33  ;;  %v5363_v45 = vmul.f32 %v5331_v61, %v13534_v53  ;;  %v11940_v8 = vld [vmem:[#allocation15 + $0xa00] ss:$16 sps:$4 sm:$0xff]   ;;  %v11945_v63 = vld [vmem:[#allocation15 + $0x9e4] ss:$16 sps:$4 sm:$0xff]  }
 0x47e   :  { %v11957_v47 = vld [vmem:[#allocation15 + $0x9a4] ss:$16 sps:$4 sm:$0xff]   ;;  %v11958_v62 = vld [vmem:[#allocation15 + $0xba0] ss:$16 sps:$4 sm:$0xff]  }
 0x47f   :  { %v5458_v34 = vmul.f32 0.7978846, %v5426_v39  ;;  %v5410_v0 = vmul.f32 %v5378_v56, %v13521_v44  ;;  %8841 = vmatpush1.bf16.msra.mxu0 %v11913_v36  ;;  %v5379_v1 = vmul.f32 %v5347_v49, %v13532_v33  ;;  %v11946_v39 = vld [vmem:[#allocation15 + $0xbe0] ss:$16 sps:$4 sm:$0xff]   ;;  %v11951_v56 = vld [vmem:[#allocation15 + $0x9c4] ss:$16 sps:$4 sm:$0xff]  }
 0x480   :  { %8884 = vmatpush1.bf16.msra.mxu1 %v11916_v40  ;;  %8842 = vmatprep.subr.bf16.mxu0 %v11921_v16  ;;  %v11943_v40 = vld [vmem:[#allocation15 + $0x9e0] ss:$16 sps:$4 sm:$0xff]   ;;  %v5395_v16 = vmul.f32 %v5363_v45, %v13534_v53  ;;  %v11966_v61 = vld [vmem:[#allocation15 + $0xb84] ss:$16 sps:$4 sm:$0xff]  }
 0x481   :  { %12715 = vtanh.f32 %v5458_v34  ;;  %v5442_v59 = vadd.f32 %v5410_v0, %v13521_v44  ;;  %8885 = vmatprep.subr.bf16.mxu1 %v11924_v5  ;;  %v5411_v37 = vmul.f32 %v5379_v1, %v13532_v33  ;;  %v11954_v5 = vld [vmem:[#allocation15 + $0xbc4] ss:$16 sps:$4 sm:$0xff]   ;;  %v11970_v45 = vld [vmem:[#allocation15 + $0xb60] ss:$16 sps:$4 sm:$0xff]  }
 0x482   :  { %v11972_v1 = vld [vmem:[#allocation15 + $0xb64] ss:$16 sps:$4 sm:$0xff]  }
 0x483   :  { %v5474_v7 = vmul.f32 0.7978846, %v5442_v59  ;;  %8843 = vmatpush1.bf16.msra.mxu0 %v11919_v17  ;;  %v5443_v0 = vadd.f32 %v5411_v37, %v13532_v33  ;;  %v11949_v17 = vld [vmem:[#allocation15 + $0x9c0] ss:$16 sps:$4 sm:$0xff]   ;;  %v11981_v37 = vld [vmem:[#allocation15 + $0x924] ss:$16 sps:$4 sm:$0xff]  }
 0x484   :  { %8886 = vmatpush1.bf16.msra.mxu1 %v11922_v38  ;;  %8844 = vmatprep.subr.bf16.mxu0 %v11927_v2  ;;  %v5314_v38 = vmul.f32 0.5, %v13521_v44  ;;  %v11952_v59 = vld [vmem:[#allocation15 + $0xbc0] ss:$16 sps:$4 sm:$0xff]   ;;  %v11963_v44 = vld [vmem:[#allocation15 + $0x984] ss:$16 sps:$4 sm:$0xff]  }
 0x485   :  { %12717 = vtanh.f32 %v5474_v7  ;;  %8887 = vmatprep.subr.bf16.mxu1 %v11930_v9  ;;  %v5427_v9 = vadd.f32 %v5395_v16, %v13534_v53  ;;  %v11960_v7 = vld [vmem:[#allocation15 + $0xba4] ss:$16 sps:$4 sm:$0xff]  }
 0x487   :  { %8845 = vmatpush1.bf16.msra.mxu0 %v11925_v57 }
 0x488   :  { %8888 = vmatpush1.bf16.msra.mxu1 %v11928_v60  ;;  %8846 = vmatprep.subr.bf16.mxu0 %v11933_v26  ;;  %v5475_v26 = vmul.f32 0.7978846, %v5443_v0 }
 0x489   :  { %8889 = vmatprep.subr.bf16.mxu1 %v11936_v10  ;;  %v11955_v10 = vld [vmem:[#allocation15 + $0x9a0] ss:$16 sps:$4 sm:$0xff]  }
 0x48a   :  { %12719 = vtanh.f32 %v5475_v26 }
 0x48b   :  { %8847 = vmatpush1.bf16.msra.mxu0 %v11931_v3  ;;  %v5459_v3 = vmul.f32 0.7978846, %v5427_v9  ;;  %v5299_v9 = vmul.f32 0.5, %v13534_v53 }
 0x48c   :  { %8890 = vmatpush1.bf16.msra.mxu1 %v11934_v29  ;;  %8848 = vmatprep.subr.bf16.mxu0 %v11939_v22  ;;  %v11961_v29 = vld [vmem:[#allocation15 + $0x980] ss:$16 sps:$4 sm:$0xff]  }
 0x48d   :  { %8891 = vmatprep.subr.bf16.mxu1 %v11942_v6  ;;  %v11964_v22 = vld [vmem:[#allocation15 + $0xb80] ss:$16 sps:$4 sm:$0xff]   ;;  %v11969_v6 = vld [vmem:[#allocation15 + $0x964] ss:$16 sps:$4 sm:$0xff]   ;;  %12721 = vtanh.f32 %v5459_v3 }
 0x48e   :  { %v12716_v36 = vpop.eup %12715  ;;  %v12002_v3 = vld [vmem:[#allocation15 + $0xec4] ss:$16 sps:$4 sm:$0xff]  }
 0x48f   :  { %8849 = vmatpush1.bf16.msra.mxu0 %v11937_v32  ;;  %v5522_v15 = vadd.f32 1.0, %v12716_v36  ;;  %v11967_v32 = vld [vmem:[#allocation15 + $0x960] ss:$16 sps:$4 sm:$0xff]  }
 0x490   :  { %8892 = vmatpush1.bf16.msra.mxu1 %v11940_v8  ;;  %8850 = vmatprep.subr.bf16.mxu0 %v11945_v63  ;;  %v11975_v8 = vld [vmem:[#allocation15 + $0x944] ss:$16 sps:$4 sm:$0xff]   ;;  %v11976_v36 = vld [vmem:[#allocation15 + $0xb40] ss:$16 sps:$4 sm:$0xff]  }
 0x491   :  { %8893 = vmatprep.subr.bf16.mxu1 %v11948_v52  ;;  %v5554_v57 = vmul.f32 %v5522_v15, %v5298_v30  ;;  %v11978_v63 = vld [vmem:[#allocation15 + $0xb44] ss:$16 sps:$4 sm:$0xff]   ;;  %v11973_v52 = vld [vmem:[#allocation15 + $0x940] ss:$16 sps:$4 sm:$0xff]  }
 0x492   :  { %v12718_v34 = vpop.eup %12717  ;;  %v11988_v30 = vld [vmem:[#allocation15 + $0xb00] ss:$16 sps:$4 sm:$0xff]  }
 0x493   :  { %8851 = vmatpush2.bf16.msra.mxu0 %v11943_v40  ;;  %v5538_v2 = vadd.f32 1.0, %v12718_v34  ;;  %v11984_v40 = vld [vmem:[#allocation15 + $0xb24] ss:$16 sps:$4 sm:$0xff]  }
 0x494   :  { %8894 = vmatpush2.bf16.msra.mxu1 %v11946_v39  ;;  %8852 = vmatprep.subr.bf16.mxu0 %v11951_v56  ;;  %v11979_v39 = vld [vmem:[#allocation15 + $0x920] ss:$16 sps:$4 sm:$0xff]   ;;  %v11990_v34 = vld [vmem:[#allocation15 + $0xb04] ss:$16 sps:$4 sm:$0xff]  }
 0x495   :  { %8895 = vmatprep.subr.bf16.mxu1 %v11954_v5  ;;  %v5570_v60 = vmul.f32 %v5538_v2, %v5314_v38  ;;  %v11982_v56 = vld [vmem:[#allocation15 + $0xb20] ss:$16 sps:$4 sm:$0xff]   ;;  %v11987_v5 = vld [vmem:[#allocation15 + $0x904] ss:$16 sps:$4 sm:$0xff]   ;;  %v5315_v2 = vmul.f32 0.5, %v13532_v33 }
 0x496   :  { %v11993_v38 = vld [vmem:[#allocation15 + $0xce4] ss:$16 sps:$4 sm:$0xff]  }
 0x497   :  { %8853 = vmatpush2.bf16.msra.mxu0 %v11949_v17  ;;  %v13546_v49 = vpack.c.bf16 %v5570_v60, %v5554_v57  ;;  %v12720_v16 = vpop.eup %12719  ;;  %v11985_v17 = vld [vmem:[#allocation15 + $0x900] ss:$16 sps:$4 sm:$0xff]  }
 0x498   :  { %8896 = vmatpush2.bf16.msra.mxu1 %v11952_v59  ;;  %8854 = vmatprep.subr.bf16.mxu0 %v11957_v47  ;;  %v5539_v0 = vadd.f32 1.0, %v12720_v16  ;;  %v11996_v47 = vld [vmem:[#allocation15 + $0xee4] ss:$16 sps:$4 sm:$0xff]   ;;  %v11991_v57 = vld [vmem:[#allocation15 + $0xce0] ss:$16 sps:$4 sm:$0xff]  }
 0x499   :  { %8897 = vmatprep.subr.bf16.mxu1 %v11960_v7  ;;  %v11994_v60 = vld [vmem:[#allocation15 + $0xee0] ss:$16 sps:$4 sm:$0xff]   ;;  %v12011_v16 = vld [vmem:[#allocation15 + $0xc84] ss:$16 sps:$4 sm:$0xff]  }
 0x49a   :  { %v12722_v15 = vpop.eup %12721  ;;  %v5571_v7 = vmul.f32 %v5539_v0, %v5315_v2  ;;  %v12012_v2 = vld [vmem:[#allocation15 + $0xe80] ss:$16 sps:$4 sm:$0xff]  }
 0x49b   :  { %8855 = vmatpush2.bf16.msra.mxu0 %v11955_v10  ;;  %v5523_v59 = vadd.f32 1.0, %v12722_v15  ;;  %v12733_v10 = vld [vmem:[#allocation14 + $0x8] sm:$0xff] }
 0x49c   :  { %8898 = vmatpush2.bf16.msra.mxu1 %v11958_v62  ;;  %8856 = vmatprep.subr.bf16.mxu0 %v11963_v44  ;;  %v2021_v62 = vrot.slane %v12733_v10, %v1988_v54  ;;  %v11999_v44 = vld [vmem:[#allocation15 + $0xcc4] ss:$16 sps:$4 sm:$0xff]  }
 0x49d   :  { %8899 = vmatprep.subr.bf16.mxu1 %v11966_v61  ;;  %v5555_v26 = vmul.f32 %v5523_v59, %v5299_v9  ;;  %v12017_v59 = vld [vmem:[#allocation15 + $0xc64] ss:$16 sps:$4 sm:$0xff]  }
 0x49f   :  { %8857 = vmatpush2.bf16.msra.mxu0 %v11961_v29  ;;  %v13553_v61 = vpack.c.bf16 %v5571_v7, %v5555_v26  ;;  %v11997_v29 = vld [vmem:[#allocation15 + $0xcc0] ss:$16 sps:$4 sm:$0xff]  }
 0x4a0   :  { %8900 = vmatpush2.bf16.msra.mxu1 %v11964_v22  ;;  %8858 = vmatprep.subr.bf16.mxu0 %v11969_v6  ;;  %v12000_v6 = vld [vmem:[#allocation15 + $0xec0] ss:$16 sps:$4 sm:$0xff]  }
 0x4a1   :  { %8901 = vmatprep.subr.bf16.mxu1 %v11972_v1  ;;  %v12005_v1 = vld [vmem:[#allocation15 + $0xca4] ss:$16 sps:$4 sm:$0xff]   ;;  %v12015_v26 = vld [vmem:[#allocation15 + $0xc60] ss:$16 sps:$4 sm:$0xff]  }
 0x4a3   :  { %8859 = vmatpush2.bf16.msra.mxu0 %v11967_v32 }
 0x4a4   :  { %8902 = vmatpush2.bf16.msra.mxu1 %v11970_v45  ;;  %8860 = vmatprep.subr.bf16.mxu0 %v11975_v8  ;;  %v12008_v45 = vld [vmem:[#allocation15 + $0xea4] ss:$16 sps:$4 sm:$0xff]  }
 0x4a5   :  { %8903 = vmatprep.subr.bf16.mxu1 %v11978_v63 }
 0x4a7   :  { %8861 = vmatpush2.bf16.msra.mxu0 %v11973_v52 }
 0x4a8   :  { %8904 = vmatpush2.bf16.msra.mxu1 %v11976_v36  ;;  %8862 = vmatprep.subr.bf16.mxu0 %v11981_v37  ;;  %v12003_v36 = vld [vmem:[#allocation15 + $0xca0] ss:$16 sps:$4 sm:$0xff]  }
 0x4a9   :  { %8905 = vmatprep.subr.bf16.mxu1 %v11984_v40  ;;  %v12006_v40 = vld [vmem:[#allocation15 + $0xea0] ss:$16 sps:$4 sm:$0xff]  }
 0x4ab   :  { %8863 = vmatpush2.bf16.msra.mxu0 %v11979_v39 }
 0x4ac   :  { %8906 = vmatpush2.bf16.msra.mxu1 %v11982_v56  ;;  %8864 = vmatprep.subr.bf16.mxu0 %v11987_v5  ;;  %v12014_v5 = vld [vmem:[#allocation15 + $0xe84] ss:$16 sps:$4 sm:$0xff]  }
 0x4ad   :  { %8907 = vmatprep.subr.bf16.mxu1 %v11990_v34  ;;  %v13781_v34 = vsub.s32 6, %v13112_v50 }
 0x4af   :  { %8865 = vmatpush2.bf16.msra.mxu0 %v11985_v17  ;;  %v2017_v0 = vrot.slane %v12733_v10, %v13781_v34  ;;  %v12036_v34 = vld [vmem:[#allocation15 + $0xe00] ss:$16 sps:$4 sm:$0xff]  }
 0x4b0   :  { %8908 = vmatpush2.bf16.msra.mxu1 %v11988_v30  ;;  %8920 = vmatprep.subr.bf16.mxu0 %v11993_v38  ;;  %v12009_v38 = vld [vmem:[#allocation15 + $0xc80] ss:$16 sps:$4 sm:$0xff]  }
 0x4b1   :  { %8963 = vmatprep.subr.bf16.mxu1 %v11996_v47 }
 0x4b2   :  { %v5234_v33 = vpop.f32.mrf.mxu0  ;;  %8867 = vmatmul.mubr.bf16.vlgmr.msra.gmra.mxu0 %v13437_v13 }
 0x4b3   :  { %v5277_v53 = vpop.f32.mrf.mxu1  ;;  %8910 = vmatmul.mubr.bf16.vlgmr.msra.gmra.mxu1 %v13500_v31  ;;  %8921 = vmatpush1.bf16.msra.mxu0 %v11991_v57  ;;  %v12020_v57 = vld [vmem:[#allocation15 + $0xe64] ss:$16 sps:$4 sm:$0xff]  }
 0x4b4   :  { %8952 = vmatprep.mubr.bf16.mxu0 %v13553_v61  ;;  %8964 = vmatpush1.bf16.msra.mxu1 %v11994_v60  ;;  %v5236_v22 = vpop.f32.mrf.mxu0  ;;  %v5235_v60 = vadd.f32 %v5234_v33, %v2017_v0  ;;  %v12021_v33 = vld [vmem:[#allocation15 + $0xc40] ss:$16 sps:$4 sm:$0xff]  }
 0x4b5   :  { %v5237_v32 = vadd.f32 %v5236_v22, %v2021_v62  ;;  %v5279_v54 = vpop.f32.mrf.mxu1  ;;  %8922 = vmatprep.subr.bf16.mxu0 %v11999_v44  ;;  %8965 = vmatprep.subr.bf16.mxu1 %v12002_v3  ;;  %v12023_v44 = vld [vmem:[#allocation15 + $0xc44] ss:$16 sps:$4 sm:$0xff]  }
 0x4b6   :  { %v5238_v8 = vpop.f32.mrf.mxu0  ;;  %v12026_v22 = vld [vmem:[#allocation15 + $0xe44] ss:$16 sps:$4 sm:$0xff]  }
 0x4b7   :  { %v13557_v63 = vadd.f32 %v5279_v54, %v5237_v32  ;;  %v5281_v52 = vpop.f32.mrf.mxu1  ;;  %8923 = vmatpush1.bf16.msra.mxu0 %v11997_v29  ;;  %v5239_v9 = vadd.f32 %v5238_v8, %v2017_v0  ;;  %v12024_v54 = vld [vmem:[#allocation15 + $0xe40] ss:$16 sps:$4 sm:$0xff]   ;;  %v12041_v0 = vld [vmem:[#allocation15 + $0xde4] ss:$16 sps:$4 sm:$0xff]  }
 0x4b8   :  { %8966 = vmatpush1.bf16.msra.mxu1 %v12000_v6  ;;  %v5240_v37 = vpop.f32.mrf.mxu0  ;;  %8924 = vmatprep.subr.bf16.mxu0 %v12005_v1  ;;  %v13572_v1 = vadd.f32 %v5277_v53, %v5235_v60  ;;  %v12030_v53 = vld [vmem:[#allocation15 + $0xe20] ss:$16 sps:$4 sm:$0xff]   ;;  %v12050_v60 = vld [vmem:[#allocation15 + $0xfc4] ss:$16 sps:$4 sm:$0xff]  }
 0x4b9   :  { %v5333_v39 = vmul.f32 0.044715, %v13557_v63  ;;  %v5241_v56 = vadd.f32 %v5240_v37, %v2021_v62  ;;  %8967 = vmatprep.subr.bf16.mxu1 %v12008_v45  ;;  %v5283_v15 = vpop.f32.mrf.mxu1  ;;  %v12018_v62 = vld [vmem:[#allocation15 + $0xe60] ss:$16 sps:$4 sm:$0xff]   ;;  %v13569_v3 = vadd.f32 %v5281_v52, %v5239_v9  ;;  %v12029_v45 = vld [vmem:[#allocation15 + $0xc24] ss:$16 sps:$4 sm:$0xff]  }
 0x4ba   :  { %v12032_v52 = vld [vmem:[#allocation15 + $0xe24] ss:$16 sps:$4 sm:$0xff]   ;;  %v5332_v37 = vmul.f32 0.044715, %v13572_v1  ;;  %v12042_v9 = vld [vmem:[#allocation15 + $0xfe0] ss:$16 sps:$4 sm:$0xff]  }
 0x4bb   :  { %v5365_v17 = vmul.f32 %v5333_v39, %v13557_v63  ;;  %v13563_v30 = vadd.f32 %v5283_v15, %v5241_v56  ;;  %8925 = vmatpush1.bf16.msra.mxu0 %v12003_v36  ;;  %v5348_v8 = vmul.f32 0.044715, %v13569_v3  ;;  %v12038_v56 = vld [vmem:[#allocation15 + $0xe04] ss:$16 sps:$4 sm:$0xff]   ;;  %v12033_v15 = vld [vmem:[#allocation15 + $0xc00] ss:$16 sps:$4 sm:$0xff]  }
 0x4bc   :  { %8968 = vmatpush1.bf16.msra.mxu1 %v12006_v40  ;;  %8926 = vmatprep.subr.bf16.mxu0 %v12011_v16  ;;  %v12027_v40 = vld [vmem:[#allocation15 + $0xc20] ss:$16 sps:$4 sm:$0xff]   ;;  %v12035_v16 = vld [vmem:[#allocation15 + $0xc04] ss:$16 sps:$4 sm:$0xff]  }
 0x4bd   :  { %v5397_v47 = vmul.f32 %v5365_v17, %v13557_v63  ;;  %v5349_v7 = vmul.f32 0.044715, %v13563_v30  ;;  %8969 = vmatprep.subr.bf16.mxu1 %v12014_v5  ;;  %v5380_v39 = vmul.f32 %v5348_v8, %v13569_v3  ;;  %v5364_v5 = vmul.f32 %v5332_v37, %v13572_v1  ;;  %v12051_v8 = vld [vmem:[#allocation15 + $0xda0] ss:$16 sps:$4 sm:$0xff]  }
 0x4be   :  { %v12054_v37 = vld [vmem:[#allocation15 + $0xfa0] ss:$16 sps:$4 sm:$0xff]  }
 0x4bf   :  { %v5381_v50 = vmul.f32 %v5349_v7, %v13563_v30  ;;  %8927 = vmatpush1.bf16.msra.mxu0 %v12009_v38  ;;  %v5429_v10 = vadd.f32 %v5397_v47, %v13557_v63  ;;  %v5412_v17 = vmul.f32 %v5380_v39, %v13569_v3  ;;  %v12044_v38 = vld [vmem:[#allocation15 + $0xfe4] ss:$16 sps:$4 sm:$0xff]  }
 0x4c0   :  { %8970 = vmatpush1.bf16.msra.mxu1 %v12012_v2  ;;  %8928 = vmatprep.subr.bf16.mxu0 %v12017_v59  ;;  %v5396_v2 = vmul.f32 %v5364_v5, %v13572_v1  ;;  %v12039_v59 = vld [vmem:[#allocation15 + $0xde0] ss:$16 sps:$4 sm:$0xff]   ;;  %v12047_v7 = vld [vmem:[#allocation15 + $0xdc4] ss:$16 sps:$4 sm:$0xff]  }
 0x4c1   :  { %v5413_v29 = vmul.f32 %v5381_v50, %v13563_v30  ;;  %8971 = vmatprep.subr.bf16.mxu1 %v12020_v57  ;;  %v5461_v6 = vmul.f32 0.7978846, %v5429_v10  ;;  %v5444_v57 = vadd.f32 %v5412_v17, %v13569_v3  ;;  %v12065_v39 = vld [vmem:[#allocation15 + $0xd64] ss:$16 sps:$4 sm:$0xff]   ;;  %v12063_v5 = vld [vmem:[#allocation15 + $0xd60] ss:$16 sps:$4 sm:$0xff]  }
 0x4c2   :  { %v5428_v50 = vadd.f32 %v5396_v2, %v13572_v1  ;;  %v12069_v17 = vld [vmem:[#allocation15 + $0xd40] ss:$16 sps:$4 sm:$0xff]   ;;  %v12077_v2 = vld [vmem:[#allocation15 + $0xd24] ss:$16 sps:$4 sm:$0xff]  }
 0x4c3   :  { %8929 = vmatpush1.bf16.msra.mxu0 %v12015_v26  ;;  %v5445_v32 = vadd.f32 %v5413_v29, %v13563_v30  ;;  %12723 = vtanh.f32 %v5461_v6  ;;  %v12045_v26 = vld [vmem:[#allocation15 + $0xdc0] ss:$16 sps:$4 sm:$0xff]   ;;  %v12053_v29 = vld [vmem:[#allocation15 + $0xda4] ss:$16 sps:$4 sm:$0xff]   ;;  %v5476_v6 = vmul.f32 0.7978846, %v5444_v57 }
 0x4c4   :  { %8972 = vmatpush1.bf16.msra.mxu1 %v12018_v62  ;;  %8930 = vmatprep.subr.bf16.mxu0 %v12023_v44  ;;  %v12048_v44 = vld [vmem:[#allocation15 + $0xfc0] ss:$16 sps:$4 sm:$0xff]  }
 0x4c5   :  { %8973 = vmatprep.subr.bf16.mxu1 %v12026_v22  ;;  %v5477_v36 = vmul.f32 0.7978846, %v5445_v32  ;;  %v12056_v22 = vld [vmem:[#allocation15 + $0xfa4] ss:$16 sps:$4 sm:$0xff]   ;;  %v5317_v32 = vmul.f32 0.5, %v13563_v30 }
 0x4c6   :  { %v12060_v30 = vld [vmem:[#allocation15 + $0xf80] ss:$16 sps:$4 sm:$0xff]  }
 0x4c7   :  { %8931 = vmatpush1.bf16.msra.mxu0 %v12021_v33  ;;  %12725 = vtanh.f32 %v5477_v36  ;;  %v5301_v33 = vmul.f32 0.5, %v13557_v63  ;;  %v12057_v63 = vld [vmem:[#allocation15 + $0xd80] ss:$16 sps:$4 sm:$0xff]  }
 0x4c8   :  { %8974 = vmatpush1.bf16.msra.mxu1 %v12024_v54  ;;  %8932 = vmatprep.subr.bf16.mxu0 %v12029_v45  ;;  %v5460_v45 = vmul.f32 0.7978846, %v5428_v50  ;;  %12727 = vtanh.f32 %v5476_v6  ;;  %v12078_v57 = vld [vmem:[#allocation15 + $0xf20] ss:$16 sps:$4 sm:$0xff]   ;;  %v12086_v50 = vld [vmem:[#allocation15 + $0xf04] ss:$16 sps:$4 sm:$0xff]  }
 0x4c9   :  { %8975 = vmatprep.subr.bf16.mxu1 %v12032_v52  ;;  %v5300_v6 = vmul.f32 0.5, %v13572_v1  ;;  %v12096_v1 = vld [vmem:[#allocation15 + $0x2c8] ss:$16 sps:$4 sm:$0xff]  }
 0x4ca   :  { %12729 = vtanh.f32 %v5460_v45  ;;  %v12087_v45 = vld [vmem:[#allocation15 + $0xe8] ss:$16 sps:$4 sm:$0xff]  }
 0x4cb   :  { %8933 = vmatpush1.bf16.msra.mxu0 %v12027_v40  ;;  %v12059_v40 = vld [vmem:[#allocation15 + $0xd84] ss:$16 sps:$4 sm:$0xff]  }
 0x4cc   :  { %8976 = vmatpush1.bf16.msra.mxu1 %v12030_v53  ;;  %8934 = vmatprep.subr.bf16.mxu0 %v12035_v16  ;;  %v12062_v16 = vld [vmem:[#allocation15 + $0xf84] ss:$16 sps:$4 sm:$0xff]  }
 0x4cd   :  { %8977 = vmatprep.subr.bf16.mxu1 %v12038_v56  ;;  %v12068_v56 = vld [vmem:[#allocation15 + $0xf64] ss:$16 sps:$4 sm:$0xff]  }
 0x4cf   :  { %8935 = vmatpush1.bf16.msra.mxu0 %v12033_v15  ;;  %v12066_v15 = vld [vmem:[#allocation15 + $0xf60] ss:$16 sps:$4 sm:$0xff]  }
 0x4d0   :  { %v12724_v47 = vpop.eup %12723  ;;  %8978 = vmatpush1.bf16.msra.mxu1 %v12036_v34  ;;  %8936 = vmatprep.subr.bf16.mxu0 %v12041_v0  ;;  %v12071_v34 = vld [vmem:[#allocation15 + $0xd44] ss:$16 sps:$4 sm:$0xff]  }
 0x4d1   :  { %8979 = vmatprep.subr.bf16.mxu1 %v12044_v38  ;;  %v5525_v10 = vadd.f32 1.0, %v12724_v47  ;;  %v12074_v0 = vld [vmem:[#allocation15 + $0xf44] ss:$16 sps:$4 sm:$0xff]   ;;  %v12072_v38 = vld [vmem:[#allocation15 + $0xf40] ss:$16 sps:$4 sm:$0xff]  }
 0x4d3   :  { %8937 = vmatpush2.bf16.msra.mxu0 %v12039_v59  ;;  %v5557_v52 = vmul.f32 %v5525_v10, %v5301_v33  ;;  %v12080_v59 = vld [vmem:[#allocation15 + $0xf24] ss:$16 sps:$4 sm:$0xff]   ;;  %v12081_v10 = vld [vmem:[#allocation15 + $0xd00] ss:$16 sps:$4 sm:$0xff]  }
 0x4d4   :  { %v12726_v62 = vpop.eup %12725  ;;  %8980 = vmatpush2.bf16.msra.mxu1 %v12042_v9  ;;  %8938 = vmatprep.subr.bf16.mxu0 %v12047_v7  ;;  %v12075_v9 = vld [vmem:[#allocation15 + $0xd20] ss:$16 sps:$4 sm:$0xff]  }
 0x4d5   :  { %8981 = vmatprep.subr.bf16.mxu1 %v12050_v60  ;;  %v5541_v54 = vadd.f32 1.0, %v12726_v62  ;;  %v12728_v47 = vpop.eup %12727  ;;  %v12083_v60 = vld [vmem:[#allocation15 + $0xd04] ss:$16 sps:$4 sm:$0xff]   ;;  %v5316_v62 = vmul.f32 0.5, %v13569_v3  ;;  %v12095_v3 = vld [vmem:[#allocation15 + $0xcc] ss:$16 sps:$4 sm:$0xff]  }
 0x4d7   :  { %8939 = vmatpush2.bf16.msra.mxu0 %v12045_v26  ;;  %v5573_v36 = vmul.f32 %v5541_v54, %v5317_v32  ;;  %v12730_v7 = vpop.eup %12729  ;;  %v5540_v26 = vadd.f32 1.0, %v12728_v47  ;;  %v12092_v32 = vld [vmem:[#allocation15 + $0x2ec] ss:$16 sps:$4 sm:$0xff]  }
 0x4d8   :  { %8982 = vmatpush2.bf16.msra.mxu1 %v12048_v44  ;;  %8940 = vmatprep.subr.bf16.mxu0 %v12053_v29  ;;  %v5524_v44 = vadd.f32 1.0, %v12730_v7  ;;  %v12084_v29 = vld [vmem:[#allocation15 + $0xf00] ss:$16 sps:$4 sm:$0xff]   ;;  %v12125_v47 = vld [vmem:[#allocation15 + $0x2c] ss:$16 sps:$4 sm:$0xff]  }
 0x4d9   :  { %8983 = vmatprep.subr.bf16.mxu1 %v12056_v22  ;;  %v13585_v53 = vpack.c.bf16 %v5573_v36, %v5557_v52  ;;  %v12089_v22 = vld [vmem:[#allocation15 + $0xec] ss:$16 sps:$4 sm:$0xff]   ;;  %v5572_v33 = vmul.f32 %v5540_v26, %v5316_v62  ;;  %v12123_v7 = vld [vmem:[#allocation15 + $0x28] ss:$16 sps:$4 sm:$0xff]  }
 0x4da   :  { %v5556_v54 = vmul.f32 %v5524_v44, %v5300_v6  ;;  %v12098_v36 = vld [vmem:[#allocation15 + $0x2cc] ss:$16 sps:$4 sm:$0xff]   ;;  %v12129_v26 = vld [vmem:[#allocation15 + $0x8] ss:$16 sps:$4 sm:$0xff]  }
 0x4db   :  { %8941 = vmatpush2.bf16.msra.mxu0 %v12051_v8  ;;  %8995 = vmatprep.mubr.bf16.mxu1 %v13585_v53  ;;  %v12090_v8 = vld [vmem:[#allocation15 + $0x2e8] ss:$16 sps:$4 sm:$0xff]   ;;  %v12137_v62 = vld [vmem:[#allocation15 + $0x1ec] ss:$16 sps:$4 sm:$0xff]  }
 0x4dc   :  { %8984 = vmatpush2.bf16.msra.mxu1 %v12054_v37  ;;  %8942 = vmatprep.subr.bf16.mxu0 %v12059_v40  ;;  %v13590_v52 = vpack.c.bf16 %v5572_v33, %v5556_v54  ;;  %v12093_v37 = vld [vmem:[#allocation15 + $0xc8] ss:$16 sps:$4 sm:$0xff]   ;;  %v12101_v40 = vld [vmem:[#allocation15 + $0xac] ss:$16 sps:$4 sm:$0xff]  }
 0x4dd   :  { %8985 = vmatprep.subr.bf16.mxu1 %v12062_v16  ;;  %v12104_v16 = vld [vmem:[#allocation15 + $0x2ac] ss:$16 sps:$4 sm:$0xff]   ;;  %v12144_v54 = vld [vmem:[#allocation15 + $0x3c8] ss:$16 sps:$4 sm:$0xff]  }
 0x4de   :  { %v12140_v44 = vld [vmem:[#allocation15 + $0x3ec] ss:$16 sps:$4 sm:$0xff]  }
 0x4df   :  { %8943 = vmatpush2.bf16.msra.mxu0 %v12057_v63  ;;  %v12099_v63 = vld [vmem:[#allocation15 + $0xa8] ss:$16 sps:$4 sm:$0xff]   ;;  %v12143_v6 = vld [vmem:[#allocation15 + $0x1cc] ss:$16 sps:$4 sm:$0xff]  }
 0x4e0   :  { %8986 = vmatpush2.bf16.msra.mxu1 %v12060_v30  ;;  %8944 = vmatprep.subr.bf16.mxu0 %v12065_v39  ;;  %v12102_v30 = vld [vmem:[#allocation15 + $0x2a8] ss:$16 sps:$4 sm:$0xff]   ;;  %v12107_v39 = vld [vmem:[#allocation15 + $0x8c] ss:$16 sps:$4 sm:$0xff]  }
 0x4e1   :  { %8987 = vmatprep.subr.bf16.mxu1 %v12068_v56  ;;  %v12110_v56 = vld [vmem:[#allocation15 + $0x28c] ss:$16 sps:$4 sm:$0xff]  }
 0x4e2   :  { %v12146_v33 = vld [vmem:[#allocation15 + $0x3cc] ss:$16 sps:$4 sm:$0xff]  }
 0x4e3   :  { %8945 = vmatpush2.bf16.msra.mxu0 %v12063_v5  ;;  %v12105_v5 = vld [vmem:[#allocation15 + $0x88] ss:$16 sps:$4 sm:$0xff]  }
 0x4e4   :  { %8988 = vmatpush2.bf16.msra.mxu1 %v12066_v15  ;;  %8946 = vmatprep.subr.bf16.mxu0 %v12071_v34  ;;  %v12113_v15 = vld [vmem:[#allocation15 + $0x6c] ss:$16 sps:$4 sm:$0xff]  }
 0x4e5   :  { %8989 = vmatprep.subr.bf16.mxu1 %v12074_v0  ;;  %v12116_v34 = vld [vmem:[#allocation15 + $0x26c] ss:$16 sps:$4 sm:$0xff]   ;;  %v12114_v0 = vld [vmem:[#allocation15 + $0x268] ss:$16 sps:$4 sm:$0xff]  }
 0x4e7   :  { %8947 = vmatpush2.bf16.msra.mxu0 %v12069_v17  ;;  %v12119_v17 = vld [vmem:[#allocation15 + $0x4c] ss:$16 sps:$4 sm:$0xff]  }
 0x4e8   :  { %8990 = vmatpush2.bf16.msra.mxu1 %v12072_v38  ;;  %8948 = vmatprep.subr.bf16.mxu0 %v12077_v2  ;;  %v12122_v38 = vld [vmem:[#allocation15 + $0x24c] ss:$16 sps:$4 sm:$0xff]   ;;  %v12117_v2 = vld [vmem:[#allocation15 + $0x48] ss:$16 sps:$4 sm:$0xff]  }
 0x4e9   :  { %8991 = vmatprep.subr.bf16.mxu1 %v12080_v59  ;;  %v12120_v59 = vld [vmem:[#allocation15 + $0x248] ss:$16 sps:$4 sm:$0xff]  }
 0x4eb   :  { %8949 = vmatpush2.bf16.msra.mxu0 %v12075_v9  ;;  %v12128_v9 = vld [vmem:[#allocation15 + $0x22c] ss:$16 sps:$4 sm:$0xff]  }
 0x4ec   :  { %8992 = vmatpush2.bf16.msra.mxu1 %v12078_v57  ;;  %8950 = vmatprep.subr.bf16.mxu0 %v12083_v60  ;;  %v12126_v57 = vld [vmem:[#allocation15 + $0x228] ss:$16 sps:$4 sm:$0xff]   ;;  %v12131_v60 = vld [vmem:[#allocation15 + $0xc] ss:$16 sps:$4 sm:$0xff]  }
 0x4ed   :  { %8993 = vmatprep.subr.bf16.mxu1 %v12086_v50  ;;  %v12134_v50 = vld [vmem:[#allocation15 + $0x20c] ss:$16 sps:$4 sm:$0xff]  }
 0x4ef   :  { %8951 = vmatpush2.bf16.msra.mxu0 %v12081_v10  ;;  %v12132_v10 = vld [vmem:[#allocation15 + $0x208] ss:$16 sps:$4 sm:$0xff]  }
 0x4f0   :  { %8994 = vmatpush2.bf16.msra.mxu1 %v12084_v29  ;;  %9006 = vmatprep.subr.bf16.mxu0 %v12089_v22  ;;  %v12135_v29 = vld [vmem:[#allocation15 + $0x1e8] ss:$16 sps:$4 sm:$0xff]  }
 0x4f1   :  { %9049 = vmatprep.subr.bf16.mxu1 %v12092_v32  ;;  %v12138_v22 = vld [vmem:[#allocation15 + $0x3e8] ss:$16 sps:$4 sm:$0xff]  }
 0x4f2   :  { %8953 = vmatmul.mubr.bf16.vlgmr.msra.gmra.mxu0 %v13546_v49  ;;  %v12141_v32 = vld [vmem:[#allocation15 + $0x1c8] ss:$16 sps:$4 sm:$0xff]  }
 0x4f3   :  { %8996 = vmatmul.mubr.bf16.vlgmr.msra.gmra.mxu1 %v13590_v52  ;;  %9007 = vmatpush1.bf16.msra.mxu0 %v12087_v45  ;;  %v12149_v45 = vld [vmem:[#allocation15 + $0x1ac] ss:$16 sps:$4 sm:$0xff]  }
 0x4f4   :  { %9038 = vmatprep.mubr.bf16.mxu0 %v13373_v20  ;;  %9050 = vmatpush1.bf16.msra.mxu1 %v12090_v8  ;;  %v12108_v20 = vld [vmem:[#allocation15 + $0x288] ss:$16 sps:$4 sm:$0xff]   ;;  %v12152_v8 = vld [vmem:[#allocation15 + $0x3ac] ss:$16 sps:$4 sm:$0xff]  }
 0x4f5   :  { %9081 = vmatprep.mubr.bf16.mxu1 %v13376_v12  ;;  %9008 = vmatprep.subr.bf16.mxu0 %v12095_v3  ;;  %v12111_v12 = vld [vmem:[#allocation15 + $0x68] ss:$16 sps:$4 sm:$0xff]  }
 0x4f6   :  { %9051 = vmatprep.subr.bf16.mxu1 %v12098_v36  ;;  %v12147_v3 = vld [vmem:[#allocation15 + $0x1a8] ss:$16 sps:$4 sm:$0xff]  }
 0x4f7   :  { %9009 = vmatpush1.bf16.msra.mxu0 %v12093_v37  ;;  %v12150_v36 = vld [vmem:[#allocation15 + $0x3a8] ss:$16 sps:$4 sm:$0xff]   ;;  %v12155_v37 = vld [vmem:[#allocation15 + $0x18c] ss:$16 sps:$4 sm:$0xff]  }
 0x4f8   :  { %9052 = vmatpush1.bf16.msra.mxu1 %v12096_v1  ;;  %9010 = vmatprep.subr.bf16.mxu0 %v12101_v40  ;;  %v12158_v1 = vld [vmem:[#allocation15 + $0x38c] ss:$16 sps:$4 sm:$0xff]   ;;  %v12153_v40 = vld [vmem:[#allocation15 + $0x188] ss:$16 sps:$4 sm:$0xff]  }
 0x4f9   :  { %9053 = vmatprep.subr.bf16.mxu1 %v12104_v16  ;;  %v12156_v16 = vld [vmem:[#allocation15 + $0x388] ss:$16 sps:$4 sm:$0xff]  }
 0x4fb   :  { %9011 = vmatpush1.bf16.msra.mxu0 %v12099_v63  ;;  %v12161_v63 = vld [vmem:[#allocation15 + $0x16c] ss:$16 sps:$4 sm:$0xff]  }
 0x4fc   :  { %9054 = vmatpush1.bf16.msra.mxu1 %v12102_v30  ;;  %9012 = vmatprep.subr.bf16.mxu0 %v12107_v39  ;;  %v12164_v30 = vld [vmem:[#allocation15 + $0x36c] ss:$16 sps:$4 sm:$0xff]   ;;  %v12159_v39 = vld [vmem:[#allocation15 + $0x168] ss:$16 sps:$4 sm:$0xff]  }
 0x4fd   :  { %9055 = vmatprep.subr.bf16.mxu1 %v12110_v56  ;;  %v12162_v56 = vld [vmem:[#allocation15 + $0x368] ss:$16 sps:$4 sm:$0xff]  }
 0x4ff   :  { %9013 = vmatpush1.bf16.msra.mxu0 %v12105_v5  ;;  %v12167_v5 = vld [vmem:[#allocation15 + $0x14c] ss:$16 sps:$4 sm:$0xff]  }
 0x500   :  { %9056 = vmatpush1.bf16.msra.mxu1 %v12108_v20  ;;  %9014 = vmatprep.subr.bf16.mxu0 %v12113_v15  ;;  %v12170_v20 = vld [vmem:[#allocation15 + $0x34c] ss:$16 sps:$4 sm:$0xff]   ;;  %v12165_v15 = vld [vmem:[#allocation15 + $0x148] ss:$16 sps:$4 sm:$0xff]  }
 0x501   :  { %9057 = vmatprep.subr.bf16.mxu1 %v12116_v34  ;;  %v12168_v34 = vld [vmem:[#allocation15 + $0x348] ss:$16 sps:$4 sm:$0xff]  }
 0x503   :  { %9015 = vmatpush1.bf16.msra.mxu0 %v12111_v12  ;;  %v12173_v12 = vld [vmem:[#allocation15 + $0x12c] ss:$16 sps:$4 sm:$0xff]  }
 0x504   :  { %9058 = vmatpush1.bf16.msra.mxu1 %v12114_v0  ;;  %9016 = vmatprep.subr.bf16.mxu0 %v12119_v17  ;;  %v12176_v0 = vld [vmem:[#allocation15 + $0x32c] ss:$16 sps:$4 sm:$0xff]   ;;  %v12171_v17 = vld [vmem:[#allocation15 + $0x128] ss:$16 sps:$4 sm:$0xff]  }
 0x505   :  { %9059 = vmatprep.subr.bf16.mxu1 %v12122_v38  ;;  %v12174_v38 = vld [vmem:[#allocation15 + $0x328] ss:$16 sps:$4 sm:$0xff]  }
 0x507   :  { %9017 = vmatpush1.bf16.msra.mxu0 %v12117_v2  ;;  %v12179_v2 = vld [vmem:[#allocation15 + $0x10c] ss:$16 sps:$4 sm:$0xff]  }
 0x508   :  { %9060 = vmatpush1.bf16.msra.mxu1 %v12120_v59  ;;  %9018 = vmatprep.subr.bf16.mxu0 %v12125_v47  ;;  %v12182_v59 = vld [vmem:[#allocation15 + $0x30c] ss:$16 sps:$4 sm:$0xff]   ;;  %v12177_v47 = vld [vmem:[#allocation15 + $0x108] ss:$16 sps:$4 sm:$0xff]  }
 0x509   :  { %9061 = vmatprep.subr.bf16.mxu1 %v12128_v9  ;;  %v12180_v9 = vld [vmem:[#allocation15 + $0x308] ss:$16 sps:$4 sm:$0xff]  }
 0x50b   :  { %9019 = vmatpush1.bf16.msra.mxu0 %v12123_v7  ;;  %v12185_v7 = vld [vmem:[#allocation15 + $0x4ec] ss:$16 sps:$4 sm:$0xff]  }
 0x50c   :  { %9062 = vmatpush1.bf16.msra.mxu1 %v12126_v57  ;;  %9020 = vmatprep.subr.bf16.mxu0 %v12131_v60  ;;  %v12188_v57 = vld [vmem:[#allocation15 + $0x6ec] ss:$16 sps:$4 sm:$0xff]   ;;  %v12183_v60 = vld [vmem:[#allocation15 + $0x4e8] ss:$16 sps:$4 sm:$0xff]  }
 0x50d   :  { %9063 = vmatprep.subr.bf16.mxu1 %v12134_v50  ;;  %v12186_v50 = vld [vmem:[#allocation15 + $0x6e8] ss:$16 sps:$4 sm:$0xff]  }
 0x50f   :  { %9021 = vmatpush1.bf16.msra.mxu0 %v12129_v26  ;;  %v12191_v26 = vld [vmem:[#allocation15 + $0x4cc] ss:$16 sps:$4 sm:$0xff]  }
 0x510   :  { %9064 = vmatpush1.bf16.msra.mxu1 %v12132_v10  ;;  %9022 = vmatprep.subr.bf16.mxu0 %v12137_v62  ;;  %v12194_v10 = vld [vmem:[#allocation15 + $0x6cc] ss:$16 sps:$4 sm:$0xff]   ;;  %v12189_v62 = vld [vmem:[#allocation15 + $0x4c8] ss:$16 sps:$4 sm:$0xff]  }
 0x511   :  { %9065 = vmatprep.subr.bf16.mxu1 %v12140_v44  ;;  %v12192_v44 = vld [vmem:[#allocation15 + $0x6c8] ss:$16 sps:$4 sm:$0xff]  }
 0x513   :  { %9023 = vmatpush2.bf16.msra.mxu0 %v12135_v29  ;;  %v12197_v29 = vld [vmem:[#allocation15 + $0x4ac] ss:$16 sps:$4 sm:$0xff]  }
 0x514   :  { %9066 = vmatpush2.bf16.msra.mxu1 %v12138_v22  ;;  %9024 = vmatprep.subr.bf16.mxu0 %v12143_v6  ;;  %v12200_v22 = vld [vmem:[#allocation15 + $0x6ac] ss:$16 sps:$4 sm:$0xff]   ;;  %v12195_v6 = vld [vmem:[#allocation15 + $0x4a8] ss:$16 sps:$4 sm:$0xff]  }
 0x515   :  { %9067 = vmatprep.subr.bf16.mxu1 %v12146_v33  ;;  %v12203_v33 = vld [vmem:[#allocation15 + $0x48c] ss:$16 sps:$4 sm:$0xff]  }
 0x517   :  { %9025 = vmatpush2.bf16.msra.mxu0 %v12141_v32  ;;  %v12201_v32 = vld [vmem:[#allocation15 + $0x488] ss:$16 sps:$4 sm:$0xff]  }
 0x518   :  { %9068 = vmatpush2.bf16.msra.mxu1 %v12144_v54  ;;  %9026 = vmatprep.subr.bf16.mxu0 %v12149_v45  ;;  %v12209_v54 = vld [vmem:[#allocation15 + $0x46c] ss:$16 sps:$4 sm:$0xff]  }
 0x519   :  { %9069 = vmatprep.subr.bf16.mxu1 %v12152_v8  ;;  %v12212_v45 = vld [vmem:[#allocation15 + $0x66c] ss:$16 sps:$4 sm:$0xff]   ;;  %v12210_v8 = vld [vmem:[#allocation15 + $0x668] ss:$16 sps:$4 sm:$0xff]  }
 0x51b   :  { %9027 = vmatpush2.bf16.msra.mxu0 %v12147_v3  ;;  %v12215_v3 = vld [vmem:[#allocation15 + $0x44c] ss:$16 sps:$4 sm:$0xff]  }
 0x51c   :  { %9070 = vmatpush2.bf16.msra.mxu1 %v12150_v36  ;;  %9028 = vmatprep.subr.bf16.mxu0 %v12155_v37  ;;  %v12218_v36 = vld [vmem:[#allocation15 + $0x64c] ss:$16 sps:$4 sm:$0xff]   ;;  %v12213_v37 = vld [vmem:[#allocation15 + $0x448] ss:$16 sps:$4 sm:$0xff]  }
 0x51d   :  { %9071 = vmatprep.subr.bf16.mxu1 %v12158_v1  ;;  %v12216_v1 = vld [vmem:[#allocation15 + $0x648] ss:$16 sps:$4 sm:$0xff]  }
 0x51f   :  { %9029 = vmatpush2.bf16.msra.mxu0 %v12153_v40  ;;  %v12221_v40 = vld [vmem:[#allocation15 + $0x42c] ss:$16 sps:$4 sm:$0xff]  }
 0x520   :  { %9072 = vmatpush2.bf16.msra.mxu1 %v12156_v16  ;;  %9030 = vmatprep.subr.bf16.mxu0 %v12161_v63  ;;  %v12224_v16 = vld [vmem:[#allocation15 + $0x62c] ss:$16 sps:$4 sm:$0xff]   ;;  %v12219_v63 = vld [vmem:[#allocation15 + $0x428] ss:$16 sps:$4 sm:$0xff]  }
 0x521   :  { %9073 = vmatprep.subr.bf16.mxu1 %v12164_v30  ;;  %v12222_v30 = vld [vmem:[#allocation15 + $0x628] ss:$16 sps:$4 sm:$0xff]  }
 0x523   :  { %9031 = vmatpush2.bf16.msra.mxu0 %v12159_v39  ;;  %v12227_v39 = vld [vmem:[#allocation15 + $0x40c] ss:$16 sps:$4 sm:$0xff]  }
 0x524   :  { %9074 = vmatpush2.bf16.msra.mxu1 %v12162_v56  ;;  %9032 = vmatprep.subr.bf16.mxu0 %v12167_v5  ;;  %v12230_v56 = vld [vmem:[#allocation15 + $0x60c] ss:$16 sps:$4 sm:$0xff]   ;;  %v12225_v5 = vld [vmem:[#allocation15 + $0x408] ss:$16 sps:$4 sm:$0xff]  }
 0x525   :  { %9075 = vmatprep.subr.bf16.mxu1 %v12170_v20  ;;  %v12228_v20 = vld [vmem:[#allocation15 + $0x608] ss:$16 sps:$4 sm:$0xff]  }
 0x527   :  { %9033 = vmatpush2.bf16.msra.mxu0 %v12165_v15  ;;  %v12233_v15 = vld [vmem:[#allocation15 + $0x5ec] ss:$16 sps:$4 sm:$0xff]  }
 0x528   :  { %9076 = vmatpush2.bf16.msra.mxu1 %v12168_v34  ;;  %9034 = vmatprep.subr.bf16.mxu0 %v12173_v12  ;;  %v12236_v34 = vld [vmem:[#allocation15 + $0x7ec] ss:$16 sps:$4 sm:$0xff]   ;;  %v12231_v12 = vld [vmem:[#allocation15 + $0x5e8] ss:$16 sps:$4 sm:$0xff]  }
 0x529   :  { %9077 = vmatprep.subr.bf16.mxu1 %v12176_v0  ;;  %v12234_v0 = vld [vmem:[#allocation15 + $0x7e8] ss:$16 sps:$4 sm:$0xff]  }
 0x52b   :  { %9035 = vmatpush2.bf16.msra.mxu0 %v12171_v17  ;;  %v12239_v17 = vld [vmem:[#allocation15 + $0x5cc] ss:$16 sps:$4 sm:$0xff]  }
 0x52c   :  { %9078 = vmatpush2.bf16.msra.mxu1 %v12174_v38  ;;  %9036 = vmatprep.subr.bf16.mxu0 %v12179_v2  ;;  %v12242_v38 = vld [vmem:[#allocation15 + $0x7cc] ss:$16 sps:$4 sm:$0xff]   ;;  %v12237_v2 = vld [vmem:[#allocation15 + $0x5c8] ss:$16 sps:$4 sm:$0xff]  }
 0x52d   :  { %9079 = vmatprep.subr.bf16.mxu1 %v12182_v59  ;;  %v12240_v59 = vld [vmem:[#allocation15 + $0x7c8] ss:$16 sps:$4 sm:$0xff]  }
 0x52f   :  { %9037 = vmatpush2.bf16.msra.mxu0 %v12177_v47  ;;  %v12245_v47 = vld [vmem:[#allocation15 + $0x5ac] ss:$16 sps:$4 sm:$0xff]  }
 0x530   :  { %9080 = vmatpush2.bf16.msra.mxu1 %v12180_v9  ;;  %9092 = vmatprep.subr.bf16.mxu0 %v12185_v7  ;;  %v12248_v9 = vld [vmem:[#allocation15 + $0x7ac] ss:$16 sps:$4 sm:$0xff]   ;;  %v12243_v7 = vld [vmem:[#allocation15 + $0x5a8] ss:$16 sps:$4 sm:$0xff]  }
 0x531   :  { %9135 = vmatprep.subr.bf16.mxu1 %v12188_v57  ;;  %v12246_v57 = vld [vmem:[#allocation15 + $0x7a8] ss:$16 sps:$4 sm:$0xff]  }
 0x532   :  { %9039 = vmatmul.mubr.bf16.vlgmr.msra.gmra.mxu0 %v13228_v41  ;;  %v12198_v41 = vld [vmem:[#allocation15 + $0x6a8] ss:$16 sps:$4 sm:$0xff]  }
 0x533   :  { %9082 = vmatmul.mubr.bf16.vlgmr.msra.gmra.mxu1 %v13258_v11  ;;  %9093 = vmatpush1.bf16.msra.mxu0 %v12183_v60  ;;  %v12206_v11 = vld [vmem:[#allocation15 + $0x68c] ss:$16 sps:$4 sm:$0xff]  }
 0x534   :  { %9124 = vmatprep.mubr.bf16.mxu0 %v13448_v25  ;;  %9136 = vmatpush1.bf16.msra.mxu1 %v12186_v50  ;;  %v12204_v25 = vld [vmem:[#allocation15 + $0x688] ss:$16 sps:$4 sm:$0xff]   ;;  %v12251_v60 = vld [vmem:[#allocation15 + $0x58c] ss:$16 sps:$4 sm:$0xff]  }
 0x535   :  { %9167 = vmatprep.mubr.bf16.mxu1 %v13451_v51  ;;  %9094 = vmatprep.subr.bf16.mxu0 %v12191_v26  ;;  %v12207_v51 = vld [vmem:[#allocation15 + $0x468] ss:$16 sps:$4 sm:$0xff]   ;;  %v12254_v50 = vld [vmem:[#allocation15 + $0x78c] ss:$16 sps:$4 sm:$0xff]  }
 0x536   :  { %9137 = vmatprep.subr.bf16.mxu1 %v12194_v10  ;;  %v12249_v26 = vld [vmem:[#allocation15 + $0x588] ss:$16 sps:$4 sm:$0xff]  }
 0x537   :  { %9095 = vmatpush1.bf16.msra.mxu0 %v12189_v62  ;;  %v12252_v10 = vld [vmem:[#allocation15 + $0x788] ss:$16 sps:$4 sm:$0xff]   ;;  %v12257_v62 = vld [vmem:[#allocation15 + $0x56c] ss:$16 sps:$4 sm:$0xff]  }
 0x538   :  { %9138 = vmatpush1.bf16.msra.mxu1 %v12192_v44  ;;  %9096 = vmatprep.subr.bf16.mxu0 %v12197_v29  ;;  %v12260_v44 = vld [vmem:[#allocation15 + $0x76c] ss:$16 sps:$4 sm:$0xff]   ;;  %v12255_v29 = vld [vmem:[#allocation15 + $0x568] ss:$16 sps:$4 sm:$0xff]  }
 0x539   :  { %9139 = vmatprep.subr.bf16.mxu1 %v12200_v22  ;;  %v12258_v22 = vld [vmem:[#allocation15 + $0x768] ss:$16 sps:$4 sm:$0xff]  }
 0x53b   :  { %9097 = vmatpush1.bf16.msra.mxu0 %v12195_v6  ;;  %v12263_v6 = vld [vmem:[#allocation15 + $0x54c] ss:$16 sps:$4 sm:$0xff]  }
 0x53c   :  { %9140 = vmatpush1.bf16.msra.mxu1 %v12198_v41  ;;  %9098 = vmatprep.subr.bf16.mxu0 %v12203_v33  ;;  %v12266_v41 = vld [vmem:[#allocation15 + $0x74c] ss:$16 sps:$4 sm:$0xff]   ;;  %v12261_v33 = vld [vmem:[#allocation15 + $0x548] ss:$16 sps:$4 sm:$0xff]  }
 0x53d   :  { %9141 = vmatprep.subr.bf16.mxu1 %v12206_v11  ;;  %v12264_v11 = vld [vmem:[#allocation15 + $0x748] ss:$16 sps:$4 sm:$0xff]  }
 0x53f   :  { %9099 = vmatpush1.bf16.msra.mxu0 %v12201_v32  ;;  %v12269_v32 = vld [vmem:[#allocation15 + $0x52c] ss:$16 sps:$4 sm:$0xff]  }
 0x540   :  { %9142 = vmatpush1.bf16.msra.mxu1 %v12204_v25  ;;  %9100 = vmatprep.subr.bf16.mxu0 %v12209_v54  ;;  %v12272_v25 = vld [vmem:[#allocation15 + $0x72c] ss:$16 sps:$4 sm:$0xff]   ;;  %v12267_v54 = vld [vmem:[#allocation15 + $0x528] ss:$16 sps:$4 sm:$0xff]  }
 0x541   :  { %9143 = vmatprep.subr.bf16.mxu1 %v12212_v45  ;;  %v12270_v45 = vld [vmem:[#allocation15 + $0x728] ss:$16 sps:$4 sm:$0xff]  }
 0x543   :  { %9101 = vmatpush1.bf16.msra.mxu0 %v12207_v51  ;;  %v12275_v51 = vld [vmem:[#allocation15 + $0x50c] ss:$16 sps:$4 sm:$0xff]  }
 0x544   :  { %9144 = vmatpush1.bf16.msra.mxu1 %v12210_v8  ;;  %9102 = vmatprep.subr.bf16.mxu0 %v12215_v3  ;;  %v12278_v8 = vld [vmem:[#allocation15 + $0x70c] ss:$16 sps:$4 sm:$0xff]   ;;  %v12273_v3 = vld [vmem:[#allocation15 + $0x508] ss:$16 sps:$4 sm:$0xff]  }
 0x545   :  { %9145 = vmatprep.subr.bf16.mxu1 %v12218_v36  ;;  %v12276_v36 = vld [vmem:[#allocation15 + $0x708] ss:$16 sps:$4 sm:$0xff]  }
 0x547   :  { %9103 = vmatpush1.bf16.msra.mxu0 %v12213_v37  ;;  %v12281_v37 = vld [vmem:[#allocation15 + $0x8ec] ss:$16 sps:$4 sm:$0xff]  }
 0x548   :  { %9146 = vmatpush1.bf16.msra.mxu1 %v12216_v1  ;;  %9104 = vmatprep.subr.bf16.mxu0 %v12221_v40  ;;  %v12284_v1 = vld [vmem:[#allocation15 + $0xaec] ss:$16 sps:$4 sm:$0xff]   ;;  %v12279_v40 = vld [vmem:[#allocation15 + $0x8e8] ss:$16 sps:$4 sm:$0xff]  }
 0x549   :  { %9147 = vmatprep.subr.bf16.mxu1 %v12224_v16  ;;  %v12282_v16 = vld [vmem:[#allocation15 + $0xae8] ss:$16 sps:$4 sm:$0xff]  }
 0x54b   :  { %9105 = vmatpush1.bf16.msra.mxu0 %v12219_v63  ;;  %v12287_v63 = vld [vmem:[#allocation15 + $0x8cc] ss:$16 sps:$4 sm:$0xff]  }
 0x54c   :  { %9148 = vmatpush1.bf16.msra.mxu1 %v12222_v30  ;;  %9106 = vmatprep.subr.bf16.mxu0 %v12227_v39  ;;  %v12290_v30 = vld [vmem:[#allocation15 + $0xacc] ss:$16 sps:$4 sm:$0xff]   ;;  %v12285_v39 = vld [vmem:[#allocation15 + $0x8c8] ss:$16 sps:$4 sm:$0xff]  }
 0x54d   :  { %9149 = vmatprep.subr.bf16.mxu1 %v12230_v56  ;;  %v12288_v56 = vld [vmem:[#allocation15 + $0xac8] ss:$16 sps:$4 sm:$0xff]  }
 0x54f   :  { %9107 = vmatpush1.bf16.msra.mxu0 %v12225_v5  ;;  %v12293_v5 = vld [vmem:[#allocation15 + $0x8ac] ss:$16 sps:$4 sm:$0xff]  }
 0x550   :  { %9150 = vmatpush1.bf16.msra.mxu1 %v12228_v20  ;;  %9108 = vmatprep.subr.bf16.mxu0 %v12233_v15  ;;  %v12296_v20 = vld [vmem:[#allocation15 + $0xaac] ss:$16 sps:$4 sm:$0xff]   ;;  %v12291_v15 = vld [vmem:[#allocation15 + $0x8a8] ss:$16 sps:$4 sm:$0xff]  }
 0x551   :  { %9151 = vmatprep.subr.bf16.mxu1 %v12236_v34  ;;  %v12299_v34 = vld [vmem:[#allocation15 + $0x88c] ss:$16 sps:$4 sm:$0xff]  }
 0x553   :  { %9109 = vmatpush2.bf16.msra.mxu0 %v12231_v12  ;;  %v12297_v12 = vld [vmem:[#allocation15 + $0x888] ss:$16 sps:$4 sm:$0xff]  }
 0x554   :  { %9152 = vmatpush2.bf16.msra.mxu1 %v12234_v0  ;;  %9110 = vmatprep.subr.bf16.mxu0 %v12239_v17  ;;  %v12305_v0 = vld [vmem:[#allocation15 + $0x86c] ss:$16 sps:$4 sm:$0xff]  }
 0x555   :  { %9153 = vmatprep.subr.bf16.mxu1 %v12242_v38  ;;  %v12308_v17 = vld [vmem:[#allocation15 + $0xa6c] ss:$16 sps:$4 sm:$0xff]   ;;  %v12306_v38 = vld [vmem:[#allocation15 + $0xa68] ss:$16 sps:$4 sm:$0xff]  }
 0x557   :  { %9111 = vmatpush2.bf16.msra.mxu0 %v12237_v2  ;;  %v12311_v2 = vld [vmem:[#allocation15 + $0x84c] ss:$16 sps:$4 sm:$0xff]  }
 0x558   :  { %9154 = vmatpush2.bf16.msra.mxu1 %v12240_v59  ;;  %9112 = vmatprep.subr.bf16.mxu0 %v12245_v47  ;;  %v12314_v59 = vld [vmem:[#allocation15 + $0xa4c] ss:$16 sps:$4 sm:$0xff]   ;;  %v12309_v47 = vld [vmem:[#allocation15 + $0x848] ss:$16 sps:$4 sm:$0xff]  }
 0x559   :  { %9155 = vmatprep.subr.bf16.mxu1 %v12248_v9  ;;  %v12312_v9 = vld [vmem:[#allocation15 + $0xa48] ss:$16 sps:$4 sm:$0xff]  }
 0x55b   :  { %9113 = vmatpush2.bf16.msra.mxu0 %v12243_v7  ;;  %v12317_v7 = vld [vmem:[#allocation15 + $0x82c] ss:$16 sps:$4 sm:$0xff]  }
 0x55c   :  { %9156 = vmatpush2.bf16.msra.mxu1 %v12246_v57  ;;  %9114 = vmatprep.subr.bf16.mxu0 %v12251_v60  ;;  %v12320_v57 = vld [vmem:[#allocation15 + $0xa2c] ss:$16 sps:$4 sm:$0xff]   ;;  %v12315_v60 = vld [vmem:[#allocation15 + $0x828] ss:$16 sps:$4 sm:$0xff]  }
 0x55d   :  { %9157 = vmatprep.subr.bf16.mxu1 %v12254_v50  ;;  %v12318_v50 = vld [vmem:[#allocation15 + $0xa28] ss:$16 sps:$4 sm:$0xff]  }
 0x55f   :  { %9115 = vmatpush2.bf16.msra.mxu0 %v12249_v26  ;;  %v12323_v26 = vld [vmem:[#allocation15 + $0x80c] ss:$16 sps:$4 sm:$0xff]  }
 0x560   :  { %9158 = vmatpush2.bf16.msra.mxu1 %v12252_v10  ;;  %9116 = vmatprep.subr.bf16.mxu0 %v12257_v62  ;;  %v12326_v10 = vld [vmem:[#allocation15 + $0xa0c] ss:$16 sps:$4 sm:$0xff]   ;;  %v12321_v62 = vld [vmem:[#allocation15 + $0x808] ss:$16 sps:$4 sm:$0xff]  }
 0x561   :  { %9159 = vmatprep.subr.bf16.mxu1 %v12260_v44  ;;  %v12324_v44 = vld [vmem:[#allocation15 + $0xa08] ss:$16 sps:$4 sm:$0xff]  }
 0x563   :  { %9117 = vmatpush2.bf16.msra.mxu0 %v12255_v29  ;;  %v12329_v29 = vld [vmem:[#allocation15 + $0x9ec] ss:$16 sps:$4 sm:$0xff]  }
 0x564   :  { %9160 = vmatpush2.bf16.msra.mxu1 %v12258_v22  ;;  %9118 = vmatprep.subr.bf16.mxu0 %v12263_v6  ;;  %v12332_v22 = vld [vmem:[#allocation15 + $0xbec] ss:$16 sps:$4 sm:$0xff]   ;;  %v12327_v6 = vld [vmem:[#allocation15 + $0x9e8] ss:$16 sps:$4 sm:$0xff]  }
 0x565   :  { %9161 = vmatprep.subr.bf16.mxu1 %v12266_v41  ;;  %v12330_v41 = vld [vmem:[#allocation15 + $0xbe8] ss:$16 sps:$4 sm:$0xff]  }
 0x567   :  { %9119 = vmatpush2.bf16.msra.mxu0 %v12261_v33  ;;  %v12335_v33 = vld [vmem:[#allocation15 + $0x9cc] ss:$16 sps:$4 sm:$0xff]  }
 0x568   :  { %9162 = vmatpush2.bf16.msra.mxu1 %v12264_v11  ;;  %9120 = vmatprep.subr.bf16.mxu0 %v12269_v32  ;;  %v12338_v11 = vld [vmem:[#allocation15 + $0xbcc] ss:$16 sps:$4 sm:$0xff]   ;;  %v12333_v32 = vld [vmem:[#allocation15 + $0x9c8] ss:$16 sps:$4 sm:$0xff]  }
 0x569   :  { %9163 = vmatprep.subr.bf16.mxu1 %v12272_v25  ;;  %v12336_v25 = vld [vmem:[#allocation15 + $0xbc8] ss:$16 sps:$4 sm:$0xff]  }
 0x56b   :  { %9121 = vmatpush2.bf16.msra.mxu0 %v12267_v54  ;;  %v12341_v54 = vld [vmem:[#allocation15 + $0x9ac] ss:$16 sps:$4 sm:$0xff]  }
 0x56c   :  { %9164 = vmatpush2.bf16.msra.mxu1 %v12270_v45  ;;  %9122 = vmatprep.subr.bf16.mxu0 %v12275_v51  ;;  %v12344_v45 = vld [vmem:[#allocation15 + $0xbac] ss:$16 sps:$4 sm:$0xff]   ;;  %v12339_v51 = vld [vmem:[#allocation15 + $0x9a8] ss:$16 sps:$4 sm:$0xff]  }
 0x56d   :  { %9165 = vmatprep.subr.bf16.mxu1 %v12278_v8  ;;  %v12342_v8 = vld [vmem:[#allocation15 + $0xba8] ss:$16 sps:$4 sm:$0xff]  }
 0x56f   :  { %9123 = vmatpush2.bf16.msra.mxu0 %v12273_v3  ;;  %v12347_v3 = vld [vmem:[#allocation15 + $0x98c] ss:$16 sps:$4 sm:$0xff]  }
 0x570   :  { %9166 = vmatpush2.bf16.msra.mxu1 %v12276_v36  ;;  %9178 = vmatprep.subr.bf16.mxu0 %v12281_v37  ;;  %v12350_v36 = vld [vmem:[#allocation15 + $0xb8c] ss:$16 sps:$4 sm:$0xff]   ;;  %v12345_v37 = vld [vmem:[#allocation15 + $0x988] ss:$16 sps:$4 sm:$0xff]  }
 0x571   :  { %9221 = vmatprep.subr.bf16.mxu1 %v12284_v1  ;;  %v12348_v1 = vld [vmem:[#allocation15 + $0xb88] ss:$16 sps:$4 sm:$0xff]  }
 0x572   :  { %9125 = vmatmul.mubr.bf16.vlgmr.msra.gmra.mxu0 %v13290_v46  ;;  %v12294_v46 = vld [vmem:[#allocation15 + $0xaa8] ss:$16 sps:$4 sm:$0xff]  }
 0x573   :  { %9168 = vmatmul.mubr.bf16.vlgmr.msra.gmra.mxu1 %v13360_v35  ;;  %9179 = vmatpush1.bf16.msra.mxu0 %v12279_v40  ;;  %v12302_v35 = vld [vmem:[#allocation15 + $0xa8c] ss:$16 sps:$4 sm:$0xff]  }
 0x574   :  { %9210 = vmatprep.mubr.bf16.mxu0 %v13510_v48  ;;  %9222 = vmatpush1.bf16.msra.mxu1 %v12282_v16  ;;  %v12300_v48 = vld [vmem:[#allocation15 + $0xa88] ss:$16 sps:$4 sm:$0xff]   ;;  %v12353_v40 = vld [vmem:[#allocation15 + $0x96c] ss:$16 sps:$4 sm:$0xff]  }
 0x575   :  { %9253 = vmatprep.mubr.bf16.mxu1 %v13513_v21  ;;  %9180 = vmatprep.subr.bf16.mxu0 %v12287_v63  ;;  %v12303_v21 = vld [vmem:[#allocation15 + $0x868] ss:$16 sps:$4 sm:$0xff]   ;;  %v12356_v16 = vld [vmem:[#allocation15 + $0xb6c] ss:$16 sps:$4 sm:$0xff]  }
 0x576   :  { %9223 = vmatprep.subr.bf16.mxu1 %v12290_v30  ;;  %v12351_v63 = vld [vmem:[#allocation15 + $0x968] ss:$16 sps:$4 sm:$0xff]  }
 0x577   :  { %9181 = vmatpush1.bf16.msra.mxu0 %v12285_v39  ;;  %v12354_v30 = vld [vmem:[#allocation15 + $0xb68] ss:$16 sps:$4 sm:$0xff]   ;;  %v12359_v39 = vld [vmem:[#allocation15 + $0x94c] ss:$16 sps:$4 sm:$0xff]  }
 0x578   :  { %9224 = vmatpush1.bf16.msra.mxu1 %v12288_v56  ;;  %9182 = vmatprep.subr.bf16.mxu0 %v12293_v5  ;;  %v12362_v56 = vld [vmem:[#allocation15 + $0xb4c] ss:$16 sps:$4 sm:$0xff]   ;;  %v12357_v5 = vld [vmem:[#allocation15 + $0x948] ss:$16 sps:$4 sm:$0xff]  }
 0x579   :  { %9225 = vmatprep.subr.bf16.mxu1 %v12296_v20  ;;  %v12360_v20 = vld [vmem:[#allocation15 + $0xb48] ss:$16 sps:$4 sm:$0xff]  }
 0x57b   :  { %9183 = vmatpush1.bf16.msra.mxu0 %v12291_v15  ;;  %v12365_v15 = vld [vmem:[#allocation15 + $0x92c] ss:$16 sps:$4 sm:$0xff]  }
 0x57c   :  { %9226 = vmatpush1.bf16.msra.mxu1 %v12294_v46  ;;  %9184 = vmatprep.subr.bf16.mxu0 %v12299_v34  ;;  %v12368_v46 = vld [vmem:[#allocation15 + $0xb2c] ss:$16 sps:$4 sm:$0xff]   ;;  %v12363_v34 = vld [vmem:[#allocation15 + $0x928] ss:$16 sps:$4 sm:$0xff]  }
 0x57d   :  { %9227 = vmatprep.subr.bf16.mxu1 %v12302_v35  ;;  %v12366_v35 = vld [vmem:[#allocation15 + $0xb28] ss:$16 sps:$4 sm:$0xff]  }
 0x57f   :  { %9185 = vmatpush1.bf16.msra.mxu0 %v12297_v12  ;;  %v12371_v12 = vld [vmem:[#allocation15 + $0x90c] ss:$16 sps:$4 sm:$0xff]  }
 0x580   :  { %9228 = vmatpush1.bf16.msra.mxu1 %v12300_v48  ;;  %9186 = vmatprep.subr.bf16.mxu0 %v12305_v0  ;;  %v12374_v48 = vld [vmem:[#allocation15 + $0xb0c] ss:$16 sps:$4 sm:$0xff]   ;;  %v12369_v0 = vld [vmem:[#allocation15 + $0x908] ss:$16 sps:$4 sm:$0xff]  }
 0x581   :  { %9229 = vmatprep.subr.bf16.mxu1 %v12308_v17  ;;  %v12372_v17 = vld [vmem:[#allocation15 + $0xb08] ss:$16 sps:$4 sm:$0xff]  }
 0x583   :  { %9187 = vmatpush1.bf16.msra.mxu0 %v12303_v21  ;;  %v12377_v21 = vld [vmem:[#allocation15 + $0xcec] ss:$16 sps:$4 sm:$0xff]  }
 0x584   :  { %9230 = vmatpush1.bf16.msra.mxu1 %v12306_v38  ;;  %9188 = vmatprep.subr.bf16.mxu0 %v12311_v2  ;;  %v12380_v38 = vld [vmem:[#allocation15 + $0xeec] ss:$16 sps:$4 sm:$0xff]   ;;  %v12375_v2 = vld [vmem:[#allocation15 + $0xce8] ss:$16 sps:$4 sm:$0xff]  }
 0x585   :  { %9231 = vmatprep.subr.bf16.mxu1 %v12314_v59  ;;  %v12378_v59 = vld [vmem:[#allocation15 + $0xee8] ss:$16 sps:$4 sm:$0xff]  }
 0x587   :  { %9189 = vmatpush1.bf16.msra.mxu0 %v12309_v47  ;;  %v12383_v47 = vld [vmem:[#allocation15 + $0xccc] ss:$16 sps:$4 sm:$0xff]  }
 0x588   :  { %9232 = vmatpush1.bf16.msra.mxu1 %v12312_v9  ;;  %9190 = vmatprep.subr.bf16.mxu0 %v12317_v7  ;;  %v12386_v9 = vld [vmem:[#allocation15 + $0xecc] ss:$16 sps:$4 sm:$0xff]   ;;  %v12381_v7 = vld [vmem:[#allocation15 + $0xcc8] ss:$16 sps:$4 sm:$0xff]  }
 0x589   :  { %9233 = vmatprep.subr.bf16.mxu1 %v12320_v57  ;;  %v12384_v57 = vld [vmem:[#allocation15 + $0xec8] ss:$16 sps:$4 sm:$0xff]  }
 0x58b   :  { %9191 = vmatpush1.bf16.msra.mxu0 %v12315_v60  ;;  %v12389_v60 = vld [vmem:[#allocation15 + $0xcac] ss:$16 sps:$4 sm:$0xff]  }
 0x58c   :  { %9234 = vmatpush1.bf16.msra.mxu1 %v12318_v50  ;;  %9192 = vmatprep.subr.bf16.mxu0 %v12323_v26  ;;  %v12392_v50 = vld [vmem:[#allocation15 + $0xeac] ss:$16 sps:$4 sm:$0xff]   ;;  %v12387_v26 = vld [vmem:[#allocation15 + $0xca8] ss:$16 sps:$4 sm:$0xff]  }
 0x58d   :  { %9235 = vmatprep.subr.bf16.mxu1 %v12326_v10  ;;  %v12395_v10 = vld [vmem:[#allocation15 + $0xc8c] ss:$16 sps:$4 sm:$0xff]  }
 0x58f   :  { %9193 = vmatpush1.bf16.msra.mxu0 %v12321_v62  ;;  %v13608_v62 = vpop.f32.mrf.mxu0 }
 0x590   :  { %9236 = vmatpush1.bf16.msra.mxu1 %v12324_v44  ;;  %9194 = vmatprep.subr.bf16.mxu0 %v12329_v29  ;;  %v13610_v44 = vpop.f32.mrf.mxu1  ;;  %v12401_v29 = vld [vmem:[#allocation15 + $0xc6c] ss:$16 sps:$4 sm:$0xff]  }
 0x591   :  { %9237 = vmatprep.subr.bf16.mxu1 %v12332_v22  ;;  %v12404_v22 = vld [vmem:[#allocation15 + $0xe6c] ss:$16 sps:$4 sm:$0xff]  }
 0x593   :  { %9195 = vmatpush2.bf16.msra.mxu0 %v12327_v6  ;;  %v13612_v6 = vpop.f32.mrf.mxu0 }
 0x594   :  { %9238 = vmatpush2.bf16.msra.mxu1 %v12330_v41  ;;  %9196 = vmatprep.subr.bf16.mxu0 %v12335_v33  ;;  %v13614_v41 = vpop.f32.mrf.mxu1  ;;  %v12399_v33 = vld [vmem:[#allocation15 + $0xc68] ss:$16 sps:$4 sm:$0xff]  }
 0x595   :  { %9239 = vmatprep.subr.bf16.mxu1 %v12338_v11  ;;  %v12402_v11 = vld [vmem:[#allocation15 + $0xe68] ss:$16 sps:$4 sm:$0xff]  }
 0x597   :  { %9197 = vmatpush2.bf16.msra.mxu0 %v12333_v32  ;;  %v12407_v32 = vld [vmem:[#allocation15 + $0xc4c] ss:$16 sps:$4 sm:$0xff]  }
 0x598   :  { %9240 = vmatpush2.bf16.msra.mxu1 %v12336_v25  ;;  %9198 = vmatprep.subr.bf16.mxu0 %v12341_v54  ;;  %v12410_v25 = vld [vmem:[#allocation15 + $0xe4c] ss:$16 sps:$4 sm:$0xff]   ;;  %v13616_v54 = vpop.f32.mrf.mxu0 }
 0x599   :  { %9241 = vmatprep.subr.bf16.mxu1 %v12344_v45  ;;  %v13618_v45 = vpop.f32.mrf.mxu1 }
 0x59b   :  { %9199 = vmatpush2.bf16.msra.mxu0 %v12339_v51  ;;  %v12405_v51 = vld [vmem:[#allocation15 + $0xc48] ss:$16 sps:$4 sm:$0xff]  }
 0x59c   :  { %9242 = vmatpush2.bf16.msra.mxu1 %v12342_v8  ;;  %9200 = vmatprep.subr.bf16.mxu0 %v12347_v3  ;;  %v12408_v8 = vld [vmem:[#allocation15 + $0xe48] ss:$16 sps:$4 sm:$0xff]   ;;  %v12413_v3 = vld [vmem:[#allocation15 + $0xc2c] ss:$16 sps:$4 sm:$0xff]  }
 0x59d   :  { %9243 = vmatprep.subr.bf16.mxu1 %v12350_v36  ;;  %v12416_v36 = vld [vmem:[#allocation15 + $0xe2c] ss:$16 sps:$4 sm:$0xff]  }
 0x59f   :  { %9201 = vmatpush2.bf16.msra.mxu0 %v12345_v37  ;;  %v13620_v37 = vpop.f32.mrf.mxu0 }
 0x5a0   :  { %9244 = vmatpush2.bf16.msra.mxu1 %v12348_v1  ;;  %9202 = vmatprep.subr.bf16.mxu0 %v12353_v40  ;;  %v13622_v1 = vpop.f32.mrf.mxu1  ;;  %v12411_v40 = vld [vmem:[#allocation15 + $0xc28] ss:$16 sps:$4 sm:$0xff]  }
 0x5a1   :  { %9245 = vmatprep.subr.bf16.mxu1 %v12356_v16  ;;  %v13624_v16 = vpop.f32.mrf.mxu0 }
 0x5a3   :  { %9203 = vmatpush2.bf16.msra.mxu0 %v12351_v63  ;;  %v12414_v63 = vld [vmem:[#allocation15 + $0xe28] ss:$16 sps:$4 sm:$0xff]  }
 0x5a4   :  { %9246 = vmatpush2.bf16.msra.mxu1 %v12354_v30  ;;  %9204 = vmatprep.subr.bf16.mxu0 %v12359_v39  ;;  %v12419_v30 = vld [vmem:[#allocation15 + $0xc0c] ss:$16 sps:$4 sm:$0xff]   ;;  %v13626_v39 = vpop.f32.mrf.mxu1 }
 0x5a5   :  { %9247 = vmatprep.subr.bf16.mxu1 %v12362_v56  ;;  %v12422_v56 = vld [vmem:[#allocation15 + $0xe0c] ss:$16 sps:$4 sm:$0xff]  }
 0x5a7   :  { %9205 = vmatpush2.bf16.msra.mxu0 %v12357_v5  ;;  %v12417_v5 = vld [vmem:[#allocation15 + $0xc08] ss:$16 sps:$4 sm:$0xff]  }
 0x5a8   :  { %9248 = vmatpush2.bf16.msra.mxu1 %v12360_v20  ;;  %9206 = vmatprep.subr.bf16.mxu0 %v12365_v15  ;;  %v13628_v20 = vpop.f32.mrf.mxu0  ;;  %v12420_v15 = vld [vmem:[#allocation15 + $0xe08] ss:$16 sps:$4 sm:$0xff]  }
 0x5a9   :  { %9249 = vmatprep.subr.bf16.mxu1 %v12368_v46  ;;  %v12425_v46 = vld [vmem:[#allocation15 + $0xdec] ss:$16 sps:$4 sm:$0xff]  }
 0x5ab   :  { %9207 = vmatpush2.bf16.msra.mxu0 %v12363_v34  ;;  %v13630_v34 = vpop.f32.mrf.mxu1 }
 0x5ac   :  { %9250 = vmatpush2.bf16.msra.mxu1 %v12366_v35  ;;  %9208 = vmatprep.subr.bf16.mxu0 %v12371_v12  ;;  %v12428_v35 = vld [vmem:[#allocation15 + $0xfec] ss:$16 sps:$4 sm:$0xff]   ;;  %v12423_v12 = vld [vmem:[#allocation15 + $0xde8] ss:$16 sps:$4 sm:$0xff]  }
 0x5ad   :  { %9251 = vmatprep.subr.bf16.mxu1 %v12374_v48  ;;  %v13632_v48 = vpop.f32.mrf.mxu0 }
 0x5af   :  { %9209 = vmatpush2.bf16.msra.mxu0 %v12369_v0  ;;  %v12426_v0 = vld [vmem:[#allocation15 + $0xfe8] ss:$16 sps:$4 sm:$0xff]  }
 0x5b0   :  { %9252 = vmatpush2.bf16.msra.mxu1 %v12372_v17  ;;  %9264 = vmatprep.subr.bf16.mxu0 %v12377_v21  ;;  %v12431_v17 = vld [vmem:[#allocation15 + $0xdcc] ss:$16 sps:$4 sm:$0xff]   ;;  %v13634_v21 = vpop.f32.mrf.mxu1 }
 0x5b1   :  { %9307 = vmatprep.subr.bf16.mxu1 %v12380_v38  ;;  %v12434_v38 = vld [vmem:[#allocation15 + $0xfcc] ss:$16 sps:$4 sm:$0xff]  }
 0x5b2   :  { %9211 = vmatmul.mubr.bf16.vlgmr.msra.gmra.mxu0 %v13437_v13  ;;  %v12390_v13 = vld [vmem:[#allocation15 + $0xea8] ss:$16 sps:$4 sm:$0xff]  }
 0x5b3   :  { %9254 = vmatmul.mubr.bf16.vlgmr.msra.gmra.mxu1 %v13500_v31  ;;  %9265 = vmatpush1.bf16.msra.mxu0 %v12375_v2  ;;  %v12398_v31 = vld [vmem:[#allocation15 + $0xe8c] ss:$16 sps:$4 sm:$0xff]   ;;  %v12429_v2 = vld [vmem:[#allocation15 + $0xdc8] ss:$16 sps:$4 sm:$0xff]  }
 0x5b4   :  { %9296 = vmatprep.mubr.bf16.mxu0 %v13553_v61  ;;  %9308 = vmatpush1.bf16.msra.mxu1 %v12378_v59  ;;  %v12393_v61 = vld [vmem:[#allocation15 + $0xc88] ss:$16 sps:$4 sm:$0xff]   ;;  %v13636_v59 = vpop.f32.mrf.mxu0 }
 0x5b5   :  { %9339 = vmatprep.mubr.bf16.mxu1 %v13585_v53  ;;  %9266 = vmatprep.subr.bf16.mxu0 %v12383_v47  ;;  %v12396_v53 = vld [vmem:[#allocation15 + $0xe88] ss:$16 sps:$4 sm:$0xff]  }
 0x5b6   :  { %9309 = vmatprep.subr.bf16.mxu1 %v12386_v9  ;;  %v12432_v47 = vld [vmem:[#allocation15 + $0xfc8] ss:$16 sps:$4 sm:$0xff]   ;;  %v12437_v9 = vld [vmem:[#allocation15 + $0xdac] ss:$16 sps:$4 sm:$0xff]  }
 0x5b7   :  { %9267 = vmatpush1.bf16.msra.mxu0 %v12381_v7  ;;  %v13638_v7 = vpop.f32.mrf.mxu1 }
 0x5b8   :  { %9310 = vmatpush1.bf16.msra.mxu1 %v12384_v57  ;;  %9268 = vmatprep.subr.bf16.mxu0 %v12389_v60  ;;  %v12440_v57 = vld [vmem:[#allocation15 + $0xfac] ss:$16 sps:$4 sm:$0xff]   ;;  %v13640_v60 = vpop.f32.mrf.mxu0 }
 0x5b9   :  { %9311 = vmatprep.subr.bf16.mxu1 %v12392_v50  ;;  %v13642_v50 = vpop.f32.mrf.mxu1 }
 0x5bb   :  { %9269 = vmatpush1.bf16.msra.mxu0 %v12387_v26  ;;  %v12435_v26 = vld [vmem:[#allocation15 + $0xda8] ss:$16 sps:$4 sm:$0xff]  }
 0x5bc   :  { %9312 = vmatpush1.bf16.msra.mxu1 %v12390_v13  ;;  %9270 = vmatprep.subr.bf16.mxu0 %v12395_v10  ;;  %v12438_v13 = vld [vmem:[#allocation15 + $0xfa8] ss:$16 sps:$4 sm:$0xff]   ;;  %v12443_v10 = vld [vmem:[#allocation15 + $0xd8c] ss:$16 sps:$4 sm:$0xff]  }
 0x5bd   :  { %9313 = vmatprep.subr.bf16.mxu1 %v12398_v31  ;;  %v12446_v31 = vld [vmem:[#allocation15 + $0xf8c] ss:$16 sps:$4 sm:$0xff]  }
 0x5bf   :  { %9271 = vmatpush1.bf16.msra.mxu0 %v12393_v61  ;;  %v13644_v61 = vpop.f32.mrf.mxu0 }
 0x5c0   :  { %9314 = vmatpush1.bf16.msra.mxu1 %v12396_v53  ;;  %9272 = vmatprep.subr.bf16.mxu0 %v12401_v29  ;;  %v13646_v53 = vpop.f32.mrf.mxu1  ;;  %v12441_v29 = vld [vmem:[#allocation15 + $0xd88] ss:$16 sps:$4 sm:$0xff]  }
 0x5c1   :  { %9315 = vmatprep.subr.bf16.mxu1 %v12404_v22  ;;  %v12444_v22 = vld [vmem:[#allocation15 + $0xf88] ss:$16 sps:$4 sm:$0xff]  }
 0x5c3   :  { %9273 = vmatpush1.bf16.msra.mxu0 %v12399_v33  ;;  %v12449_v33 = vld [vmem:[#allocation15 + $0xd6c] ss:$16 sps:$4 sm:$0xff]  }
 0x5c4   :  { %9316 = vmatpush1.bf16.msra.mxu1 %v12402_v11  ;;  %9274 = vmatprep.subr.bf16.mxu0 %v12407_v32  ;;  %v12452_v11 = vld [vmem:[#allocation15 + $0xf6c] ss:$16 sps:$4 sm:$0xff]   ;;  %v13648_v32 = vpop.f32.mrf.mxu0 }
 0x5c5   :  { %9317 = vmatprep.subr.bf16.mxu1 %v12410_v25  ;;  %v13650_v25 = vpop.f32.mrf.mxu1 }
 0x5c7   :  { %9275 = vmatpush1.bf16.msra.mxu0 %v12405_v51  ;;  %v12447_v51 = vld [vmem:[#allocation15 + $0xd68] ss:$16 sps:$4 sm:$0xff]  }
 0x5c8   :  { %9318 = vmatpush1.bf16.msra.mxu1 %v12408_v8  ;;  %9276 = vmatprep.subr.bf16.mxu0 %v12413_v3  ;;  %v12450_v8 = vld [vmem:[#allocation15 + $0xf68] ss:$16 sps:$4 sm:$0xff]   ;;  %v12455_v3 = vld [vmem:[#allocation15 + $0xd4c] ss:$16 sps:$4 sm:$0xff]  }
 0x5c9   :  { %9319 = vmatprep.subr.bf16.mxu1 %v12416_v36  ;;  %v12458_v36 = vld [vmem:[#allocation15 + $0xf4c] ss:$16 sps:$4 sm:$0xff]  }
 0x5cb   :  { %9277 = vmatpush1.bf16.msra.mxu0 %v12411_v40  ;;  %v13652_v40 = vpop.f32.mrf.mxu0 }
 0x5cc   :  { %9320 = vmatpush1.bf16.msra.mxu1 %v12414_v63  ;;  %9278 = vmatprep.subr.bf16.mxu0 %v12419_v30  ;;  %v13654_v63 = vpop.f32.mrf.mxu1  ;;  %v12453_v30 = vld [vmem:[#allocation15 + $0xd48] ss:$16 sps:$4 sm:$0xff]  }
 0x5cd   :  { %9321 = vmatprep.subr.bf16.mxu1 %v12422_v56  ;;  %v13656_v56 = vpop.f32.mrf.mxu0 }
 0x5cf   :  { %9279 = vmatpush1.bf16.msra.mxu0 %v12417_v5  ;;  %v12456_v5 = vld [vmem:[#allocation15 + $0xf48] ss:$16 sps:$4 sm:$0xff]  }
 0x5d0   :  { %9322 = vmatpush1.bf16.msra.mxu1 %v12420_v15  ;;  %9280 = vmatprep.subr.bf16.mxu0 %v12425_v46  ;;  %v12461_v15 = vld [vmem:[#allocation15 + $0xd2c] ss:$16 sps:$4 sm:$0xff]   ;;  %v13658_v46 = vpop.f32.mrf.mxu1 }
 0x5d1   :  { %9323 = vmatprep.subr.bf16.mxu1 %v12428_v35  ;;  %v12464_v35 = vld [vmem:[#allocation15 + $0xf2c] ss:$16 sps:$4 sm:$0xff]  }
 0x5d3   :  { %9281 = vmatpush2.bf16.msra.mxu0 %v12423_v12  ;;  %v12459_v12 = vld [vmem:[#allocation15 + $0xd28] ss:$16 sps:$4 sm:$0xff]  }
 0x5d4   :  { %9324 = vmatpush2.bf16.msra.mxu1 %v12426_v0  ;;  %9282 = vmatprep.subr.bf16.mxu0 %v12431_v17  ;;  %v13660_v0 = vpop.f32.mrf.mxu0  ;;  %v12462_v17 = vld [vmem:[#allocation15 + $0xf28] ss:$16 sps:$4 sm:$0xff]  }
 0x5d5   :  { %9325 = vmatprep.subr.bf16.mxu1 %v12434_v38  ;;  %v12467_v38 = vld [vmem:[#allocation15 + $0xd0c] ss:$16 sps:$4 sm:$0xff]  }
 0x5d7   :  { %9283 = vmatpush2.bf16.msra.mxu0 %v12429_v2  ;;  %v13662_v2 = vpop.f32.mrf.mxu1 }
 0x5d8   :  { %9326 = vmatpush2.bf16.msra.mxu1 %v12432_v47  ;;  %9284 = vmatprep.subr.bf16.mxu0 %v12437_v9  ;;  %v12470_v47 = vld [vmem:[#allocation15 + $0xf0c] ss:$16 sps:$4 sm:$0xff]   ;;  %v12465_v9 = vld [vmem:[#allocation15 + $0xd08] ss:$16 sps:$4 sm:$0xff]  }
 0x5d9   :  { %9327 = vmatprep.subr.bf16.mxu1 %v12440_v57  ;;  %v13664_v57 = vpop.f32.mrf.mxu0 }
 0x5db   :  { %9285 = vmatpush2.bf16.msra.mxu0 %v12435_v26  ;;  %v12468_v26 = vld [vmem:[#allocation15 + $0xf08] ss:$16 sps:$4 sm:$0xff]  }
 0x5dc   :  { %9328 = vmatpush2.bf16.msra.mxu1 %v12438_v13  ;;  %9286 = vmatprep.subr.bf16.mxu0 %v12443_v10  ;;  %v12473_v13 = vld [vmem:[#allocation11 + $0xe4] ss:$16 sps:$4 sm:$0xff]   ;;  %v13666_v10 = vpop.f32.mrf.mxu1 }
 0x5dd   :  { %9329 = vmatprep.subr.bf16.mxu1 %v12446_v31  ;;  %v12476_v31 = vld [vmem:[#allocation11 + $0x2e4] ss:$16 sps:$4 sm:$0xff]  }
 0x5df   :  { %9287 = vmatpush2.bf16.msra.mxu0 %v12441_v29  ;;  %v12471_v29 = vld [vmem:[#allocation11 + $0xe0] ss:$16 sps:$4 sm:$0xff]  }
 0x5e0   :  { %9330 = vmatpush2.bf16.msra.mxu1 %v12444_v22  ;;  %9288 = vmatprep.subr.bf16.mxu0 %v12449_v33  ;;  %v13668_v22 = vpop.f32.mrf.mxu0  ;;  %v12474_v33 = vld [vmem:[#allocation11 + $0x2e0] ss:$16 sps:$4 sm:$0xff]  }
 0x5e1   :  { %9331 = vmatprep.subr.bf16.mxu1 %v12452_v11  ;;  %v13670_v11 = vpop.f32.mrf.mxu1 }
 0x5e3   :  { %9289 = vmatpush2.bf16.msra.mxu0 %v12447_v51  ;;  %v12479_v51 = vld [vmem:[#allocation11 + $0xc4] ss:$16 sps:$4 sm:$0xff]  }
 0x5e4   :  { %9332 = vmatpush2.bf16.msra.mxu1 %v12450_v8  ;;  %9290 = vmatprep.subr.bf16.mxu0 %v12455_v3  ;;  %v12482_v3 = vld [vmem:[#allocation11 + $0x2c4] ss:$16 sps:$4 sm:$0xff]  }
 0x5e5   :  { %9333 = vmatprep.subr.bf16.mxu1 %v12458_v36 }
 0x5e7   :  { %9291 = vmatpush2.bf16.msra.mxu0 %v12453_v30  ;;  %v12477_v30 = vld [vmem:[#allocation11 + $0xc0] ss:$16 sps:$4 sm:$0xff]  }
 0x5e8   :  { %9334 = vmatpush2.bf16.msra.mxu1 %v12456_v5  ;;  %9292 = vmatprep.subr.bf16.mxu0 %v12461_v15 }
 0x5e9   :  { %9335 = vmatprep.subr.bf16.mxu1 %v12464_v35  ;;  %v12480_v35 = vld [vmem:[#allocation11 + $0x2c0] ss:$16 sps:$4 sm:$0xff]  }
 0x5eb   :  { %9293 = vmatpush2.bf16.msra.mxu0 %v12459_v12  ;;  %v12485_v12 = vld [vmem:[#allocation11 + $0xa4] ss:$16 sps:$4 sm:$0xff]  }
 0x5ec   :  { %9336 = vmatpush2.bf16.msra.mxu1 %v12462_v17  ;;  %9294 = vmatprep.subr.bf16.mxu0 %v12467_v38  ;;  %v12488_v38 = vld [vmem:[#allocation11 + $0x2a4] ss:$16 sps:$4 sm:$0xff]  }
 0x5ed   :  { %9337 = vmatprep.subr.bf16.mxu1 %v12470_v47 }
 0x5ef   :  { %9295 = vmatpush2.bf16.msra.mxu0 %v12465_v9  ;;  %v12483_v9 = vld [vmem:[#allocation11 + $0xa0] ss:$16 sps:$4 sm:$0xff]  }
 0x5f0   :  { %9338 = vmatpush2.bf16.msra.mxu1 %v12468_v26  ;;  %9990 = vmatprep.subr.bf16.mxu0 %v12473_v13 }
 0x5f1   :  { %10033 = vmatprep.subr.bf16.mxu1 %v12476_v31  ;;  %v12486_v31 = vld [vmem:[#allocation11 + $0x2a0] ss:$16 sps:$4 sm:$0xff]  }
 0x5f2   :  { %v9040_v8 = vpop.f32.mrf.mxu0  ;;  %9297 = vmatmul.mubr.bf16.vlgmr.msra.gmra.mxu0 %v13546_v49 }
 0x5f3   :  { %v9083_v36 = vpop.f32.mrf.mxu1  ;;  %9340 = vmatmul.mubr.bf16.vlgmr.msra.gmra.mxu1 %v13590_v52  ;;  %9991 = vmatpush1.bf16.msra.mxu0 %v12471_v29  ;;  %v12491_v29 = vld [vmem:[#allocation11 + $0x84] ss:$16 sps:$4 sm:$0xff]  }
 0x5f4   :  { %v13674_v5 = vadd.f32 %v9083_v36, %v9040_v8  ;;  %10022 = vmatprep.mubr.bf16.mxu0 %v13192_v19  ;;  %10034 = vmatpush1.bf16.msra.mxu1 %v12474_v33  ;;  %v9042_v15 = vpop.f32.mrf.mxu0  ;;  %v12494_v8 = vld [vmem:[#allocation11 + $0x284] ss:$16 sps:$4 sm:$0xff]  }
 0x5f5   :  { %10065 = vmatprep.mubr.bf16.mxu1 %v13200_v27  ;;  %v9085_v17 = vpop.f32.mrf.mxu1  ;;  %9992 = vmatprep.subr.bf16.mxu0 %v12479_v51  ;;  %v12489_v51 = vld [vmem:[#allocation11 + $0x80] ss:$16 sps:$4 sm:$0xff]  }
 0x5f6   :  { %v13678_v49 = vadd.f32 %v9085_v17, %v9042_v15  ;;  %v9044_v47 = vpop.f32.mrf.mxu0  ;;  %10035 = vmatprep.subr.bf16.mxu1 %v12482_v3  ;;  %v12492_v3 = vld [vmem:[#allocation11 + $0x280] ss:$16 sps:$4 sm:$0xff]   ;;  %v12497_v15 = vld [vmem:[#allocation11 + $0x64] ss:$16 sps:$4 sm:$0xff]  }
 0x5f7   :  { %v9087_v52 = vpop.f32.mrf.mxu1  ;;  %9993 = vmatpush1.bf16.msra.mxu0 %v12477_v30  ;;  %v12500_v30 = vld [vmem:[#allocation11 + $0x264] ss:$16 sps:$4 sm:$0xff]   ;;  %v12495_v17 = vld [vmem:[#allocation11 + $0x60] ss:$16 sps:$4 sm:$0xff]  }
 0x5f8   :  { %v13680_v26 = vadd.f32 %v9087_v52, %v9044_v47  ;;  %10036 = vmatpush1.bf16.msra.mxu1 %v12480_v35  ;;  %v9046_v13 = vpop.f32.mrf.mxu0  ;;  %9994 = vmatprep.subr.bf16.mxu0 %v12485_v12  ;;  %v12498_v35 = vld [vmem:[#allocation11 + $0x260] ss:$16 sps:$4 sm:$0xff]   ;;  %v12503_v12 = vld [vmem:[#allocation11 + $0x44] ss:$16 sps:$4 sm:$0xff]  }
 0x5f9   :  { %v9089_v33 = vpop.f32.mrf.mxu1  ;;  %10037 = vmatprep.subr.bf16.mxu1 %v12488_v38  ;;  %v12506_v47 = vld [vmem:[#allocation11 + $0x244] ss:$16 sps:$4 sm:$0xff]   ;;  %v12501_v38 = vld [vmem:[#allocation11 + $0x40] ss:$16 sps:$4 sm:$0xff]  }
 0x5fa   :  { %v13682_v36 = vadd.f32 %v9089_v33, %v9046_v13  ;;  %v12504_v52 = vld [vmem:[#allocation11 + $0x240] ss:$16 sps:$4 sm:$0xff]   ;;  %v12512_v13 = vld [vmem:[#allocation11 + $0x224] ss:$16 sps:$4 sm:$0xff]  }
 0x5fb   :  { %9995 = vmatpush1.bf16.msra.mxu0 %v12483_v9  ;;  %v12509_v9 = vld [vmem:[#allocation11 + $0x24] ss:$16 sps:$4 sm:$0xff]  }
 0x5fc   :  { %10038 = vmatpush1.bf16.msra.mxu1 %v12486_v31  ;;  %9996 = vmatprep.subr.bf16.mxu0 %v12491_v29  ;;  %v12507_v31 = vld [vmem:[#allocation11 + $0x20] ss:$16 sps:$4 sm:$0xff]   ;;  %v12515_v33 = vld [vmem:[#allocation11 + $0x4] ss:$16 sps:$4 sm:$0xff]  }
 0x5fd   :  { %10039 = vmatprep.subr.bf16.mxu1 %v12494_v8  ;;  %v12510_v29 = vld [vmem:[#allocation11 + $0x220] ss:$16 sps:$4 sm:$0xff]   ;;  %v12518_v8 = vld [vmem:[#allocation11 + $0x204] ss:$16 sps:$4 sm:$0xff]  }
 0x5ff   :  { %9997 = vmatpush1.bf16.msra.mxu0 %v12489_v51  ;;  %v12513_v51 = vld [vmem:[#allocation11] ss:$16 sps:$4 sm:$0xff]  }
 0x600   :  { %10040 = vmatpush1.bf16.msra.mxu1 %v12492_v3  ;;  %9998 = vmatprep.subr.bf16.mxu0 %v12497_v15  ;;  %v12516_v3 = vld [vmem:[#allocation11 + $0x200] ss:$16 sps:$4 sm:$0xff]   ;;  %v12521_v15 = vld [vmem:[#allocation11 + $0x1e4] ss:$16 sps:$4 sm:$0xff]  }
 0x601   :  { %10041 = vmatprep.subr.bf16.mxu1 %v12500_v30  ;;  %v12524_v30 = vld [vmem:[#allocation11 + $0x3e4] ss:$16 sps:$4 sm:$0xff]  }
 0x603   :  { %9999 = vmatpush1.bf16.msra.mxu0 %v12495_v17  ;;  %v12519_v17 = vld [vmem:[#allocation11 + $0x1e0] ss:$16 sps:$4 sm:$0xff]  }
 0x604   :  { %10042 = vmatpush1.bf16.msra.mxu1 %v12498_v35  ;;  %10000 = vmatprep.subr.bf16.mxu0 %v12503_v12  ;;  %v12522_v35 = vld [vmem:[#allocation11 + $0x3e0] ss:$16 sps:$4 sm:$0xff]   ;;  %v12527_v12 = vld [vmem:[#allocation11 + $0x1c4] ss:$16 sps:$4 sm:$0xff]  }
 0x605   :  { %10043 = vmatprep.subr.bf16.mxu1 %v12506_v47  ;;  %v12530_v47 = vld [vmem:[#allocation11 + $0x3c4] ss:$16 sps:$4 sm:$0xff]  }
 0x607   :  { %10001 = vmatpush1.bf16.msra.mxu0 %v12501_v38  ;;  %v12525_v38 = vld [vmem:[#allocation11 + $0x1c0] ss:$16 sps:$4 sm:$0xff]  }
 0x608   :  { %10044 = vmatpush1.bf16.msra.mxu1 %v12504_v52  ;;  %10002 = vmatprep.subr.bf16.mxu0 %v12509_v9  ;;  %v12528_v52 = vld [vmem:[#allocation11 + $0x3c0] ss:$16 sps:$4 sm:$0xff]   ;;  %v12533_v9 = vld [vmem:[#allocation11 + $0x1a4] ss:$16 sps:$4 sm:$0xff]  }
 0x609   :  { %10045 = vmatprep.subr.bf16.mxu1 %v12512_v13  ;;  %v12536_v13 = vld [vmem:[#allocation11 + $0x3a4] ss:$16 sps:$4 sm:$0xff]  }
 0x60b   :  { %10003 = vmatpush1.bf16.msra.mxu0 %v12507_v31  ;;  %v12531_v31 = vld [vmem:[#allocation11 + $0x1a0] ss:$16 sps:$4 sm:$0xff]  }
 0x60c   :  { %10046 = vmatpush1.bf16.msra.mxu1 %v12510_v29  ;;  %10004 = vmatprep.subr.bf16.mxu0 %v12515_v33  ;;  %v12534_v29 = vld [vmem:[#allocation11 + $0x3a0] ss:$16 sps:$4 sm:$0xff]   ;;  %v12539_v33 = vld [vmem:[#allocation11 + $0x184] ss:$16 sps:$4 sm:$0xff]  }
 0x60d   :  { %10047 = vmatprep.subr.bf16.mxu1 %v12518_v8  ;;  %v12542_v8 = vld [vmem:[#allocation11 + $0x384] ss:$16 sps:$4 sm:$0xff]  }
 0x60f   :  { %10005 = vmatpush1.bf16.msra.mxu0 %v12513_v51  ;;  %v12537_v51 = vld [vmem:[#allocation11 + $0x180] ss:$16 sps:$4 sm:$0xff]  }
 0x610   :  { %10048 = vmatpush1.bf16.msra.mxu1 %v12516_v3  ;;  %10006 = vmatprep.subr.bf16.mxu0 %v12521_v15  ;;  %v12540_v3 = vld [vmem:[#allocation11 + $0x380] ss:$16 sps:$4 sm:$0xff]   ;;  %v12545_v15 = vld [vmem:[#allocation11 + $0x164] ss:$16 sps:$4 sm:$0xff]  }
 0x611   :  { %10049 = vmatprep.subr.bf16.mxu1 %v12524_v30  ;;  %v12548_v30 = vld [vmem:[#allocation11 + $0x364] ss:$16 sps:$4 sm:$0xff]  }
 0x613   :  { %10007 = vmatpush2.bf16.msra.mxu0 %v12519_v17  ;;  %v12543_v17 = vld [vmem:[#allocation11 + $0x160] ss:$16 sps:$4 sm:$0xff]  }
 0x614   :  { %10050 = vmatpush2.bf16.msra.mxu1 %v12522_v35  ;;  %10008 = vmatprep.subr.bf16.mxu0 %v12527_v12  ;;  %v12546_v35 = vld [vmem:[#allocation11 + $0x360] ss:$16 sps:$4 sm:$0xff]   ;;  %v12551_v12 = vld [vmem:[#allocation11 + $0x144] ss:$16 sps:$4 sm:$0xff]  }
 0x615   :  { %10051 = vmatprep.subr.bf16.mxu1 %v12530_v47  ;;  %v12554_v47 = vld [vmem:[#allocation11 + $0x344] ss:$16 sps:$4 sm:$0xff]  }
 0x617   :  { %10009 = vmatpush2.bf16.msra.mxu0 %v12525_v38  ;;  %v12549_v38 = vld [vmem:[#allocation11 + $0x140] ss:$16 sps:$4 sm:$0xff]  }
 0x618   :  { %10052 = vmatpush2.bf16.msra.mxu1 %v12528_v52  ;;  %10010 = vmatprep.subr.bf16.mxu0 %v12533_v9  ;;  %v12552_v52 = vld [vmem:[#allocation11 + $0x340] ss:$16 sps:$4 sm:$0xff]   ;;  %v12557_v9 = vld [vmem:[#allocation11 + $0x124] ss:$16 sps:$4 sm:$0xff]  }
 0x619   :  { %10053 = vmatprep.subr.bf16.mxu1 %v12536_v13  ;;  %v12560_v13 = vld [vmem:[#allocation11 + $0x324] ss:$16 sps:$4 sm:$0xff]  }
 0x61b   :  { %10011 = vmatpush2.bf16.msra.mxu0 %v12531_v31  ;;  %v12555_v31 = vld [vmem:[#allocation11 + $0x120] ss:$16 sps:$4 sm:$0xff]  }
 0x61c   :  { %10054 = vmatpush2.bf16.msra.mxu1 %v12534_v29  ;;  %10012 = vmatprep.subr.bf16.mxu0 %v12539_v33  ;;  %v12558_v29 = vld [vmem:[#allocation11 + $0x320] ss:$16 sps:$4 sm:$0xff]   ;;  %v12563_v33 = vld [vmem:[#allocation11 + $0x104] ss:$16 sps:$4 sm:$0xff]  }
 0x61d   :  { %10055 = vmatprep.subr.bf16.mxu1 %v12542_v8  ;;  %v12566_v8 = vld [vmem:[#allocation11 + $0x304] ss:$16 sps:$4 sm:$0xff]  }
 0x61f   :  { %10013 = vmatpush2.bf16.msra.mxu0 %v12537_v51  ;;  %v12561_v51 = vld [vmem:[#allocation11 + $0x100] ss:$16 sps:$4 sm:$0xff]  }
 0x620   :  { %10056 = vmatpush2.bf16.msra.mxu1 %v12540_v3  ;;  %10014 = vmatprep.subr.bf16.mxu0 %v12545_v15  ;;  %v12564_v3 = vld [vmem:[#allocation11 + $0x300] ss:$16 sps:$4 sm:$0xff]   ;;  %v12569_v15 = vld [vmem:[#allocation11 + $0xec] ss:$16 sps:$4 sm:$0xff]  }
 0x621   :  { %10057 = vmatprep.subr.bf16.mxu1 %v12548_v30  ;;  %v12572_v30 = vld [vmem:[#allocation11 + $0x2ec] ss:$16 sps:$4 sm:$0xff]  }
 0x623   :  { %10015 = vmatpush2.bf16.msra.mxu0 %v12543_v17  ;;  %v12567_v17 = vld [vmem:[#allocation11 + $0xe8] ss:$16 sps:$4 sm:$0xff]  }
 0x624   :  { %10058 = vmatpush2.bf16.msra.mxu1 %v12546_v35  ;;  %10016 = vmatprep.subr.bf16.mxu0 %v12551_v12  ;;  %v12570_v35 = vld [vmem:[#allocation11 + $0x2e8] ss:$16 sps:$4 sm:$0xff]   ;;  %v12575_v12 = vld [vmem:[#allocation11 + $0xcc] ss:$16 sps:$4 sm:$0xff]  }
 0x625   :  { %10059 = vmatprep.subr.bf16.mxu1 %v12554_v47 }
 0x627   :  { %10017 = vmatpush2.bf16.msra.mxu0 %v12549_v38  ;;  %v12578_v38 = vld [vmem:[#allocation11 + $0x2cc] ss:$16 sps:$4 sm:$0xff]  }
 0x628   :  { %10060 = vmatpush2.bf16.msra.mxu1 %v12552_v52  ;;  %10018 = vmatprep.subr.bf16.mxu0 %v12557_v9 }
 0x629   :  { %10061 = vmatprep.subr.bf16.mxu1 %v12560_v13  ;;  %v12573_v13 = vld [vmem:[#allocation11 + $0xc8] ss:$16 sps:$4 sm:$0xff]  }
 0x62b   :  { %10019 = vmatpush2.bf16.msra.mxu0 %v12555_v31 }
 0x62c   :  { %10062 = vmatpush2.bf16.msra.mxu1 %v12558_v29  ;;  %10020 = vmatprep.subr.bf16.mxu0 %v12563_v33  ;;  %v12576_v29 = vld [vmem:[#allocation11 + $0x2c8] ss:$16 sps:$4 sm:$0xff]   ;;  %v12581_v33 = vld [vmem:[#allocation11 + $0xac] ss:$16 sps:$4 sm:$0xff]  }
 0x62d   :  { %10063 = vmatprep.subr.bf16.mxu1 %v12566_v8 }
 0x62f   :  { %10021 = vmatpush2.bf16.msra.mxu0 %v12561_v51 }
 0x630   :  { %10064 = vmatpush2.bf16.msra.mxu1 %v12564_v3  ;;  %10076 = vmatprep.subr.bf16.mxu0 %v12569_v15 }
 0x631   :  { %10119 = vmatprep.subr.bf16.mxu1 %v12572_v30 }
 0x632   :  { %v9126_v47 = vpop.f32.mrf.mxu0  ;;  %10023 = vmatmul.mubr.bf16.vlgmr.msra.gmra.mxu0 %v13190_v14 }
 0x633   :  { %v9127_v52 = vadd.f32 %v9126_v47, %v13674_v5  ;;  %v9169_v9 = vpop.f32.mrf.mxu1  ;;  %10066 = vmatmul.mubr.bf16.vlgmr.msra.gmra.mxu1 %v13198_v18  ;;  %10077 = vmatpush1.bf16.msra.mxu0 %v12567_v17  ;;  %v12584_v5 = vld [vmem:[#allocation11 + $0x2ac] ss:$16 sps:$4 sm:$0xff]  }
 0x634   :  { %10108 = vmatprep.mubr.bf16.mxu0 %v13192_v19  ;;  %10120 = vmatpush1.bf16.msra.mxu1 %v12570_v35  ;;  %v9128_v31 = vpop.f32.mrf.mxu0  ;;  %v12579_v35 = vld [vmem:[#allocation11 + $0xa8] ss:$16 sps:$4 sm:$0xff]  }
 0x635   :  { %v13688_v8 = vadd.f32 %v9169_v9, %v9127_v52  ;;  %10151 = vmatprep.mubr.bf16.mxu1 %v13200_v27  ;;  %v9129_v51 = vadd.f32 %v9128_v31, %v13678_v49  ;;  %v9171_v3 = vpop.f32.mrf.mxu1  ;;  %10078 = vmatprep.subr.bf16.mxu0 %v12575_v12  ;;  %v12582_v52 = vld [vmem:[#allocation11 + $0x2a8] ss:$16 sps:$4 sm:$0xff]   ;;  %v12587_v9 = vld [vmem:[#allocation11 + $0x8c] ss:$16 sps:$4 sm:$0xff]  }
 0x636   :  { %v9130_v15 = vpop.f32.mrf.mxu0  ;;  %10121 = vmatprep.subr.bf16.mxu1 %v12578_v38  ;;  %v12590_v12 = vld [vmem:[#allocation11 + $0x28c] ss:$16 sps:$4 sm:$0xff]  }
 0x637   :  { %v13692_v30 = vadd.f32 %v9171_v3, %v9129_v51  ;;  %v9131_v17 = vadd.f32 %v9130_v15, %v13680_v26  ;;  %v9173_v19 = vpop.f32.mrf.mxu1  ;;  %10079 = vmatpush1.bf16.msra.mxu0 %v12573_v13  ;;  %v12585_v51 = vld [vmem:[#allocation11 + $0x88] ss:$16 sps:$4 sm:$0xff]   ;;  %v12593_v13 = vld [vmem:[#allocation11 + $0x6c] ss:$16 sps:$4 sm:$0xff]  }
 0x638   :  { %10122 = vmatpush1.bf16.msra.mxu1 %v12576_v29  ;;  %v9132_v47 = vpop.f32.mrf.mxu0  ;;  %10080 = vmatprep.subr.bf16.mxu0 %v12581_v33  ;;  %v12588_v26 = vld [vmem:[#allocation11 + $0x288] ss:$16 sps:$4 sm:$0xff]   ;;  %v12596_v29 = vld [vmem:[#allocation11 + $0x26c] ss:$16 sps:$4 sm:$0xff]  }
 0x639   :  { %v13695_v27 = vadd.f32 %v9173_v19, %v9131_v17  ;;  %v9133_v49 = vadd.f32 %v9132_v47, %v13682_v36  ;;  %10123 = vmatprep.subr.bf16.mxu1 %v12584_v5  ;;  %v9175_v31 = vpop.f32.mrf.mxu1  ;;  %v12591_v33 = vld [vmem:[#allocation11 + $0x68] ss:$16 sps:$4 sm:$0xff]   ;;  %v12599_v15 = vld [vmem:[#allocation11 + $0x4c] ss:$16 sps:$4 sm:$0xff]  }
 0x63a   :  { %v12594_v3 = vld [vmem:[#allocation11 + $0x268] ss:$16 sps:$4 sm:$0xff]   ;;  %v12602_v36 = vld [vmem:[#allocation11 + $0x24c] ss:$16 sps:$4 sm:$0xff]  }
 0x63b   :  { %v13698_v38 = vadd.f32 %v9175_v31, %v9133_v49  ;;  %10081 = vmatpush1.bf16.msra.mxu0 %v12579_v35  ;;  %v12597_v5 = vld [vmem:[#allocation11 + $0x48] ss:$16 sps:$4 sm:$0xff]   ;;  %v12605_v19 = vld [vmem:[#allocation11 + $0x2c] ss:$16 sps:$4 sm:$0xff]  }
 0x63c   :  { %10124 = vmatpush1.bf16.msra.mxu1 %v12582_v52  ;;  %10082 = vmatprep.subr.bf16.mxu0 %v12587_v9  ;;  %v12600_v17 = vld [vmem:[#allocation11 + $0x248] ss:$16 sps:$4 sm:$0xff]   ;;  %v12608_v35 = vld [vmem:[#allocation11 + $0x22c] ss:$16 sps:$4 sm:$0xff]  }
 0x63d   :  { %10125 = vmatprep.subr.bf16.mxu1 %v12590_v12  ;;  %v12603_v47 = vld [vmem:[#allocation11 + $0x28] ss:$16 sps:$4 sm:$0xff]   ;;  %v12611_v9 = vld [vmem:[#allocation11 + $0xc] ss:$16 sps:$4 sm:$0xff]  }
 0x63e   :  { %v12606_v52 = vld [vmem:[#allocation11 + $0x228] ss:$16 sps:$4 sm:$0xff]   ;;  %v12614_v49 = vld [vmem:[#allocation11 + $0x20c] ss:$16 sps:$4 sm:$0xff]  }
 0x63f   :  { %10083 = vmatpush1.bf16.msra.mxu0 %v12585_v51  ;;  %v12609_v12 = vld [vmem:[#allocation11 + $0x8] ss:$16 sps:$4 sm:$0xff]   ;;  %v12617_v51 = vld [vmem:[#allocation11 + $0x1ec] ss:$16 sps:$4 sm:$0xff]  }
 0x640   :  { %10126 = vmatpush1.bf16.msra.mxu1 %v12588_v26  ;;  %10084 = vmatprep.subr.bf16.mxu0 %v12593_v13  ;;  %v12612_v31 = vld [vmem:[#allocation11 + $0x208] ss:$16 sps:$4 sm:$0xff]   ;;  %v12620_v26 = vld [vmem:[#allocation11 + $0x3ec] ss:$16 sps:$4 sm:$0xff]  }
 0x641   :  { %10127 = vmatprep.subr.bf16.mxu1 %v12596_v29  ;;  %v12615_v13 = vld [vmem:[#allocation11 + $0x1e8] ss:$16 sps:$4 sm:$0xff]  }
 0x642   :  { %v12618_v29 = vld [vmem:[#allocation11 + $0x3e8] ss:$16 sps:$4 sm:$0xff]  }
 0x643   :  { %10085 = vmatpush1.bf16.msra.mxu0 %v12591_v33  ;;  %v12623_v33 = vld [vmem:[#allocation11 + $0x1cc] ss:$16 sps:$4 sm:$0xff]  }
 0x644   :  { %10128 = vmatpush1.bf16.msra.mxu1 %v12594_v3  ;;  %10086 = vmatprep.subr.bf16.mxu0 %v12599_v15  ;;  %v12626_v3 = vld [vmem:[#allocation11 + $0x3cc] ss:$16 sps:$4 sm:$0xff]   ;;  %v12621_v15 = vld [vmem:[#allocation11 + $0x1c8] ss:$16 sps:$4 sm:$0xff]  }
 0x645   :  { %10129 = vmatprep.subr.bf16.mxu1 %v12602_v36  ;;  %v12624_v36 = vld [vmem:[#allocation11 + $0x3c8] ss:$16 sps:$4 sm:$0xff]  }
 0x647   :  { %10087 = vmatpush1.bf16.msra.mxu0 %v12597_v5  ;;  %v12629_v5 = vld [vmem:[#allocation11 + $0x1ac] ss:$16 sps:$4 sm:$0xff]  }
 0x648   :  { %10130 = vmatpush1.bf16.msra.mxu1 %v12600_v17  ;;  %10088 = vmatprep.subr.bf16.mxu0 %v12605_v19  ;;  %v12632_v17 = vld [vmem:[#allocation11 + $0x3ac] ss:$16 sps:$4 sm:$0xff]   ;;  %v12627_v19 = vld [vmem:[#allocation11 + $0x1a8] ss:$16 sps:$4 sm:$0xff]  }
 0x649   :  { %10131 = vmatprep.subr.bf16.mxu1 %v12608_v35  ;;  %v12630_v35 = vld [vmem:[#allocation11 + $0x3a8] ss:$16 sps:$4 sm:$0xff]  }
 0x64b   :  { %10089 = vmatpush1.bf16.msra.mxu0 %v12603_v47  ;;  %v12635_v47 = vld [vmem:[#allocation11 + $0x18c] ss:$16 sps:$4 sm:$0xff]  }
 0x64c   :  { %10132 = vmatpush1.bf16.msra.mxu1 %v12606_v52  ;;  %10090 = vmatprep.subr.bf16.mxu0 %v12611_v9  ;;  %v12638_v52 = vld [vmem:[#allocation11 + $0x38c] ss:$16 sps:$4 sm:$0xff]   ;;  %v12633_v9 = vld [vmem:[#allocation11 + $0x188] ss:$16 sps:$4 sm:$0xff]  }
 0x64d   :  { %10133 = vmatprep.subr.bf16.mxu1 %v12614_v49  ;;  %v12636_v49 = vld [vmem:[#allocation11 + $0x388] ss:$16 sps:$4 sm:$0xff]  }
 0x64f   :  { %10091 = vmatpush1.bf16.msra.mxu0 %v12609_v12  ;;  %v12641_v12 = vld [vmem:[#allocation11 + $0x16c] ss:$16 sps:$4 sm:$0xff]  }
 0x650   :  { %10134 = vmatpush1.bf16.msra.mxu1 %v12612_v31  ;;  %10092 = vmatprep.subr.bf16.mxu0 %v12617_v51  ;;  %v12644_v31 = vld [vmem:[#allocation11 + $0x36c] ss:$16 sps:$4 sm:$0xff]   ;;  %v12639_v51 = vld [vmem:[#allocation11 + $0x168] ss:$16 sps:$4 sm:$0xff]  }
 0x651   :  { %10135 = vmatprep.subr.bf16.mxu1 %v12620_v26  ;;  %v12642_v26 = vld [vmem:[#allocation11 + $0x368] ss:$16 sps:$4 sm:$0xff]  }
 0x653   :  { %10093 = vmatpush2.bf16.msra.mxu0 %v12615_v13  ;;  %v12647_v13 = vld [vmem:[#allocation11 + $0x14c] ss:$16 sps:$4 sm:$0xff]  }
 0x654   :  { %10136 = vmatpush2.bf16.msra.mxu1 %v12618_v29  ;;  %10094 = vmatprep.subr.bf16.mxu0 %v12623_v33  ;;  %v12650_v29 = vld [vmem:[#allocation11 + $0x34c] ss:$16 sps:$4 sm:$0xff]   ;;  %v12645_v33 = vld [vmem:[#allocation11 + $0x148] ss:$16 sps:$4 sm:$0xff]  }
 0x655   :  { %10137 = vmatprep.subr.bf16.mxu1 %v12626_v3  ;;  %v12648_v3 = vld [vmem:[#allocation11 + $0x348] ss:$16 sps:$4 sm:$0xff]  }
 0x657   :  { %10095 = vmatpush2.bf16.msra.mxu0 %v12621_v15  ;;  %v12653_v15 = vld [vmem:[#allocation11 + $0x12c] ss:$16 sps:$4 sm:$0xff]  }
 0x658   :  { %10138 = vmatpush2.bf16.msra.mxu1 %v12624_v36  ;;  %10096 = vmatprep.subr.bf16.mxu0 %v12629_v5  ;;  %v12656_v36 = vld [vmem:[#allocation11 + $0x32c] ss:$16 sps:$4 sm:$0xff]   ;;  %v12651_v5 = vld [vmem:[#allocation11 + $0x128] ss:$16 sps:$4 sm:$0xff]  }
 0x659   :  { %10139 = vmatprep.subr.bf16.mxu1 %v12632_v17  ;;  %v12654_v17 = vld [vmem:[#allocation11 + $0x328] ss:$16 sps:$4 sm:$0xff]  }
 0x65b   :  { %10097 = vmatpush2.bf16.msra.mxu0 %v12627_v19  ;;  %v12659_v19 = vld [vmem:[#allocation11 + $0x10c] ss:$16 sps:$4 sm:$0xff]  }
 0x65c   :  { %10140 = vmatpush2.bf16.msra.mxu1 %v12630_v35  ;;  %10098 = vmatprep.subr.bf16.mxu0 %v12635_v47  ;;  %v12662_v35 = vld [vmem:[#allocation11 + $0x30c] ss:$16 sps:$4 sm:$0xff]   ;;  %v12657_v47 = vld [vmem:[#allocation11 + $0x108] ss:$16 sps:$4 sm:$0xff]  }
 0x65d   :  { %10141 = vmatprep.subr.bf16.mxu1 %v12638_v52  ;;  %v12660_v52 = vld [vmem:[#allocation11 + $0x308] ss:$16 sps:$4 sm:$0xff]  }
 0x65f   :  { %10099 = vmatpush2.bf16.msra.mxu0 %v12633_v9 }
 0x660   :  { %10142 = vmatpush2.bf16.msra.mxu1 %v12636_v49  ;;  %10100 = vmatprep.subr.bf16.mxu0 %v12641_v12 }
 0x661   :  { %10143 = vmatprep.subr.bf16.mxu1 %v12644_v31 }
 0x663   :  { %10101 = vmatpush2.bf16.msra.mxu0 %v12639_v51 }
 0x664   :  { %10144 = vmatpush2.bf16.msra.mxu1 %v12642_v26  ;;  %10102 = vmatprep.subr.bf16.mxu0 %v12647_v13 }
 0x665   :  { %10145 = vmatprep.subr.bf16.mxu1 %v12650_v29 }
 0x667   :  { %10103 = vmatpush2.bf16.msra.mxu0 %v12645_v33 }
 0x668   :  { %10146 = vmatpush2.bf16.msra.mxu1 %v12648_v3  ;;  %10104 = vmatprep.subr.bf16.mxu0 %v12653_v15 }
 0x669   :  { %10147 = vmatprep.subr.bf16.mxu1 %v12656_v36 }
 0x66b   :  { %10105 = vmatpush2.bf16.msra.mxu0 %v12651_v5 }
 0x66c   :  { %10148 = vmatpush2.bf16.msra.mxu1 %v12654_v17  ;;  %10106 = vmatprep.subr.bf16.mxu0 %v12659_v19 }
 0x66d   :  { %10149 = vmatprep.subr.bf16.mxu1 %v12662_v35 }
 0x66f   :  { %10107 = vmatpush2.bf16.msra.mxu0 %v12657_v47 }
 0x670   :  { %10150 = vmatpush2.bf16.msra.mxu1 %v12660_v52 }
 0x672   :  { %v9212_v9 = vpop.f32.mrf.mxu0  ;;  %10109 = vmatmul.mubr.bf16.vlgmr.msra.gmra.mxu0 %v13190_v14 }
 0x673   :  { %v9213_v49 = vadd.f32 %v9212_v9, %v13688_v8  ;;  %v9255_v12 = vpop.f32.mrf.mxu1  ;;  %10152 = vmatmul.mubr.bf16.vlgmr.msra.gmra.mxu1 %v13198_v18 }
 0x674   :  { %v9214_v31 = vpop.f32.mrf.mxu0 }
 0x675   :  { %v9256_v51 = vadd.f32 %v9255_v12, %v9213_v49  ;;  %v9215_v26 = vadd.f32 %v9214_v31, %v13692_v30  ;;  %v9257_v13 = vpop.f32.mrf.mxu1 }
 0x676   :  { %v9216_v29 = vpop.f32.mrf.mxu0 }
 0x677   :  { %v9258_v33 = vadd.f32 %v9257_v13, %v9215_v26  ;;  %v9217_v3 = vadd.f32 %v9216_v29, %v13695_v27  ;;  %v9259_v15 = vpop.f32.mrf.mxu1 }
 0x678   :  { %v9218_v36 = vpop.f32.mrf.mxu0 }
 0x679   :  { %v9260_v5 = vadd.f32 %v9259_v15, %v9217_v3  ;;  %v9219_v17 = vadd.f32 %v9218_v36, %v13698_v38  ;;  %v9261_v14 = vpop.f32.mrf.mxu1  ;;  %v8742_v15 = vadd.f32 %v13614_v41, %v13612_v6  ;;  %v8744_v36 = vadd.f32 %v13618_v45, %v13616_v54 }
 0x67b   :  { %v9262_v19 = vadd.f32 %v9261_v14, %v9219_v17  ;;  %v8746_v17 = vadd.f32 %v13622_v1, %v13620_v37 }
 0x6b2   :  { %v9298_v8 = vpop.f32.mrf.mxu0 }
 0x6b3   :  { %v9299_v35 = vadd.f32 %v9298_v8, %v9256_v51  ;;  %v9341_v47 = vpop.f32.mrf.mxu1  ;;  %v8740_v51 = vadd.f32 %v13610_v44, %v13608_v62  ;;  %v8789_v62 = vadd.f32 %v13636_v59, %v8746_v17 }
 0x6b4   :  { %v9300_v18 = vpop.f32.mrf.mxu0 }
 0x6b5   :  { %v13706_v52 = vadd.f32 %v9341_v47, %v9299_v35  ;;  %v9301_v9 = vadd.f32 %v9300_v18, %v9258_v33  ;;  %v9343_v30 = vpop.f32.mrf.mxu1  ;;  %v8783_v33 = vadd.f32 %v13624_v16, %v8740_v51  ;;  %v8832_v54 = vadd.f32 %v13638_v7, %v8789_v62  ;;  %v12734_v7 = vld [vmem:[#allocation17] sm:$0xf] }
 0x6b6   :  { %v9302_v49 = vpop.f32.mrf.mxu0 }
 0x6b7   :  { %v13708_v12 = vadd.f32 %v9343_v30, %v9301_v9  ;;  %v9303_v31 = vadd.f32 %v9302_v49, %v9260_v5  ;;  %v9345_v27 = vpop.f32.mrf.mxu1  ;;  %v8785_v5 = vadd.f32 %v13628_v20, %v8742_v15  ;;  %v8826_v14 = vadd.f32 %v13626_v39, %v8783_v33 }
 0x6b8   :  { %v9304_v26 = vpop.f32.mrf.mxu0  ;;  %v8875_v16 = vadd.f32 %v13652_v40, %v8832_v54 }
 0x6b9   :  { %v13710_v13 = vadd.f32 %v9345_v27, %v9303_v31  ;;  %v9305_v29 = vadd.f32 %v9304_v26, %v9262_v19  ;;  %v9347_v38 = vpop.f32.mrf.mxu1  ;;  %v8787_v19 = vadd.f32 %v13632_v48, %v8744_v36  ;;  %v8828_v8 = vadd.f32 %v13630_v34, %v8785_v5 }
 0x6ba   :  { %v8869_v44 = vadd.f32 %v13640_v60, %v8826_v14  ;;  %v8918_v48 = vadd.f32 %v13654_v63, %v8875_v16  ;;  %v277_v60 = vrot.slane %v12734_v7, %v13121_v58 }
 0x6bb   :  { %v13712_v3 = vadd.f32 %v9347_v38, %v9305_v29  ;;  %v8830_v6 = vadd.f32 %v13634_v21, %v8787_v19  ;;  %v8871_v41 = vadd.f32 %v13644_v61, %v8828_v8  ;;  %v281_v61 = vrot.slane %v12734_v7, %v13115_v55 }
 0x6bc   :  { %v8912_v45 = vadd.f32 %v13642_v50, %v8869_v44  ;;  %v294_v63 = vadd.f32 %v277_v60, %v13146_v4  ;;  %v298_v31 = vadd.f32 %v277_v60, %v13148_v28 }
 0x6bd   :  { %v8873_v37 = vadd.f32 %v13648_v32, %v8830_v6  ;;  %v8914_v1 = vadd.f32 %v13646_v53, %v8871_v41  ;;  %v8961_v32 = vadd.f32 %v13668_v22, %v8918_v48  ;;  %v295_v47 = vadd.f32 %v281_v61, %v13142_v23 }
 0x6be   :  { %v8955_v39 = vadd.f32 %v13656_v56, %v8912_v45  ;;  %v299_v29 = vadd.f32 %v281_v61, %v13144_v24 }
 0x6bf   :  { %v8916_v20 = vadd.f32 %v13650_v25, %v8873_v37  ;;  %v8957_v34 = vadd.f32 %v13660_v0, %v8914_v1  ;;  %v9004_v18 = vadd.f32 %v13670_v11, %v8961_v32 }
 0x6c0   :  { %v8998_v21 = vadd.f32 %v13658_v46, %v8955_v39 }
 0x6c1   :  { %v8959_v59 = vadd.f32 %v13664_v57, %v8916_v20  ;;  %v9000_v53 = vadd.f32 %v13662_v2, %v8957_v34 }
 0x6c3   :  { %v9002_v0 = vadd.f32 %v13666_v10, %v8959_v59 }
 0x6f2   :  { %v10024_v50 = vpop.f32.mrf.mxu0 }
 0x6f3   :  { %v10025_v40 = vadd.f32 %v10024_v50, %v8998_v21  ;;  %v10067_v25 = vpop.f32.mrf.mxu1 }
 0x6f4   :  { %v10026_v56 = vpop.f32.mrf.mxu0 }
 0x6f5   :  { %v10068_v46 = vadd.f32 %v10067_v25, %v10025_v40  ;;  %v10027_v35 = vadd.f32 %v10026_v56, %v9000_v53  ;;  %v10069_v57 = vpop.f32.mrf.mxu1 }
 0x6f6   :  { %v10028_v58 = vpop.f32.mrf.mxu0 }
 0x6f7   :  { %v10162_v55 = vadd.f32 %v10068_v46, %v294_v63  ;;  %v10070_v9 = vadd.f32 %v10069_v57, %v10027_v35  ;;  %v10029_v2 = vadd.f32 %v10028_v58, %v9002_v0  ;;  %v10071_v30 = vpop.f32.mrf.mxu1 }
 0x6f8   :  { %v10030_v22 = vpop.f32.mrf.mxu0 }
 0x6f9   :  { %10170 = vst [vmem:[#allocation18] sm:$0xff] %v10162_v55  ;;  %v10163_v49 = vadd.f32 %v10070_v9, %v295_v47  ;;  %v10072_v10 = vadd.f32 %v10071_v30, %v10029_v2  ;;  %v10031_v27 = vadd.f32 %v10030_v22, %v9004_v18  ;;  %v10073_v4 = vpop.f32.mrf.mxu1 }
 0x6fb   :  { %10171 = vst [vmem:[#allocation18 + $0x8] sm:$0xff] %v10163_v49  ;;  %v10166_v26 = vadd.f32 %v10072_v10, %v298_v31  ;;  %v10074_v23 = vadd.f32 %v10073_v4, %v10031_v27 }
 0x6fd   :  { %10174 = vst [vmem:[#allocation18 + $0x20] sm:$0xff] %v10166_v26  ;;  %v10167_v38 = vadd.f32 %v10074_v23, %v299_v29 }
 0x6ff   :  { %10175 = vst [vmem:[#allocation18 + $0x28] sm:$0xff] %v10167_v38 }
 0x732   :  { %v10110_v11 = vpop.f32.mrf.mxu0 }
 0x733   :  { %v10111_v51 = vadd.f32 %v10110_v11, %v13706_v52  ;;  %v10153_v15 = vpop.f32.mrf.mxu1 }
 0x734   :  { %v10112_v33 = vpop.f32.mrf.mxu0 }
 0x735   :  { %v10154_v36 = vadd.f32 %v10153_v15, %v10111_v51  ;;  %v10113_v5 = vadd.f32 %v10112_v33, %v13708_v12  ;;  %v10155_v28 = vpop.f32.mrf.mxu1  ;;  %v13782_v12 = vld [vmem:[#allocation25_spill] sm:$0xff] }
 0x736   :  { %v10114_v17 = vpop.f32.mrf.mxu0 }
 0x737   :  { %v10164_v14 = vadd.f32 %v10154_v36, %v13170_v42  ;;  %v10156_v19 = vadd.f32 %v10155_v28, %v10113_v5  ;;  %v10115_v8 = vadd.f32 %v10114_v17, %v13710_v13  ;;  %v10157_v24 = vpop.f32.mrf.mxu1  ;;  %v13783_v42 = vld [vmem:[#allocation26_spill] sm:$0xff] }
 0x738   :  { %v10116_v62 = vpop.f32.mrf.mxu0 }
 0x739   :  { %10172 = vst [vmem:[#allocation18 + $0x10] sm:$0xff] %v10164_v14  ;;  %v10165_v44 = vadd.f32 %v10156_v19, %v13172_v43  ;;  %v10158_v6 = vadd.f32 %v10157_v24, %v10115_v8  ;;  %v10117_v52 = vadd.f32 %v10116_v62, %v13712_v3  ;;  %v10159_v41 = vpop.f32.mrf.mxu1 }
 0x73b   :  { %10173 = vst [vmem:[#allocation18 + $0x18] sm:$0xff] %v10165_v44  ;;  %v10168_v54 = vadd.f32 %v10158_v6, %v13782_v12  ;;  %v10160_v45 = vadd.f32 %v10159_v41, %v10117_v52 }
 0x73d   :  { %10176 = vst [vmem:[#allocation18 + $0x30] sm:$0xff] %v10168_v54  ;;  %v10169_v37 = vadd.f32 %v10160_v45, %v13783_v42 }
 0x73f   :  { %10177 = vst [vmem:[#allocation18 + $0x38] sm:$0xff] %v10169_v37 }
 0x740   :  { %12926 = shalt.err (!%p12923_p7)
}
 0x741   :  { %10189 = dma.vmem_to_hbm [thread:$0]  %s10184_s8, 1024, %s13775_s9, [#allocation5], %s12956_s12, %s12956_s12, %s12957_s13  }
 0x742   :  { %12945 = dma.done.wait [#allocation5], 1024  }
 0x743   :  { %12946 = vsyncadd [#allocation5], 4294966272 }
 0x744   :  { %10193 = vsyncpa [#allocation4], 1 }
 0x745   :  { %10194 = vsyncpa [#allocation7], 1 }
 0x746   :  { %10195 = vsyncpa [#allocation10], 1 }
 0x747   :  { %10196 = vsyncpa [#allocation13], 1 }
 0x748   :  { %10197 = vsyncpa [#allocation16], 1 }
 0x749   :  { %10198 = vsyncpa [#allocation5], 1 }

</bundles_post_ra>
